<compile_context>
chip_gen: v7x
topology: tpu7x:2x2x1
jax: 0.10.0
libtpu: 0.0.40
codegen_flags: <defaults>
</compile_context>

<pallas_src>
import functools

import jax
import jax.numpy as jnp
from jax.experimental import pallas as pl
from jax.experimental.pallas import tpu as pltpu

EPS = 1e-5


# ----------------------------------------------------------------------------
# Fused conv + folded-BN (+ residual) (+ ReLU) Pallas kernel
# ----------------------------------------------------------------------------
def _conv_bn_kernel(*refs, kh, kw, stride, wo, relu, has_residual):
    """One output tile:  out = relu( sum_rows(x_row_slab @ w_row) * scale + bias [+ res] ).

    refs (in order):
      x_ref     (P, Hpp, Wpp, Cin)   bf16  phase-split image, resident per batch
      w_ref     (kh, kw*Cin, Cout)   bf16  resident across the whole grid
      scale_ref (1, Cout)            f32   folded BatchNorm scale
      bias_ref  (1, Cout)            f32   folded BatchNorm bias
      [res_ref  (1, TM, Cout)        bf16  residual tile]
      o_ref     (1, TM, Cout)              output tile (flat spatial)
    """
    if has_residual:
        x_ref, w_ref, scale_ref, bias_ref, res_ref, o_ref = refs
    else:
        x_ref, w_ref, scale_ref, bias_ref, o_ref = refs
        res_ref = None

    _, tm, cout = o_ref.shape
    th = tm // wo
    cin = x_ref.shape[-1]
    s = stride
    # First output row of this tile; hint alignment for the dynamic slab loads.
    h0 = pl.multiple_of(pl.program_id(1) * th, th)

    acc = jnp.zeros((tm, cout), jnp.float32)
    # Static unroll over the kh row-taps.  For each row-tap the kw column-taps
    # are concatenated along Cin, so a single MXU matmul has K = kw*Cin.
    for di in range(kh):
        slabs = []
        for dj in range(kw):
            p = (di % s) * s + (dj % s)        # phase holding this tap
            r0 = h0 + di // s                  # phase-row offset (dynamic)
            c0 = dj // s                       # phase-col offset (static)
            slab = x_ref[p, pl.ds(r0, th), pl.ds(c0, wo), :]   # (TH, Wo, Cin) bf16
            slabs.append(slab.reshape(tm, cin))
        lhs = slabs[0] if kw == 1 else jnp.concatenate(slabs, axis=-1)
        acc = acc + jnp.dot(lhs, w_ref[di], preferred_element_type=jnp.float32)

    # f32 epilogue, executed exactly once per output tile.
    out = acc * scale_ref[...] + bias_ref[...]
    if has_residual:
        out = out + res_ref[0].astype(jnp.float32)
    if relu:
        out = jnp.maximum(out, 0.0)
    o_ref[0] = out.astype(o_ref.dtype)


# ----------------------------------------------------------------------------
# Wrapper: padding / phase split / BlockSpecs
# ----------------------------------------------------------------------------
def _pick_tile_h(ho, wo, target_m=256):
    """Largest divisor TH of Ho with TH*Wo <= ~256 and TH*Wo a multiple of 8."""
    best = 1
    for th in range(1, ho + 1):
        if ho % th:
            continue
        m = th * wo
        if m <= max(target_m, wo) and (m % 8 == 0 or th == 1):
            best = th
    return best


def _pad_and_phase_split(x, pad, stride):
    """NHWC -> (N*stride^2, Hpp, Wpp, C): zero-pad then space-to-depth by stride.

    Image n's phase (r, c) sits at row n*stride^2 + r*stride + c and holds padded
    pixels (r::stride, c::stride).  Total traffic ~1x the input (no im2col dup).
    """
    n, h, w, c = x.shape
    xp = jnp.pad(x, ((0, 0), (pad, pad), (pad, pad), (0, 0)))
    hp, wp = h + 2 * pad, w + 2 * pad
    if stride == 1:
        return xp, hp, wp
    s = stride
    hp2 = ((hp + s - 1) // s) * s
    wp2 = ((wp + s - 1) // s) * s
    xp = jnp.pad(xp, ((0, 0), (0, hp2 - hp), (0, wp2 - wp), (0, 0)))
    hpp, wpp = hp2 // s, wp2 // s
    ph = xp.reshape(n, hpp, s, wpp, s, c)
    ph = jnp.transpose(ph, (0, 2, 4, 1, 3, 5))          # (N, s, s, Hpp, Wpp, C)
    return ph.reshape(n * s * s, hpp, wpp, c), hpp, wpp


def conv_bn(x, w_packed, bn, *, k, stride, pad, relu, residual=None,
            out_dtype=jnp.float32):
    """Fused conv(kxk, stride, pad) + BatchNorm (+residual) (+ReLU).  x: NHWC."""
    n, h, w, cin = x.shape
    kh, kcin, cout = w_packed.shape
    assert kh == k and kcin == k * cin
    ho = (h + 2 * pad - k) // stride + 1
    wo = (w + 2 * pad - k) // stride + 1

    # 1x1 convs only ever read phase (0,0): realize the stride as a cheap slice.
    if k == 1 and stride > 1:
        x = x[:, ::stride, ::stride, :]
        stride = 1
        n, h, w, cin = x.shape

    # Single cast+pad pass (no-op cast when the input is already bf16, e.g. conv2).
    phases, hpp, wpp = _pad_and_phase_split(x.astype(jnp.bfloat16), pad, stride)
    p = stride * stride

    scale = (bn["gamma"] / jnp.sqrt(bn["var"] + EPS)).astype(jnp.float32)
    bias = (bn["beta"] - bn["mean"] * scale).astype(jnp.float32)
    scale2 = scale.reshape(1, cout)
    bias2 = bias.reshape(1, cout)

    th = _pick_tile_h(ho, wo)
    tm = th * wo
    grid = (n, ho // th)
    out_itemsize = 2 if out_dtype == jnp.bfloat16 else 4

    in_specs = [
        # whole phase-split image of batch n (resident across the row-tile axis)
        pl.BlockSpec((p, hpp, wpp, cin), lambda ni, hi: (ni, 0, 0, 0)),
        # weights / folded BN: constant index_map -> fetched once, stay in VMEM
        pl.BlockSpec((k, k * cin, cout), lambda ni, hi: (0, 0, 0)),
        pl.BlockSpec((1, cout), lambda ni, hi: (0, 0)),
        pl.BlockSpec((1, cout), lambda ni, hi: (0, 0)),
    ]
    args = [phases, w_packed, scale2, bias2]
    res_bytes = 0
    if residual is not None:
        res_flat = residual.reshape(n, ho * wo, cout).astype(jnp.bfloat16)
        in_specs.append(pl.BlockSpec((1, tm, cout), lambda ni, hi: (ni, hi, 0)))
        args.append(res_flat)
        res_bytes = res_flat.size * 2

    flops = 2 * n * ho * wo * k * k * cin * cout
    bytes_accessed = (phases.size * 2 + w_packed.size * 2
                      + n * ho * wo * cout * out_itemsize + res_bytes)

    # VMEM footprint estimate (double-buffered blocks + acc + lhs temp) -> limit.
    footprint = 2 * (p * hpp * wpp * cin * 2            # image block
                     + k * k * cin * cout * 2           # weights
                     + tm * cout * out_itemsize         # output tile
                     + (tm * cout * 2 if residual is not None else 0))
    footprint += tm * cout * 4 + tm * k * cin * 2       # f32 acc + concat lhs
    vmem_limit = int(min(32 * 1024 * 1024, max(16 * 1024 * 1024, 4 * footprint)))

    kernel = functools.partial(_conv_bn_kernel, kh=k, kw=k, stride=stride,
                               wo=wo, relu=relu,
                               has_residual=residual is not None)
    out_flat = pl.pallas_call(
        kernel,
        out_shape=jax.ShapeDtypeStruct((n, ho * wo, cout), out_dtype),
        grid=grid,
        in_specs=in_specs,
        out_specs=pl.BlockSpec((1, tm, cout), lambda ni, hi: (ni, hi, 0)),
        compiler_params=pltpu.CompilerParams(
            # batch axis parallel (dual-TC shards distinct batch elements and does
            # not duplicate the per-batch image block); row-tile axis arbitrary.
            dimension_semantics=("parallel", "arbitrary"),
            vmem_limit_bytes=vmem_limit,
        ),
        cost_estimate=pl.CostEstimate(flops=int(flops), transcendentals=0,
                                      bytes_accessed=int(bytes_accessed)),
    )(*args)
    return out_flat.reshape(n, ho, wo, cout)


# ----------------------------------------------------------------------------
# BasicBlock forward (matches the PyTorch module, inference-mode BatchNorm)
# ----------------------------------------------------------------------------
def basic_block_forward(params, x_nchw):
    x = jnp.transpose(x_nchw, (0, 2, 3, 1))                       # NCHW -> NHWC
    s = params["stride"]

    out = conv_bn(x, params["conv1_w"], params["bn1"],
                  k=3, stride=s, pad=1, relu=True, out_dtype=jnp.bfloat16)
    if "down_w" in params:
        identity = conv_bn(x, params["down_w"], params["down_bn"],
                           k=1, stride=s, pad=0, relu=False,
                           out_dtype=jnp.bfloat16)
    else:
        identity = x.astype(jnp.bfloat16)
    out = conv_bn(out, params["conv2_w"], params["bn2"],
                  k=3, stride=1, pad=1, relu=True, residual=identity,
                  out_dtype=jnp.float32)
    return jnp.transpose(out, (0, 3, 1, 2))                       # back to NCHW


# ----------------------------------------------------------------------------
# Pure-JAX reference (same bf16 operands / bf16 intermediates, f32 accumulation)
# ----------------------------------------------------------------------------
def _conv_bn_ref(x, w_packed, bn, *, k, stride, pad, relu, residual=None):
    kh, kcin, cout = w_packed.shape
    cin = kcin // k
    w = w_packed.reshape(k, k, cin, cout)                         # HWIO, bf16
    y = jax.lax.conv_general_dilated(
        x.astype(jnp.bfloat16), w, window_strides=(stride, stride),
        padding=[(pad, pad), (pad, pad)],
        dimension_numbers=("NHWC", "HWIO", "NHWC"),
        preferred_element_type=jnp.float32)
    scale = bn["gamma"] / jnp.sqrt(bn["var"] + EPS)
    y = y * scale + (bn["beta"] - bn["mean"] * scale)
    if residual is not None:
        y = y + residual.astype(jnp.float32)
    if relu:
        y = jnp.maximum(y, 0.0)
    return y


def basic_block_reference(params, x_nchw):
    x = jnp.transpose(x_nchw, (0, 2, 3, 1)).astype(jnp.float32)
    s = params["stride"]
    out = _conv_bn_ref(x, params["conv1_w"], params["bn1"],
                       k=3, stride=s, pad=1, relu=True).astype(jnp.bfloat16)
    if "down_w" in params:
        identity = _conv_bn_ref(x, params["down_w"], params["down_bn"],
                                k=1, stride=s, pad=0,
                                relu=False).astype(jnp.bfloat16)
    else:
        identity = x.astype(jnp.bfloat16)
    out = _conv_bn_ref(out, params["conv2_w"], params["bn2"],
                       k=3, stride=1, pad=1, relu=True, residual=identity)
    return jnp.transpose(out, (0, 3, 1, 2))


# ----------------------------------------------------------------------------
# Parameter construction (mirrors the PyTorch module's __init__ shapes)
# ----------------------------------------------------------------------------
def make_basic_block_params(key, inplanes, planes, stride):
    with_downsample = (stride != 1) or (inplanes != planes)
    ki = iter(jax.random.split(key, 16))

    def conv_w(k_rng, cout, cin, ksize):
        # kaiming_normal_(fan_out) in PyTorch (Cout,Cin,kh,kw) layout, then
        # pre-packed ONCE to the kernel's (kh, kw*Cin, Cout) bf16 layout.
        fan_out = cout * ksize * ksize
        std = (2.0 / fan_out) ** 0.5
        w = jax.random.normal(k_rng, (cout, cin, ksize, ksize), jnp.float32) * std
        w = jnp.transpose(w, (2, 3, 1, 0))                   # (kh, kw, Cin, Cout)
        w = w.reshape(ksize, ksize * cin, cout)
        return w.astype(jnp.bfloat16)

    def bn_params(k_rng, c):
        k1, k2, k3, k4 = jax.random.split(k_rng, 4)
        # Non-trivial running stats / affine so the folded-BN epilogue is exercised.
        return dict(
            gamma=jax.random.uniform(k1, (c,), jnp.float32, 0.5, 1.5),
            beta=jax.random.normal(k2, (c,), jnp.float32) * 0.1,
            mean=jax.random.normal(k3, (c,), jnp.float32) * 0.1,
            var=jax.random.uniform(k4, (c,), jnp.float32, 0.5, 1.5),
        )

    params = dict(
        stride=stride,
        conv1_w=conv_w(next(ki), planes, inplanes, 3),
        bn1=bn_params(next(ki), planes),
        conv2_w=conv_w(next(ki), planes, planes, 3),
        bn2=bn_params(next(ki), planes),
    )
    if with_downsample:
        params["down_w"] = conv_w(next(ki), planes, inplanes, 1)
        params["down_bn"] = bn_params(next(ki), planes)
    return params


# ----------------------------------------------------------------------------
if __name__ == "__main__":
    key = jax.random.PRNGKey(0)
    k1, k2, k3, k4 = jax.random.split(key, 4)

    # Config A: stride-2 block with 1x1 downsample (64 -> 128 channels).
    params_a = make_basic_block_params(k1, inplanes=64, planes=128, stride=2)
    x_a = jax.random.normal(k2, (2, 64, 32, 32), jnp.float32)      # NCHW
    # Config B: stride-1 identity block (128 -> 128 channels, no downsample).
    params_b = make_basic_block_params(k3, inplanes=128, planes=128, stride=1)
    x_b = jax.random.normal(k4, (2, 128, 16, 16), jnp.float32)

    for name, prm, x in (("stride2_downsample", params_a, x_a),
                         ("stride1_identity", params_b, x_b)):
        fwd = jax.jit(functools.partial(basic_block_forward, prm))
        ref = jax.jit(functools.partial(basic_block_reference, prm))
        y = jax.block_until_ready(fwd(x))
        y_ref = jax.block_until_ready(ref(x))
        assert y.shape == y_ref.shape
        assert bool(jnp.all(jnp.isfinite(y)))
        if not bool(jnp.allclose(y, y_ref, atol=3e-2, rtol=3e-2)):
            raise AssertionError(f"Pallas BasicBlock mismatch vs reference ({name})")

    print("KERNEL_OK")
</pallas_src>

<mosaic_0001>
module attributes {stable_mosaic.version = 11 : i64} {
  func.func @_conv_bn_kernel(%arg0: i32, %arg1: i32, %arg2: memref<1x16x16x64xbf16, #tpu.memory_space<vmem>>, %arg3: memref<1x64x128xbf16, #tpu.memory_space<vmem>>, %arg4: memref<1x128xf32, #tpu.memory_space<vmem>>, %arg5: memref<1x128xf32, #tpu.memory_space<vmem>>, %arg6: memref<1x256x128xbf16, #tpu.memory_space<vmem>>) attributes {dimension_semantics = [#tpu.dimension_semantics<parallel>, #tpu.dimension_semantics<arbitrary>], iteration_bounds = array<i64: 2, 1>, scalar_prefetch = 0 : i64, scratch_operands = 0 : i64, tpu.core_type = #tpu.core_type<tc>, window_params = [{transform_indices = @transform_0, window_bounds = array<i64: 1, 16, 16, 64>}, {pipeline_mode = #tpu.pipeline_mode<synchronous>, transform_indices = @transform_1, window_bounds = array<i64: 1, 64, 128>}, {pipeline_mode = #tpu.pipeline_mode<synchronous>, transform_indices = @transform_2, window_bounds = array<i64: 1, 128>}, {pipeline_mode = #tpu.pipeline_mode<synchronous>, transform_indices = @transform_3, window_bounds = array<i64: 1, 128>}, {transform_indices = @transform_4, window_bounds = array<i64: 1, 256, 128>}]} {
    %c16_i32 = arith.constant 16 : i32
    %0 = arith.muli %arg1, %c16_i32 : i32
    %1 = tpu.assume_multiple %0, 16 : i32
    %cst = arith.constant 0.000000e+00 : f32
    %2 = vector.broadcast %cst : f32 to vector<256x128xf32>
    %c0_i32 = arith.constant 0 : i32
    %3 = arith.addi %1, %c0_i32 : i32
    %c0 = arith.constant 0 : index
    %4 = arith.index_cast %3 : i32 to index
    %c0_0 = arith.constant 0 : index
    %c0_1 = arith.constant 0 : index
    %5 = vector.load %arg2[%c0, %4, %c0_0, %c0_1] : memref<1x16x16x64xbf16, #tpu.memory_space<vmem>>, vector<1x16x16x64xbf16>
    %6 = vector.shape_cast %5 : vector<1x16x16x64xbf16> to vector<16x16x64xbf16>
    %7 = vector.shape_cast %6 : vector<16x16x64xbf16> to vector<256x64xbf16>
    %c0_2 = arith.constant 0 : index
    %c0_3 = arith.constant 0 : index
    %c0_4 = arith.constant 0 : index
    %8 = vector.load %arg3[%c0_2, %c0_3, %c0_4] : memref<1x64x128xbf16, #tpu.memory_space<vmem>>, vector<1x64x128xbf16>
    %9 = vector.shape_cast %8 : vector<1x64x128xbf16> to vector<64x128xbf16>
    %cst_5 = arith.constant dense<0.000000e+00> : vector<256x128xf32>
    %10 = tpu.matmul %7, %9, %cst_5 {dimension_numbers = #tpu.dot_dimension_numbers<[1], [0], [0], [1], [0, 0, 1, 1], [], []>} : vector<256x64xbf16>, vector<64x128xbf16>, vector<256x128xf32> -> vector<256x128xf32>
    %11 = arith.addf %2, %10 : vector<256x128xf32>
    %c0_6 = arith.constant 0 : index
    %c0_7 = arith.constant 0 : index
    %12 = vector.load %arg4[%c0_6, %c0_7] : memref<1x128xf32, #tpu.memory_space<vmem>>, vector<1x128xf32>
    %13 = vector.broadcast %12 : vector<1x128xf32> to vector<256x128xf32>
    %14 = arith.mulf %11, %13 : vector<256x128xf32>
    %c0_8 = arith.constant 0 : index
    %c0_9 = arith.constant 0 : index
    %15 = vector.load %arg5[%c0_8, %c0_9] : memref<1x128xf32, #tpu.memory_space<vmem>>, vector<1x128xf32>
    %16 = vector.broadcast %15 : vector<1x128xf32> to vector<256x128xf32>
    %17 = arith.addf %14, %16 : vector<256x128xf32>
    %18 = arith.truncf %17 : vector<256x128xf32> to vector<256x128xbf16>
    %c0_10 = arith.constant 0 : index
    %c0_11 = arith.constant 0 : index
    %c0_12 = arith.constant 0 : index
    %19 = vector.load %arg6[%c0_10, %c0_11, %c0_12] : memref<1x256x128xbf16, #tpu.memory_space<vmem>>, vector<1x256x128xbf16>
    %20 = vector.shape_cast %19 : vector<1x256x128xbf16> to vector<256x128xbf16>
    %21 = vector.shape_cast %18 : vector<256x128xbf16> to vector<1x256x128xbf16>
    tpu.vector_store %arg6[%c0_10, %c0_11, %c0_12], %21 {strides = array<i32>} : memref<1x256x128xbf16, #tpu.memory_space<vmem>>, vector<1x256x128xbf16>,
    return
  }
  func.func @transform_0(%arg0: i32, %arg1: i32) -> (i32, i32, i32, i32) {
    %c0_i32 = arith.constant 0 : i32
    %c0_i32_0 = arith.constant 0 : i32
    %c0_i32_1 = arith.constant 0 : i32
    %c0_i32_2 = arith.constant 0 : i32
    return %arg0, %c0_i32, %c0_i32_0, %c0_i32_1 : i32, i32, i32, i32
  }
  func.func @transform_1(%arg0: i32, %arg1: i32) -> (i32, i32, i32) {
    %c0_i32 = arith.constant 0 : i32
    %c0_i32_0 = arith.constant 0 : i32
    %c0_i32_1 = arith.constant 0 : i32
    %c0_i32_2 = arith.constant 0 : i32
    return %c0_i32, %c0_i32_0, %c0_i32_1 : i32, i32, i32
  }
  func.func @transform_2(%arg0: i32, %arg1: i32) -> (i32, i32) {
    %c0_i32 = arith.constant 0 : i32
    %c0_i32_0 = arith.constant 0 : i32
    %c0_i32_1 = arith.constant 0 : i32
    return %c0_i32, %c0_i32_0 : i32, i32
  }
  func.func @transform_3(%arg0: i32, %arg1: i32) -> (i32, i32) {
    %c0_i32 = arith.constant 0 : i32
    %c0_i32_0 = arith.constant 0 : i32
    %c0_i32_1 = arith.constant 0 : i32
    return %c0_i32, %c0_i32_0 : i32, i32
  }
  func.func @transform_4(%arg0: i32, %arg1: i32) -> (i32, i32, i32) {
    %c0_i32 = arith.constant 0 : i32
    %c0_i32_0 = arith.constant 0 : i32
    return %arg0, %arg1, %c0_i32 : i32, i32, i32
  }
}

module attributes {stable_mosaic.version = 11 : i64} {
  func.func @_conv_bn_kernel(%arg0: i32, %arg1: i32, %arg2: memref<4x17x17x64xbf16, #tpu.memory_space<vmem>>, %arg3: memref<3x192x128xbf16, #tpu.memory_space<vmem>>, %arg4: memref<1x128xf32, #tpu.memory_space<vmem>>, %arg5: memref<1x128xf32, #tpu.memory_space<vmem>>, %arg6: memref<1x256x128xbf16, #tpu.memory_space<vmem>>) attributes {dimension_semantics = [#tpu.dimension_semantics<parallel>, #tpu.dimension_semantics<arbitrary>], iteration_bounds = array<i64: 2, 1>, scalar_prefetch = 0 : i64, scratch_operands = 0 : i64, tpu.core_type = #tpu.core_type<tc>, window_params = [{transform_indices = @transform_0, window_bounds = array<i64: 4, 17, 17, 64>}, {pipeline_mode = #tpu.pipeline_mode<synchronous>, transform_indices = @transform_1, window_bounds = array<i64: 3, 192, 128>}, {pipeline_mode = #tpu.pipeline_mode<synchronous>, transform_indices = @transform_2, window_bounds = array<i64: 1, 128>}, {pipeline_mode = #tpu.pipeline_mode<synchronous>, transform_indices = @transform_3, window_bounds = array<i64: 1, 128>}, {transform_indices = @transform_4, window_bounds = array<i64: 1, 256, 128>}]} {
    %c16_i32 = arith.constant 16 : i32
    %0 = arith.muli %arg1, %c16_i32 : i32
    %1 = tpu.assume_multiple %0, 16 : i32
    %cst = arith.constant 0.000000e+00 : f32
    %2 = vector.broadcast %cst : f32 to vector<256x128xf32>
    %c0_i32 = arith.constant 0 : i32
    %3 = arith.addi %1, %c0_i32 : i32
    %c0 = arith.constant 0 : index
    %4 = arith.index_cast %3 : i32 to index
    %c0_0 = arith.constant 0 : index
    %c0_1 = arith.constant 0 : index
    %5 = vector.load %arg2[%c0, %4, %c0_0, %c0_1] : memref<4x17x17x64xbf16, #tpu.memory_space<vmem>>, vector<1x16x16x64xbf16>
    %6 = vector.shape_cast %5 : vector<1x16x16x64xbf16> to vector<16x16x64xbf16>
    %7 = vector.shape_cast %6 : vector<16x16x64xbf16> to vector<256x64xbf16>
    %c0_i32_2 = arith.constant 0 : i32
    %8 = arith.addi %1, %c0_i32_2 : i32
    %c1 = arith.constant 1 : index
    %9 = arith.index_cast %8 : i32 to index
    %c0_3 = arith.constant 0 : index
    %c0_4 = arith.constant 0 : index
    %10 = vector.load %arg2[%c1, %9, %c0_3, %c0_4] : memref<4x17x17x64xbf16, #tpu.memory_space<vmem>>, vector<1x16x16x64xbf16>
    %11 = vector.shape_cast %10 : vector<1x16x16x64xbf16> to vector<16x16x64xbf16>
    %12 = vector.shape_cast %11 : vector<16x16x64xbf16> to vector<256x64xbf16>
    %c0_i32_5 = arith.constant 0 : i32
    %13 = arith.addi %1, %c0_i32_5 : i32
    %c0_6 = arith.constant 0 : index
    %14 = arith.index_cast %13 : i32 to index
    %c1_7 = arith.constant 1 : index
    %c0_8 = arith.constant 0 : index
    %15 = vector.load %arg2[%c0_6, %14, %c1_7, %c0_8] : memref<4x17x17x64xbf16, #tpu.memory_space<vmem>>, vector<1x16x16x64xbf16>
    %16 = vector.shape_cast %15 : vector<1x16x16x64xbf16> to vector<16x16x64xbf16>
    %17 = vector.shape_cast %16 : vector<16x16x64xbf16> to vector<256x64xbf16>
    %18 = tpu.concatenate %7, %12, %17 in 1 : vector<256x64xbf16>, vector<256x64xbf16>, vector<256x64xbf16> -> vector<256x192xbf16>
    %c0_9 = arith.constant 0 : index
    %c0_10 = arith.constant 0 : index
    %c0_11 = arith.constant 0 : index
    %19 = vector.load %arg3[%c0_9, %c0_10, %c0_11] : memref<3x192x128xbf16, #tpu.memory_space<vmem>>, vector<1x192x128xbf16>
    %20 = vector.shape_cast %19 : vector<1x192x128xbf16> to vector<192x128xbf16>
    %cst_12 = arith.constant dense<0.000000e+00> : vector<256x128xf32>
    %21 = tpu.matmul %18, %20, %cst_12 {dimension_numbers = #tpu.dot_dimension_numbers<[1], [0], [0], [1], [0, 0, 1, 1], [], []>} : vector<256x192xbf16>, vector<192x128xbf16>, vector<256x128xf32> -> vector<256x128xf32>
    %22 = arith.addf %2, %21 : vector<256x128xf32>
    %c0_i32_13 = arith.constant 0 : i32
    %23 = arith.addi %1, %c0_i32_13 : i32
    %c2 = arith.constant 2 : index
    %24 = arith.index_cast %23 : i32 to index
    %c0_14 = arith.constant 0 : index
    %c0_15 = arith.constant 0 : index
    %25 = vector.load %arg2[%c2, %24, %c0_14, %c0_15] : memref<4x17x17x64xbf16, #tpu.memory_space<vmem>>, vector<1x16x16x64xbf16>
    %26 = vector.shape_cast %25 : vector<1x16x16x64xbf16> to vector<16x16x64xbf16>
    %27 = vector.shape_cast %26 : vector<16x16x64xbf16> to vector<256x64xbf16>
    %c0_i32_16 = arith.constant 0 : i32
    %28 = arith.addi %1, %c0_i32_16 : i32
    %c3 = arith.constant 3 : index
    %29 = arith.index_cast %28 : i32 to index
    %c0_17 = arith.constant 0 : index
    %c0_18 = arith.constant 0 : index
    %30 = vector.load %arg2[%c3, %29, %c0_17, %c0_18] : memref<4x17x17x64xbf16, #tpu.memory_space<vmem>>, vector<1x16x16x64xbf16>
    %31 = vector.shape_cast %30 : vector<1x16x16x64xbf16> to vector<16x16x64xbf16>
    %32 = vector.shape_cast %31 : vector<16x16x64xbf16> to vector<256x64xbf16>
    %c0_i32_19 = arith.constant 0 : i32
    %33 = arith.addi %1, %c0_i32_19 : i32
    %c2_20 = arith.constant 2 : index
    %34 = arith.index_cast %33 : i32 to index
    %c1_21 = arith.constant 1 : index
    %c0_22 = arith.constant 0 : index
    %35 = vector.load %arg2[%c2_20, %34, %c1_21, %c0_22] : memref<4x17x17x64xbf16, #tpu.memory_space<vmem>>, vector<1x16x16x64xbf16>
    %36 = vector.shape_cast %35 : vector<1x16x16x64xbf16> to vector<16x16x64xbf16>
    %37 = vector.shape_cast %36 : vector<16x16x64xbf16> to vector<256x64xbf16>
    %38 = tpu.concatenate %27, %32, %37 in 1 : vector<256x64xbf16>, vector<256x64xbf16>, vector<256x64xbf16> -> vector<256x192xbf16>
    %c1_23 = arith.constant 1 : index
    %c0_24 = arith.constant 0 : index
    %c0_25 = arith.constant 0 : index
    %39 = vector.load %arg3[%c1_23, %c0_24, %c0_25] : memref<3x192x128xbf16, #tpu.memory_space<vmem>>, vector<1x192x128xbf16>
    %40 = vector.shape_cast %39 : vector<1x192x128xbf16> to vector<192x128xbf16>
    %cst_26 = arith.constant dense<0.000000e+00> : vector<256x128xf32>
    %41 = tpu.matmul %38, %40, %cst_26 {dimension_numbers = #tpu.dot_dimension_numbers<[1], [0], [0], [1], [0, 0, 1, 1], [], []>} : vector<256x192xbf16>, vector<192x128xbf16>, vector<256x128xf32> -> vector<256x128xf32>
    %42 = arith.addf %22, %41 : vector<256x128xf32>
    %c1_i32 = arith.constant 1 : i32
    %43 = arith.addi %1, %c1_i32 : i32
    %c0_27 = arith.constant 0 : index
    %44 = arith.index_cast %43 : i32 to index
    %c0_28 = arith.constant 0 : index
    %c0_29 = arith.constant 0 : index
    %45 = vector.load %arg2[%c0_27, %44, %c0_28, %c0_29] : memref<4x17x17x64xbf16, #tpu.memory_space<vmem>>, vector<1x16x16x64xbf16>
    %46 = vector.shape_cast %45 : vector<1x16x16x64xbf16> to vector<16x16x64xbf16>
    %47 = vector.shape_cast %46 : vector<16x16x64xbf16> to vector<256x64xbf16>
    %c1_i32_30 = arith.constant 1 : i32
    %48 = arith.addi %1, %c1_i32_30 : i32
    %c1_31 = arith.constant 1 : index
    %49 = arith.index_cast %48 : i32 to index
    %c0_32 = arith.constant 0 : index
    %c0_33 = arith.constant 0 : index
    %50 = vector.load %arg2[%c1_31, %49, %c0_32, %c0_33] : memref<4x17x17x64xbf16, #tpu.memory_space<vmem>>, vector<1x16x16x64xbf16>
    %51 = vector.shape_cast %50 : vector<1x16x16x64xbf16> to vector<16x16x64xbf16>
    %52 = vector.shape_cast %51 : vector<16x16x64xbf16> to vector<256x64xbf16>
    %c1_i32_34 = arith.constant 1 : i32
    %53 = arith.addi %1, %c1_i32_34 : i32
    %c0_35 = arith.constant 0 : index
    %54 = arith.index_cast %53 : i32 to index
    %c1_36 = arith.constant 1 : index
    %c0_37 = arith.constant 0 : index
    %55 = vector.load %arg2[%c0_35, %54, %c1_36, %c0_37] : memref<4x17x17x64xbf16, #tpu.memory_space<vmem>>, vector<1x16x16x64xbf16>
    %56 = vector.shape_cast %55 : vector<1x16x16x64xbf16> to vector<16x16x64xbf16>
    %57 = vector.shape_cast %56 : vector<16x16x64xbf16> to vector<256x64xbf16>
    %58 = tpu.concatenate %47, %52, %57 in 1 : vector<256x64xbf16>, vector<256x64xbf16>, vector<256x64xbf16> -> vector<256x192xbf16>
    %c2_38 = arith.constant 2 : index
    %c0_39 = arith.constant 0 : index
    %c0_40 = arith.constant 0 : index
    %59 = vector.load %arg3[%c2_38, %c0_39, %c0_40] : memref<3x192x128xbf16, #tpu.memory_space<vmem>>, vector<1x192x128xbf16>
    %60 = vector.shape_cast %59 : vector<1x192x128xbf16> to vector<192x128xbf16>
    %cst_41 = arith.constant dense<0.000000e+00> : vector<256x128xf32>
    %61 = tpu.matmul %58, %60, %cst_41 {dimension_numbers = #tpu.dot_dimension_numbers<[1], [0], [0], [1], [0, 0, 1, 1], [], []>} : vector<256x192xbf16>, vector<192x128xbf16>, vector<256x128xf32> -> vector<256x128xf32>
    %62 = arith.addf %42, %61 : vector<256x128xf32>
    %c0_42 = arith.constant 0 : index
    %c0_43 = arith.constant 0 : index
    %63 = vector.load %arg4[%c0_42, %c0_43] : memref<1x128xf32, #tpu.memory_space<vmem>>, vector<1x128xf32>
    %64 = vector.broadcast %63 : vector<1x128xf32> to vector<256x128xf32>
    %65 = arith.mulf %62, %64 : vector<256x128xf32>
    %c0_44 = arith.constant 0 : index
    %c0_45 = arith.constant 0 : index
    %66 = vector.load %arg5[%c0_44, %c0_45] : memref<1x128xf32, #tpu.memory_space<vmem>>, vector<1x128xf32>
    %67 = vector.broadcast %66 : vector<1x128xf32> to vector<256x128xf32>
    %68 = arith.addf %65, %67 : vector<256x128xf32>
    %cst_46 = arith.constant 0.000000e+00 : f32
    %69 = vector.broadcast %cst_46 : f32 to vector<256x128xf32>
    %70 = arith.maximumf %68, %69 : vector<256x128xf32>
    %71 = arith.truncf %70 : vector<256x128xf32> to vector<256x128xbf16>
    %c0_47 = arith.constant 0 : index
    %c0_48 = arith.constant 0 : index
    %c0_49 = arith.constant 0 : index
    %72 = vector.load %arg6[%c0_47, %c0_48, %c0_49] : memref<1x256x128xbf16, #tpu.memory_space<vmem>>, vector<1x256x128xbf16>
    %73 = vector.shape_cast %72 : vector<1x256x128xbf16> to vector<256x128xbf16>
    %74 = vector.shape_cast %71 : vector<256x128xbf16> to vector<1x256x128xbf16>
    tpu.vector_store %arg6[%c0_47, %c0_48, %c0_49], %74 {strides = array<i32>} : memref<1x256x128xbf16, #tpu.memory_space<vmem>>, vector<1x256x128xbf16>,
    return
  }
  func.func @transform_0(%arg0: i32, %arg1: i32) -> (i32, i32, i32, i32) {
    %c0_i32 = arith.constant 0 : i32
    %c0_i32_0 = arith.constant 0 : i32
    %c0_i32_1 = arith.constant 0 : i32
    %c0_i32_2 = arith.constant 0 : i32
    return %arg0, %c0_i32, %c0_i32_0, %c0_i32_1 : i32, i32, i32, i32
  }
  func.func @transform_1(%arg0: i32, %arg1: i32) -> (i32, i32, i32) {
    %c0_i32 = arith.constant 0 : i32
    %c0_i32_0 = arith.constant 0 : i32
    %c0_i32_1 = arith.constant 0 : i32
    %c0_i32_2 = arith.constant 0 : i32
    return %c0_i32, %c0_i32_0, %c0_i32_1 : i32, i32, i32
  }
  func.func @transform_2(%arg0: i32, %arg1: i32) -> (i32, i32) {
    %c0_i32 = arith.constant 0 : i32
    %c0_i32_0 = arith.constant 0 : i32
    %c0_i32_1 = arith.constant 0 : i32
    return %c0_i32, %c0_i32_0 : i32, i32
  }
  func.func @transform_3(%arg0: i32, %arg1: i32) -> (i32, i32) {
    %c0_i32 = arith.constant 0 : i32
    %c0_i32_0 = arith.constant 0 : i32
    %c0_i32_1 = arith.constant 0 : i32
    return %c0_i32, %c0_i32_0 : i32, i32
  }
  func.func @transform_4(%arg0: i32, %arg1: i32) -> (i32, i32, i32) {
    %c0_i32 = arith.constant 0 : i32
    %c0_i32_0 = arith.constant 0 : i32
    return %arg0, %arg1, %c0_i32 : i32, i32, i32
  }
}

module attributes {stable_mosaic.version = 11 : i64} {
  func.func @_conv_bn_kernel(%arg0: i32, %arg1: i32, %arg2: memref<1x18x18x128xbf16, #tpu.memory_space<vmem>>, %arg3: memref<3x384x128xbf16, #tpu.memory_space<vmem>>, %arg4: memref<1x128xf32, #tpu.memory_space<vmem>>, %arg5: memref<1x128xf32, #tpu.memory_space<vmem>>, %arg6: memref<1x256x128xbf16, #tpu.memory_space<vmem>>, %arg7: memref<1x256x128xf32, #tpu.memory_space<vmem>>) attributes {dimension_semantics = [#tpu.dimension_semantics<parallel>, #tpu.dimension_semantics<arbitrary>], iteration_bounds = array<i64: 2, 1>, scalar_prefetch = 0 : i64, scratch_operands = 0 : i64, tpu.core_type = #tpu.core_type<tc>, window_params = [{transform_indices = @transform_0, window_bounds = array<i64: 1, 18, 18, 128>}, {pipeline_mode = #tpu.pipeline_mode<synchronous>, transform_indices = @transform_1, window_bounds = array<i64: 3, 384, 128>}, {pipeline_mode = #tpu.pipeline_mode<synchronous>, transform_indices = @transform_2, window_bounds = array<i64: 1, 128>}, {pipeline_mode = #tpu.pipeline_mode<synchronous>, transform_indices = @transform_3, window_bounds = array<i64: 1, 128>}, {transform_indices = @transform_4, window_bounds = array<i64: 1, 256, 128>}, {transform_indices = @transform_5, window_bounds = array<i64: 1, 256, 128>}]} {
    %c16_i32 = arith.constant 16 : i32
    %0 = arith.muli %arg1, %c16_i32 : i32
    %1 = tpu.assume_multiple %0, 16 : i32
    %cst = arith.constant 0.000000e+00 : f32
    %2 = vector.broadcast %cst : f32 to vector<256x128xf32>
    %c0_i32 = arith.constant 0 : i32
    %3 = arith.addi %1, %c0_i32 : i32
    %c0 = arith.constant 0 : index
    %4 = arith.index_cast %3 : i32 to index
    %c0_0 = arith.constant 0 : index
    %c0_1 = arith.constant 0 : index
    %5 = vector.load %arg2[%c0, %4, %c0_0, %c0_1] : memref<1x18x18x128xbf16, #tpu.memory_space<vmem>>, vector<1x16x16x128xbf16>
    %6 = vector.shape_cast %5 : vector<1x16x16x128xbf16> to vector<16x16x128xbf16>
    %7 = vector.shape_cast %6 : vector<16x16x128xbf16> to vector<256x128xbf16>
    %c0_i32_2 = arith.constant 0 : i32
    %8 = arith.addi %1, %c0_i32_2 : i32
    %c0_3 = arith.constant 0 : index
    %9 = arith.index_cast %8 : i32 to index
    %c1 = arith.constant 1 : index
    %c0_4 = arith.constant 0 : index
    %10 = vector.load %arg2[%c0_3, %9, %c1, %c0_4] : memref<1x18x18x128xbf16, #tpu.memory_space<vmem>>, vector<1x16x16x128xbf16>
    %11 = vector.shape_cast %10 : vector<1x16x16x128xbf16> to vector<16x16x128xbf16>
    %12 = vector.shape_cast %11 : vector<16x16x128xbf16> to vector<256x128xbf16>
    %c0_i32_5 = arith.constant 0 : i32
    %13 = arith.addi %1, %c0_i32_5 : i32
    %c0_6 = arith.constant 0 : index
    %14 = arith.index_cast %13 : i32 to index
    %c2 = arith.constant 2 : index
    %c0_7 = arith.constant 0 : index
    %15 = vector.load %arg2[%c0_6, %14, %c2, %c0_7] : memref<1x18x18x128xbf16, #tpu.memory_space<vmem>>, vector<1x16x16x128xbf16>
    %16 = vector.shape_cast %15 : vector<1x16x16x128xbf16> to vector<16x16x128xbf16>
    %17 = vector.shape_cast %16 : vector<16x16x128xbf16> to vector<256x128xbf16>
    %18 = tpu.concatenate %7, %12, %17 in 1 : vector<256x128xbf16>, vector<256x128xbf16>, vector<256x128xbf16> -> vector<256x384xbf16>
    %c0_8 = arith.constant 0 : index
    %c0_9 = arith.constant 0 : index
    %c0_10 = arith.constant 0 : index
    %19 = vector.load %arg3[%c0_8, %c0_9, %c0_10] : memref<3x384x128xbf16, #tpu.memory_space<vmem>>, vector<1x384x128xbf16>
    %20 = vector.shape_cast %19 : vector<1x384x128xbf16> to vector<384x128xbf16>
    %cst_11 = arith.constant dense<0.000000e+00> : vector<256x128xf32>
    %21 = tpu.matmul %18, %20, %cst_11 {dimension_numbers = #tpu.dot_dimension_numbers<[1], [0], [0], [1], [0, 0, 1, 1], [], []>} : vector<256x384xbf16>, vector<384x128xbf16>, vector<256x128xf32> -> vector<256x128xf32>
    %22 = arith.addf %2, %21 : vector<256x128xf32>
    %c1_i32 = arith.constant 1 : i32
    %23 = arith.addi %1, %c1_i32 : i32
    %c0_12 = arith.constant 0 : index
    %24 = arith.index_cast %23 : i32 to index
    %c0_13 = arith.constant 0 : index
    %c0_14 = arith.constant 0 : index
    %25 = vector.load %arg2[%c0_12, %24, %c0_13, %c0_14] : memref<1x18x18x128xbf16, #tpu.memory_space<vmem>>, vector<1x16x16x128xbf16>
    %26 = vector.shape_cast %25 : vector<1x16x16x128xbf16> to vector<16x16x128xbf16>
    %27 = vector.shape_cast %26 : vector<16x16x128xbf16> to vector<256x128xbf16>
    %c1_i32_15 = arith.constant 1 : i32
    %28 = arith.addi %1, %c1_i32_15 : i32
    %c0_16 = arith.constant 0 : index
    %29 = arith.index_cast %28 : i32 to index
    %c1_17 = arith.constant 1 : index
    %c0_18 = arith.constant 0 : index
    %30 = vector.load %arg2[%c0_16, %29, %c1_17, %c0_18] : memref<1x18x18x128xbf16, #tpu.memory_space<vmem>>, vector<1x16x16x128xbf16>
    %31 = vector.shape_cast %30 : vector<1x16x16x128xbf16> to vector<16x16x128xbf16>
    %32 = vector.shape_cast %31 : vector<16x16x128xbf16> to vector<256x128xbf16>
    %c1_i32_19 = arith.constant 1 : i32
    %33 = arith.addi %1, %c1_i32_19 : i32
    %c0_20 = arith.constant 0 : index
    %34 = arith.index_cast %33 : i32 to index
    %c2_21 = arith.constant 2 : index
    %c0_22 = arith.constant 0 : index
    %35 = vector.load %arg2[%c0_20, %34, %c2_21, %c0_22] : memref<1x18x18x128xbf16, #tpu.memory_space<vmem>>, vector<1x16x16x128xbf16>
    %36 = vector.shape_cast %35 : vector<1x16x16x128xbf16> to vector<16x16x128xbf16>
    %37 = vector.shape_cast %36 : vector<16x16x128xbf16> to vector<256x128xbf16>
    %38 = tpu.concatenate %27, %32, %37 in 1 : vector<256x128xbf16>, vector<256x128xbf16>, vector<256x128xbf16> -> vector<256x384xbf16>
    %c1_23 = arith.constant 1 : index
    %c0_24 = arith.constant 0 : index
    %c0_25 = arith.constant 0 : index
    %39 = vector.load %arg3[%c1_23, %c0_24, %c0_25] : memref<3x384x128xbf16, #tpu.memory_space<vmem>>, vector<1x384x128xbf16>
    %40 = vector.shape_cast %39 : vector<1x384x128xbf16> to vector<384x128xbf16>
    %cst_26 = arith.constant dense<0.000000e+00> : vector<256x128xf32>
    %41 = tpu.matmul %38, %40, %cst_26 {dimension_numbers = #tpu.dot_dimension_numbers<[1], [0], [0], [1], [0, 0, 1, 1], [], []>} : vector<256x384xbf16>, vector<384x128xbf16>, vector<256x128xf32> -> vector<256x128xf32>
    %42 = arith.addf %22, %41 : vector<256x128xf32>
    %c2_i32 = arith.constant 2 : i32
    %43 = arith.addi %1, %c2_i32 : i32
    %c0_27 = arith.constant 0 : index
    %44 = arith.index_cast %43 : i32 to index
    %c0_28 = arith.constant 0 : index
    %c0_29 = arith.constant 0 : index
    %45 = vector.load %arg2[%c0_27, %44, %c0_28, %c0_29] : memref<1x18x18x128xbf16, #tpu.memory_space<vmem>>, vector<1x16x16x128xbf16>
    %46 = vector.shape_cast %45 : vector<1x16x16x128xbf16> to vector<16x16x128xbf16>
    %47 = vector.shape_cast %46 : vector<16x16x128xbf16> to vector<256x128xbf16>
    %c2_i32_30 = arith.constant 2 : i32
    %48 = arith.addi %1, %c2_i32_30 : i32
    %c0_31 = arith.constant 0 : index
    %49 = arith.index_cast %48 : i32 to index
    %c1_32 = arith.constant 1 : index
    %c0_33 = arith.constant 0 : index
    %50 = vector.load %arg2[%c0_31, %49, %c1_32, %c0_33] : memref<1x18x18x128xbf16, #tpu.memory_space<vmem>>, vector<1x16x16x128xbf16>
    %51 = vector.shape_cast %50 : vector<1x16x16x128xbf16> to vector<16x16x128xbf16>
    %52 = vector.shape_cast %51 : vector<16x16x128xbf16> to vector<256x128xbf16>
    %c2_i32_34 = arith.constant 2 : i32
    %53 = arith.addi %1, %c2_i32_34 : i32
    %c0_35 = arith.constant 0 : index
    %54 = arith.index_cast %53 : i32 to index
    %c2_36 = arith.constant 2 : index
    %c0_37 = arith.constant 0 : index
    %55 = vector.load %arg2[%c0_35, %54, %c2_36, %c0_37] : memref<1x18x18x128xbf16, #tpu.memory_space<vmem>>, vector<1x16x16x128xbf16>
    %56 = vector.shape_cast %55 : vector<1x16x16x128xbf16> to vector<16x16x128xbf16>
    %57 = vector.shape_cast %56 : vector<16x16x128xbf16> to vector<256x128xbf16>
    %58 = tpu.concatenate %47, %52, %57 in 1 : vector<256x128xbf16>, vector<256x128xbf16>, vector<256x128xbf16> -> vector<256x384xbf16>
    %c2_38 = arith.constant 2 : index
    %c0_39 = arith.constant 0 : index
    %c0_40 = arith.constant 0 : index
    %59 = vector.load %arg3[%c2_38, %c0_39, %c0_40] : memref<3x384x128xbf16, #tpu.memory_space<vmem>>, vector<1x384x128xbf16>
    %60 = vector.shape_cast %59 : vector<1x384x128xbf16> to vector<384x128xbf16>
    %cst_41 = arith.constant dense<0.000000e+00> : vector<256x128xf32>
    %61 = tpu.matmul %58, %60, %cst_41 {dimension_numbers = #tpu.dot_dimension_numbers<[1], [0], [0], [1], [0, 0, 1, 1], [], []>} : vector<256x384xbf16>, vector<384x128xbf16>, vector<256x128xf32> -> vector<256x128xf32>
    %62 = arith.addf %42, %61 : vector<256x128xf32>
    %c0_42 = arith.constant 0 : index
    %c0_43 = arith.constant 0 : index
    %63 = vector.load %arg4[%c0_42, %c0_43] : memref<1x128xf32, #tpu.memory_space<vmem>>, vector<1x128xf32>
    %64 = vector.broadcast %63 : vector<1x128xf32> to vector<256x128xf32>
    %65 = arith.mulf %62, %64 : vector<256x128xf32>
    %c0_44 = arith.constant 0 : index
    %c0_45 = arith.constant 0 : index
    %66 = vector.load %arg5[%c0_44, %c0_45] : memref<1x128xf32, #tpu.memory_space<vmem>>, vector<1x128xf32>
    %67 = vector.broadcast %66 : vector<1x128xf32> to vector<256x128xf32>
    %68 = arith.addf %65, %67 : vector<256x128xf32>
    %c0_46 = arith.constant 0 : index
    %c0_47 = arith.constant 0 : index
    %c0_48 = arith.constant 0 : index
    %69 = vector.load %arg6[%c0_46, %c0_47, %c0_48] : memref<1x256x128xbf16, #tpu.memory_space<vmem>>, vector<1x256x128xbf16>
    %70 = vector.shape_cast %69 : vector<1x256x128xbf16> to vector<256x128xbf16>
    %71 = arith.extf %70 : vector<256x128xbf16> to vector<256x128xf32>
    %72 = arith.addf %68, %71 : vector<256x128xf32>
    %cst_49 = arith.constant 0.000000e+00 : f32
    %73 = vector.broadcast %cst_49 : f32 to vector<256x128xf32>
    %74 = arith.maximumf %72, %73 : vector<256x128xf32>
    %c0_50 = arith.constant 0 : index
    %c0_51 = arith.constant 0 : index
    %c0_52 = arith.constant 0 : index
    %75 = vector.load %arg7[%c0_50, %c0_51, %c0_52] : memref<1x256x128xf32, #tpu.memory_space<vmem>>, vector<1x256x128xf32>
    %76 = vector.shape_cast %75 : vector<1x256x128xf32> to vector<256x128xf32>
    %77 = vector.shape_cast %74 : vector<256x128xf32> to vector<1x256x128xf32>
    tpu.vector_store %arg7[%c0_50, %c0_51, %c0_52], %77 {strides = array<i32>} : memref<1x256x128xf32, #tpu.memory_space<vmem>>, vector<1x256x128xf32>,
    return
  }
  func.func @transform_0(%arg0: i32, %arg1: i32) -> (i32, i32, i32, i32) {
    %c0_i32 = arith.constant 0 : i32
    %c0_i32_0 = arith.constant 0 : i32
    %c0_i32_1 = arith.constant 0 : i32
    %c0_i32_2 = arith.constant 0 : i32
    return %arg0, %c0_i32, %c0_i32_0, %c0_i32_1 : i32, i32, i32, i32
  }
  func.func @transform_1(%arg0: i32, %arg1: i32) -> (i32, i32, i32) {
    %c0_i32 = arith.constant 0 : i32
    %c0_i32_0 = arith.constant 0 : i32
    %c0_i32_1 = arith.constant 0 : i32
    %c0_i32_2 = arith.constant 0 : i32
    return %c0_i32, %c0_i32_0, %c0_i32_1 : i32, i32, i32
  }
  func.func @transform_2(%arg0: i32, %arg1: i32) -> (i32, i32) {
    %c0_i32 = arith.constant 0 : i32
    %c0_i32_0 = arith.constant 0 : i32
    %c0_i32_1 = arith.constant 0 : i32
    return %c0_i32, %c0_i32_0 : i32, i32
  }
  func.func @transform_3(%arg0: i32, %arg1: i32) -> (i32, i32) {
    %c0_i32 = arith.constant 0 : i32
    %c0_i32_0 = arith.constant 0 : i32
    %c0_i32_1 = arith.constant 0 : i32
    return %c0_i32, %c0_i32_0 : i32, i32
  }
  func.func @transform_4(%arg0: i32, %arg1: i32) -> (i32, i32, i32) {
    %c0_i32 = arith.constant 0 : i32
    %c0_i32_0 = arith.constant 0 : i32
    return %arg0, %arg1, %c0_i32 : i32, i32, i32
  }
  func.func @transform_5(%arg0: i32, %arg1: i32) -> (i32, i32, i32) {
    %c0_i32 = arith.constant 0 : i32
    %c0_i32_0 = arith.constant 0 : i32
    return %arg0, %arg1, %c0_i32 : i32, i32, i32
  }
}

</mosaic_0001>

<bundles_post_ra>
// kernel: basic_block_forward.4
= control target key start
LH: loop header
LB: loop body
LE: loop exit
PB: predicated region body
PF: predicated region fallthrough
CT: control target
= control target key end

     0   :  { %s1272_s15 = smov 0   ;;  %s1274_s16 = smov 0   ;;  %s1450_s0 = inlined_call_operand.vmem [shape: bf16[2,16,16,64], index: 0, kind: input, shape index: {}]   ;;  %s1451_s1 = inlined_call_operand.vmem [shape: bf16[1,64,128], index: 1, kind: input, shape index: {}]   ;;  %s1452_s2 = inlined_call_operand.vmem [shape: f32[1,128], index: 2, kind: input, shape index: {}]   ;;  %s1453_s3 = inlined_call_operand.vmem [shape: f32[1,128], index: 3, kind: input, shape index: {}]   ;;  %s1454_s4 = inlined_call_operand.vmem [shape: bf16[2,256,128], index: 4, kind: output, shape index: {}]  }
   0x1   :  { %s1276_s17 = smov 0  }
   0x2 LB: > { %s26_s18 = sadd.s32 1, %s1241_s16  ;;  %p905_p0 = scmp.ge.s32.totalorder %s1245_s17, 1  ;;  %s1245_s17 = sphi %s1276_s17, %s14_s17   ;;  %s1241_s16 = sphi %s1274_s16, %s1456_s16   ;;  %s1237_s15 = sphi %s1272_s15, %s1455_s15  }
   0x3   : > { %p28_p1 = scmp.ge.s32.totalorder %s26_s18, 2  ;;  %p176_p2 = scmp.lt.s32.totalorder %s1245_s17, 3 }
   0x5   : > { %s1458_s18 = smov (%p28_p1, %s26_s18), 0  ;;  %p177_p3 = pnand %p905_p0, %p176_p2 }
   0x6   : > { %v1203_v0 = vld [vmem:[%s1451_s1] sm:$0xff] (!%p177_p3)   ;;  %p206_p4 = scmp.lt.s32.totalorder (!%p177_p3), %s1237_s15, 1  ;;  %v1204_v1 = vld [vmem:[%s1451_s1 + $0x8] sm:$0xff] (!%p177_p3)   ;;  %v1205_v2 = vld [vmem:[%s1451_s1 + $0x10] sm:$0xff] (!%p177_p3)   ;;  %vm370_vm0 = vcmask (!%p177_p3), 523264  }
   0x7   : > { %180 = sbr.rel (%p177_p3) target bundleno = 269 (0x10d), region = 36  ;;  %1131 = vmatprep.subr.bf16.mxu0 (!%p177_p3), %v1203_v0  ;;  %1171 = vmatprep.subr.bf16.mxu1 (!%p177_p3), %v1203_v0  ;;  %v1206_v5 = vld [vmem:[%s1451_s1 + $0x18] sm:$0xff] (!%p177_p3)   ;;  %v1347_v20 = vld [vmem:[%s1452_s2] ss:$0 sm:$0xff] (!%p177_p3) }
   0x8   : > { %1132 = vmatpush3.bf16.msra.mxu0 (!%p177_p3), %v1203_v0  ;;  %1175 = vmatpush3.bf16.msra.mxu1 (!%p177_p3), %v1203_v0  ;;  %v1354_v27 = vld [vmem:[%s1453_s3] ss:$0 sm:$0xff] (!%p177_p3) }
   0x9   : > { %1133 = vmatprep.subr.bf16.mxu0 (!%p177_p3), %v1204_v1  ;;  %1172 = vmatprep.subr.bf16.mxu1 (!%p177_p3), %v1204_v1 }
   0xc   : > { %1134 = vmatpush3.bf16.msra.mxu0 (!%p177_p3), %v1204_v1  ;;  %1176 = vmatpush3.bf16.msra.mxu1 (!%p177_p3), %v1204_v1 }
   0xd   : > { %1135 = vmatprep.subr.bf16.mxu0 (!%p177_p3), %v1205_v2  ;;  %1173 = vmatprep.subr.bf16.mxu1 (!%p177_p3), %v1205_v2 }
   0xe   : > { %s1460_s15 = smov (!%p206_p4, %s1237_s15), 1 }
   0xf   : > { %s982_s25 = sshll.u32 %s1460_s15, 7 }
  0x10   : > { %s1307_s28 = scalar_lea.vmem %s1450_s0, %s982_s25  ;;  %1136 = vmatpush3.bf16.msra.mxu0 %v1205_v2  ;;  %1177 = vmatpush3.bf16.msra.mxu1 %v1205_v2  ;;  %s1373_s11 = scalar_lea.vmem %s1454_s4, %s982_s25 }
  0x11   : > { %v1207_v3 = vld [vmem:[%s1307_s28] sm:$0xff]   ;;  %1137 = vmatprep.subr.bf16.mxu0 %v1206_v5  ;;  %1174 = vmatprep.subr.bf16.mxu1 %v1206_v5  ;;  %v1209_v6 = vld [vmem:[%s1307_s28 + $0x8] sm:$0xff]   ;;  %v1211_v8 = vld [vmem:[%s1307_s28 + $0x10] sm:$0xff]  }
  0x12   : > { %v1208_v4 = vld [vmem:[%s1307_s28 + $0x40] sm:$0xff]   ;;  %1139 = vmatprep.mubr.msk.bf16.mxu0 %vm370_vm0, %v1207_v3  ;;  %v1210_v7 = vld [vmem:[%s1307_s28 + $0x48] sm:$0xff]   ;;  %v1212_v9 = vld [vmem:[%s1307_s28 + $0x50] sm:$0xff]  }
  0x13   : > { %1155 = vmatprep.mubr.msk.bf16.mxu1 %vm370_vm0, %v1208_v4  ;;  %v1213_v10 = vld [vmem:[%s1307_s28 + $0x18] sm:$0xff]   ;;  %v1215_v12 = vld [vmem:[%s1307_s28 + $0x20] sm:$0xff]   ;;  %v1217_v14 = vld [vmem:[%s1307_s28 + $0x28] sm:$0xff]  }
  0x14   : > { %1138 = vmatpush3.bf16.msra.mxu0 %v1206_v5  ;;  %1178 = vmatpush3.bf16.msra.mxu1 %v1206_v5  ;;  %v1214_v11 = vld [vmem:[%s1307_s28 + $0x58] sm:$0xff]   ;;  %v1216_v13 = vld [vmem:[%s1307_s28 + $0x60] sm:$0xff]   ;;  %v1218_v15 = vld [vmem:[%s1307_s28 + $0x68] sm:$0xff]  }
  0x15   : > { %v1219_v16 = vld [vmem:[%s1307_s28 + $0x30] sm:$0xff]   ;;  %v1221_v18 = vld [vmem:[%s1307_s28 + $0x38] sm:$0xff]  }
  0x16   : > { %v1220_v17 = vld [vmem:[%s1307_s28 + $0x70] sm:$0xff]   ;;  %v1222_v19 = vld [vmem:[%s1307_s28 + $0x78] sm:$0xff]  }
  0x17   : > { %1140 = vmatmul.mubr.msk.bf16.vlgmr.msra.gmra.mrb[0].mxu0 %vm370_vm0, %v1209_v6  ;;  %1156 = vmatmul.mubr.msk.bf16.vlgmr.msra.gmra.mrb[0].mxu1 %vm370_vm0, %v1210_v7 }
  0x18   : > { %1143 = vmatprep.mubr.msk.bf16.mxu0 %vm370_vm0, %v1211_v8  ;;  %1159 = vmatprep.mubr.msk.bf16.mxu1 %vm370_vm0, %v1212_v9 }
  0x1f   : > { %1144 = vmatmul.mubr.msk.bf16.gmra.mrb[4].mxu0 %vm370_vm0, %v1213_v10  ;;  %1160 = vmatmul.mubr.msk.bf16.gmra.mrb[4].mxu1 %vm370_vm0, %v1214_v11 }
  0x20   : > { %1147 = vmatprep.mubr.msk.bf16.mxu0 %vm370_vm0, %v1215_v12  ;;  %1163 = vmatprep.mubr.msk.bf16.mxu1 %vm370_vm0, %v1216_v13 }
  0x27   : > { %1148 = vmatmul.mubr.msk.bf16.gmra.mrb[8].mxu0 %vm370_vm0, %v1217_v14  ;;  %1164 = vmatmul.mubr.msk.bf16.gmra.mrb[8].mxu1 %vm370_vm0, %v1218_v15 }
  0x28   : > { %1151 = vmatprep.mubr.msk.bf16.mxu0 %vm370_vm0, %v1219_v16  ;;  %1167 = vmatprep.mubr.msk.bf16.mxu1 %vm370_vm0, %v1220_v17 }
  0x2f   : > { %1152 = vmatmul.mubr.msk.bf16.gmra.mrb[12].mxu0 %vm370_vm0, %v1221_v18  ;;  %1168 = vmatmul.mubr.msk.bf16.gmra.mrb[12].mxu1 %vm370_vm0, %v1222_v19 }
  0xea   : > { %v1141_v21 = vpop.f32.mrb[0].mxu0  ;;  %v1157_v22 = vpop.f32.mrb[0].mxu1 }
  0xeb   : > { %v589_v23 = vmul.f32 %v1141_v21, %v1347_v20  ;;  %v605_v24 = vmul.f32 %v1157_v22, %v1347_v20  ;;  %v453_v25 = vpop.f32.mrb[1].mxu0  ;;  %v517_v26 = vpop.f32.mrb[1].mxu1 }
  0xec   : > { %v587_v28 = vmul.f32 %v1347_v20, %v453_v25  ;;  %v603_v29 = vmul.f32 %v1347_v20, %v517_v26  ;;  %v1142_v30 = vpop.f32.mrb[2].mxu0  ;;  %v1158_v31 = vpop.f32.mrb[2].mxu1 }
  0xed   : > { %v590_v32 = vmul.f32 %v1142_v30, %v1347_v20  ;;  %v606_v33 = vmul.f32 %v1158_v31, %v1347_v20  ;;  %v456_v34 = vpop.f32.mrb[3].mxu0  ;;  %v520_v35 = vpop.f32.mrb[3].mxu1  ;;  %v628_v38 = vadd.f32 %v1354_v27, %v589_v23  ;;  %v644_v39 = vadd.f32 %v1354_v27, %v605_v24 }
  0xee   : > { %v588_v36 = vmul.f32 %v1347_v20, %v456_v34  ;;  %v604_v37 = vmul.f32 %v1347_v20, %v520_v35  ;;  %v626_v42 = vadd.f32 %v1354_v27, %v587_v28  ;;  %v642_v43 = vadd.f32 %v1354_v27, %v603_v29 }
  0xef   : > { %v629_v40 = vadd.f32 %v1354_v27, %v590_v32  ;;  %v645_v41 = vadd.f32 %v1354_v27, %v606_v33 }
  0xf0   : > { %v627_v44 = vadd.f32 %v1354_v27, %v588_v36  ;;  %v643_v45 = vadd.f32 %v1354_v27, %v604_v37 }
  0xf1   : > { %v1024_v46 = vpack.c.bf16 %v629_v40, %v628_v38  ;;  %v1064_v47 = vpack.c.bf16 %v645_v41, %v644_v39 }
  0xf2   : > { %v1019_v48 = vpack.c.bf16 %v627_v44, %v626_v42  ;;  %v1059_v49 = vpack.c.bf16 %v643_v45, %v642_v43  ;;  %v1145_v50 = vpop.f32.mrb[4].mxu0  ;;  %v1161_v51 = vpop.f32.mrb[4].mxu1 }
  0xf3   : > { %1096 = vst [vmem:[%s1373_s11 + $0x8] sm:$0xff] %v1024_v46   ;;  %1104 = vst [vmem:[%s1373_s11 + $0x48] sm:$0xff] %v1064_v47   ;;  %v593_v52 = vmul.f32 %v1145_v50, %v1347_v20  ;;  %v609_v53 = vmul.f32 %v1161_v51, %v1347_v20  ;;  %v469_v54 = vpop.f32.mrb[5].mxu0  ;;  %v533_v55 = vpop.f32.mrb[5].mxu1 }
  0xf4   : > { %1020 = vst [vmem:[%s1373_s11] sm:$0xff] %v1019_v48   ;;  %1103 = vst [vmem:[%s1373_s11 + $0x40] sm:$0xff] %v1059_v49   ;;  %v591_v56 = vmul.f32 %v1347_v20, %v469_v54  ;;  %v607_v57 = vmul.f32 %v1347_v20, %v533_v55  ;;  %v1146_v58 = vpop.f32.mrb[6].mxu0  ;;  %v1162_v59 = vpop.f32.mrb[6].mxu1 }
  0xf5   : > { %v594_v60 = vmul.f32 %v1146_v58, %v1347_v20  ;;  %v610_v61 = vmul.f32 %v1162_v59, %v1347_v20  ;;  %v472_v62 = vpop.f32.mrb[7].mxu0  ;;  %v536_v63 = vpop.f32.mrb[7].mxu1  ;;  %v632_v2 = vadd.f32 %v1354_v27, %v593_v52  ;;  %v648_v3 = vadd.f32 %v1354_v27, %v609_v53 }
  0xf6   : > { %v592_v0 = vmul.f32 %v1347_v20, %v472_v62  ;;  %v608_v1 = vmul.f32 %v1347_v20, %v536_v63  ;;  %v630_v6 = vadd.f32 %v1354_v27, %v591_v56  ;;  %v646_v7 = vadd.f32 %v1354_v27, %v607_v57 }
  0xf7   : > { %v633_v4 = vadd.f32 %v1354_v27, %v594_v60  ;;  %v649_v5 = vadd.f32 %v1354_v27, %v610_v61 }
  0xf8   : > { %v631_v8 = vadd.f32 %v1354_v27, %v592_v0  ;;  %v647_v9 = vadd.f32 %v1354_v27, %v608_v1 }
  0xf9   : > { %v1034_v10 = vpack.c.bf16 %v633_v4, %v632_v2  ;;  %v1074_v11 = vpack.c.bf16 %v649_v5, %v648_v3 }
  0xfa   : > { %v1029_v12 = vpack.c.bf16 %v631_v8, %v630_v6  ;;  %v1069_v13 = vpack.c.bf16 %v647_v9, %v646_v7  ;;  %v1149_v14 = vpop.f32.mrb[8].mxu0  ;;  %v1165_v15 = vpop.f32.mrb[8].mxu1 }
  0xfb   : > { %1098 = vst [vmem:[%s1373_s11 + $0x18] sm:$0xff] %v1034_v10   ;;  %1106 = vst [vmem:[%s1373_s11 + $0x58] sm:$0xff] %v1074_v11   ;;  %v597_v16 = vmul.f32 %v1149_v14, %v1347_v20  ;;  %v613_v17 = vmul.f32 %v1165_v15, %v1347_v20  ;;  %v485_v18 = vpop.f32.mrb[9].mxu0  ;;  %v549_v19 = vpop.f32.mrb[9].mxu1 }
  0xfc   : > { %1097 = vst [vmem:[%s1373_s11 + $0x10] sm:$0xff] %v1029_v12   ;;  %1105 = vst [vmem:[%s1373_s11 + $0x50] sm:$0xff] %v1069_v13   ;;  %v595_v21 = vmul.f32 %v1347_v20, %v485_v18  ;;  %v611_v22 = vmul.f32 %v1347_v20, %v549_v19  ;;  %v1150_v23 = vpop.f32.mrb[10].mxu0  ;;  %v1166_v24 = vpop.f32.mrb[10].mxu1 }
  0xfd   : > { %v598_v25 = vmul.f32 %v1150_v23, %v1347_v20  ;;  %v614_v26 = vmul.f32 %v1166_v24, %v1347_v20  ;;  %v488_v28 = vpop.f32.mrb[11].mxu0  ;;  %v552_v29 = vpop.f32.mrb[11].mxu1  ;;  %v636_v32 = vadd.f32 %v1354_v27, %v597_v16  ;;  %v652_v33 = vadd.f32 %v1354_v27, %v613_v17 }
  0xfe   : > { %v596_v30 = vmul.f32 %v1347_v20, %v488_v28  ;;  %v612_v31 = vmul.f32 %v1347_v20, %v552_v29  ;;  %v634_v36 = vadd.f32 %v1354_v27, %v595_v21  ;;  %v650_v37 = vadd.f32 %v1354_v27, %v611_v22 }
  0xff   : > { %v637_v34 = vadd.f32 %v1354_v27, %v598_v25  ;;  %v653_v35 = vadd.f32 %v1354_v27, %v614_v26 }
 0x100   : > { %v635_v38 = vadd.f32 %v1354_v27, %v596_v30  ;;  %v651_v39 = vadd.f32 %v1354_v27, %v612_v31 }
 0x101   : > { %v1044_v40 = vpack.c.bf16 %v637_v34, %v636_v32  ;;  %v1084_v41 = vpack.c.bf16 %v653_v35, %v652_v33 }
 0x102   : > { %v1039_v42 = vpack.c.bf16 %v635_v38, %v634_v36  ;;  %v1079_v43 = vpack.c.bf16 %v651_v39, %v650_v37  ;;  %v1153_v44 = vpop.f32.mrb[12].mxu0  ;;  %v1169_v45 = vpop.f32.mrb[12].mxu1 }
 0x103   : > { %1100 = vst [vmem:[%s1373_s11 + $0x28] sm:$0xff] %v1044_v40   ;;  %1108 = vst [vmem:[%s1373_s11 + $0x68] sm:$0xff] %v1084_v41   ;;  %v601_v46 = vmul.f32 %v1153_v44, %v1347_v20  ;;  %v617_v47 = vmul.f32 %v1169_v45, %v1347_v20  ;;  %v501_v48 = vpop.f32.mrb[13].mxu0  ;;  %v565_v49 = vpop.f32.mrb[13].mxu1 }
 0x104   : > { %1099 = vst [vmem:[%s1373_s11 + $0x20] sm:$0xff] %v1039_v42   ;;  %1107 = vst [vmem:[%s1373_s11 + $0x60] sm:$0xff] %v1079_v43   ;;  %v599_v50 = vmul.f32 %v1347_v20, %v501_v48  ;;  %v615_v51 = vmul.f32 %v1347_v20, %v565_v49  ;;  %v1154_v52 = vpop.f32.mrb[14].mxu0  ;;  %v1170_v53 = vpop.f32.mrb[14].mxu1 }
 0x105   : > { %v602_v54 = vmul.f32 %v1154_v52, %v1347_v20  ;;  %v618_v55 = vmul.f32 %v1170_v53, %v1347_v20  ;;  %v504_v56 = vpop.f32.mrb[15].mxu0  ;;  %v568_v57 = vpop.f32.mrb[15].mxu1  ;;  %v640_v60 = vadd.f32 %v1354_v27, %v601_v46  ;;  %v656_v61 = vadd.f32 %v1354_v27, %v617_v47 }
 0x106   : > { %v600_v58 = vmul.f32 %v1347_v20, %v504_v56  ;;  %v616_v59 = vmul.f32 %v1347_v20, %v568_v57  ;;  %v638_v0 = vadd.f32 %v1354_v27, %v599_v50  ;;  %v654_v1 = vadd.f32 %v1354_v27, %v615_v51 }
 0x107   : > { %v641_v62 = vadd.f32 %v1354_v27, %v602_v54  ;;  %v657_v63 = vadd.f32 %v1354_v27, %v618_v55 }
 0x108   : > { %v639_v2 = vadd.f32 %v1354_v27, %v600_v58  ;;  %v655_v3 = vadd.f32 %v1354_v27, %v616_v59 }
 0x109   : > { %v1054_v4 = vpack.c.bf16 %v641_v62, %v640_v60  ;;  %v1094_v5 = vpack.c.bf16 %v657_v63, %v656_v61 }
 0x10a   : > { %v1049_v20 = vpack.c.bf16 %v639_v2, %v638_v0  ;;  %v1089_v6 = vpack.c.bf16 %v655_v3, %v654_v1 }
 0x10b   : > { %1102 = vst [vmem:[%s1373_s11 + $0x38] sm:$0xff] %v1054_v4   ;;  %1110 = vst [vmem:[%s1373_s11 + $0x78] sm:$0xff] %v1094_v5  }
 0x10c   : > { %1101 = vst [vmem:[%s1373_s11 + $0x30] sm:$0xff] %v1049_v20   ;;  %1109 = vst [vmem:[%s1373_s11 + $0x70] sm:$0xff] %v1089_v6  }
 0x10d PF: > { %s14_s17 = sadd.s32 1, %s1245_s17   ;;  %s1455_s15 = smov %s1241_s16 }
 0x10e   : > { %p11_p5 = scmp.ge.s32.totalorder %s14_s17, 4   ;;  %s1456_s16 = smov %s1458_s18 }
 0x110   :  { %13 = sbr.rel (!%p11_p5) target bundleno = 2 (0x2), region = 67 }

// kernel: basic_block_forward.3
= control target key start
LH: loop header
LB: loop body
LE: loop exit
PB: predicated region body
PF: predicated region fallthrough
CT: control target
= control target key end

     0   :  { %s4861_s15 = smov 0   ;;  %s4863_s16 = smov 0   ;;  %s6772_s0 = inlined_call_operand.vmem [shape: bf16[8,17,17,64], index: 0, kind: input, shape index: {}]   ;;  %s6773_s1 = inlined_call_operand.vmem [shape: bf16[3,192,128], index: 1, kind: input, shape index: {}]   ;;  %s6774_s2 = inlined_call_operand.vmem [shape: f32[1,128], index: 2, kind: input, shape index: {}]   ;;  %s6775_s3 = inlined_call_operand.vmem [shape: f32[1,128], index: 3, kind: input, shape index: {}]   ;;  %s6776_s4 = inlined_call_operand.vmem [shape: bf16[2,256,128], index: 4, kind: output, shape index: {}]  }
   0x1   :  { %s4865_s17 = smov 0  }
   0x2 LB: > { %s26_s18 = sadd.s32 1, %s4828_s16  ;;  %p3882_p0 = scmp.ge.s32.totalorder %s4832_s17, 1  ;;  %s4832_s17 = sphi %s4865_s17, %s14_s17   ;;  %s4828_s16 = sphi %s4863_s16, %s6839_s16   ;;  %s4824_s15 = sphi %s4861_s15, %s6838_s15  }
   0x3   : > { %p28_p1 = scmp.ge.s32.totalorder %s26_s18, 2  ;;  %p178_p2 = scmp.lt.s32.totalorder %s4832_s17, 3 }
   0x5   : > { %s6841_s18 = smov (%p28_p1, %s26_s18), 0  ;;  %p179_p3 = pnand %p3882_p0, %p178_p2 }
   0x7   : > { %182 = sbr.rel (%p179_p3) target bundleno = 551 (0x227), region = 36 }
   0xe   : > { %s3883_s19 = sshll.u32 %s4824_s15, 2  ;;  %v4684_v0 = vld [vmem:[%s6773_s1] sm:$0xff]   ;;  %v6777_v1 = vmov 0   ;;  %v4687_v3 = vld [vmem:[%s6773_s1 + $0x8] sm:$0xff]   ;;  %v4690_v5 = vld [vmem:[%s6773_s1 + $0x10] sm:$0xff]   ;;  %s4835_s12 = smov 64  }
   0xf   : > { %p210_p4 = scmp.lt.s32.totalorder %s3883_s19, 7  ;;  %2230 = vmatprep.subr.bf16.mxu0 %v6777_v1  ;;  %1949 = vmatprep.subr.bf16.mxu1 %v6777_v1  ;;  %v4685_v2 = vld [vmem:[%s6773_s1 + $0x60] sm:$0xff]   ;;  %v4688_v4 = vld [vmem:[%s6773_s1 + $0x68] sm:$0xff]   ;;  %v4691_v6 = vld [vmem:[%s6773_s1 + $0x70] sm:$0xff]   ;;  %vm314_vm0 = vsmask.f32 3328 }
  0x10   : > { %2231 = vmatpush1.bf16.msra.mxu0 %v4684_v0  ;;  %1950 = vmatpush1.bf16.msra.mxu1 %v4685_v2  ;;  %v4693_v8 = vld [vmem:[%s6773_s1 + $0x18] sm:$0xff]   ;;  %v4696_v23 = vld [vmem:[%s6773_s1 + $0x20] sm:$0xff]   ;;  %v4699_v26 = vld [vmem:[%s6773_s1 + $0x28] sm:$0xff]   ;;  %vm315_vm1 = vsmask.f32 7440  ;;  %vm941_vm3 = vcmask 523264  }
  0x11   : > { %s6843_s19 = smov (!%p210_p4, %s3883_s19), 7  ;;  %2232 = vmatprep.subr.bf16.mxu0 %v6777_v1  ;;  %1951 = vmatprep.subr.bf16.mxu1 %v6777_v1  ;;  %v4694_v21 = vld [vmem:[%s6773_s1 + $0x78] sm:$0xff]   ;;  %v4697_v24 = vld [vmem:[%s6773_s1 + $0x80] sm:$0xff]   ;;  %v4700_v27 = vld [vmem:[%s6773_s1 + $0x88] sm:$0xff]   ;;  %p217_p5 = scmp.lt.s32.totalorder %s4824_s15, 1 }
  0x12   : > { %s4639_s28 = smul.u32 204, %s6843_s19  ;;  %v4702_v29 = vld [vmem:[%s6773_s1 + $0x30] sm:$0xff]   ;;  %v4705_v33 = vld [vmem:[%s6773_s1 + $0x38] sm:$0xff]   ;;  %v4708_v37 = vld [vmem:[%s6773_s1 + $0x40] sm:$0xff]  }
  0x13   : > { %v4703_v31 = vld [vmem:[%s6773_s1 + $0x90] sm:$0xff]   ;;  %v4706_v35 = vld [vmem:[%s6773_s1 + $0x98] sm:$0xff]   ;;  %v4709_v39 = vld [vmem:[%s6773_s1 + $0xa0] sm:$0xff]   ;;  %s6845_s15 = smov (!%p217_p5, %s4824_s15), 1 }
  0x14   : > { %2233 = vmatpush1.bf16.msra.mxu0 %v4687_v3  ;;  %s4904_s7 = scalar_lea.vmem %s6772_s0, %s4639_s28  ;;  %1952 = vmatpush1.bf16.msra.mxu1 %v4688_v4  ;;  %v4711_v41 = vld [vmem:[%s6773_s1 + $0x48] sm:$0xff]   ;;  %v4714_v46 = vld [vmem:[%s6773_s1 + $0x50] sm:$0xff]   ;;  %v4717_v63 = vld [vmem:[%s6773_s1 + $0x58] sm:$0xff]   ;;  %s4391_s19 = sshll.u32 %s6845_s15, 7 }
  0x15   : > { %2234 = vmatprep.subr.bf16.mxu0 %v6777_v1  ;;  %v4666_v7 = vld [vmem:[%s4904_s7 + $0xcc] sm:$0xff]   ;;  %1953 = vmatprep.subr.bf16.mxu1 %v6777_v1  ;;  %v4667_v9 = vld [vmem:[%s4904_s7 + $0x264] sm:$0xff]   ;;  %v4668_v10 = vld [vmem:[%s4904_s7 + $0xd8] sm:$0xff]   ;;  %s6675_s22 = scalar_lea.vmem %s6776_s4, %s4391_s19 }
  0x16   : > { %861 = vrot.lane.b32.xlu0 %v4666_v7, %s4835_s12  ;;  %863 = vrot.lane.b32.xlu1 %v4668_v10, %s4835_s12  ;;  %v4669_v11 = vld [vmem:[%s4904_s7 + $0x270] sm:$0xff]   ;;  %v4670_v12 = vld [vmem:[%s4904_s7 + $0xe4] sm:$0xff]   ;;  %vm5056_vm2 = vmor %vm314_vm0, %vm315_vm1 }
  0x17   : > { %v4671_v13 = vld [vmem:[%s4904_s7 + $0x27c] sm:$0xff]   ;;  %v4672_v14 = vld [vmem:[%s4904_s7 + $0xf0] sm:$0xff]   ;;  %v4673_v15 = vld [vmem:[%s4904_s7 + $0x288] sm:$0xff]  }
  0x18   : > { %2235 = vmatpush1.bf16.msra.mxu0 %v4690_v5  ;;  %1954 = vmatpush1.bf16.msra.mxu1 %v4691_v6  ;;  %v4674_v16 = vld [vmem:[%s4904_s7 + $0xfc] sm:$0xff]   ;;  %v4675_v17 = vld [vmem:[%s4904_s7 + $0x294] sm:$0xff]   ;;  %v4676_v18 = vld [vmem:[%s4904_s7 + $0x108] sm:$0xff]  }
  0x19   : > { %2236 = vmatprep.subr.bf16.mxu0 %v6777_v1  ;;  %1955 = vmatprep.subr.bf16.mxu1 %v6777_v1  ;;  %v4677_v19 = vld [vmem:[%s4904_s7 + $0x2a0] sm:$0xff]   ;;  %v4678_v20 = vld [vmem:[%s4904_s7 + $0x114] sm:$0xff]   ;;  %v4679_v22 = vld [vmem:[%s4904_s7 + $0x2ac] sm:$0xff]  }
  0x1a   : > { %1660 = vrot.lane.b32.xlu0 %v4667_v9, %s4835_s12  ;;  %1662 = vrot.lane.b32.xlu1 %v4669_v11, %s4835_s12  ;;  %v4680_v25 = vld [vmem:[%s4904_s7 + $0x120] sm:$0xff]   ;;  %v4681_v28 = vld [vmem:[%s4904_s7 + $0x2b8] sm:$0xff]  }
  0x1b   : > { %v4683_v30 = vld [vmem:[%s4904_s7 + $0x2c4] sm:$0xff]   ;;  %v4682_v32 = vld [vmem:[%s4904_s7 + $0xd8] sm:$0xff]   ;;  %v4689_v34 = vld [vmem:[%s4904_s7 + $0x2d0] sm:$0xff]  }
  0x1c   : > { %2237 = vmatpush1.bf16.msra.mxu0 %v4693_v8  ;;  %1956 = vmatpush1.bf16.msra.mxu1 %v4694_v21  ;;  %v4686_v36 = vld [vmem:[%s4904_s7 + $0xe4] sm:$0xff]   ;;  %v4695_v38 = vld [vmem:[%s4904_s7 + $0x2dc] sm:$0xff]   ;;  %v4692_v40 = vld [vmem:[%s4904_s7 + $0xf0] sm:$0xff]  }
  0x1d   : > { %2238 = vmatprep.subr.bf16.mxu0 %v6777_v1  ;;  %1957 = vmatprep.subr.bf16.mxu1 %v6777_v1  ;;  %v4698_v42 = vld [vmem:[%s4904_s7 + $0xfc] sm:$0xff]   ;;  %v4701_v43 = vld [vmem:[%s4904_s7 + $0x2e8] sm:$0xff]   ;;  %v4707_v45 = vld [vmem:[%s4904_s7 + $0x2f4] sm:$0xff]  }
  0x1e   : > { %865 = vrot.lane.b32.xlu0 %v4670_v12, %s4835_s12  ;;  %1664 = vrot.lane.b32.xlu1 %v4671_v13, %s4835_s12  ;;  %v4712_v44 = vld [vmem:[%s6773_s1 + $0xa8] sm:$0xff]   ;;  %v5018_v47 = vld [vmem:[%s4904_s7] sm:$0xf] }
  0x1f   : > { %v5021_v48 = vld [vmem:[%s4904_s7 + $0x4] sm:$0xf]  ;;  %v298_v49 = vld [vmem:[%s4904_s7 + $0x8] sm:$0x1]  ;;  %v318_v52 = vshrl.u32 %v5018_v47, 16  ;;  %v321_v53 = vshll.u32 %v5018_v47, 16 }
  0x20   : > { %2239 = vmatpush1.bf16.msra.mxu0 %v4696_v23  ;;  %1958 = vmatpush1.bf16.msra.mxu1 %v4697_v24  ;;  %v4704_v51 = vld [vmem:[%s4904_s7 + $0x108] sm:$0xff]   ;;  %v327_v54 = vshll.u32 %v5021_v48, 16  ;;  %v331_v55 = vshrl.u32 %v5021_v48, 16  ;;  %v4715_v56 = vld [vmem:[%s6773_s1 + $0xb0] sm:$0xff]   ;;  %v337_v57 = vshll.u32 %v298_v49, 16  ;;  %v4713_v58 = vld [vmem:[%s4904_s7 + $0x300] sm:$0xff]  }
  0x21   : > { %2240 = vmatprep.subr.bf16.mxu0 %v6777_v1  ;;  %1959 = vmatprep.subr.bf16.mxu1 %v6777_v1  ;;  %v320_v59 = vrot.slane %v318_v52, 4  ;;  %v323_v60 = vrot.slane %v321_v53, 5  ;;  %v5043_v2 = vld [vmem:[%s4904_s7 + $0x198] sm:$0xf]  ;;  %v5046_v3 = vld [vmem:[%s4904_s7 + $0x19c] sm:$0xf] }
  0x22   : > { %867 = vrot.lane.b32.xlu0 %v4672_v14, %s4835_s12  ;;  %1666 = vrot.lane.b32.xlu1 %v4673_v15, %s4835_s12  ;;  %v329_v61 = vrot.slane %v327_v54, 5  ;;  %v333_v62 = vrot.slane %v331_v55, 4  ;;  %v339_v0 = vrot.slane %v337_v57, 5  ;;  %v4710_v4 = vld [vmem:[%s4904_s7 + $0x114] sm:$0xff]   ;;  %v4031_v7 = vld [vmem:[%s4904_s7 + $0x1a0] sm:$0x1] }
  0x23   : > { %v324_v5 = vor.u32 %v323_v60, %v320_v59  ;;  %v1117_v8 = vshrl.u32 %v5043_v2, 16  ;;  %v1120_v9 = vshll.u32 %v5043_v2, 16  ;;  %v4718_v11 = vld [vmem:[%s6773_s1 + $0xb8] sm:$0xff]   ;;  %v1126_v12 = vshll.u32 %v5046_v3, 16  ;;  %v4719_v24 = vld [vmem:[%s4904_s7 + $0x30c] sm:$0xff]  }
  0x24   : > { %2241 = vmatpush1.bf16.msra.mxu0 %v4699_v26  ;;  %1960 = vmatpush1.bf16.msra.mxu1 %v4700_v27  ;;  %v334_v6 = vor.u32 %v333_v62, %v329_v61  ;;  %v1130_v13 = vshrl.u32 %v5046_v3, 16  ;;  %v1136_v14 = vshll.u32 %v4031_v7, 16  ;;  %v5077_v27 = vld [vmem:[%s4904_s7 + $0xc] sm:$0xf]  ;;  %v5107_v49 = vld [vmem:[%s4904_s7 + $0x18] sm:$0xf] }
  0x25   : > { %2242 = vmatprep.subr.bf16.mxu0 %v6777_v1  ;;  %1961 = vmatprep.subr.bf16.mxu1 %v6777_v1  ;;  %v4730_v57 = vld [vmem:[%s4904_s7 + $0x12c] sm:$0xff]   ;;  %v366_v62 = vshrl.u32 %v5107_v49, 16 }
  0x26   : > { %869 = vrot.lane.b32.xlu0 %v4674_v16, %s4835_s12  ;;  %1668 = vrot.lane.b32.xlu1 %v4675_v17, %s4835_s12  ;;  %v325_v16 = vrot.slane %v324_v5, 4  ;;  %v335_v17 = vrot.slane %v334_v6, 4  ;;  %v1132_v21 = vrot.slane %v1130_v13, 4  ;;  %v1138_v26 = vrot.slane %v1136_v14, 5 }
  0x28   : > { %2243 = vmatpush1.bf16.msra.mxu0 %v4702_v29  ;;  %1962 = vmatpush1.bf16.msra.mxu1 %v4703_v31  ;;  %v340_v23 = vsel %vm5056_vm2, %v335_v17, %v339_v0  ;;  %v4716_v31 = vld [vmem:[%s4904_s7 + $0x120] sm:$0xff]  }
  0x29   : > { %2244 = vmatprep.subr.bf16.mxu0 %v6777_v1  ;;  %1963 = vmatprep.subr.bf16.mxu1 %v6777_v1 }
  0x2a   : > { %871 = vrot.lane.b32.xlu0 %v4676_v18, %s4835_s12  ;;  %1670 = vrot.lane.b32.xlu1 %v4677_v19, %s4835_s12  ;;  %v1119_v18 = vrot.slane %v1117_v8, 4  ;;  %v1122_v19 = vrot.slane %v1120_v9, 5 }
  0x2c   : > { %2245 = vmatpush1.bf16.msra.mxu0 %v4705_v33  ;;  %1964 = vmatpush1.bf16.msra.mxu1 %v4706_v35 }
  0x2d   : > { %2246 = vmatprep.subr.bf16.mxu0 %v6777_v1  ;;  %1965 = vmatprep.subr.bf16.mxu1 %v6777_v1 }
  0x2e   : > { %873 = vrot.lane.b32.xlu0 %v4678_v20, %s4835_s12  ;;  %1672 = vrot.lane.b32.xlu1 %v4679_v22, %s4835_s12  ;;  %v1128_v20 = vrot.slane %v1126_v12, 5  ;;  %v330_v22 = vsel %vm5056_vm2, %v325_v16, %v329_v61  ;;  %v5120_v61 = vld [vmem:[%s4904_s7 + $0x1c] sm:$0xf]  ;;  %v300_v12 = vld [vmem:[%s4904_s7 + $0x20] sm:$0x1]  ;;  %v368_v16 = vrot.slane %v366_v62, 4 }
  0x2f   : > { %v375_v5 = vshll.u32 %v5120_v61, 16  ;;  %v379_v6 = vshrl.u32 %v5120_v61, 16 }
  0x30   : > { %2247 = vmatpush1.bf16.msra.mxu0 %v4708_v37  ;;  %1966 = vmatpush1.bf16.msra.mxu1 %v4709_v39  ;;  %v1133_v29 = vor.u32 %v1132_v21, %v1128_v20  ;;  %v4724_v39 = vld [vmem:[%s4904_s7 + $0x318] sm:$0xff]  }
  0x31   : > { %2248 = vmatprep.subr.bf16.mxu0 %v6777_v1  ;;  %1967 = vmatprep.subr.bf16.mxu1 %v6777_v1  ;;  %v5137_v21 = vrot.slane %v375_v5, 5 }
  0x32   : > { %875 = vrot.lane.b32.xlu0 %v4680_v25, %s4835_s12  ;;  %1674 = vrot.lane.b32.xlu1 %v4681_v28, %s4835_s12  ;;  %v1123_v25 = vor.u32 %v1122_v19, %v1119_v18  ;;  %v3951_v28 = vcombine.low %v330_v22, %v340_v23  ;;  %v1134_v33 = vrot.slane %v1133_v29, 4  ;;  %v4734_v18 = vld [vmem:[%s4904_s7 + $0x144] sm:$0xff]   ;;  %v381_v22 = vrot.slane %v379_v6, 4  ;;  %v4735_v23 = vld [vmem:[%s4904_s7 + $0x138] sm:$0xff]  }
  0x34   : > { %2249 = vmatpush1.bf16.msra.mxu0 %v4711_v41  ;;  %1968 = vmatpush1.bf16.msra.mxu1 %v4712_v44  ;;  %v4721_v41 = vld [vmem:[%s4904_s7 + $0x12c] sm:$0xff]   ;;  %v5102_v44 = vld [vmem:[%s4904_s7 + $0x1a8] sm:$0xf] }
  0x35   : > { %2250 = vmatprep.subr.bf16.mxu0 %v6777_v1  ;;  %1969 = vmatprep.subr.bf16.mxu1 %v6777_v1  ;;  %v1150_v59 = vshll.u32 %v5102_v44, 16  ;;  %v1154_v60 = vshrl.u32 %v5102_v44, 16 }
  0x36   : > { %1676 = vrot.lane.b32.xlu0 %v4683_v30, %s4835_s12  ;;  %3022 = vrot.lane.b32.xlu1 %v4682_v32, %s4835_s12  ;;  %v5080_v30 = vld [vmem:[%s4904_s7 + $0x10] sm:$0xf]  ;;  %v1124_v32 = vrot.slane %v1123_v25, 4 }
  0x37   : > { %4159 = vmatprep.mubr.msk.bf16.mxu0 %vm941_vm3, %v3951_v28  ;;  %v351_v37 = vshll.u32 %v5080_v30, 16  ;;  %v5128_v9 = vrot.slane %v1150_v59, 5  ;;  %v5144_v28 = vld [vmem:[%s4904_s7 + $0x1b4] sm:$0xf] }
  0x38   : > { %2251 = vmatpush1.bf16.msra.mxu0 %v4714_v46  ;;  %1970 = vmatpush1.bf16.msra.mxu1 %v4715_v56  ;;  %v1129_v35 = vsel %vm5056_vm2, %v1124_v32, %v1128_v20  ;;  %v4728_v56 = vld [vmem:[%s4904_s7 + $0x138] sm:$0xff]   ;;  %v5135_v20 = vld [vmem:[%s4904_s7 + $0x1b0] sm:$0xf]  ;;  %6792 = vst [vmem:[#allocation3_spill] sm:$0xff] %v5144_v28 }
  0x39   : > { %2252 = vmatprep.subr.bf16.mxu0 %v6777_v1  ;;  %1971 = vmatprep.subr.bf16.mxu1 %v6777_v1  ;;  %v5111_v54 = vrot.slane %v351_v37, 5  ;;  %6791 = vst [vmem:[#allocation2_spill] sm:$0xff] %v5135_v20  ;;  %v1168_v37 = vshll.u32 %v5135_v20, 16 }
  0x3a   : > { %1678 = vrot.lane.b32.xlu0 %v4689_v34, %s4835_s12  ;;  %3024 = vrot.lane.b32.xlu1 %v4686_v36, %s4835_s12  ;;  %v342_v34 = vshrl.u32 %v5077_v27, 16  ;;  %v345_v36 = vshll.u32 %v5077_v27, 16 }
  0x3c   : > { %2253 = vmatpush1.bf16.msra.mxu0 %v4717_v63  ;;  %1972 = vmatpush1.bf16.msra.mxu1 %v4718_v11  ;;  %v344_v52 = vrot.slane %v342_v34, 4  ;;  %v347_v53 = vrot.slane %v345_v36, 5  ;;  %v369_v63 = vshll.u32 %v5107_v49, 16  ;;  %v1156_v11 = vrot.slane %v1154_v60, 4 }
  0x3d   : > { %3311 = vmatprep.subr.bf16.mxu0 %v6777_v1  ;;  %4519 = vmatprep.subr.bf16.mxu1 %v6777_v1  ;;  %v382_v36 = vor.u32 %v381_v22, %v5137_v21  ;;  %v301_v22 = vld [vmem:[%s4904_s7 + $0x2c] sm:$0x1]  ;;  %v5233_v1 = vld [vmem:[%s4904_s7 + $0x1c8] sm:$0xf] }
  0x3e   : > { %1680 = vrot.lane.b32.xlu0 %v4695_v38, %s4835_s12  ;;  %3026 = vrot.lane.b32.xlu1 %v4692_v40, %s4835_s12  ;;  %v355_v38 = vshrl.u32 %v5080_v30, 16  ;;  %v1139_v40 = vsel %vm5056_vm2, %v1134_v33, %v1138_v26  ;;  %v348_v7 = vor.u32 %v347_v53, %v344_v52  ;;  %v371_v17 = vrot.slane %v369_v63, 5  ;;  %v5170_v52 = vld [vmem:[%s4904_s7 + $0x24] sm:$0xf]  ;;  %v5173_v53 = vld [vmem:[%s4904_s7 + $0x28] sm:$0xf] }
  0x3f   : > { %v1157_v25 = vor.u32 %v1156_v11, %v5128_v9  ;;  %v385_v26 = vshll.u32 %v300_v12, 16  ;;  %v1165_v33 = vshrl.u32 %v5135_v20, 16  ;;  %6793 = vst [vmem:[#allocation4_spill] sm:$0xff] %v5170_v52  ;;  %6794 = vst [vmem:[#allocation5_spill] sm:$0xff] %v5173_v53  ;;  %v390_v63 = vshrl.u32 %v5170_v52, 16 }
  0x40   : > { %v357_v55 = vrot.slane %v355_v38, 4  ;;  %v5146_v29 = vrot.slane %v348_v7, 4  ;;  %v372_v32 = vor.u32 %v371_v17, %v368_v16  ;;  %v1174_v38 = vshll.u32 %v5144_v28, 16  ;;  %v5194_v11 = vld [vmem:[%s4904_s7 + $0x30] sm:$0xf] }
  0x41   : > { %v403_v5 = vshrl.u32 %v5173_v53, 16  ;;  %v392_v17 = vrot.slane %v390_v63, 4 }
  0x42   : > { %1682 = vrot.lane.b32.xlu0 %v4701_v43, %s4835_s12  ;;  %3028 = vrot.lane.b32.xlu1 %v4698_v42, %s4835_s12  ;;  %v5098_v42 = vld [vmem:[%s4904_s7 + $0x1a4] sm:$0xf]  ;;  %v4079_v43 = vcombine.low %v1129_v35, %v1139_v40  ;;  %v358_v13 = vor.u32 %v357_v55, %v5111_v54  ;;  %v5162_v40 = vrot.slane %v385_v26, 5  ;;  %v5176_v55 = vld [vmem:[%s4904_s7 + $0x1bc] sm:$0xf]  ;;  %v5184_v59 = vrot.slane %v1174_v38, 5 }
  0x43   : > { %v1144_v46 = vshll.u32 %v5098_v42, 16  ;;  %6795 = vst [vmem:[#allocation6_spill] sm:$0xff] %v5176_v55  ;;  %v1189_v6 = vshrl.u32 %v5176_v55, 16  ;;  %v1192_v7 = vshll.u32 %v5176_v55, 16  ;;  %v414_v26 = vshrl.u32 %v5194_v11, 16 }
  0x44   : > { %4131 = vmatprep.mubr.msk.bf16.mxu1 %vm941_vm3, %v4079_v43  ;;  %v1178_v43 = vshrl.u32 %v5144_v28, 16  ;;  %v354_v63 = vsel %vm5056_vm2, %v5146_v29, %v5111_v54 }
  0x46   : > { %1684 = vrot.lane.b32.xlu0 %v4707_v45, %s4835_s12  ;;  %3030 = vrot.lane.b32.xlu1 %v4704_v51, %s4835_s12  ;;  %v1141_v45 = vshrl.u32 %v5098_v42, 16  ;;  %v299_v51 = vld [vmem:[%s4904_s7 + $0x14] sm:$0x1]  ;;  %v1180_v62 = vrot.slane %v1178_v43, 4 }
  0x47   : > { %v361_v8 = vshll.u32 %v299_v51, 16  ;;  %v1167_v51 = vrot.slane %v1165_v33, 4  ;;  %v4034_v33 = vld [vmem:[%s4904_s7 + $0x1c4] sm:$0x1] }
  0x48   : > { %v1143_v0 = vrot.slane %v1141_v45, 4  ;;  %v4739_v45 = vld [vmem:[%s4904_s7 + $0x150] sm:$0xff]  }
  0x4a   : > { %1686 = vrot.lane.b32.xlu0 %v4713_v58, %s4835_s12  ;;  %3032 = vrot.lane.b32.xlu1 %v4710_v4, %s4835_s12  ;;  %v4032_v58 = vld [vmem:[%s4904_s7 + $0x1ac] sm:$0x1]  ;;  %v1146_v4 = vrot.slane %v1144_v46, 5  ;;  %v5167_v46 = vrot.slane %v372_v32, 4  ;;  %v417_v32 = vshll.u32 %v5194_v11, 16 }
  0x4b   : > { %v1160_v14 = vshll.u32 %v4032_v58, 16  ;;  %v1170_v58 = vrot.slane %v1168_v37, 5 }
  0x4c   : > { %v1147_v19 = vor.u32 %v1146_v4, %v1143_v0  ;;  %v393_v0 = vshll.u32 %v5170_v52, 16  ;;  %v399_v4 = vshll.u32 %v5173_v53, 16  ;;  %v5371_v53 = vld [vmem:[%s4904_s7 + $0x1e0] sm:$0xf] }
  0x4d   : > { %v5155_v35 = vrot.slane %v1160_v14, 5  ;;  %v4741_v14 = vld [vmem:[%s4904_s7 + $0x144] sm:$0xff]   ;;  %v1171_v16 = vor.u32 %v1170_v58, %v1167_v51  ;;  %v4745_v58 = vld [vmem:[%s4904_s7 + $0x15c] sm:$0xff]   ;;  %6798 = vst [vmem:[#allocation9_spill] sm:$0xff] %v5371_v53 }
  0x4e   : > { %1688 = vrot.lane.b32.xlu0 %v4719_v24, %s4835_s12  ;;  %3034 = vrot.lane.b32.xlu1 %v4716_v31, %s4835_s12  ;;  %v5140_v24 = vrot.slane %v361_v8, 5  ;;  %v5148_v31 = vrot.slane %v358_v13, 4  ;;  %v5153_v34 = vrot.slane %v1147_v19, 4  ;;  %v5198_v13 = vld [vmem:[%s4904_s7 + $0x34] sm:$0xf]  ;;  %v5201_v19 = vrot.slane %v399_v4, 5 }
  0x4f   : > { %v423_v38 = vshll.u32 %v5198_v13, 16  ;;  %v1181_v4 = vor.u32 %v1180_v62, %v5184_v59  ;;  %v1172_v43 = vrot.slane %v1171_v16, 4  ;;  %v1208_v62 = vshll.u32 %v4034_v33, 16 }
  0x50   : > { %v1213_v33 = vshrl.u32 %v5233_v1, 16 }
  0x51   : > { %v5230_v29 = vrot.slane %v423_v38, 5 }
  0x52   : > { %1690 = vrot.lane.b32.xlu0 %v4724_v39, %s4835_s12  ;;  %3036 = vrot.lane.b32.xlu1 %v4721_v41, %s4835_s12  ;;  %v5160_v39 = vrot.slane %v1157_v25, 4  ;;  %v4033_v41 = vld [vmem:[%s4904_s7 + $0x1b8] sm:$0x1]  ;;  %v1191_v25 = vrot.slane %v1189_v6, 4 }
  0x53   : > { %v1184_v60 = vshll.u32 %v4033_v41, 16  ;;  %v427_v41 = vshrl.u32 %v5198_v13, 16  ;;  %v302_v6 = vld [vmem:[%s4904_s7 + $0x38] sm:$0x1] }
  0x54   : > { %v1163_v16 = vsel %vm5056_vm2, %v5160_v39, %v5155_v35  ;;  %v4750_v39 = vld [vmem:[%s4904_s7 + $0x168] sm:$0xff]  }
  0x55   : > { %v1186_v54 = vrot.slane %v1184_v60, 5  ;;  %v429_v15 = vrot.slane %v427_v41, 4  ;;  %v1153_v60 = vsel %vm5056_vm2, %v5153_v34, %v5128_v9  ;;  %v378_v9 = vsel %vm5056_vm2, %v5167_v46, %v5137_v21 }
  0x56   : > { %877 = vrot.lane.b32.xlu0 %v4730_v57, %s4835_s12  ;;  %3038 = vrot.lane.b32.xlu1 %v4728_v56, %s4835_s12  ;;  %v5179_v56 = vld [vmem:[%s4904_s7 + $0x1c0] sm:$0xf]  ;;  %v5182_v57 = vrot.slane %v382_v36, 4  ;;  %v1194_v36 = vrot.slane %v1192_v7, 5  ;;  %v1177_v21 = vsel %vm5056_vm2, %v1172_v43, %v5184_v59  ;;  %v5291_v59 = vrot.slane %v1213_v33, 4 }
  0x57   : > { %6796 = vst [vmem:[#allocation7_spill] sm:$0xff] %v5179_v56  ;;  %v1198_v8 = vshll.u32 %v5179_v56, 16  ;;  %v1202_v12 = vshrl.u32 %v5179_v56, 16  ;;  %v430_v34 = vor.u32 %v429_v15, %v5230_v29  ;;  %v5322_v33 = vld [vmem:[%s4904_s7 + $0x48] sm:$0xf] }
  0x58   : > { %v388_v15 = vsel %vm5056_vm2, %v5182_v57, %v5162_v40 }
  0x59   : > { %v5208_v37 = vrot.slane %v1198_v8, 5  ;;  %v1204_v51 = vrot.slane %v1202_v12, 4  ;;  %v409_v8 = vshll.u32 %v301_v22, 16  ;;  %v416_v12 = vrot.slane %v414_v26, 4 }
  0x5a   : > { %3040 = vrot.lane.b32.xlu1 %v4734_v18, %s4835_s12  ;;  %879 = vrot.lane.b32.xlu0 %v4735_v23, %s4835_s12  ;;  %v395_v18 = vrot.slane %v393_v0, 5  ;;  %v405_v23 = vrot.slane %v403_v5, 4  ;;  %v364_v0 = vsel %vm5056_vm2, %v5148_v31, %v5140_v24  ;;  %v1195_v24 = vor.u32 %v1194_v36, %v1191_v25 }
  0x5b   : > { %v1205_v31 = vor.u32 %v1204_v51, %v5208_v37  ;;  %v1182_v22 = vrot.slane %v1181_v4, 4  ;;  %v411_v26 = vrot.slane %v409_v8, 5  ;;  %v1216_v36 = vshll.u32 %v5233_v1, 16 }
  0x5c   : > { %v396_v5 = vor.u32 %v395_v18, %v392_v17  ;;  %v406_v7 = vor.u32 %v405_v23, %v5201_v19  ;;  %v433_v17 = vshll.u32 %v302_v6, 16  ;;  %v5237_v18 = vld [vmem:[%s4904_s7 + $0x1cc] sm:$0xf]  ;;  %v5257_v38 = vrot.slane %v1195_v24, 4  ;;  %v5284_v6 = vld [vmem:[%s4904_s7 + $0x40] sm:$0xf] }
  0x5d   : > { %v1222_v35 = vshll.u32 %v5237_v18, 16  ;;  %v5259_v41 = vrot.slane %v1205_v31, 4  ;;  %v1187_v46 = vsel %vm5056_vm2, %v1182_v22, %v1186_v54  ;;  %v1226_v43 = vshrl.u32 %v5237_v18, 16 }
  0x5e   : > { %3042 = vrot.lane.b32.xlu1 %v4739_v45, %s4835_s12  ;;  %881 = vrot.lane.b32.xlu0 %v4741_v14, %s4835_s12  ;;  %v419_v14 = vrot.slane %v417_v32, 5  ;;  %v4746_v45 = vld [vmem:[%s4904_s7 + $0x150] sm:$0xff]   ;;  %v397_v23 = vrot.slane %v396_v5, 4  ;;  %v407_v25 = vrot.slane %v406_v7, 4  ;;  %v5263_v51 = vrot.slane %v433_v17, 5  ;;  %v4752_v7 = vld [vmem:[%s4904_s7 + $0x15c] sm:$0xff]  }
  0x5f   : > { %v5281_v5 = vld [vmem:[%s4904_s7 + $0x3c] sm:$0xf]  ;;  %v5297_v8 = vrot.slane %v1216_v36, 5  ;;  %v447_v31 = vshll.u32 %v5284_v6, 16  ;;  %v5307_v17 = vld [vmem:[%s4904_s7 + $0x1d4] sm:$0xf]  ;;  %v5310_v22 = vcombine.low %v354_v63, %v364_v0  ;;  %v5326_v36 = vcombine.low %v1177_v21, %v1187_v46 }
  0x60   : > { %v420_v32 = vor.u32 %v419_v14, %v416_v12  ;;  %v402_v4 = vsel %vm5056_vm2, %v397_v23, %v5201_v19  ;;  %v412_v40 = vsel %vm5056_vm2, %v407_v25, %v411_v26  ;;  %v5295_v19 = vrot.slane %v430_v34, 4 }
  0x61   : > { %v5299_v12 = vrot.slane %v1222_v35, 5  ;;  %v438_v54 = vshrl.u32 %v5281_v5, 16  ;;  %v441_v24 = vshll.u32 %v5281_v5, 16  ;;  %v5312_v23 = vcombine.low %v1153_v60, %v1163_v16  ;;  %v4756_v60 = vld [vmem:[%s4904_s7 + $0x174] sm:$0xff]   ;;  %v4036_v35 = vld [vmem:[%s4904_s7 + $0x1dc] sm:$0x1] }
  0x62   : > { %3044 = vrot.lane.b32.xlu1 %v4745_v58, %s4835_s12  ;;  %883 = vrot.lane.b32.xlu0 %v4746_v45, %s4835_s12  ;;  %v5261_v45 = vrot.slane %v1208_v62, 5  ;;  %v5266_v58 = vld [vmem:[%s4904_s7 + $0x1d0] sm:$0x1]  ;;  %v5289_v57 = vrot.slane %v420_v32, 4  ;;  %v451_v62 = vshrl.u32 %v5284_v6, 16  ;;  %v5324_v34 = vcombine.low %v378_v9, %v388_v15 }
  0x63   : > { %v1232_v14 = vshll.u32 %v5266_v58, 16  ;;  %v5319_v32 = vld [vmem:[%s4904_s7 + $0x1d8] sm:$0xf]  ;;  %v1228_v0 = vrot.slane %v1226_v43, 4  ;;  %v5331_v16 = vcombine.low %v402_v4, %v412_v40  ;;  %v1237_v58 = vshrl.u32 %v5307_v17, 16  ;;  %v4757_v4 = vld [vmem:[%s4904_s7 + $0x168] sm:$0xff]  }
  0x64   : > { %v1240_v9 = vshll.u32 %v5307_v17, 16  ;;  %v5339_v15 = vld [vmem:[%s4904_s7 + $0x4c] sm:$0xf]  ;;  %v440_v21 = vrot.slane %v438_v54, 4  ;;  %v443_v46 = vrot.slane %v441_v24, 5  ;;  %v1250_v43 = vshrl.u32 %v5319_v32, 16 }
  0x65   : > { %6797 = vst [vmem:[#allocation8_spill] sm:$0xff] %v5331_v16  ;;  %v5345_v40 = vrot.slane %v447_v31, 5  ;;  %v453_v63 = vrot.slane %v451_v62, 4  ;;  %v462_v26 = vshrl.u32 %v5322_v33, 16  ;;  %v465_v25 = vshll.u32 %v5322_v33, 16 }
  0x66   : > { %3046 = vrot.lane.b32.xlu1 %v4750_v39, %s4835_s12  ;;  %885 = vrot.lane.b32.xlu0 %v4752_v7, %s4835_s12  ;;  %v303_v39 = vld [vmem:[%s4904_s7 + $0x44] sm:$0x1]  ;;  %v1246_v7 = vshll.u32 %v5319_v32, 16  ;;  %v1201_v54 = vsel %vm5056_vm2, %v5257_v38, %v5208_v37  ;;  %v1211_v24 = vsel %vm5056_vm2, %v5259_v41, %v5261_v45  ;;  %v471_v31 = vshll.u32 %v5339_v15, 16 }
  0x67   : > { %v475_v62 = vshrl.u32 %v5339_v15, 16  ;;  %v1219_v37 = vor.u32 %v5297_v8, %v5291_v59  ;;  %v1239_v38 = vrot.slane %v1237_v58, 4  ;;  %v1242_v50 = vrot.slane %v1240_v9, 5 }
  0x68   : > { %v1229_v41 = vor.u32 %v1228_v0, %v5299_v12  ;;  %v457_v45 = vshll.u32 %v303_v39, 16  ;;  %v5368_v56 = vrot.slane %v1246_v7, 5  ;;  %v1252_v55 = vrot.slane %v1250_v43, 4 }
  0x69   : > { %v1234_v52 = vrot.slane %v1232_v14, 5  ;;  %v454_v16 = vor.u32 %v453_v63, %v5345_v40  ;;  %v1256_v28 = vshll.u32 %v4036_v35, 16  ;;  %v464_v59 = vrot.slane %v462_v26, 4 }
  0x6a   : > { %3048 = vrot.lane.b32.xlu1 %v4756_v60, %s4835_s12  ;;  %887 = vrot.lane.b32.xlu0 %v4757_v4, %s4835_s12  ;;  %v426_v60 = vsel %vm5056_vm2, %v5289_v57, %v5230_v29  ;;  %v444_v4 = vor.u32 %v443_v46, %v440_v21  ;;  %v304_v29 = vld [vmem:[%s4904_s7 + $0x50] sm:$0x1]  ;;  %v5376_v57 = vld [vmem:[%s4904_s7 + $0x1e4] sm:$0xf]  ;;  %v467_v8 = vrot.slane %v465_v25, 5  ;;  %v5378_v58 = vrot.slane %v471_v31, 5 }
  0x6b   : > { %6799 = vst [vmem:[#allocation10_spill] sm:$0xff] %v5376_v57  ;;  %v477_v0 = vrot.slane %v475_v62, 4  ;;  %v436_v39 = vsel %vm5056_vm2, %v5295_v19, %v5263_v51  ;;  %v1243_v9 = vor.u32 %v1242_v50, %v1239_v38  ;;  %v1261_v14 = vshrl.u32 %v5371_v53, 16  ;;  %v4761_v25 = vld [vmem:[%s4904_s7 + $0x180] sm:$0xff]   ;;  %v4037_v38 = vld [vmem:[%s4904_s7 + $0x1e8] sm:$0x1] }
  0x6c   : > { %v1264_v63 = vshll.u32 %v5371_v53, 16  ;;  %v1220_v35 = vrot.slane %v1219_v37, 4  ;;  %v1230_v21 = vrot.slane %v1229_v41, 4  ;;  %v459_v46 = vrot.slane %v457_v45, 5  ;;  %v6813_v53 = vld [vmem:[#allocation4_spill] sm:$0xff] }
  0x6d   : > { %v1253_v26 = vor.u32 %v1252_v55, %v5368_v56  ;;  %v445_v7 = vrot.slane %v444_v4, 4  ;;  %v455_v43 = vrot.slane %v454_v16, 4  ;;  %v1270_v31 = vshll.u32 %v5376_v57, 16  ;;  %v4723_v55 = vld [vmem:[%s6773_s1 + $0xc0] sm:$0xff]   ;;  %v4764_v4 = vld [vmem:[%s4904_s7 + $0x174] sm:$0xff]  }
  0x6e   : > { %v1274_v62 = vshrl.u32 %v5376_v57, 16  ;;  %v5390_v51 = vrot.slane %v1256_v28, 5  ;;  %v468_v50 = vor.u32 %v467_v8, %v464_v59  ;;  %v478_v19 = vor.u32 %v477_v0, %v5378_v58  ;;  %3050 = vrot.lane.b32.xlu1 %v4761_v25, %s4835_s12  ;;  %v5408_v0 = vld [vmem:[%s4904_s7 + $0x54] sm:$0xf]  ;;  %v4766_v25 = vld [vmem:[%s4904_s7 + $0x18c] sm:$0xff]   ;;  %889 = vrot.lane.b32.xlu0 %v4764_v4, %s4835_s12 }
  0x6f   : > { %v481_v37 = vshll.u32 %v304_v29, 16  ;;  %v1244_v41 = vrot.slane %v1243_v9, 4  ;;  %v1263_v45 = vrot.slane %v1261_v14, 4  ;;  %v1266_v28 = vrot.slane %v1264_v63, 5  ;;  %6800 = vst [vmem:[#allocation11_spill] sm:$0xff] %v5408_v0  ;;  %v4767_v29 = vld [vmem:[%s4904_s7 + $0x180] sm:$0xff]  }
  0x70   : > { %v5401_v20 = vcombine.low %v1201_v54, %v1211_v24  ;;  %v5403_v59 = vcombine.low %v426_v60, %v436_v39  ;;  %v1254_v8 = vrot.slane %v1253_v26, 4  ;;  %v1225_v16 = vsel %vm5056_vm2, %v1220_v35, %v5299_v12 }
  0x71   : > { %v1235_v9 = vsel %vm5056_vm2, %v1230_v21, %v1234_v52  ;;  %v5416_v14 = vrot.slane %v1270_v31, 5  ;;  %v1276_v54 = vrot.slane %v1274_v62, 4  ;;  %v469_v60 = vrot.slane %v468_v50, 4 }
  0x72   : > { %v479_v39 = vrot.slane %v478_v19, 4  ;;  %v483_v63 = vrot.slane %v481_v37, 5  ;;  %v1280_v26 = vshll.u32 %v4037_v38, 16  ;;  %3052 = vrot.lane.b32.xlu1 %v4766_v25, %s4835_s12  ;;  %v6801_v12 = vcombine.low %v5018_v47, %v5021_v48  ;;  %v5437_v48 = vld [vmem:[%s4904_s7 + $0x58] sm:$0xf]  ;;  %891 = vrot.lane.b32.xlu0 %v4767_v29, %s4835_s12 }
  0x73   : > { %v450_v52 = vsel %vm5056_vm2, %v445_v7, %v5345_v40  ;;  %v460_v21 = vsel %vm5056_vm2, %v455_v43, %v459_v46  ;;  %v1267_v31 = vor.u32 %v1266_v28, %v1263_v45  ;;  %v5430_v50 = vcombine.low %v1225_v16, %v1235_v9  ;;  %6802 = vst [vmem:[#allocation12_spill] sm:$0xff] %v5437_v48  ;;  %v4726_v40 = vld [vmem:[%s6773_s1 + $0xc8] sm:$0xff]   ;;  %v4039_v47 = vld [vmem:[%s4904_s7 + $0x200] sm:$0x1] }
  0x74   : > { %v486_v37 = vshrl.u32 %v5408_v0, 16  ;;  %v1249_v46 = vsel %vm5056_vm2, %v1244_v41, %v5368_v56  ;;  %v1259_v7 = vsel %vm5056_vm2, %v1254_v8, %v5390_v51  ;;  %v1277_v43 = vor.u32 %v1276_v54, %v5416_v14  ;;  %v5464_v51 = vld [vmem:[%s4904_s7 + $0x5c] sm:$0x1]  ;;  %v5477_v9 = vld [vmem:[%s4904_s7 + $0x1ec] sm:$0xf] }
  0x75   : > { %v489_v38 = vshll.u32 %v5408_v0, 16  ;;  %v5454_v16 = vcombine.low %v450_v52, %v460_v21  ;;  %v474_v45 = vsel %vm5056_vm2, %v469_v60, %v5378_v58  ;;  %v484_v56 = vsel %vm5056_vm2, %v479_v39, %v483_v63  ;;  %v5480_v54 = vld [vmem:[%s4904_s7 + $0x1f0] sm:$0xf]  ;;  %v4798_v39 = vld [vmem:[%s6773_s1] sm:$0xff]   ;;  %v5504_v21 = vld [vmem:[%s4904_s7 + $0xc] sm:$0xf] }
  0x76   : > { %v5461_v41 = vrot.slane %v1280_v26, 5  ;;  %v6804_v28 = vcombine.low %v5043_v2, %v5046_v3  ;;  %v5473_v25 = vrot.slane %v1267_v31, 4  ;;  %v495_v58 = vshll.u32 %v5437_v48, 16  ;;  %v4729_v2 = vld [vmem:[%s6773_s1 + $0xd0] sm:$0xff]  }
  0x77   : > { %v5485_v3 = vcombine.low %v1249_v46, %v1259_v7  ;;  %v499_v60 = vshrl.u32 %v5437_v48, 16  ;;  %v6805_v63 = vcombine.low %v5077_v27, %v5080_v30  ;;  %v5501_v52 = vrot.slane %v489_v38, 5  ;;  %v5507_v31 = vld [vmem:[%s4904_s7 + $0x10] sm:$0xf]  ;;  %v5527_v38 = vld [vmem:[%s4904_s7 + $0x1f8] sm:$0xf] }
  0x78   : > { %v1285_v27 = vshrl.u32 %v5477_v9, 16  ;;  %v1288_v30 = vshll.u32 %v5477_v9, 16  ;;  %v1273_v46 = vsel %vm5056_vm2, %v5473_v25, %v5416_v14  ;;  %v5521_v7 = vrot.slane %v495_v58, 5  ;;  %v5534_v14 = vld [vmem:[%s4904_s7 + $0x1fc] sm:$0xf]  ;;  %v4799_v25 = vld [vmem:[%s6773_s1 + $0x8] sm:$0xff]  }
  0x79   : > { %v4733_v58 = vld [vmem:[%s6773_s1 + $0xd8] sm:$0xff]   ;;  %v1309_v29 = vshrl.u32 %v5527_v38, 16  ;;  %v6812_v48 = vld [vmem:[#allocation8_spill] sm:$0xff] }
  0x88   : > { %v862_v24 = vpop.permute.xlu0 %861  ;;  %v864_v62 = vpop.permute.xlu1 %863 }
  0x89   : > { %v944_v35 = vsel %vm941_vm3, %v6801_v12, %v862_v24  ;;  %v5489_v24 = vrot.slane %v486_v37, 4  ;;  %v948_v26 = vsel %vm941_vm3, %v6805_v63, %v864_v62  ;;  %v5499_v12 = vcombine.low %v474_v45, %v484_v56 }
  0x8a   : > { %2263 = vmatmul.mubr.bf16.vlgmr.msra.gmra.mrb[0].mxu0 %v944_v35  ;;  %v1278_v35 = vrot.slane %v1277_v43, 4  ;;  %v1294_v62 = vshll.u32 %v5480_v54, 16  ;;  %v2482_v45 = vshll.u32 %v5504_v21, 16  ;;  %v2488_v56 = vshll.u32 %v5507_v31, 16  ;;  %v4239_v43 = vld [vmem:[%s4904_s7 + $0x14] sm:$0x1] }
  0x8b   : > { %3312 = vmatpush1.bf16.msra.mxu0 %v4723_v55  ;;  %4160 = vmatprep.mubr.msk.bf16.mxu0 %vm941_vm3, %v5310_v22  ;;  %v6803_v22 = vmov 0  }
  0x8c   : > { %v1661_v55 = vpop.permute.xlu0 %1660  ;;  %3313 = vmatprep.subr.bf16.mxu0 %v6803_v22  ;;  %v1663_v37 = vpop.permute.xlu1 %1662 }
  0x8d   : > { %v1742_v4 = vsel %vm941_vm3, %v6804_v28, %v1661_v55  ;;  %v2479_v55 = vshrl.u32 %v5504_v21, 16  ;;  %v2492_v28 = vshrl.u32 %v5507_v31, 16 }
  0x8e   : > { %1982 = vmatmul.mubr.bf16.vlgmr.msra.gmra.mrb[0].mxu1 %v1742_v4 }
  0x8f   : > { %4531 = vmatpush1.bf16.msra.mxu1 %v4798_v39  ;;  %3314 = vmatpush1.bf16.msra.mxu0 %v4726_v40  ;;  %v1298_v40 = vshrl.u32 %v5480_v54, 16  ;;  %v1283_v39 = vsel %vm5056_vm2, %v1278_v35, %v5461_v41  ;;  %v1312_v41 = vshll.u32 %v5527_v38, 16  ;;  %v2484_v35 = vrot.slane %v2482_v45, 5 }
  0x90   : > { %4132 = vmatprep.mubr.msk.bf16.mxu1 %vm941_vm3, %v5312_v23  ;;  %4520 = vmatprep.subr.bf16.mxu1 %v6803_v22  ;;  %v505_v23 = vshll.u32 %v5464_v51, 16  ;;  %v6806_v51 = vcombine.low %v5098_v42, %v5102_v44  ;;  %v492_v42 = vor.u32 %v5501_v52, %v5489_v24  ;;  %v501_v44 = vrot.slane %v499_v60, 4  ;;  %v866_v63 = vpop.permute.xlu0 %865 }
  0x91   : > { %3315 = vmatprep.subr.bf16.mxu0 %v6803_v22  ;;  %v1318_v24 = vshll.u32 %v5534_v14, 16  ;;  %v2481_v60 = vrot.slane %v2479_v55, 4  ;;  %v5563_v52 = vrot.slane %v2488_v56, 5  ;;  %v5580_v56 = vld [vmem:[%s4904_s7 + $0x18] sm:$0xf] }
  0x92   : > { %2271 = vmatmul.mubr.bf16.gmra.mrb[4].mxu0 %v948_v26  ;;  %v1746_v4 = vsel %vm941_vm3, %v6806_v51, %v1663_v37  ;;  %v4038_v26 = vld [vmem:[%s4904_s7 + $0x1f4] sm:$0x1]  ;;  %v1287_v37 = vrot.slane %v1285_v27, 4  ;;  %v1290_v51 = vrot.slane %v1288_v30, 5  ;;  %v2494_v27 = vrot.slane %v2492_v28, 4 }
  0x93   : > { %4532 = vmatpush1.bf16.msra.mxu1 %v4799_v25  ;;  %4161 = vmatprep.mubr.msk.bf16.mxu0 %vm941_vm3, %v5324_v34  ;;  %v5555_v34 = vrot.slane %v1294_v62, 5  ;;  %v1300_v25 = vrot.slane %v1298_v40, 4  ;;  %v6807_v30 = vcombine.low %v5107_v49, %v5120_v61  ;;  %v4800_v40 = vld [vmem:[%s6773_s1 + $0x10] sm:$0xff]   ;;  %v502_v55 = vor.u32 %v501_v44, %v5521_v7  ;;  %v1665_v49 = vpop.permute.xlu1 %1664  ;;  %v4737_v61 = vld [vmem:[%s6773_s1 + $0xe0] sm:$0xff]  }
  0x94   : > { %3316 = vmatpush1.bf16.msra.mxu0 %v4729_v2  ;;  %4521 = vmatprep.subr.bf16.mxu1 %v6803_v22  ;;  %v1322_v2 = vshrl.u32 %v5534_v14, 16  ;;  %v5577_v45 = vrot.slane %v505_v23, 5  ;;  %v1311_v23 = vrot.slane %v1309_v29, 4  ;;  %v1314_v44 = vrot.slane %v1312_v41, 5  ;;  %v4801_v29 = vld [vmem:[%s6773_s1 + $0x18] sm:$0xff]  }
  0x95   : > { %3317 = vmatprep.subr.bf16.mxu0 %v6803_v22  ;;  %v952_v62 = vsel %vm941_vm3, %v6807_v30, %v866_v63  ;;  %v1301_v28 = vor.u32 %v1300_v25, %v5555_v34  ;;  %v5588_v63 = vld [vmem:[%s4904_s7 + $0x1c] sm:$0xf]  ;;  %v5591_v30 = vrot.slane %v1318_v24, 5  ;;  %v2495_v8 = vor.u32 %v2494_v27, %v5563_v52 }
  0x96   : > { %1990 = vmatmul.mubr.bf16.gmra.mrb[4].mxu1 %v1746_v4  ;;  %v5574_v4 = vcombine.low %v1273_v46, %v1283_v39  ;;  %v1304_v46 = vshll.u32 %v4038_v26, 16  ;;  %v2498_v39 = vshll.u32 %v4239_v43, 16  ;;  %v6809_v26 = vld [vmem:[#allocation2_spill] sm:$0xff]  ;;  %v6810_v43 = vld [vmem:[#allocation3_spill] sm:$0xff]  ;;  %v493_v41 = vrot.slane %v492_v42, 4 }
  0x97   : > { %4133 = vmatprep.mubr.msk.bf16.mxu1 %vm941_vm3, %v5326_v36  ;;  %4533 = vmatpush1.bf16.msra.mxu1 %v4800_v40  ;;  %v1291_v36 = vor.u32 %v1290_v51, %v1287_v37  ;;  %v2485_v40 = vor.u32 %v2484_v35, %v2481_v60  ;;  %v2503_v37 = vshrl.u32 %v5580_v56, 16  ;;  %v2506_v51 = vshll.u32 %v5580_v56, 16  ;;  %v868_v60 = vpop.permute.xlu0 %867  ;;  %v4740_v35 = vld [vmem:[%s6773_s1 + $0xe8] sm:$0xff]  }
  0x98   : > { %6808 = vst [vmem:[#allocation13_spill] sm:$0xff] %v5574_v4  ;;  %3318 = vmatpush1.bf16.msra.mxu0 %v4733_v58  ;;  %4522 = vmatprep.subr.bf16.mxu1 %v6803_v22  ;;  %v1324_v58 = vrot.slane %v1322_v2, 4  ;;  %v6811_v25 = vcombine.low %v6809_v26, %v6810_v43  ;;  %v2512_v24 = vshll.u32 %v5588_v63, 16  ;;  %v2516_v2 = vshrl.u32 %v5588_v63, 16 }
  0x99   : > { %3319 = vmatprep.subr.bf16.mxu0 %v6803_v22  ;;  %v503_v27 = vrot.slane %v502_v55, 4  ;;  %v2500_v26 = vrot.slane %v2498_v39, 5  ;;  %v1315_v42 = vor.u32 %v1314_v44, %v1311_v23  ;;  %v2496_v0 = vrot.slane %v2495_v8, 4  ;;  %v6814_v55 = vld [vmem:[#allocation5_spill] sm:$0xff]  ;;  %v4240_v23 = vld [vmem:[%s4904_s7 + $0x20] sm:$0x1] }
  0x9a   : > { %2279 = vmatmul.mubr.bf16.gmra.mrb[8].mxu0 %v952_v62  ;;  %v1750_v19 = vsel %vm941_vm3, %v6811_v25, %v1665_v49  ;;  %v1302_v62 = vrot.slane %v1301_v28, 4  ;;  %v1306_v49 = vrot.slane %v1304_v46, 5  ;;  %v1325_v43 = vor.u32 %v1324_v58, %v5591_v30  ;;  %v5642_v44 = vld [vmem:[%s4904_s7 + $0x204] sm:$0xf] }
  0x9b   : > { %4162 = vmatprep.mubr.msk.bf16.mxu0 %vm941_vm3, %v6812_v48  ;;  %4534 = vmatpush1.bf16.msra.mxu1 %v4801_v29  ;;  %v1292_v48 = vrot.slane %v1291_v36, 4  ;;  %v1328_v25 = vshll.u32 %v4039_v47, 16  ;;  %v1667_v29 = vpop.permute.xlu1 %1666  ;;  %v2505_v4 = vrot.slane %v2503_v37, 4  ;;  %v2508_v57 = vrot.slane %v2506_v51, 5  ;;  %v4802_v47 = vld [vmem:[%s6773_s1 + $0x20] sm:$0xff]  }
  0x9c   : > { %3320 = vmatpush1.bf16.msra.mxu0 %v4737_v61  ;;  %4523 = vmatprep.subr.bf16.mxu1 %v6803_v22  ;;  %v2486_v61 = vrot.slane %v2485_v40, 4  ;;  %v6815_v36 = vcombine.low %v6813_v53, %v6814_v55  ;;  %v5626_v8 = vrot.slane %v2512_v24, 5  ;;  %v2518_v46 = vrot.slane %v2516_v2, 4  ;;  %v4744_v53 = vld [vmem:[%s6773_s1 + $0xf0] sm:$0xff]   ;;  %v6816_v51 = vld [vmem:[#allocation6_spill] sm:$0xff]  ;;  %v6829_v55 = vld [vmem:[#allocation11_spill] sm:$0xff] }
  0x9d   : > { %3321 = vmatprep.subr.bf16.mxu0 %v6803_v22  ;;  %v1297_v39 = vsel %vm5056_vm2, %v1292_v48, %v5555_v34  ;;  %v1307_v58 = vsel %vm5056_vm2, %v1302_v62, %v1306_v49  ;;  %v1316_v40 = vrot.slane %v1315_v42, 4  ;;  %v1330_v37 = vrot.slane %v1328_v25, 5  ;;  %v870_v48 = vpop.permute.xlu0 %869  ;;  %v4803_v62 = vld [vmem:[%s6773_s1 + $0x28] sm:$0xff]  }
  0x9e   : > { %1998 = vmatmul.mubr.bf16.gmra.mrb[8].mxu1 %v1750_v19  ;;  %v956_v28 = vsel %vm941_vm3, %v6815_v36, %v868_v60  ;;  %v498_v19 = vsel %vm5056_vm2, %v493_v41, %v5521_v7  ;;  %v6817_v41 = vld [vmem:[#allocation7_spill] sm:$0xff]  ;;  %v2491_v60 = vsel %vm5056_vm2, %v2486_v61, %v5563_v52  ;;  %v2519_v49 = vor.u32 %v2518_v46, %v5626_v8  ;;  %v5688_v36 = vld [vmem:[%s4904_s7 + $0x24] sm:$0xf]  ;;  %v6830_v7 = vld [vmem:[#allocation12_spill] sm:$0xff] }
  0x9f   : > { %4134 = vmatprep.mubr.msk.bf16.mxu1 %vm941_vm3, %v5401_v20  ;;  %4535 = vmatpush1.bf16.msra.mxu1 %v4802_v47  ;;  %v508_v20 = vsel %vm5056_vm2, %v503_v27, %v5577_v45  ;;  %v1326_v45 = vrot.slane %v1325_v43, 4  ;;  %v6818_v24 = vcombine.low %v6816_v51, %v6817_v41  ;;  %v1669_v2 = vpop.permute.xlu1 %1668  ;;  %v2509_v27 = vor.u32 %v2508_v57, %v2505_v4  ;;  %v5663_v43 = vld [vmem:[%s4904_s7 + $0x208] sm:$0xf]  ;;  %v4748_v57 = vld [vmem:[%s6773_s1 + $0xf8] sm:$0xff]  }
  0xa0   : > { %3322 = vmatpush1.bf16.msra.mxu0 %v4740_v35  ;;  %4524 = vmatprep.subr.bf16.mxu1 %v6803_v22  ;;  %v2501_v35 = vsel %vm5056_vm2, %v2496_v0, %v2500_v26  ;;  %v2522_v42 = vshll.u32 %v4240_v23, 16  ;;  %v1333_v52 = vshrl.u32 %v5642_v44, 16  ;;  %v1336_v0 = vshll.u32 %v5642_v44, 16 }
  0xa1   : > { %3323 = vmatprep.subr.bf16.mxu0 %v6803_v22  ;;  %v1754_v34 = vsel %vm941_vm3, %v6818_v24, %v1667_v29  ;;  %v5672_v4 = vcombine.low %v1297_v39, %v1307_v58  ;;  %v5678_v25 = vcombine.low %v2491_v60, %v2501_v35  ;;  %v1321_v29 = vsel %vm5056_vm2, %v1316_v40, %v5591_v30  ;;  %v872_v39 = vpop.permute.xlu0 %871  ;;  %v4040_v24 = vld [vmem:[%s4904_s7 + $0x20c] sm:$0x1]  ;;  %v5732_v35 = vld [vmem:[%s4904_s7 + $0x214] sm:$0xf] }
  0xa2   : > { %2287 = vmatmul.mubr.bf16.gmra.mrb[12].mxu0 %v956_v28  ;;  %v1331_v61 = vsel %vm5056_vm2, %v1326_v45, %v1330_v37  ;;  %v6819_v28 = vcombine.low %v5194_v11, %v5198_v13  ;;  %v5694_v46 = vrot.slane %v2509_v27, 4  ;;  %v1346_v30 = vshrl.u32 %v5663_v43, 16  ;;  %v4804_v11 = vld [vmem:[%s6773_s1 + $0x30] sm:$0xff]  }
  0xa3   : > { %4163 = vmatprep.mubr.msk.bf16.mxu0 %vm941_vm3, %v5403_v59  ;;  %4536 = vmatpush1.bf16.msra.mxu1 %v4803_v62  ;;  %v5670_v59 = vcombine.low %v498_v19, %v508_v20  ;;  %v1671_v19 = vpop.permute.xlu1 %1670  ;;  %v5699_v20 = vld [vmem:[%s4904_s7 + $0x28] sm:$0xf]  ;;  %v2520_v13 = vrot.slane %v2519_v49, 4  ;;  %v2524_v23 = vrot.slane %v2522_v42, 5  ;;  %v5706_v58 = vrot.slane %v1333_v52, 4 }
  0xa4   : > { %3324 = vmatpush1.bf16.msra.mxu0 %v4744_v53  ;;  %4525 = vmatprep.subr.bf16.mxu1 %v6803_v22  ;;  %v960_v47 = vsel %vm941_vm3, %v6819_v28, %v870_v48  ;;  %v1342_v53 = vshll.u32 %v5663_v43, 16  ;;  %v5708_v40 = vrot.slane %v1336_v0, 5  ;;  %v6820_v45 = vcombine.low %v5233_v1, %v5237_v18 }
  0xa5   : > { %3325 = vmatprep.subr.bf16.mxu0 %v6803_v22  ;;  %v5717_v51 = vcombine.low %v1321_v29, %v1331_v61  ;;  %v2527_v1 = vshrl.u32 %v5688_v36, 16  ;;  %v2530_v18 = vshll.u32 %v5688_v36, 16  ;;  %v2540_v60 = vshrl.u32 %v5699_v20, 16  ;;  %v4805_v29 = vld [vmem:[%s6773_s1 + $0x38] sm:$0xff]   ;;  %v874_v61 = vpop.permute.xlu0 %873 }
  0xa6   : > { %2006 = vmatmul.mubr.bf16.gmra.mrb[12].mxu1 %v1754_v34  ;;  %v1758_v37 = vsel %vm941_vm3, %v6820_v45, %v1669_v2  ;;  %v5724_v34 = vld [vmem:[%s4904_s7 + $0x210] sm:$0xf]  ;;  %v2536_v2 = vshll.u32 %v5699_v20, 16  ;;  %v6821_v27 = vcombine.low %v5281_v5, %v5284_v6  ;;  %v2515_v49 = vsel %vm5056_vm2, %v5694_v46, %v5626_v8  ;;  %v4755_v5 = vld [vmem:[%s6773_s1 + $0x108] sm:$0xff]   ;;  %v4242_v8 = vld [vmem:[%s4904_s7 + $0x38] sm:$0x1] }
  0xa7   : > { %4135 = vmatprep.mubr.msk.bf16.mxu1 %vm941_vm3, %v5430_v50  ;;  %4537 = vmatpush1.bf16.msra.mxu1 %v4804_v11  ;;  %v4751_v50 = vld [vmem:[%s6773_s1 + $0x100] sm:$0xff]   ;;  %v5738_v62 = vpop.permute.xlu1 %1672  ;;  %v5744_v42 = vrot.slane %v1342_v53, 5  ;;  %v1348_v52 = vrot.slane %v1346_v30, 4  ;;  %v2525_v6 = vsel %vm5056_vm2, %v2520_v13, %v2524_v23  ;;  %v1339_v0 = vor.u32 %v5708_v40, %v5706_v58  ;;  %v5768_v30 = vld [vmem:[%s4904_s7 + $0x34] sm:$0xf] }
  0xa8   : > { %3326 = vmatpush1.bf16.msra.mxu0 %v4748_v57  ;;  %4526 = vmatprep.subr.bf16.mxu1 %v6803_v22  ;;  %v964_v48 = vsel %vm941_vm3, %v6821_v27, %v872_v39  ;;  %v1352_v57 = vshll.u32 %v4040_v24, 16  ;;  %v1357_v28 = vshrl.u32 %v5724_v34, 16  ;;  %v1366_v46 = vshll.u32 %v5732_v35, 16  ;;  %v4241_v24 = vld [vmem:[%s4904_s7 + $0x2c] sm:$0x1] }
  0xa9   : > { %3327 = vmatprep.subr.bf16.mxu0 %v6803_v22  ;;  %v1370_v53 = vshrl.u32 %v5732_v35, 16  ;;  %v2529_v39 = vrot.slane %v2527_v1, 4  ;;  %v2532_v11 = vrot.slane %v2530_v18, 5  ;;  %v5772_v13 = vrot.slane %v2536_v2, 5  ;;  %v876_v2 = vpop.permute.xlu0 %875 }
  0xaa   : > { %2295 = vmatmul.mubr.bf16.gmra.mrb[16].mxu0 %v960_v47  ;;  %v1360_v47 = vshll.u32 %v5724_v34, 16  ;;  %v2542_v23 = vrot.slane %v2540_v60, 4  ;;  %v6822_v58 = vcombine.low %v5307_v17, %v5319_v32  ;;  %v5789_v17 = vcombine.low %v2515_v49, %v2525_v6  ;;  %v4806_v49 = vld [vmem:[%s6773_s1 + $0x40] sm:$0xff]   ;;  %v5801_v6 = vld [vmem:[%s4904_s7 + $0x21c] sm:$0xf] }
  0xab   : > { %4164 = vmatprep.mubr.msk.bf16.mxu0 %vm941_vm3, %v5454_v16  ;;  %4538 = vmatpush1.bf16.msra.mxu1 %v4805_v29  ;;  %v5761_v16 = vld [vmem:[%s4904_s7 + $0x30] sm:$0xf]  ;;  %v5778_v45 = vpop.permute.xlu1 %1674  ;;  %v5791_v32 = vrot.slane %v1352_v57, 5  ;;  %v2564_v18 = vshrl.u32 %v5768_v30, 16  ;;  %v1359_v60 = vrot.slane %v1357_v28, 4  ;;  %v5795_v29 = vrot.slane %v1366_v46, 5 }
  0xac   : > { %3328 = vmatpush1.bf16.msra.mxu0 %v4751_v50  ;;  %4527 = vmatprep.subr.bf16.mxu1 %v6803_v22  ;;  %v1762_v40 = vsel %vm941_vm3, %v6822_v58, %v1671_v19  ;;  %v1349_v50 = vor.u32 %v1348_v52, %v5744_v42  ;;  %v2551_v27 = vshrl.u32 %v5761_v16, 16  ;;  %v2554_v1 = vshll.u32 %v5761_v16, 16  ;;  %6823 = vst [vmem:[#allocation2_spill] sm:$0xff] %v5789_v17 }
  0xad   : > { %3329 = vmatprep.subr.bf16.mxu0 %v6803_v22  ;;  %v2560_v19 = vshll.u32 %v5768_v30, 16  ;;  %v1362_v52 = vrot.slane %v1360_v47, 5  ;;  %v1340_v57 = vrot.slane %v1339_v0, 4  ;;  %v2533_v58 = vor.u32 %v2532_v11, %v2529_v39  ;;  %v4041_v47 = vld [vmem:[%s4904_s7 + $0x218] sm:$0x1] }
  0xae   : > { %2014 = vmatmul.mubr.bf16.gmra.mrb[16].mxu1 %v1758_v37  ;;  %v4759_v37 = vld [vmem:[%s6773_s1 + $0x110] sm:$0xff]   ;;  %v2546_v28 = vshll.u32 %v4241_v24, 16  ;;  %v6824_v46 = vcombine.low %v5322_v33, %v5339_v15  ;;  %v2553_v41 = vrot.slane %v2551_v27, 4  ;;  %v2556_v26 = vrot.slane %v2554_v1, 5  ;;  %v5817_v11 = vld [vmem:[%s4904_s7 + $0x220] sm:$0xf]  ;;  %v1677_v27 = vpop.permute.xlu0 %1676 }
  0xaf   : > { %4136 = vmatprep.mubr.msk.bf16.mxu1 %vm941_vm3, %v5485_v3  ;;  %v1372_v3 = vrot.slane %v1370_v53, 4  ;;  %4539 = vmatpush1.bf16.msra.mxu1 %v4806_v49  ;;  %v1350_v49 = vrot.slane %v1349_v50, 4  ;;  %v5814_v0 = vrot.slane %v2560_v19, 5  ;;  %v2566_v39 = vrot.slane %v2564_v18, 4  ;;  %v6825_v33 = vld [vmem:[#allocation9_spill] sm:$0xff]  ;;  %v6826_v15 = vld [vmem:[#allocation10_spill] sm:$0xff]  ;;  %v5831_v24 = vpop.permute.xlu1 %3022 }
  0xb0   : > { %3330 = vmatpush1.bf16.msra.mxu0 %v4755_v5  ;;  %v2543_v5 = vor.u32 %v2542_v23, %v5772_v13  ;;  %4528 = vmatprep.subr.bf16.mxu1 %v6803_v22  ;;  %v968_v53 = vsel %vm941_vm3, %v6824_v46, %v874_v61  ;;  %v1381_v23 = vshrl.u32 %v5801_v6, 16  ;;  %v6827_v61 = vcombine.low %v6825_v33, %v6826_v15  ;;  %v4807_v15 = vld [vmem:[%s6773_s1 + $0x48] sm:$0xff]  }
  0xb1   : > { %3331 = vmatprep.subr.bf16.mxu0 %v6803_v22  ;;  %v1363_v1 = vor.u32 %v1362_v52, %v1359_v60  ;;  %v1373_v19 = vor.u32 %v1372_v3, %v5795_v29  ;;  %v1376_v18 = vshll.u32 %v4041_v47, 16  ;;  %v1345_v46 = vsel %vm5056_vm2, %v1340_v57, %v5744_v42  ;;  %v6828_v42 = vld [vmem:[#allocation13_spill] sm:$0xff] }
  0xb2   : > { %2303 = vmatmul.mubr.bf16.gmra.mrb[20].mxu0 %v964_v48  ;;  %v1384_v48 = vshll.u32 %v5801_v6, 16  ;;  %v5826_v50 = vsel %vm941_vm3, %v6827_v61, %v5738_v62  ;;  %v2534_v62 = vrot.slane %v2533_v58, 4  ;;  %v2544_v33 = vrot.slane %v2543_v5, 4  ;;  %v1679_v61 = vpop.permute.xlu0 %1678 }
  0xb3   : > { %4165 = vmatprep.mubr.msk.bf16.mxu0 %vm941_vm3, %v5499_v12  ;;  %v4762_v12 = vld [vmem:[%s6773_s1 + $0x118] sm:$0xff]   ;;  %4540 = vmatpush1.bf16.msra.mxu1 %v4807_v15  ;;  %v1355_v60 = vsel %vm5056_vm2, %v1350_v49, %v5791_v32  ;;  %v2570_v52 = vshll.u32 %v4242_v8, 16  ;;  %v1390_v3 = vshll.u32 %v5817_v11, 16  ;;  %v1394_v47 = vshrl.u32 %v5817_v11, 16 }
  0xb4   : > { %3332 = vmatpush1.bf16.msra.mxu0 %v4759_v37  ;;  %v2548_v37 = vrot.slane %v2546_v28, 5  ;;  %4529 = vmatprep.subr.bf16.mxu1 %v6803_v22  ;;  %v2557_v57 = vor.u32 %v2556_v26, %v2553_v41  ;;  %v2567_v58 = vor.u32 %v2566_v39, %v5814_v0  ;;  %v1383_v5 = vrot.slane %v1381_v23, 4 }
  0xb5   : > { %3333 = vmatprep.subr.bf16.mxu0 %v6803_v22  ;;  %v1386_v28 = vrot.slane %v1384_v48, 5  ;;  %v4257_v8 = vcombine.low %v5688_v36, %v5699_v20  ;;  %v1364_v32 = vrot.slane %v1363_v1, 4  ;;  %v1374_v49 = vrot.slane %v1373_v19, 4  ;;  %v4808_v36 = vld [vmem:[%s6773_s1 + $0x50] sm:$0xff]   ;;  %v5882_v48 = vld [vmem:[%s4904_s7 + $0x3c] sm:$0xf] }
  0xb6   : > { %2022 = vmatmul.mubr.bf16.gmra.mrb[20].mxu1 %v1762_v40  ;;  %v3025_v40 = vpop.permute.xlu1 %3024  ;;  %v1378_v15 = vrot.slane %v1376_v18, 5  ;;  %v6831_v17 = vcombine.low %v6829_v55, %v6830_v7  ;;  %v5856_v41 = vcombine.low %v1345_v46, %v1355_v60  ;;  %v2539_v39 = vsel %vm5056_vm2, %v2534_v62, %v5772_v13  ;;  %v1681_v1 = vpop.permute.xlu0 %1680 }
  0xb7   : > { %4137 = vmatprep.mubr.msk.bf16.mxu1 %vm941_vm3, %v6828_v42  ;;  %v2549_v23 = vsel %vm5056_vm2, %v2544_v33, %v2548_v37  ;;  %4541 = vmatpush1.bf16.msra.mxu1 %v4808_v36  ;;  %v6832_v7 = vcombine.low %v5477_v9, %v5480_v54  ;;  %v6833_v20 = vcombine.low %v5527_v38, %v5534_v14  ;;  %v2558_v9 = vrot.slane %v2557_v57, 4  ;;  %v4809_v37 = vld [vmem:[%s6773_s1 + $0x58] sm:$0xff]   ;;  %v5948_v57 = vld [vmem:[%s4904_s7 + $0x228] sm:$0xf] }
  0xb8   : > { %3334 = vmatpush1.bf16.msra.mxu0 %v4762_v12  ;;  %v972_v26 = vsel %vm941_vm3, %v6831_v17, %v876_v2  ;;  %v5879_v17 = vrot.slane %v1390_v3, 5  ;;  %v1396_v2 = vrot.slane %v1394_v47, 4  ;;  %v5885_v12 = vld [vmem:[%s4904_s7 + $0x40] sm:$0xf]  ;;  %4530 = vmatprep.subr.bf16.mxu1 %v6803_v22  ;;  %v2568_v54 = vrot.slane %v2567_v58, 4 }
  0xb9   : > { %v5871_v55 = vsel %vm941_vm3, %v6832_v7, %v5778_v45  ;;  %v5877_v13 = vsel %vm941_vm3, %v6833_v20, %v1677_v27  ;;  %v2572_v45 = vrot.slane %v2570_v52, 5  ;;  %v1387_v38 = vor.u32 %v1386_v28, %v1383_v5 }
  0xba   : > { %2311 = vmatmul.mubr.bf16.gmra.mrb[24].mxu0 %v968_v53  ;;  %v4042_v53 = vld [vmem:[%s4904_s7 + $0x224] sm:$0x1]  ;;  %v3027_v14 = vpop.permute.xlu1 %3026  ;;  %v5891_v27 = vcombine.low %v2539_v39, %v2549_v23  ;;  %v1369_v19 = vsel %vm5056_vm2, %v1364_v32, %v5795_v29  ;;  %v1379_v18 = vsel %vm5056_vm2, %v1374_v49, %v1378_v15  ;;  %v4057_v22 = vcombine.low %v5724_v34, %v5732_v35  ;;  %v5965_v32 = vld [vmem:[%s4904_s7 + $0x48] sm:$0xf]  ;;  %v5980_v39 = vld [vmem:[%s4904_s7 + $0x4c] sm:$0xf] }
  0xbb   : > { %4166 = vmatprep.mubr.msk.bf16.mxu0 %vm941_vm3, %v5670_v59  ;;  %v2575_v59 = vshrl.u32 %v5882_v48, 16  ;;  %v2578_v46 = vshll.u32 %v5882_v48, 16  ;;  %v2584_v62 = vshll.u32 %v5885_v12, 16  ;;  %v2588_v33 = vshrl.u32 %v5885_v12, 16  ;;  %4542 = vmatpush1.bf16.msra.mxu1 %v4809_v37  ;;  %v5983_v23 = vld [vmem:[%s4904_s7 + $0x234] sm:$0xf] }
  0xbc   : > { %v6834_v29 = vcombine.low %v5504_v21, %v5507_v31  ;;  %v4258_v35 = vcombine.low %v5761_v16, %v5768_v30  ;;  %v1397_v60 = vor.u32 %v1396_v2, %v5879_v17  ;;  %v1400_v52 = vshll.u32 %v4042_v53, 16  ;;  %v5990_v2 = vld [vmem:[%s4904_s7 + $0x238] sm:$0xf] }
  0xbd   : > { %v2573_v21 = vsel %vm5056_vm2, %v2568_v54, %v2572_v45  ;;  %v5925_v31 = vrot.slane %v1387_v38, 4  ;;  %v6835_v16 = vcombine.low %v5580_v56, %v5588_v63  ;;  %v5941_v3 = vcombine.low %v1369_v19, %v1379_v18 }
  0xbe   : > { %2030 = vmatmul.mubr.bf16.gmra.mrb[24].mxu1 %v5826_v50  ;;  %v5913_v34 = vsel %vm941_vm3, %v6834_v29, %v5831_v24  ;;  %v2563_v50 = vsel %vm5056_vm2, %v2558_v9, %v5814_v0  ;;  %v4058_v24 = vcombine.low %v5801_v6, %v5817_v11  ;;  %v5944_v47 = vsel %vm941_vm3, %v4057_v22, %v1681_v1  ;;  %v3029_v42 = vpop.permute.xlu1 %3028  ;;  %v1683_v6 = vpop.permute.xlu0 %1682  ;;  %v4243_v11 = vld [vmem:[%s4904_s7 + $0x44] sm:$0x1] }
  0xbf   : > { %4138 = vmatprep.mubr.msk.bf16.mxu1 %vm941_vm3, %v5672_v4  ;;  %v5933_v30 = vsel %vm941_vm3, %v6835_v16, %v3025_v40  ;;  %v6836_v4 = vcombine.low %v5642_v44, %v5663_v43  ;;  %v2577_v56 = vrot.slane %v2575_v59, 4  ;;  %v2580_v63 = vrot.slane %v2578_v46, 5  ;;  %v5953_v43 = vld [vmem:[%s4904_s7 + $0x22c] sm:$0xf]  ;;  %v6009_v46 = vld [vmem:[%s4904_s7 + $0x54] sm:$0xf] }
  0xc0   : > { %v5950_v58 = vrot.slane %v2584_v62, 5  ;;  %v2590_v44 = vrot.slane %v2588_v33, 4  ;;  %v5956_v5 = vsel %vm941_vm3, %v4257_v8, %v3027_v14  ;;  %v5958_v28 = vcombine.low %v2563_v50, %v2573_v21  ;;  %v4043_v62 = vld [vmem:[%s4904_s7 + $0x230] sm:$0x1] }
  0xc1   : > { %v5939_v0 = vsel %vm941_vm3, %v6836_v4, %v1679_v61  ;;  %v5960_v40 = vrot.slane %v1397_v60, 4  ;;  %v5962_v61 = vrot.slane %v1400_v52, 5  ;;  %v5970_v49 = vsel %vm941_vm3, %v4258_v35, %v3029_v42  ;;  %v4044_v4 = vld [vmem:[%s4904_s7 + $0x23c] sm:$0x1] }
  0xc2   : > { %2319 = vmatmul.mubr.bf16.gmra.mrb[28].mxu0 %v972_v26  ;;  %v1393_v8 = vsel %vm5056_vm2, %v5925_v31, %v5879_v17  ;;  %v5977_v15 = vsel %vm941_vm3, %v4058_v24, %v1683_v6  ;;  %v2594_v26 = vshll.u32 %v4243_v11, 16  ;;  %v1405_v36 = vshrl.u32 %v5948_v57, 16  ;;  %v6837_v11 = vld [vmem:[#allocation2_spill] sm:$0xff] }
  0xc3   : > { %4339 = vmatprep.mubr.msk.bf16.mxu0 %vm941_vm3, %v5678_v25  ;;  %v1408_v25 = vshll.u32 %v5948_v57, 16  ;;  %v1414_v7 = vshll.u32 %v5953_v43, 16  ;;  %v1418_v20 = vshrl.u32 %v5953_v43, 16  ;;  %v2581_v9 = vor.u32 %v2580_v63, %v2577_v56 }
  0xc4   : > { %v2591_v54 = vor.u32 %v2590_v44, %v5950_v58  ;;  %v2599_v45 = vshrl.u32 %v5965_v32, 16  ;;  %v2602_v53 = vshll.u32 %v5965_v32, 16  ;;  %v1403_v38 = vsel %vm5056_vm2, %v5960_v40, %v5962_v61  ;;  %v6025_v40 = vld [vmem:[%s4904_s7 + $0x58] sm:$0xf] }
  0xc5   : > { %v2608_v14 = vshll.u32 %v5980_v39, 16  ;;  %v2612_v1 = vshrl.u32 %v5980_v39, 16  ;;  %v1429_v19 = vshrl.u32 %v5983_v23, 16  ;;  %v2596_v18 = vrot.slane %v2594_v26, 5 }
  0xc6   : > { %2038 = vmatmul.mubr.bf16.gmra.mrb[28].mxu1 %v5871_v55  ;;  %v1432_v22 = vshll.u32 %v5983_v23, 16  ;;  %v1438_v55 = vshll.u32 %v5990_v2, 16  ;;  %v1442_v59 = vshrl.u32 %v5990_v2, 16  ;;  %v1407_v33 = vrot.slane %v1405_v36, 4 }
  0xc7   : > { %4139 = vmatprep.mubr.msk.bf16.mxu1 %vm941_vm3, %v5717_v51  ;;  %v1410_v37 = vrot.slane %v1408_v25, 5  ;;  %v6012_v29 = vrot.slane %v1414_v7, 5  ;;  %v1420_v35 = vrot.slane %v1418_v20, 4  ;;  %v2582_v60 = vrot.slane %v2581_v9, 4  ;;  %v4244_v51 = vld [vmem:[%s4904_s7 + $0x50] sm:$0x1] }
  0xc8   : > { %v2592_v52 = vrot.slane %v2591_v54, 4  ;;  %v2601_v50 = vrot.slane %v2599_v45, 4  ;;  %v2604_v21 = vrot.slane %v2602_v53, 5  ;;  %v6016_v24 = vrot.slane %v2608_v14, 5  ;;  %v3031_v45 = vpop.permute.xlu1 %3030 }
  0xc9   : > { %v2614_v16 = vrot.slane %v2612_v1, 4  ;;  %v1431_v42 = vrot.slane %v1429_v19, 4  ;;  %v2623_v6 = vshrl.u32 %v6009_v46, 16  ;;  %v1434_v56 = vrot.slane %v1432_v22, 5 }
  0xca   : > { %3344 = vmatmul.mubr.bf16.vlgmr.msra.gmra.mrb[0].mxu0 %v5913_v34  ;;  %v6022_v63 = vrot.slane %v1438_v55, 5  ;;  %v1444_v44 = vrot.slane %v1442_v59, 4  ;;  %v2626_v61 = vshll.u32 %v6009_v46, 16  ;;  %v4259_v34 = vcombine.low %v5882_v48, %v5885_v12 }
  0xcb   : > { %4340 = vmatprep.mubr.msk.bf16.mxu0 %vm941_vm3, %v6837_v11  ;;  %v1411_v26 = vor.u32 %v1410_v37, %v1407_v33  ;;  %v1421_v36 = vor.u32 %v1420_v35, %v6012_v29  ;;  %v1424_v25 = vshll.u32 %v4043_v62, 16  ;;  %v2587_v7 = vsel %vm5056_vm2, %v2582_v60, %v5950_v58  ;;  %v1685_v33 = vpop.permute.xlu0 %1684  ;;  %v4245_v60 = vld [vmem:[%s4904_s7 + $0x5c] sm:$0x1] }
  0xcc   : > { %v2597_v20 = vsel %vm5056_vm2, %v2592_v52, %v2596_v18  ;;  %v2605_v9 = vor.u32 %v2604_v21, %v2601_v50  ;;  %v2618_v54 = vshll.u32 %v4244_v51, 16  ;;  %v2615_v53 = vor.u32 %v2614_v16, %v6016_v24  ;;  %v3033_v17 = vpop.permute.xlu1 %3032  ;;  %v6062_v51 = vld [vmem:[%s4904_s7 + $0x240] sm:$0xf] }
  0xcd   : > { %v1448_v14 = vshll.u32 %v4044_v4, 16  ;;  %v2632_v48 = vshll.u32 %v6025_v40, 16  ;;  %v2636_v12 = vshrl.u32 %v6025_v40, 16  ;;  %v1435_v58 = vor.u32 %v1434_v56, %v1431_v42 }
  0xce   : > { %2046 = vmatmul.mubr.bf16.gmra.mrb[32].mxu1 %v5877_v13  ;;  %v1445_v1 = vor.u32 %v1444_v44, %v6022_v63  ;;  %v2625_v19 = vrot.slane %v2623_v6, 4  ;;  %v2628_v18 = vrot.slane %v2626_v61, 5  ;;  %v6048_v13 = vcombine.low %v1393_v8, %v1403_v38 }
  0xcf   : > { %4140 = vmatprep.mubr.msk.bf16.mxu1 %vm941_vm3, %v5856_v41  ;;  %v1412_v22 = vrot.slane %v1411_v26, 4  ;;  %v1422_v55 = vrot.slane %v1421_v36, 4  ;;  %v1426_v59 = vrot.slane %v1424_v25, 5  ;;  %v6050_v62 = vcombine.low %v2587_v7, %v2597_v20  ;;  %v1687_v11 = vpop.permute.xlu0 %1686  ;;  %v6113_v25 = vld [vmem:[%s4904_s7 + $0x60] sm:$0xf] }
  0xd0   : > { %v6053_v41 = vsel %vm941_vm3, %v4259_v34, %v3031_v45  ;;  %v4059_v37 = vcombine.low %v5948_v57, %v5953_v43  ;;  %v2606_v35 = vrot.slane %v2605_v9, 4  ;;  %v2616_v31 = vrot.slane %v2615_v53, 4  ;;  %v6067_v57 = vld [vmem:[%s4904_s7 + $0x244] sm:$0xf]  ;;  %v6124_v53 = vld [vmem:[%s4904_s7 + $0x24c] sm:$0xf] }
  0xd1   : > { %v2620_v8 = vrot.slane %v2618_v54, 5  ;;  %v6059_v38 = vrot.slane %v2632_v48, 5  ;;  %v2638_v52 = vrot.slane %v2636_v12, 4  ;;  %v1436_v50 = vrot.slane %v1435_v58, 4  ;;  %v6121_v45 = vld [vmem:[%s4904_s7 + $0x64] sm:$0xf] }
  0xd2   : > { %3352 = vmatmul.mubr.bf16.gmra.mrb[4].mxu0 %v5933_v30  ;;  %v1446_v21 = vrot.slane %v1445_v1, 4  ;;  %v1450_v16 = vrot.slane %v1448_v14, 5  ;;  %v2629_v4 = vor.u32 %v2628_v18, %v2625_v19  ;;  %v1417_v30 = vsel %vm5056_vm2, %v1412_v22, %v6012_v29  ;;  %v6132_v1 = vld [vmem:[%s4904_s7 + $0x250] sm:$0xf] }
  0xd3   : > { %4341 = vmatprep.mubr.msk.bf16.mxu0 %vm941_vm3, %v5891_v27  ;;  %v1427_v43 = vsel %vm5056_vm2, %v1422_v55, %v1426_v59  ;;  %v4260_v42 = vcombine.low %v5965_v32, %v5980_v39  ;;  %v4060_v6 = vcombine.low %v5983_v23, %v5990_v2  ;;  %v2611_v27 = vsel %vm5056_vm2, %v2606_v35, %v6016_v24  ;;  %v3035_v39 = vpop.permute.xlu1 %3034  ;;  %v6143_v55 = vld [vmem:[%s4904_s7 + $0x6c] sm:$0xf]  ;;  %v6146_v59 = vld [vmem:[%s4904_s7 + $0x70] sm:$0xf] }
  0xd4   : > { %v2642_v56 = vshll.u32 %v4245_v60, 16  ;;  %v4261_v44 = vcombine.low %v6009_v46, %v6025_v40  ;;  %v1453_v29 = vshrl.u32 %v6062_v51, 16  ;;  %v2621_v32 = vsel %vm5056_vm2, %v2616_v31, %v2620_v8 }
  0xd5   : > { %v2639_v23 = vor.u32 %v2638_v52, %v6059_v38  ;;  %v1456_v2 = vshll.u32 %v6062_v51, 16  ;;  %v1462_v24 = vshll.u32 %v6067_v57, 16  ;;  %v1451_v46 = vsel %vm5056_vm2, %v1446_v21, %v1450_v16 }
  0xd6   : > { %2054 = vmatmul.mubr.bf16.gmra.mrb[36].mxu1 %v5939_v0  ;;  %v1441_v0 = vsel %vm5056_vm2, %v1436_v50, %v6022_v63  ;;  %v6097_v40 = vrot.slane %v2629_v4, 4  ;;  %v1466_v61 = vshrl.u32 %v6067_v57, 16  ;;  %v6100_v34 = vcombine.low %v1417_v30, %v1427_v43  ;;  %v4045_v63 = vld [vmem:[%s4904_s7 + $0x248] sm:$0x1] }
  0xd7   : > { %4141 = vmatprep.mubr.msk.bf16.mxu1 %vm941_vm3, %v5941_v3  ;;  %v6103_v26 = vsel %vm941_vm3, %v4059_v37, %v1685_v33  ;;  %v6106_v3 = vsel %vm941_vm3, %v4260_v42, %v3033_v17  ;;  %v6109_v36 = vsel %vm941_vm3, %v4060_v6, %v1687_v11  ;;  %v6115_v7 = vcombine.low %v2611_v27, %v2621_v32  ;;  %v6171_v27 = vld [vmem:[%s4904_s7 + $0x60] sm:$0xf]  ;;  %v4246_v11 = vld [vmem:[%s4904_s7 + $0x68] sm:$0x1]  ;;  %v4046_v32 = vld [vmem:[%s4904_s7 + $0x254] sm:$0x1] }
  0xd8   : > { %v2644_v20 = vrot.slane %v2642_v56, 5  ;;  %v6118_v9 = vsel %vm941_vm3, %v4261_v44, %v3035_v39  ;;  %v1455_v54 = vrot.slane %v1453_v29, 4  ;;  %v6127_v14 = vcombine.low %v1441_v0, %v1451_v46 }
  0xd9   : > { %v2640_v48 = vrot.slane %v2639_v23, 4  ;;  %v1458_v12 = vrot.slane %v1456_v2, 5  ;;  %v6129_v58 = vrot.slane %v1462_v24, 5  ;;  %v2635_v19 = vsel %vm5056_vm2, %v6097_v40, %v6059_v38  ;;  %v4247_v40 = vld [vmem:[%s4904_s7 + $0x74] sm:$0x1] }
  0xda   : > { %3360 = vmatmul.mubr.bf16.gmra.mrb[8].mxu0 %v5956_v5  ;;  %v1468_v18 = vrot.slane %v1466_v61, 4  ;;  %v1472_v22 = vshll.u32 %v4045_v63, 16  ;;  %v4061_v5 = vcombine.low %v6062_v51, %v6067_v57  ;;  %v2647_v33 = vshrl.u32 %v6113_v25, 16  ;;  %v1689_v57 = vpop.permute.xlu0 %1688 }
  0xdb   : > { %4342 = vmatprep.mubr.msk.bf16.mxu0 %vm941_vm3, %v5958_v28  ;;  %v2650_v37 = vshll.u32 %v6113_v25, 16  ;;  %v2656_v28 = vshll.u32 %v6121_v45, 16  ;;  %v2660_v35 = vshrl.u32 %v6121_v45, 16  ;;  %v1477_v60 = vshrl.u32 %v6124_v53, 16 }
  0xdc   : > { %v1480_v17 = vshll.u32 %v6124_v53, 16  ;;  %v1486_v31 = vshll.u32 %v6132_v1, 16  ;;  %v1490_v8 = vshrl.u32 %v6132_v1, 16  ;;  %v2671_v38 = vshrl.u32 %v6143_v55, 16 }
  0xdd   : > { %v2674_v52 = vshll.u32 %v6143_v55, 16  ;;  %v2680_v51 = vshll.u32 %v6146_v59, 16  ;;  %v2684_v50 = vshrl.u32 %v6146_v59, 16  ;;  %v2645_v21 = vsel %vm5056_vm2, %v2640_v48, %v2644_v20 }
  0xde   : > { %2062 = vmatmul.mubr.bf16.gmra.mrb[40].mxu1 %v5944_v47  ;;  %v1459_v16 = vor.u32 %v1458_v12, %v1455_v54  ;;  %v1469_v4 = vor.u32 %v1468_v18, %v6129_v58  ;;  %v6166_v47 = vrot.slane %v1472_v22, 5  ;;  %v2649_v30 = vrot.slane %v2647_v33, 4  ;;  %v6197_v12 = vld [vmem:[%s4904_s7 + $0x64] sm:$0xf] }
  0xdf   : > { %4142 = vmatprep.mubr.msk.bf16.mxu1 %vm941_vm3, %v6048_v13  ;;  %v2652_v43 = vrot.slane %v2650_v37, 5  ;;  %v6168_v42 = vrot.slane %v2656_v28, 5  ;;  %v2662_v6 = vrot.slane %v2660_v35, 4  ;;  %v1479_v13 = vrot.slane %v1477_v60, 4 }
  0xe0   : > { %v1482_v56 = vrot.slane %v1480_v17, 5  ;;  %v6174_v44 = vrot.slane %v1486_v31, 5  ;;  %v1492_v29 = vrot.slane %v1490_v8, 4  ;;  %v2673_v39 = vrot.slane %v2671_v38, 4 }
  0xe1   : > { %v2676_v23 = vrot.slane %v2674_v52, 5  ;;  %v6178_v2 = vrot.slane %v2680_v51, 5  ;;  %v2686_v24 = vrot.slane %v2684_v50, 4  ;;  %v6182_v0 = vcombine.low %v2635_v19, %v2645_v21 }
  0xe2   : > { %3368 = vmatmul.mubr.bf16.gmra.mrb[12].mxu0 %v5970_v49  ;;  %v6185_v46 = vsel %vm941_vm3, %v4061_v5, %v1689_v57  ;;  %v510_v61 = vshrl.u32 %v6171_v27, 16  ;;  %v513_v49 = vshll.u32 %v6171_v27, 16  ;;  %v6190_v63 = vrot.slane %v1459_v16, 4  ;;  %v6222_v16 = vld [vmem:[%s4904_s7 + $0x7c] sm:$0xf] }
  0xe3   : > { %4343 = vmatprep.mubr.msk.bf16.mxu0 %vm941_vm3, %v6050_v62  ;;  %v6192_v20 = vrot.slane %v1469_v4, 4  ;;  %v2666_v54 = vshll.u32 %v4246_v11, 16  ;;  %v4262_v48 = vcombine.low %v6113_v25, %v6121_v45  ;;  %v3037_v62 = vpop.permute.xlu1 %3036  ;;  %v2653_v19 = vor.u32 %v2652_v43, %v2649_v30 }
  0xe4   : > { %v2663_v18 = vor.u32 %v2662_v6, %v6168_v42  ;;  %v1483_v22 = vor.u32 %v1482_v56, %v1479_v13  ;;  %v1496_v5 = vshll.u32 %v4046_v32, 16  ;;  %v1493_v33 = vor.u32 %v1492_v29, %v6174_v44  ;;  %v306_v13 = vld [vmem:[%s4904_s7 + $0x68] sm:$0x1] }
  0xe5   : > { %v2677_v37 = vor.u32 %v2676_v23, %v2673_v39  ;;  %v2687_v28 = vor.u32 %v2686_v24, %v6178_v2  ;;  %v2690_v35 = vshll.u32 %v4247_v40, 16  ;;  %v512_v25 = vrot.slane %v510_v61, 4 }
  0xe6   : > { %2070 = vmatmul.mubr.bf16.gmra.mrb[44].mxu1 %v5977_v15  ;;  %v515_v45 = vrot.slane %v513_v49, 5  ;;  %v519_v60 = vshll.u32 %v6197_v12, 16  ;;  %v523_v17 = vshrl.u32 %v6197_v12, 16  ;;  %v1465_v15 = vsel %vm5056_vm2, %v6190_v63, %v6129_v58 }
  0xe7   : > { %4143 = vmatprep.mubr.msk.bf16.mxu1 %vm941_vm3, %v6100_v34  ;;  %v1475_v31 = vsel %vm5056_vm2, %v6192_v20, %v6166_v47  ;;  %v2668_v8 = vrot.slane %v2666_v54, 5  ;;  %v6216_v38 = vsel %vm941_vm3, %v4262_v48, %v3037_v62  ;;  %v6219_v34 = vld [vmem:[%s4904_s7 + $0x78] sm:$0xf]  ;;  %v2654_v52 = vrot.slane %v2653_v19, 4  ;;  %v1691_v47 = vpop.permute.xlu0 %1690  ;;  %v3039_v61 = vpop.permute.xlu1 %3038 }
  0xe8   : > { %v2664_v51 = vrot.slane %v2663_v18, 4  ;;  %v1484_v50 = vrot.slane %v1483_v22, 4  ;;  %v1498_v21 = vrot.slane %v1496_v5, 5  ;;  %v1494_v58 = vrot.slane %v1493_v33, 4 }
  0xe9   : > { %v2678_v4 = vrot.slane %v2677_v37, 4  ;;  %v2688_v57 = vrot.slane %v2687_v28, 4  ;;  %v2692_v30 = vrot.slane %v2690_v35, 5  ;;  %v516_v43 = vor.u32 %v515_v45, %v512_v25  ;;  %v6284_v28 = vld [vmem:[%s4904_s7 + $0x70] sm:$0xf] }
  0xea   : > { %3376 = vmatmul.mubr.bf16.gmra.mrb[16].mxu0 %v6053_v41  ;;  %v6227_v6 = vrot.slane %v519_v60, 5  ;;  %v525_v11 = vrot.slane %v523_v17, 4  ;;  %v2695_v56 = vshrl.u32 %v6219_v34, 16  ;;  %v4062_v29 = vcombine.low %v6124_v53, %v6132_v1  ;;  %v4248_v1 = vld [vmem:[%s4904_s7 + $0x80] sm:$0x1] }
  0xeb   : > { %4344 = vmatprep.mubr.msk.bf16.mxu0 %vm941_vm3, %v6115_v7  ;;  %v2698_v41 = vshll.u32 %v6219_v34, 16  ;;  %v2704_v32 = vshll.u32 %v6222_v16, 16  ;;  %v2708_v39 = vshrl.u32 %v6222_v16, 16  ;;  %v2659_v7 = vsel %vm5056_vm2, %v2654_v52, %v6168_v42  ;;  %v6287_v35 = vld [vmem:[%s4904_s7 + $0x84] sm:$0xf] }
  0xec   : > { %v2669_v23 = vsel %vm5056_vm2, %v2664_v51, %v2668_v8  ;;  %v1489_v24 = vsel %vm5056_vm2, %v1484_v50, %v6174_v44  ;;  %v4263_v53 = vcombine.low %v6143_v55, %v6146_v59  ;;  %v1499_v40 = vsel %vm5056_vm2, %v1494_v58, %v1498_v21  ;;  %v6301_v17 = vld [vmem:[%s4904_s7 + $0x88] sm:$0xf]  ;;  %v6311_v50 = vld [vmem:[%s4904_s7 + $0x7c] sm:$0xf] }
  0xed   : > { %v2683_v42 = vsel %vm5056_vm2, %v2678_v4, %v6178_v2  ;;  %v3927_v49 = vcombine.low %v6171_v27, %v6197_v12  ;;  %v529_v63 = vshll.u32 %v306_v13, 16  ;;  %v2693_v55 = vsel %vm5056_vm2, %v2688_v57, %v2692_v30  ;;  %v6265_v12 = vld [vmem:[%s4904_s7 + $0x6c] sm:$0xf] }
  0xee   : > { %2078 = vmatmul.mubr.bf16.gmra.mrb[48].mxu1 %v6103_v26  ;;  %v878_v26 = vpop.permute.xlu0 %877  ;;  %v526_v59 = vor.u32 %v525_v11, %v6227_v6  ;;  %v6260_v44 = vrot.slane %v516_v43, 4  ;;  %v2697_v20 = vrot.slane %v2695_v56, 4  ;;  %v2700_v54 = vrot.slane %v2698_v41, 5 }
  0xef   : > { %4144 = vmatprep.mubr.msk.bf16.mxu1 %vm941_vm3, %v6127_v14  ;;  %v6262_v2 = vrot.slane %v2704_v32, 5  ;;  %v2710_v48 = vrot.slane %v2708_v39, 4  ;;  %v2714_v27 = vshll.u32 %v4248_v1, 16  ;;  %v4093_v62 = vcombine.low %v1465_v15, %v1475_v31  ;;  %v6304_v15 = vld [vmem:[%s4904_s7 + $0x78] sm:$0xf]  ;;  %v3041_v31 = vpop.permute.xlu1 %3040 }
  0xf0   : > { %v4294_v14 = vcombine.low %v2659_v7, %v2669_v23  ;;  %v6268_v19 = vsel %vm941_vm3, %v4062_v29, %v1691_v47  ;;  %v6271_v18 = vsel %vm941_vm3, %v4263_v53, %v3039_v61  ;;  %v6274_v22 = vcombine.low %v1489_v24, %v1499_v40  ;;  %v6334_v7 = vld [vmem:[%s4904_s7 + $0x90] sm:$0xf]  ;;  %v6339_v40 = vld [vmem:[%s4904_s7 + $0x94] sm:$0xf] }
  0xf1   : > { %v6276_v5 = vcombine.low %v2683_v42, %v2693_v55  ;;  %v6279_v33 = vsel %vm941_vm3, %v3927_v49, %v878_v26  ;;  %v6281_v37 = vrot.slane %v529_v63, 5  ;;  %v6295_v25 = vrot.slane %v526_v59, 4  ;;  %v4249_v59 = vld [vmem:[%s4904_s7 + $0x8c] sm:$0x1] }
  0xf2   : > { %3384 = vmatmul.mubr.bf16.gmra.mrb[20].mxu0 %v6106_v3  ;;  %v522_v3 = vsel %vm5056_vm2, %v6260_v44, %v6227_v6  ;;  %v4264_v45 = vcombine.low %v6219_v34, %v6222_v16  ;;  %v534_v60 = vshrl.u32 %v6265_v12, 16  ;;  %v2701_v8 = vor.u32 %v2700_v54, %v2697_v20  ;;  %v6382_v6 = vld [vmem:[%s4904_s7 + $0x88] sm:$0xf] }
  0xf3   : > { %4345 = vmatprep.mubr.msk.bf16.mxu0 %vm941_vm3, %v6182_v0  ;;  %v2711_v0 = vor.u32 %v2710_v48, %v6262_v2  ;;  %v6307_v52 = vrot.slane %v2714_v27, 5  ;;  %v537_v51 = vshll.u32 %v6265_v12, 16  ;;  %v543_v21 = vshll.u32 %v6284_v28, 16  ;;  %v308_v48 = vld [vmem:[%s4904_s7 + $0x80] sm:$0x1] }
  0xf4   : > { %v547_v34 = vshrl.u32 %v6284_v28, 16  ;;  %v2719_v16 = vshrl.u32 %v6287_v35, 16  ;;  %v2722_v58 = vshll.u32 %v6287_v35, 16  ;;  %v2728_v4 = vshll.u32 %v6301_v17, 16 }
  0xf5   : > { %v2732_v57 = vshrl.u32 %v6301_v17, 16  ;;  %v558_v30 = vshrl.u32 %v6304_v15, 16  ;;  %v561_v47 = vshll.u32 %v6304_v15, 16  ;;  %v532_v43 = vsel %vm5056_vm2, %v6295_v25, %v6281_v37 }
  0xf6   : > { %2086 = vmatmul.mubr.bf16.gmra.mrb[52].mxu1 %v6109_v36  ;;  %v6328_v11 = vsel %vm941_vm3, %v4264_v45, %v3041_v31  ;;  %v307_v36 = vld [vmem:[%s4904_s7 + $0x74] sm:$0x1]  ;;  %v567_v13 = vshll.u32 %v6311_v50, 16  ;;  %v571_v56 = vshrl.u32 %v6311_v50, 16  ;;  %v2702_v29 = vrot.slane %v2701_v8, 4  ;;  %v880_v45 = vpop.permute.xlu0 %879 }
  0xf7   : > { %4145 = vmatprep.mubr.msk.bf16.mxu1 %vm941_vm3, %v4093_v62  ;;  %v2712_v41 = vrot.slane %v2711_v0, 4  ;;  %v536_v32 = vrot.slane %v534_v60, 4  ;;  %v539_v39 = vrot.slane %v537_v51, 5  ;;  %v6336_v23 = vrot.slane %v543_v21, 5  ;;  %v4250_v21 = vld [vmem:[%s4904_s7 + $0x98] sm:$0x1] }
  0xf8   : > { %v549_v24 = vrot.slane %v547_v34, 4  ;;  %v2721_v53 = vrot.slane %v2719_v16, 4  ;;  %v2724_v1 = vrot.slane %v2722_v58, 5  ;;  %v6342_v61 = vrot.slane %v2728_v4, 5 }
  0xf9   : > { %v2734_v42 = vrot.slane %v2732_v57, 4  ;;  %v560_v49 = vrot.slane %v558_v30, 4  ;;  %v563_v63 = vrot.slane %v561_v47, 5  ;;  %v553_v55 = vshll.u32 %v307_v36, 16  ;;  %v6376_v57 = vld [vmem:[%s4904_s7 + $0x84] sm:$0xf] }
  0xfa   : > { %3392 = vmatmul.mubr.bf16.gmra.mrb[24].mxu0 %v6118_v9  ;;  %v3928_v26 = vcombine.low %v6265_v12, %v6284_v28  ;;  %v6348_v20 = vrot.slane %v567_v13, 5  ;;  %v573_v54 = vrot.slane %v571_v56, 4  ;;  %v2743_v27 = vshrl.u32 %v6334_v7, 16 }
  0xfb   : > { %4346 = vmatprep.mubr.msk.bf16.mxu0 %vm941_vm3, %v4294_v14  ;;  %v2746_v9 = vshll.u32 %v6334_v7, 16  ;;  %v2752_v62 = vshll.u32 %v6339_v40, 16  ;;  %v2756_v37 = vshrl.u32 %v6339_v40, 16  ;;  %v2707_v14 = vsel %vm5056_vm2, %v2702_v29, %v6262_v2 }
  0xfc   : > { %v2717_v12 = vsel %vm5056_vm2, %v2712_v41, %v6307_v52  ;;  %v540_v28 = vor.u32 %v539_v39, %v536_v32  ;;  %v550_v25 = vor.u32 %v549_v24, %v6336_v23  ;;  %v2725_v60 = vor.u32 %v2724_v1, %v2721_v53  ;;  %v3043_v39 = vpop.permute.xlu1 %3042 }
  0xfd   : > { %v2735_v31 = vor.u32 %v2734_v42, %v6342_v61  ;;  %v2738_v8 = vshll.u32 %v4249_v59, 16  ;;  %v564_v0 = vor.u32 %v563_v63, %v560_v49  ;;  %v3959_v2 = vcombine.low %v522_v3, %v532_v43 }
  0xfe   : > { %2094 = vmatmul.mubr.bf16.gmra.mrb[56].mxu1 %v6185_v46  ;;  %v555_v52 = vrot.slane %v553_v55, 5  ;;  %v574_v46 = vor.u32 %v573_v54, %v6348_v20  ;;  %v577_v51 = vshll.u32 %v308_v48, 16  ;;  %v2745_v34 = vrot.slane %v2743_v27, 4 }
  0xff   : > { %4146 = vmatprep.mubr.msk.bf16.mxu1 %vm941_vm3, %v6274_v22  ;;  %v2748_v16 = vrot.slane %v2746_v9, 5  ;;  %v6373_v58 = vrot.slane %v2752_v62, 5  ;;  %v2758_v4 = vrot.slane %v2756_v37, 4  ;;  %v4296_v30 = vcombine.low %v2707_v14, %v2717_v12  ;;  %v309_v37 = vld [vmem:[%s4904_s7 + $0x8c] sm:$0x1] }
 0x100   : > { %v541_v22 = vrot.slane %v540_v28, 4  ;;  %v551_v47 = vrot.slane %v550_v25, 4  ;;  %v6379_v36 = vsel %vm941_vm3, %v3928_v26, %v880_v45  ;;  %v2726_v44 = vrot.slane %v2725_v60, 4  ;;  %v3045_v9 = vpop.permute.xlu1 %3044 }
 0x101   : > { %v2736_v3 = vrot.slane %v2735_v31, 4  ;;  %v2740_v43 = vrot.slane %v2738_v8, 5  ;;  %v565_v13 = vrot.slane %v564_v0, 4  ;;  %v575_v56 = vrot.slane %v574_v46, 4 }
 0x102   : > { %3400 = vmatmul.mubr.bf16.gmra.mrb[28].mxu0 %v6216_v38  ;;  %v579_v29 = vrot.slane %v577_v51, 5  ;;  %v2762_v41 = vshll.u32 %v4250_v21, 16  ;;  %v582_v32 = vshrl.u32 %v6376_v57, 16  ;;  %v2749_v24 = vor.u32 %v2748_v16, %v2745_v34  ;;  %v6455_v16 = vld [vmem:[%s4904_s7 + $0xa8] sm:$0xf] }
 0x103   : > { %4347 = vmatprep.mubr.msk.bf16.mxu0 %vm941_vm3, %v6276_v5  ;;  %v2759_v53 = vor.u32 %v2758_v4, %v6373_v58  ;;  %v585_v38 = vshll.u32 %v6376_v57, 16  ;;  %v591_v1 = vshll.u32 %v6382_v6, 16  ;;  %v546_v42 = vsel %vm5056_vm2, %v541_v22, %v6336_v23 }
 0x104   : > { %v556_v5 = vsel %vm5056_vm2, %v551_v47, %v555_v52  ;;  %v4265_v49 = vcombine.low %v6287_v35, %v6301_v17  ;;  %v595_v63 = vshrl.u32 %v6382_v6, 16  ;;  %v2731_v55 = vsel %vm5056_vm2, %v2726_v44, %v6342_v61  ;;  %v6411_v35 = vld [vmem:[%s4904_s7 + $0x9c] sm:$0xf]  ;;  %v6414_v17 = vld [vmem:[%s4904_s7 + $0xa0] sm:$0xf] }
 0x105   : > { %v2741_v26 = vsel %vm5056_vm2, %v2736_v3, %v2740_v43  ;;  %v570_v23 = vsel %vm5056_vm2, %v565_v13, %v6348_v20  ;;  %v3929_v59 = vcombine.low %v6304_v15, %v6311_v50  ;;  %v580_v61 = vsel %vm5056_vm2, %v575_v56, %v579_v29  ;;  %v6445_v52 = vld [vmem:[%s4904_s7 + $0x94] sm:$0xf]  ;;  %v6461_v3 = vld [vmem:[%s4904_s7 + $0xac] sm:$0xf] }
 0x106   : > { %2102 = vmatmul.mubr.bf16.gmra.mrb[60].mxu1 %v6268_v19  ;;  %v882_v19 = vpop.permute.xlu0 %881  ;;  %v2764_v54 = vrot.slane %v2762_v41, 5  ;;  %v4266_v48 = vcombine.low %v6334_v7, %v6339_v40  ;;  %v584_v27 = vrot.slane %v582_v32, 4  ;;  %v2750_v20 = vrot.slane %v2749_v24, 4 }
 0x107   : > { %4167 = vmatprep.mubr.msk.bf16.mxu1 %vm941_vm3, %v3959_v2  ;;  %v2760_v62 = vrot.slane %v2759_v53, 4  ;;  %v587_v15 = vrot.slane %v585_v38, 5  ;;  %v6422_v50 = vrot.slane %v591_v1, 5  ;;  %v597_v14 = vrot.slane %v595_v63, 4  ;;  %v6442_v2 = vld [vmem:[%s4904_s7 + $0x90] sm:$0xf] }
 0x108   : > { %v2767_v12 = vshrl.u32 %v6411_v35, 16  ;;  %v2770_v28 = vshll.u32 %v6411_v35, 16  ;;  %v2776_v25 = vshll.u32 %v6414_v17, 16  ;;  %v3960_v7 = vcombine.low %v546_v42, %v556_v5  ;;  %v6478_v38 = vld [vmem:[%s4904_s7 + $0x9c] sm:$0xf] }
 0x109   : > { %v6429_v40 = vsel %vm941_vm3, %v4265_v49, %v3043_v39  ;;  %v6432_v45 = vsel %vm941_vm3, %v3929_v59, %v882_v19  ;;  %v2780_v60 = vshrl.u32 %v6414_v17, 16  ;;  %v4297_v31 = vcombine.low %v2731_v55, %v2741_v26  ;;  %v6481_v63 = vld [vmem:[%s4904_s7 + $0xa0] sm:$0xf]  ;;  %v310_v19 = vld [vmem:[%s4904_s7 + $0x98] sm:$0x1] }
 0x10a   : > { %3408 = vmatmul.mubr.bf16.gmra.mrb[32].mxu0 %v6271_v18  ;;  %v6436_v8 = vcombine.low %v570_v23, %v580_v61  ;;  %v6439_v0 = vsel %vm941_vm3, %v4266_v48, %v3045_v9  ;;  %v601_v18 = vshll.u32 %v309_v37, 16  ;;  %v2755_v46 = vsel %vm5056_vm2, %v2750_v20, %v6373_v58  ;;  %v884_v4 = vpop.permute.xlu0 %883  ;;  %v4251_v58 = vld [vmem:[%s4904_s7 + $0xa4] sm:$0x1]  ;;  %v4252_v9 = vld [vmem:[%s4904_s7 + $0xb0] sm:$0x1] }
 0x10b   : > { %4348 = vmatprep.mubr.msk.bf16.mxu0 %vm941_vm3, %v4296_v30  ;;  %v2765_v51 = vsel %vm5056_vm2, %v2760_v62, %v2764_v54  ;;  %v588_v21 = vor.u32 %v587_v15, %v584_v27  ;;  %v3930_v34 = vcombine.low %v6376_v57, %v6382_v6  ;;  %v598_v30 = vor.u32 %v597_v14, %v6422_v50 }
 0x10c   : > { %v2769_v22 = vrot.slane %v2767_v12, 4  ;;  %v2772_v47 = vrot.slane %v2770_v28, 5  ;;  %v6458_v44 = vrot.slane %v2776_v25, 5  ;;  %v2782_v43 = vrot.slane %v2780_v60, 4  ;;  %v6502_v25 = vld [vmem:[%s4904_s7 + $0xb4] sm:$0xf] }
 0x10d   : > { %v606_v13 = vshrl.u32 %v6442_v2, 16  ;;  %v609_v57 = vshll.u32 %v6442_v2, 16  ;;  %v615_v6 = vshll.u32 %v6445_v52, 16  ;;  %v603_v56 = vrot.slane %v601_v18, 5 }
 0x10e   : > { %2327 = vmatmul.mubr.bf16.vlgmr.msra.gmra.mrb[32].mxu1 %v6279_v33  ;;  %v619_v29 = vshrl.u32 %v6445_v52, 16  ;;  %v2791_v41 = vshrl.u32 %v6455_v16, 16  ;;  %v2794_v32 = vshll.u32 %v6455_v16, 16  ;;  %v4298_v39 = vcombine.low %v2755_v46, %v2765_v51  ;;  %v6506_v46 = vld [vmem:[%s4904_s7 + $0xb8] sm:$0xf] }
 0x10f   : > { %4168 = vmatprep.mubr.msk.bf16.mxu1 %vm941_vm3, %v3960_v7  ;;  %v6473_v33 = vsel %vm941_vm3, %v3930_v34, %v884_v4  ;;  %v2800_v24 = vshll.u32 %v6461_v3, 16  ;;  %v2804_v53 = vshrl.u32 %v6461_v3, 16  ;;  %v589_v1 = vrot.slane %v588_v21, 4 }
 0x110   : > { %v599_v42 = vrot.slane %v598_v30, 4  ;;  %v2773_v5 = vor.u32 %v2772_v47, %v2769_v22  ;;  %v2786_v49 = vshll.u32 %v4251_v58, 16  ;;  %v2783_v55 = vor.u32 %v2782_v43, %v6458_v44  ;;  %v311_v47 = vld [vmem:[%s4904_s7 + $0xa4] sm:$0x1] }
 0x111   : > { %v608_v26 = vrot.slane %v606_v13, 4  ;;  %v611_v23 = vrot.slane %v609_v57, 5  ;;  %v6485_v59 = vrot.slane %v615_v6, 5  ;;  %v621_v61 = vrot.slane %v619_v29, 4 }
 0x112   : > { %3416 = vmatmul.mubr.bf16.gmra.mrb[36].mxu0 %v6328_v11  ;;  %v2793_v54 = vrot.slane %v2791_v41, 4  ;;  %v2796_v48 = vrot.slane %v2794_v32, 5  ;;  %v630_v27 = vshrl.u32 %v6478_v38, 16  ;;  %v6491_v20 = vrot.slane %v2800_v24, 5  ;;  %v6526_v41 = vld [vmem:[%s4904_s7 + $0xa8] sm:$0xf] }
 0x113   : > { %4349 = vmatprep.mubr.msk.bf16.mxu0 %vm941_vm3, %v4297_v31  ;;  %v2806_v11 = vrot.slane %v2804_v53, 4  ;;  %v633_v62 = vshll.u32 %v6478_v38, 16  ;;  %v639_v37 = vshll.u32 %v6481_v63, 16  ;;  %v594_v15 = vsel %vm5056_vm2, %v589_v1, %v6422_v50 }
 0x114   : > { %v604_v14 = vsel %vm5056_vm2, %v599_v42, %v603_v56  ;;  %v2788_v12 = vrot.slane %v2786_v49, 5  ;;  %v643_v28 = vshrl.u32 %v6481_v63, 16  ;;  %v2774_v7 = vrot.slane %v2773_v5, 4  ;;  %v6530_v42 = vld [vmem:[%s4904_s7 + $0xac] sm:$0xf] }
 0x115   : > { %v2784_v60 = vrot.slane %v2783_v55, 4  ;;  %v612_v31 = vor.u32 %v611_v23, %v608_v26  ;;  %v625_v18 = vshll.u32 %v310_v19, 16  ;;  %v622_v50 = vor.u32 %v621_v61, %v6485_v59 }
 0x116   : > { %2335 = vmatmul.mubr.bf16.gmra.mrb[36].mxu1 %v6379_v36  ;;  %v2797_v51 = vor.u32 %v2796_v48, %v2793_v54  ;;  %v2810_v21 = vshll.u32 %v4252_v9, 16  ;;  %v632_v34 = vrot.slane %v630_v27, 4  ;;  %v2807_v4 = vor.u32 %v2806_v11, %v6491_v20 }
 0x117   : > { %4169 = vmatprep.mubr.msk.bf16.mxu1 %vm941_vm3, %v6436_v8  ;;  %v635_v30 = vrot.slane %v633_v62, 5  ;;  %v6512_v22 = vrot.slane %v639_v37, 5  ;;  %v2815_v36 = vshrl.u32 %v6502_v25, 16  ;;  %v645_v58 = vrot.slane %v643_v28, 4  ;;  %v6555_v28 = vld [vmem:[%s4904_s7 + $0xc0] sm:$0xf] }
 0x118   : > { %v2818_v43 = vshll.u32 %v6502_v25, 16  ;;  %v2824_v8 = vshll.u32 %v6506_v46, 16  ;;  %v2828_v13 = vshrl.u32 %v6506_v46, 16  ;;  %v3962_v57 = vcombine.low %v594_v15, %v604_v14 }
 0x119   : > { %v2779_v6 = vsel %vm5056_vm2, %v2774_v7, %v6458_v44  ;;  %v2789_v56 = vsel %vm5056_vm2, %v2784_v60, %v2788_v12  ;;  %v627_v29 = vrot.slane %v625_v18, 5  ;;  %v613_v32 = vrot.slane %v612_v31, 4 }
 0x11a   : > { %3424 = vmatmul.mubr.bf16.gmra.mrb[40].mxu0 %v6429_v40  ;;  %v623_v24 = vrot.slane %v622_v50, 4  ;;  %v2798_v53 = vrot.slane %v2797_v51, 4  ;;  %v2812_v1 = vrot.slane %v2810_v21, 5  ;;  %v2808_v40 = vrot.slane %v2807_v4, 4 }
 0x11b   : > { %4350 = vmatprep.mubr.msk.bf16.mxu0 %vm941_vm3, %v4298_v39  ;;  %v636_v5 = vor.u32 %v635_v30, %v632_v34  ;;  %v649_v49 = vshll.u32 %v311_v47, 16  ;;  %v2817_v55 = vrot.slane %v2815_v36, 4  ;;  %v646_v44 = vor.u32 %v645_v58, %v6512_v22  ;;  %v4253_v39 = vld [vmem:[%s4904_s7 + $0xbc] sm:$0x1]  ;;  %v312_v34 = vld [vmem:[%s4904_s7 + $0xb0] sm:$0x1] }
 0x11c   : > { %v2820_v26 = vrot.slane %v2818_v43, 5  ;;  %v6533_v23 = vrot.slane %v2824_v8, 5  ;;  %v2830_v19 = vrot.slane %v2828_v13, 4  ;;  %v654_v61 = vshrl.u32 %v6526_v41, 16  ;;  %v6574_v8 = vld [vmem:[%s4904_s7 + $0xb4] sm:$0xf] }
 0x11d   : > { %v657_v54 = vshll.u32 %v6526_v41, 16  ;;  %v663_v48 = vshll.u32 %v6530_v42, 16  ;;  %v667_v27 = vshrl.u32 %v6530_v42, 16  ;;  %v4299_v9 = vcombine.low %v2779_v6, %v2789_v56 }
 0x11e   : > { %2343 = vmatmul.mubr.bf16.gmra.mrb[40].mxu1 %v6432_v45  ;;  %v4267_v11 = vcombine.low %v6411_v35, %v6414_v17  ;;  %v618_v45 = vsel %vm5056_vm2, %v613_v32, %v6485_v59  ;;  %v628_v62 = vsel %vm5056_vm2, %v623_v24, %v627_v29  ;;  %v2803_v37 = vsel %vm5056_vm2, %v2798_v53, %v6491_v20  ;;  %v6558_v35 = vld [vmem:[%s4904_s7 + $0xc4] sm:$0xf]  ;;  %v3047_v17 = vpop.permute.xlu1 %3046  ;;  %v6582_v29 = vld [vmem:[%s4904_s7 + $0xb8] sm:$0xf] }
 0x11f   : > { %4170 = vmatprep.mubr.msk.bf16.mxu1 %vm941_vm3, %v3962_v57  ;;  %v2813_v15 = vsel %vm5056_vm2, %v2808_v40, %v2812_v1  ;;  %v637_v14 = vrot.slane %v636_v5, 4  ;;  %v651_v12 = vrot.slane %v649_v49, 5  ;;  %v647_v7 = vrot.slane %v646_v44, 4  ;;  %v4254_v49 = vld [vmem:[%s4904_s7 + $0xc8] sm:$0x1] }
 0x120   : > { %v2821_v59 = vor.u32 %v2820_v26, %v2817_v55  ;;  %v2831_v60 = vor.u32 %v2830_v19, %v6533_v23  ;;  %v2834_v31 = vshll.u32 %v4253_v39, 16  ;;  %v656_v20 = vrot.slane %v654_v61, 4 }
 0x121   : > { %v659_v18 = vrot.slane %v657_v54, 5  ;;  %v6562_v50 = vrot.slane %v663_v48, 5  ;;  %v669_v51 = vrot.slane %v667_v27, 4  ;;  %v3963_v21 = vcombine.low %v618_v45, %v628_v62 }
 0x122   : > { %3432 = vmatmul.mubr.bf16.gmra.mrb[44].mxu0 %v6439_v0  ;;  %v2839_v4 = vshrl.u32 %v6555_v28, 16  ;;  %v2842_v30 = vshll.u32 %v6555_v28, 16  ;;  %v2848_v36 = vshll.u32 %v6558_v35, 16  ;;  %v3152_v47 = vsel %vm941_vm3, %v4267_v11, %v3047_v17  ;;  %v3049_v11 = vpop.permute.xlu1 %3048  ;;  %v313_v17 = vld [vmem:[%s4904_s7 + $0xbc] sm:$0x1] }
 0x123   : > { %4351 = vmatprep.mubr.msk.bf16.mxu0 %vm941_vm3, %v4299_v9  ;;  %v3931_v0 = vcombine.low %v6442_v2, %v6445_v52  ;;  %v4300_v58 = vcombine.low %v2803_v37, %v2813_v15  ;;  %v2852_v43 = vshrl.u32 %v6558_v35, 16  ;;  %v642_v13 = vsel %vm5056_vm2, %v637_v14, %v6512_v22  ;;  %v886_v2 = vpop.permute.xlu0 %885 }
 0x124   : > { %v652_v57 = vsel %vm5056_vm2, %v647_v7, %v651_v12  ;;  %v2822_v6 = vrot.slane %v2821_v59, 4  ;;  %v2836_v56 = vrot.slane %v2834_v31, 5  ;;  %v2832_v52 = vrot.slane %v2831_v60, 4 }
 0x125   : > { %v660_v32 = vor.u32 %v659_v18, %v656_v20  ;;  %v670_v24 = vor.u32 %v669_v51, %v6562_v50  ;;  %v673_v53 = vshll.u32 %v312_v34, 16  ;;  %v2841_v1 = vrot.slane %v2839_v4, 4 }
 0x126   : > { %2351 = vmatmul.mubr.bf16.gmra.mrb[44].mxu1 %v6473_v33  ;;  %v2844_v22 = vrot.slane %v2842_v30, 5  ;;  %v2850_v40 = vrot.slane %v2848_v36, 5  ;;  %v678_v5 = vshrl.u32 %v6574_v8, 16  ;;  %v2854_v55 = vrot.slane %v2852_v43, 4 }
 0x127   : > { %4171 = vmatprep.mubr.msk.bf16.mxu1 %vm941_vm3, %v3963_v21  ;;  %v681_v44 = vshll.u32 %v6574_v8, 16  ;;  %v687_v26 = vshll.u32 %v6582_v29, 16  ;;  %v691_v33 = vshrl.u32 %v6582_v29, 16  ;;  %v992_v19 = vsel %vm941_vm3, %v3931_v0, %v886_v2  ;;  %v888_v51 = vpop.permute.xlu0 %887 }
 0x128   : > { %v4268_v39 = vcombine.low %v6455_v16, %v6461_v3  ;;  %v3964_v61 = vcombine.low %v642_v13, %v652_v57  ;;  %v2827_v54 = vsel %vm5056_vm2, %v2822_v6, %v6533_v23  ;;  %v2837_v48 = vsel %vm5056_vm2, %v2832_v52, %v2836_v56 }
 0x129   : > { %v661_v27 = vrot.slane %v660_v32, 4  ;;  %v675_v9 = vrot.slane %v673_v53, 5  ;;  %v671_v45 = vrot.slane %v670_v24, 4  ;;  %v2845_v62 = vor.u32 %v2844_v22, %v2841_v1 }
 0x12a   : > { %3440 = vmatmul.mubr.bf16.gmra.mrb[48].mxu0 %v3152_v47  ;;  %v2858_v37 = vshll.u32 %v4254_v49, 16  ;;  %v680_v15 = vrot.slane %v678_v5, 4  ;;  %v2855_v16 = vor.u32 %v2854_v55, %v2850_v40  ;;  %v683_v3 = vrot.slane %v681_v44, 5  ;;  %v3051_v47 = vpop.permute.xlu1 %3050 }
 0x12b   : > { %4352 = vmatprep.mubr.msk.bf16.mxu0 %vm941_vm3, %v4300_v58  ;;  %v689_v14 = vrot.slane %v687_v26, 5  ;;  %v693_v12 = vrot.slane %v691_v33, 4  ;;  %v3156_v23 = vsel %vm941_vm3, %v4268_v39, %v3049_v11  ;;  %v3932_v7 = vcombine.low %v6478_v38, %v6481_v63 }
 0x12c   : > { %v4301_v59 = vcombine.low %v2827_v54, %v2837_v48  ;;  %v666_v60 = vsel %vm5056_vm2, %v661_v27, %v6562_v50  ;;  %v676_v31 = vsel %vm5056_vm2, %v671_v45, %v675_v9  ;;  %v2846_v20 = vrot.slane %v2845_v62, 4 }
 0x12d   : > { %v2860_v18 = vrot.slane %v2858_v37, 5  ;;  %v2856_v21 = vrot.slane %v2855_v16, 4  ;;  %v684_v34 = vor.u32 %v683_v3, %v680_v15  ;;  %v694_v4 = vor.u32 %v693_v12, %v689_v14 }
 0x12e   : > { %2359 = vmatmul.mubr.bf16.gmra.mrb[48].mxu1 %v992_v19  ;;  %v697_v30 = vshll.u32 %v313_v17, 16  ;;  %v996_v38 = vsel %vm941_vm3, %v3932_v7, %v888_v51  ;;  %v4269_v63 = vcombine.low %v6502_v25, %v6506_v46  ;;  %v3965_v36 = vcombine.low %v666_v60, %v676_v31  ;;  %v890_v46 = vpop.permute.xlu0 %889  ;;  %v3053_v53 = vpop.permute.xlu1 %3052  ;;  %v6660_v31 = vld [vmem:[%s6774_s2] ss:$0 sm:$0xff] }
 0x12f   : > { %4172 = vmatprep.mubr.msk.bf16.mxu1 %vm941_vm3, %v3964_v61  ;;  %v2851_v50 = vsel %vm5056_vm2, %v2846_v20, %v2850_v40  ;;  %v2861_v0 = vsel %vm5056_vm2, %v2856_v21, %v2860_v18  ;;  %v685_v58 = vrot.slane %v684_v34, 4  ;;  %v695_v43 = vrot.slane %v694_v4, 4  ;;  %v6665_v51 = vld [vmem:[%s6775_s3] ss:$0 sm:$0xff] }
 0x130   : > { %v699_v13 = vrot.slane %v697_v30, 5  ;;  %v3160_v57 = vsel %vm941_vm3, %v4269_v63, %v3051_v47  ;;  %v3933_v6 = vcombine.low %v6526_v41, %v6530_v42  ;;  %v4302_v25 = vcombine.low %v2851_v50, %v2861_v0 }
 0x131   : > { %v690_v56 = vsel %vm5056_vm2, %v685_v58, %v689_v14  ;;  %v4270_v32 = vcombine.low %v6555_v28, %v6558_v35  ;;  %v3934_v42 = vcombine.low %v6574_v8, %v6582_v29 }
 0x132   : > { %3448 = vmatmul.mubr.bf16.gmra.mrb[52].mxu0 %v3156_v23  ;;  %v700_v2 = vsel %vm5056_vm2, %v695_v43, %v699_v13  ;;  %v1000_v52 = vsel %vm941_vm3, %v3933_v6, %v890_v46  ;;  %v892_v10 = vpop.permute.xlu0 %891 }
 0x133   : > { %4353 = vmatprep.mubr.msk.bf16.mxu0 %vm941_vm3, %v4301_v59  ;;  %v3966_v24 = vcombine.low %v690_v56, %v700_v2  ;;  %v3164_v41 = vsel %vm941_vm3, %v4270_v32, %v3053_v53  ;;  %v1004_v1 = vsel %vm941_vm3, %v3934_v42, %v892_v10 }
 0x136   : > { %2367 = vmatmul.mubr.bf16.gmra.mrb[52].mxu1 %v996_v38 }
 0x137   : > { %4173 = vmatprep.mubr.msk.bf16.mxu1 %vm941_vm3, %v3965_v36 }
 0x13a   : > { %3456 = vmatmul.mubr.bf16.gmra.mrb[56].mxu0 %v3160_v57 }
 0x13b   : > { %4354 = vmatprep.mubr.msk.bf16.mxu0 %vm941_vm3, %v4302_v25 }
 0x13e   : > { %2375 = vmatmul.mubr.bf16.gmra.mrb[56].mxu1 %v1000_v52 }
 0x13f   : > { %4174 = vmatprep.mubr.msk.bf16.mxu1 %vm941_vm3, %v3966_v24 }
 0x142   : > { %3464 = vmatmul.mubr.bf16.gmra.mrb[60].mxu0 %v3164_v41 }
 0x146   : > { %2383 = vmatmul.mubr.bf16.gmra.mrb[60].mxu1 %v1004_v1 }
 0x161   : > { %v1983_v22 = vpop.f32.mrb[0].mxu1 }
 0x162   : > { %v1985_v40 = vpop.f32.mrb[1].mxu1 }
 0x163   : > { %v1986_v5 = vpop.f32.mrb[2].mxu1 }
 0x164   : > { %v1988_v49 = vpop.f32.mrb[3].mxu1 }
 0x169   : > { %v1991_v28 = vpop.f32.mrb[4].mxu1 }
 0x16a   : > { %v1993_v35 = vpop.f32.mrb[5].mxu1 }
 0x16b   : > { %v1994_v55 = vpop.f32.mrb[6].mxu1 }
 0x16c   : > { %v1996_v44 = vpop.f32.mrb[7].mxu1 }
 0x171   : > { %v1999_v26 = vpop.f32.mrb[8].mxu1 }
 0x172   : > { %v2001_v33 = vpop.f32.mrb[9].mxu1 }
 0x173   : > { %v2002_v19 = vpop.f32.mrb[10].mxu1 }
 0x174   : > { %v2004_v39 = vpop.f32.mrb[11].mxu1 }
 0x179   : > { %v6636_v61 = vpop.f32.mrb[12].mxu1 }
 0x17a   : > { %v2009_v8 = vpop.f32.mrb[13].mxu1 }
 0x17b   : > { %v6638_v29 = vpop.f32.mrb[14].mxu1 }
 0x17c   : > { %v2012_v54 = vpop.f32.mrb[15].mxu1 }
 0x181   : > { %v6640_v48 = vpop.f32.mrb[16].mxu1 }
 0x182   : > { %v2017_v27 = vpop.f32.mrb[17].mxu1 }
 0x183   : > { %v6642_v9 = vpop.f32.mrb[18].mxu1 }
 0x184   : > { %v2020_v11 = vpop.f32.mrb[19].mxu1 }
 0x189   : > { %v6644_v45 = vpop.f32.mrb[20].mxu1 }
 0x18a   : > { %v2025_v62 = vpop.f32.mrb[21].mxu1 }
 0x18b   : > { %v6646_v37 = vpop.f32.mrb[22].mxu1 }
 0x18c   : > { %v2028_v15 = vpop.f32.mrb[23].mxu1 }
 0x191   : > { %v6648_v16 = vpop.f32.mrb[24].mxu1 }
 0x192   : > { %v2033_v3 = vpop.f32.mrb[25].mxu1 }
 0x193   : > { %v6650_v14 = vpop.f32.mrb[26].mxu1 }
 0x194   : > { %v2036_v12 = vpop.f32.mrb[27].mxu1 }
 0x199   : > { %v6652_v17 = vpop.f32.mrb[28].mxu1 }
 0x19a   : > { %v2041_v23 = vpop.f32.mrb[29].mxu1 }
 0x19b   : > { %v6654_v7 = vpop.f32.mrb[30].mxu1 }
 0x19c   : > { %v2044_v59 = vpop.f32.mrb[31].mxu1 }
 0x19d   : > { %v3345_v60 = vpop.f32.mrb[0].mxu0 }
 0x19e   : > { %v4543_v20 = vadd.f32 %v3345_v60, %v1983_v22  ;;  %v3347_v18 = vpop.f32.mrb[1].mxu0 }
 0x19f   : > { %v3348_v21 = vpop.f32.mrb[2].mxu0 }
 0x1a0   : > { %v3511_v34 = vmul.f32 %v4543_v20, %v6660_v31  ;;  %v4544_v4 = vadd.f32 %v3348_v21, %v1986_v5  ;;  %v3350_v30 = vpop.f32.mrb[3].mxu0 }
 0x1a2   : > { %v3550_v38 = vadd.f32 %v6665_v51, %v3511_v34  ;;  %v3512_v63 = vmul.f32 %v4544_v4, %v6660_v31 }
 0x1a4   : > { %v3551_v36 = vadd.f32 %v6665_v51, %v3512_v63  ;;  %v3582_v47 = vmax.f32 %v3550_v38, 0.0 }
 0x1a5   : > { %v3353_v50 = vpop.f32.mrb[4].mxu0 }
 0x1a6   : > { %v3583_v0 = vmax.f32 %v3551_v36, 0.0  ;;  %v4545_v58 = vadd.f32 %v3353_v50, %v1991_v28  ;;  %v3355_v43 = vpop.f32.mrb[5].mxu0 }
 0x1a7   : > { %v3356_v13 = vpop.f32.mrb[6].mxu0 }
 0x1a8   : > { %v4427_v57 = vpack.c.bf16 %v3583_v0, %v3582_v47  ;;  %v3513_v6 = vmul.f32 %v4545_v58, %v6660_v31  ;;  %v4546_v25 = vadd.f32 %v3356_v13, %v1994_v55  ;;  %v3358_v46 = vpop.f32.mrb[7].mxu0 }
 0x1aa   : > { %4428 = vst [vmem:[%s6675_s22] sm:$0xff] %v4427_v57   ;;  %v3552_v56 = vadd.f32 %v6665_v51, %v3513_v6  ;;  %v3514_v2 = vmul.f32 %v4546_v25, %v6660_v31 }
 0x1ac   : > { %v3553_v52 = vadd.f32 %v6665_v51, %v3514_v2  ;;  %v3584_v24 = vmax.f32 %v3552_v56, 0.0 }
 0x1ad   : > { %v3361_v32 = vpop.f32.mrb[8].mxu0 }
 0x1ae   : > { %v3585_v53 = vmax.f32 %v3553_v52, 0.0  ;;  %v4547_v41 = vadd.f32 %v3361_v32, %v1999_v26  ;;  %v3363_v42 = vpop.f32.mrb[9].mxu0 }
 0x1af   : > { %v3364_v10 = vpop.f32.mrb[10].mxu0 }
 0x1b0   : > { %v4432_v1 = vpack.c.bf16 %v3585_v53, %v3584_v24  ;;  %v3515_v22 = vmul.f32 %v4547_v41, %v6660_v31  ;;  %v4548_v40 = vadd.f32 %v3364_v10, %v2002_v19  ;;  %v3366_v5 = vpop.f32.mrb[11].mxu0 }
 0x1b2   : > { %4504 = vst [vmem:[%s6675_s22 + $0x8] sm:$0xff] %v4432_v1   ;;  %v3554_v49 = vadd.f32 %v6665_v51, %v3515_v22  ;;  %v3516_v28 = vmul.f32 %v4548_v40, %v6660_v31 }
 0x1b4   : > { %v3555_v35 = vadd.f32 %v6665_v51, %v3516_v28  ;;  %v3586_v44 = vmax.f32 %v3554_v49, 0.0 }
 0x1b5   : > { %v3369_v55 = vpop.f32.mrb[12].mxu0 }
 0x1b6   : > { %v3587_v33 = vmax.f32 %v3555_v35, 0.0  ;;  %v4549_v26 = vadd.f32 %v3369_v55, %v6636_v61  ;;  %v3371_v39 = vpop.f32.mrb[13].mxu0 }
 0x1b7   : > { %v3372_v8 = vpop.f32.mrb[14].mxu0 }
 0x1b8   : > { %v4437_v54 = vpack.c.bf16 %v3587_v33, %v3586_v44  ;;  %v3517_v27 = vmul.f32 %v4549_v26, %v6660_v31  ;;  %v4550_v19 = vadd.f32 %v3372_v8, %v6638_v29  ;;  %v3374_v11 = vpop.f32.mrb[15].mxu0 }
 0x1ba   : > { %4505 = vst [vmem:[%s6675_s22 + $0x10] sm:$0xff] %v4437_v54   ;;  %v3556_v62 = vadd.f32 %v6665_v51, %v3517_v27  ;;  %v3518_v15 = vmul.f32 %v4550_v19, %v6660_v31 }
 0x1bc   : > { %v3557_v3 = vadd.f32 %v6665_v51, %v3518_v15  ;;  %v3588_v23 = vmax.f32 %v3556_v62, 0.0 }
 0x1bd   : > { %v3377_v12 = vpop.f32.mrb[16].mxu0 }
 0x1be   : > { %v3589_v59 = vmax.f32 %v3557_v3, 0.0  ;;  %v4551_v61 = vadd.f32 %v3377_v12, %v6640_v48  ;;  %v3379_v60 = vpop.f32.mrb[17].mxu0 }
 0x1bf   : > { %v3380_v20 = vpop.f32.mrb[18].mxu0 }
 0x1c0   : > { %v4442_v18 = vpack.c.bf16 %v3589_v59, %v3588_v23  ;;  %v3519_v21 = vmul.f32 %v4551_v61, %v6660_v31  ;;  %v4552_v29 = vadd.f32 %v3380_v20, %v6642_v9  ;;  %v3382_v34 = vpop.f32.mrb[19].mxu0 }
 0x1c2   : > { %4506 = vst [vmem:[%s6675_s22 + $0x18] sm:$0xff] %v4442_v18   ;;  %v3558_v4 = vadd.f32 %v6665_v51, %v3519_v21  ;;  %v3520_v30 = vmul.f32 %v4552_v29, %v6660_v31 }
 0x1c4   : > { %v3559_v38 = vadd.f32 %v6665_v51, %v3520_v30  ;;  %v3590_v36 = vmax.f32 %v3558_v4, 0.0 }
 0x1c5   : > { %v3385_v63 = vpop.f32.mrb[20].mxu0 }
 0x1c6   : > { %v3591_v50 = vmax.f32 %v3559_v38, 0.0  ;;  %v4553_v48 = vadd.f32 %v3385_v63, %v6644_v45  ;;  %v3387_v47 = vpop.f32.mrb[21].mxu0 }
 0x1c7   : > { %v3388_v0 = vpop.f32.mrb[22].mxu0 }
 0x1c8   : > { %v4447_v58 = vpack.c.bf16 %v3591_v50, %v3590_v36  ;;  %v3521_v43 = vmul.f32 %v4553_v48, %v6660_v31  ;;  %v4554_v9 = vadd.f32 %v3388_v0, %v6646_v37  ;;  %v3390_v13 = vpop.f32.mrb[23].mxu0 }
 0x1ca   : > { %4507 = vst [vmem:[%s6675_s22 + $0x20] sm:$0xff] %v4447_v58   ;;  %v3560_v57 = vadd.f32 %v6665_v51, %v3521_v43  ;;  %v3522_v6 = vmul.f32 %v4554_v9, %v6660_v31 }
 0x1cc   : > { %v3561_v25 = vadd.f32 %v6665_v51, %v3522_v6  ;;  %v3592_v56 = vmax.f32 %v3560_v57, 0.0 }
 0x1cd   : > { %v3393_v46 = vpop.f32.mrb[24].mxu0 }
 0x1ce   : > { %v3593_v2 = vmax.f32 %v3561_v25, 0.0  ;;  %v4555_v45 = vadd.f32 %v3393_v46, %v6648_v16  ;;  %v3395_v52 = vpop.f32.mrb[25].mxu0 }
 0x1cf   : > { %v3396_v32 = vpop.f32.mrb[26].mxu0 }
 0x1d0   : > { %v4452_v24 = vpack.c.bf16 %v3593_v2, %v3592_v56  ;;  %v3523_v53 = vmul.f32 %v4555_v45, %v6660_v31  ;;  %v4556_v37 = vadd.f32 %v3396_v32, %v6650_v14  ;;  %v3398_v41 = vpop.f32.mrb[27].mxu0 }
 0x1d2   : > { %4508 = vst [vmem:[%s6675_s22 + $0x28] sm:$0xff] %v4452_v24   ;;  %v3562_v42 = vadd.f32 %v6665_v51, %v3523_v53  ;;  %v3524_v10 = vmul.f32 %v4556_v37, %v6660_v31 }
 0x1d4   : > { %v3563_v1 = vadd.f32 %v6665_v51, %v3524_v10  ;;  %v3594_v40 = vmax.f32 %v3562_v42, 0.0 }
 0x1d5   : > { %v3401_v22 = vpop.f32.mrb[28].mxu0 }
 0x1d6   : > { %v3595_v5 = vmax.f32 %v3563_v1, 0.0  ;;  %v4557_v16 = vadd.f32 %v3401_v22, %v6652_v17  ;;  %v3403_v49 = vpop.f32.mrb[29].mxu0 }
 0x1d7   : > { %v3404_v28 = vpop.f32.mrb[30].mxu0 }
 0x1d8   : > { %v4457_v35 = vpack.c.bf16 %v3595_v5, %v3594_v40  ;;  %v3525_v14 = vmul.f32 %v4557_v16, %v6660_v31  ;;  %v4558_v55 = vadd.f32 %v3404_v28, %v6654_v7  ;;  %v3406_v44 = vpop.f32.mrb[31].mxu0 }
 0x1da   : > { %4509 = vst [vmem:[%s6675_s22 + $0x30] sm:$0xff] %v4457_v35   ;;  %v3564_v33 = vadd.f32 %v6665_v51, %v3525_v14  ;;  %v3526_v26 = vmul.f32 %v4558_v55, %v6660_v31 }
 0x1dc   : > { %v3565_v39 = vadd.f32 %v6665_v51, %v3526_v26  ;;  %v3596_v54 = vmax.f32 %v3564_v33, 0.0 }
 0x1dd   : > { %v3409_v8 = vpop.f32.mrb[32].mxu0 }
 0x1de   : > { %v3597_v27 = vmax.f32 %v3565_v39, 0.0  ;;  %v3411_v17 = vpop.f32.mrb[33].mxu0 }
 0x1df   : > { %v3412_v19 = vpop.f32.mrb[34].mxu0 }
 0x1e0   : > { %v4462_v11 = vpack.c.bf16 %v3597_v27, %v3596_v54  ;;  %v3414_v62 = vpop.f32.mrb[35].mxu0 }
 0x1e1   : > { %v2328_v15 = vpop.f32.mrb[32].mxu1 }
 0x1e2   : > { %4510 = vst [vmem:[%s6675_s22 + $0x38] sm:$0xff] %v4462_v11   ;;  %v4559_v3 = vadd.f32 %v3409_v8, %v2328_v15  ;;  %v2330_v12 = vpop.f32.mrb[33].mxu1 }
 0x1e3   : > { %v2331_v7 = vpop.f32.mrb[34].mxu1 }
 0x1e4   : > { %v3527_v23 = vmul.f32 %v4559_v3, %v6660_v31  ;;  %v4560_v59 = vadd.f32 %v3412_v19, %v2331_v7  ;;  %v2333_v61 = vpop.f32.mrb[35].mxu1 }
 0x1e5   : > { %v3417_v60 = vpop.f32.mrb[36].mxu0 }
 0x1e6   : > { %v3566_v20 = vadd.f32 %v6665_v51, %v3527_v23  ;;  %v3528_v18 = vmul.f32 %v4560_v59, %v6660_v31  ;;  %v3419_v21 = vpop.f32.mrb[37].mxu0 }
 0x1e7   : > { %v3420_v29 = vpop.f32.mrb[38].mxu0 }
 0x1e8   : > { %v3567_v34 = vadd.f32 %v6665_v51, %v3528_v18  ;;  %v3422_v4 = vpop.f32.mrb[39].mxu0  ;;  %v3598_v38 = vmax.f32 %v3566_v20, 0.0 }
 0x1e9   : > { %v2336_v30 = vpop.f32.mrb[36].mxu1 }
 0x1ea   : > { %v3599_v63 = vmax.f32 %v3567_v34, 0.0  ;;  %v4561_v36 = vadd.f32 %v3417_v60, %v2336_v30  ;;  %v2338_v50 = vpop.f32.mrb[37].mxu1 }
 0x1eb   : > { %v2339_v48 = vpop.f32.mrb[38].mxu1 }
 0x1ec   : > { %v4467_v47 = vpack.c.bf16 %v3599_v63, %v3598_v38  ;;  %v3529_v0 = vmul.f32 %v4561_v36, %v6660_v31  ;;  %v4562_v58 = vadd.f32 %v3420_v29, %v2339_v48  ;;  %v2341_v43 = vpop.f32.mrb[39].mxu1 }
 0x1ed   : > { %v3425_v9 = vpop.f32.mrb[40].mxu0 }
 0x1ee   : > { %4511 = vst [vmem:[%s6675_s22 + $0x40] sm:$0xff] %v4467_v47   ;;  %v3568_v13 = vadd.f32 %v6665_v51, %v3529_v0  ;;  %v3530_v57 = vmul.f32 %v4562_v58, %v6660_v31  ;;  %v3427_v6 = vpop.f32.mrb[41].mxu0 }
 0x1ef   : > { %v3428_v25 = vpop.f32.mrb[42].mxu0 }
 0x1f0   : > { %v3569_v46 = vadd.f32 %v6665_v51, %v3530_v57  ;;  %v3430_v56 = vpop.f32.mrb[43].mxu0  ;;  %v3600_v45 = vmax.f32 %v3568_v13, 0.0 }
 0x1f1   : > { %v2344_v2 = vpop.f32.mrb[40].mxu1 }
 0x1f2   : > { %v3601_v52 = vmax.f32 %v3569_v46, 0.0  ;;  %v4563_v32 = vadd.f32 %v3425_v9, %v2344_v2  ;;  %v2346_v24 = vpop.f32.mrb[41].mxu1 }
 0x1f3   : > { %v2347_v53 = vpop.f32.mrb[42].mxu1 }
 0x1f4   : > { %v4472_v37 = vpack.c.bf16 %v3601_v52, %v3600_v45  ;;  %v3531_v41 = vmul.f32 %v4563_v32, %v6660_v31  ;;  %v4564_v42 = vadd.f32 %v3428_v25, %v2347_v53  ;;  %v2349_v10 = vpop.f32.mrb[43].mxu1 }
 0x1f5   : > { %v3433_v1 = vpop.f32.mrb[44].mxu0 }
 0x1f6   : > { %4512 = vst [vmem:[%s6675_s22 + $0x48] sm:$0xff] %v4472_v37   ;;  %v3570_v22 = vadd.f32 %v6665_v51, %v3531_v41  ;;  %v3532_v40 = vmul.f32 %v4564_v42, %v6660_v31  ;;  %v3435_v5 = vpop.f32.mrb[45].mxu0 }
 0x1f7   : > { %v3436_v16 = vpop.f32.mrb[46].mxu0 }
 0x1f8   : > { %v3571_v49 = vadd.f32 %v6665_v51, %v3532_v40  ;;  %v3438_v28 = vpop.f32.mrb[47].mxu0  ;;  %v3602_v14 = vmax.f32 %v3570_v22, 0.0 }
 0x1f9   : > { %v2352_v35 = vpop.f32.mrb[44].mxu1 }
 0x1fa   : > { %v3603_v55 = vmax.f32 %v3571_v49, 0.0  ;;  %v4565_v44 = vadd.f32 %v3433_v1, %v2352_v35  ;;  %v2354_v33 = vpop.f32.mrb[45].mxu1 }
 0x1fb   : > { %v2355_v26 = vpop.f32.mrb[46].mxu1 }
 0x1fc   : > { %v4477_v39 = vpack.c.bf16 %v3603_v55, %v3602_v14  ;;  %v3533_v8 = vmul.f32 %v4565_v44, %v6660_v31  ;;  %v4566_v54 = vadd.f32 %v3436_v16, %v2355_v26  ;;  %v2357_v27 = vpop.f32.mrb[47].mxu1 }
 0x1fd   : > { %v3441_v17 = vpop.f32.mrb[48].mxu0 }
 0x1fe   : > { %4513 = vst [vmem:[%s6675_s22 + $0x50] sm:$0xff] %v4477_v39   ;;  %v3572_v19 = vadd.f32 %v6665_v51, %v3533_v8  ;;  %v3534_v11 = vmul.f32 %v4566_v54, %v6660_v31  ;;  %v3443_v62 = vpop.f32.mrb[49].mxu0 }
 0x1ff   : > { %v3444_v15 = vpop.f32.mrb[50].mxu0 }
 0x200   : > { %v3573_v3 = vadd.f32 %v6665_v51, %v3534_v11  ;;  %v3446_v12 = vpop.f32.mrb[51].mxu0  ;;  %v3604_v23 = vmax.f32 %v3572_v19, 0.0 }
 0x201   : > { %v2360_v7 = vpop.f32.mrb[48].mxu1 }
 0x202   : > { %v3605_v59 = vmax.f32 %v3573_v3, 0.0  ;;  %v4567_v61 = vadd.f32 %v3441_v17, %v2360_v7  ;;  %v2362_v60 = vpop.f32.mrb[49].mxu1 }
 0x203   : > { %v2363_v20 = vpop.f32.mrb[50].mxu1 }
 0x204   : > { %v4482_v18 = vpack.c.bf16 %v3605_v59, %v3604_v23  ;;  %v3535_v21 = vmul.f32 %v4567_v61, %v6660_v31  ;;  %v4568_v29 = vadd.f32 %v3444_v15, %v2363_v20  ;;  %v2365_v34 = vpop.f32.mrb[51].mxu1 }
 0x205   : > { %v3449_v4 = vpop.f32.mrb[52].mxu0 }
 0x206   : > { %4514 = vst [vmem:[%s6675_s22 + $0x58] sm:$0xff] %v4482_v18   ;;  %v3574_v30 = vadd.f32 %v6665_v51, %v3535_v21  ;;  %v3536_v38 = vmul.f32 %v4568_v29, %v6660_v31  ;;  %v3451_v63 = vpop.f32.mrb[53].mxu0 }
 0x207   : > { %v3452_v36 = vpop.f32.mrb[54].mxu0 }
 0x208   : > { %v3575_v50 = vadd.f32 %v6665_v51, %v3536_v38  ;;  %v3454_v48 = vpop.f32.mrb[55].mxu0  ;;  %v3606_v0 = vmax.f32 %v3574_v30, 0.0 }
 0x209   : > { %v2368_v47 = vpop.f32.mrb[52].mxu1 }
 0x20a   : > { %v3607_v58 = vmax.f32 %v3575_v50, 0.0  ;;  %v4569_v43 = vadd.f32 %v3449_v4, %v2368_v47  ;;  %v2370_v9 = vpop.f32.mrb[53].mxu1 }
 0x20b   : > { %v2371_v13 = vpop.f32.mrb[54].mxu1 }
 0x20c   : > { %v4487_v57 = vpack.c.bf16 %v3607_v58, %v3606_v0  ;;  %v3537_v6 = vmul.f32 %v4569_v43, %v6660_v31  ;;  %v4570_v25 = vadd.f32 %v3452_v36, %v2371_v13  ;;  %v2373_v46 = vpop.f32.mrb[55].mxu1 }
 0x20d   : > { %v3457_v56 = vpop.f32.mrb[56].mxu0 }
 0x20e   : > { %4515 = vst [vmem:[%s6675_s22 + $0x60] sm:$0xff] %v4487_v57   ;;  %v3576_v2 = vadd.f32 %v6665_v51, %v3537_v6  ;;  %v3538_v45 = vmul.f32 %v4570_v25, %v6660_v31  ;;  %v3459_v52 = vpop.f32.mrb[57].mxu0 }
 0x20f   : > { %v3460_v32 = vpop.f32.mrb[58].mxu0 }
 0x210   : > { %v3577_v24 = vadd.f32 %v6665_v51, %v3538_v45  ;;  %v3462_v53 = vpop.f32.mrb[59].mxu0  ;;  %v3608_v41 = vmax.f32 %v3576_v2, 0.0 }
 0x211   : > { %v2376_v37 = vpop.f32.mrb[56].mxu1 }
 0x212   : > { %v3609_v42 = vmax.f32 %v3577_v24, 0.0  ;;  %v4571_v10 = vadd.f32 %v3457_v56, %v2376_v37  ;;  %v2378_v1 = vpop.f32.mrb[57].mxu1 }
 0x213   : > { %v2379_v22 = vpop.f32.mrb[58].mxu1 }
 0x214   : > { %v4492_v40 = vpack.c.bf16 %v3609_v42, %v3608_v41  ;;  %v3539_v5 = vmul.f32 %v4571_v10, %v6660_v31  ;;  %v4572_v16 = vadd.f32 %v3460_v32, %v2379_v22  ;;  %v2381_v49 = vpop.f32.mrb[59].mxu1 }
 0x215   : > { %v3465_v28 = vpop.f32.mrb[60].mxu0 }
 0x216   : > { %4516 = vst [vmem:[%s6675_s22 + $0x68] sm:$0xff] %v4492_v40   ;;  %v3578_v35 = vadd.f32 %v6665_v51, %v3539_v5  ;;  %v3540_v14 = vmul.f32 %v4572_v16, %v6660_v31  ;;  %v3467_v55 = vpop.f32.mrb[61].mxu0 }
 0x217   : > { %v3468_v44 = vpop.f32.mrb[62].mxu0 }
 0x218   : > { %v3579_v33 = vadd.f32 %v6665_v51, %v3540_v14  ;;  %v3470_v26 = vpop.f32.mrb[63].mxu0  ;;  %v3610_v8 = vmax.f32 %v3578_v35, 0.0 }
 0x219   : > { %v2384_v39 = vpop.f32.mrb[60].mxu1 }
 0x21a   : > { %v3611_v54 = vmax.f32 %v3579_v33, 0.0  ;;  %v4573_v27 = vadd.f32 %v3465_v28, %v2384_v39  ;;  %v2386_v17 = vpop.f32.mrb[61].mxu1 }
 0x21b   : > { %v2387_v19 = vpop.f32.mrb[62].mxu1 }
 0x21c   : > { %v4497_v11 = vpack.c.bf16 %v3611_v54, %v3610_v8  ;;  %v3541_v62 = vmul.f32 %v4573_v27, %v6660_v31  ;;  %v4574_v15 = vadd.f32 %v3468_v44, %v2387_v19  ;;  %v2389_v3 = vpop.f32.mrb[63].mxu1 }
 0x21e   : > { %4517 = vst [vmem:[%s6675_s22 + $0x70] sm:$0xff] %v4497_v11   ;;  %v3580_v12 = vadd.f32 %v6665_v51, %v3541_v62  ;;  %v3542_v7 = vmul.f32 %v4574_v15, %v6660_v31 }
 0x220   : > { %v3581_v23 = vadd.f32 %v6665_v51, %v3542_v7  ;;  %v3612_v59 = vmax.f32 %v3580_v12, 0.0 }
 0x222   : > { %v3613_v61 = vmax.f32 %v3581_v23, 0.0 }
 0x224   : > { %v4502_v60 = vpack.c.bf16 %v3613_v61, %v3612_v59 }
 0x226   : > { %4518 = vst [vmem:[%s6675_s22 + $0x78] sm:$0xff] %v4502_v60  }
 0x227 PF: > { %s14_s17 = sadd.s32 1, %s4832_s17   ;;  %s6838_s15 = smov %s4828_s16 }
 0x228   : > { %p11_p6 = scmp.ge.s32.totalorder %s14_s17, 4   ;;  %s6839_s16 = smov %s6841_s18 }
 0x22a   :  { %13 = sbr.rel (!%p11_p6) target bundleno = 2 (0x2), region = 74 }

// kernel: basic_block_forward.5
= control target key start
LH: loop header
LB: loop body
LE: loop exit
PB: predicated region body
PF: predicated region fallthrough
CT: control target
= control target key end

     0   :  { %10 = vsyncpa [#allocation3], 0  ;;  %s8414_s0 = inlined_call_operand.vmem [shape: bf16[2,18,18,128], index: 0, kind: input, shape index: {}]   ;;  %s8415_s1 = inlined_call_operand.vmem [shape: bf16[3,384,128], index: 1, kind: input, shape index: {}]   ;;  %s8416_s2 = inlined_call_operand.vmem [shape: f32[1,128], index: 2, kind: input, shape index: {}]   ;;  %s8417_s3 = inlined_call_operand.vmem [shape: f32[1,128], index: 3, kind: input, shape index: {}]   ;;  %s8418_s4 = inlined_call_operand.vmem [shape: bf16[2,256,128], index: 4, kind: input, shape index: {}]   ;;  %s8419_s5 = inlined_call_operand.hbm [shape: f32[2,256,128], index: 5, kind: output, shape index: {}]  }
   0x1   :  { %12 = vsyncpa [#allocation3 + $0x1], 0  ;;  %s6323_s18 = smov 0   ;;  %s6325_s19 = smov 0  }
   0x2   :  { %s6327_s20 = smov 0   ;;  %s6329_s21 = smov 0  }
   0x3   :  { %s6331_s22 = smov 0   ;;  %s6333_s23 = smov 0  }
   0x4 LB: > { %s4672_s24 = sadd.s32 4294967295, %s6288_s23   ;;  %s4673_s25 = sadd.s32 4294967294, %s6288_s23   ;;  %s6288_s23 = sphi %s6333_s23, %s18_s23   ;;  %s6284_s22 = sphi %s6331_s22, %s8430_s22   ;;  %s6280_s21 = sphi %s6329_s21, %s8429_s21   ;;  %s6276_s20 = sphi %s6327_s20, %s8428_s20   ;;  %s6272_s19 = sphi %s6325_s19, %s8427_s19   ;;  %s6268_s18 = sphi %s6323_s18, %s8426_s18  }
   0x5   : > { %s30_s26 = sadd.s32 1, %s6284_s22  ;;  %s156_s27 = sadd.s32 1, %s6276_s20 }
   0x6   : > { %p32_p0 = scmp.ge.s32.totalorder %s30_s26, 2  ;;  %p166_p1 = scmp.ne.s32.totalorder %s6276_s20, %s6272_s19 }
   0x7   : > { %p167_p2 = scmp.eq.s32.totalorder %s4672_s24, 1  ;;  %p172_p3 = scmp.ne.s32.totalorder %s6272_s19, %s6268_s18 }
   0x8   : > { %s8432_s26 = smov (%p32_p0, %s30_s26), 0  ;;  %p173_p5 = scmp.eq.s32.totalorder %s4673_s25, 1 }
   0x9   : > { %p6363_p4 = por %p167_p2, %p166_p1  ;;  %s151_s29 = ssub.s32 %s6284_s22, %s8432_s26 }
   0xa   : > { %p4676_p6 = scmp.ge.s32.totalorder %s6288_s23, 1  ;;  %p154_p7 = scmp.eq.s32.totalorder %s151_s29, 0 }
   0xb   : > { %p6370_p8 = por %p173_p5, %p172_p3  ;;  %p221_p9 = scmp.lt.s32.totalorder %s6288_s23, 3 }
   0xc   : > { %s6376_s6 = scalar_select %p154_p7, %s6276_s20, %s156_s27  }
   0xd   : > { %p222_p10 = pnand %p4676_p6, %p221_p9 }
   0xe   : > { %v6043_v0 = vld [vmem:[%s8415_s1 + $0x100] sm:$0xff] (!%p222_p10)   ;;  %v6046_v3 = vld [vmem:[%s8415_s1 + $0x108] sm:$0xff] (!%p222_p10)   ;;  %v6049_v6 = vld [vmem:[%s8415_s1 + $0x110] sm:$0xff] (!%p222_p10)   ;;  %p258_p11 = scmp.lt.s32.totalorder (!%p222_p10), %s6280_s21, 1  ;;  %vm778_vm0 = vcmask (!%p222_p10), 1042432   ;;  %vm779_vm1 = vcmask (!%p222_p10), 1046532  }
   0xf   : > { %225 = sbr.rel (%p222_p10) target bundleno = 587 (0x24b), region = 40  ;;  %v6384_v1 = vld [vmem:[%s8415_s1 + $0x140] sm:$0xff] (!%p222_p10)   ;;  %5257 = vmatprep.subr.bf16.mxu0 (!%p222_p10), %v6043_v0  ;;  %v6397_v4 = vld [vmem:[%s8415_s1 + $0x148] sm:$0xff] (!%p222_p10)   ;;  %v6409_v7 = vld [vmem:[%s8415_s1 + $0x150] sm:$0xff] (!%p222_p10)   ;;  %vm327_vm2 = vsmask.f32 (!%p222_p10), 3328 }
  0x10   : > { %v6045_v2 = vld [vmem:[%s8415_s1 + $0xc0] sm:$0xff] (!%p222_p10)   ;;  %5809 = vmatprep.subr.bf16.mxu1 (!%p222_p10), %v6384_v1  ;;  %v6048_v5 = vld [vmem:[%s8415_s1 + $0xc8] sm:$0xff] (!%p222_p10)   ;;  %v6051_v8 = vld [vmem:[%s8415_s1 + $0xd0] sm:$0xff] (!%p222_p10)   ;;  %vm328_vm3 = vsmask.f32 (!%p222_p10), 7440  ;;  %s5177_s25 = sshll.u32 (!%p222_p10), %s6280_s21, 12 }
  0x11   : > { %5258 = vmatpush3.bf16.msra.mxu0 (!%p222_p10), %v6045_v2  ;;  %5817 = vmatpush3.bf16.msra.mxu1 (!%p222_p10), %v6384_v1  ;;  %v6052_v9 = vld [vmem:[%s8415_s1 + $0x118] sm:$0xff] (!%p222_p10)   ;;  %v6055_v12 = vld [vmem:[%s8415_s1 + $0x120] sm:$0xff] (!%p222_p10)   ;;  %v6058_v15 = vld [vmem:[%s8415_s1 + $0x128] sm:$0xff] (!%p222_p10)   ;;  %s6290_s11 = smov (!%p222_p10), [#allocation2]  }
  0x12   : > { %5259 = vmatprep.subr.bf16.mxu0 (!%p222_p10), %v6046_v3  ;;  %5810 = vmatprep.subr.bf16.mxu1 (!%p222_p10), %v6397_v4  ;;  %v6423_v10 = vld [vmem:[%s8415_s1 + $0x158] sm:$0xff] (!%p222_p10)   ;;  %v6436_v13 = vld [vmem:[%s8415_s1 + $0x160] sm:$0xff] (!%p222_p10)   ;;  %v6452_v16 = vld [vmem:[%s8415_s1 + $0x168] sm:$0xff] (!%p222_p10)  }
  0x13   : > { %v6054_v11 = vld [vmem:[%s8415_s1 + $0xd8] sm:$0xff] (!%p222_p10)   ;;  %v6057_v14 = vld [vmem:[%s8415_s1 + $0xe0] sm:$0xff] (!%p222_p10)   ;;  %v6060_v17 = vld [vmem:[%s8415_s1 + $0xe8] sm:$0xff] (!%p222_p10)  }
  0x14   : > { %v6061_v18 = vld [vmem:[%s8415_s1 + $0x130] sm:$0xff] (!%p222_p10)   ;;  %v6064_v21 = vld [vmem:[%s8415_s1 + $0x138] sm:$0xff] (!%p222_p10)   ;;  %vm6512_vm4 = vmor (!%p222_p10), %vm778_vm0, %vm779_vm1 }
  0x15   : > { %5260 = vmatpush3.bf16.msra.mxu0 (!%p222_p10), %v6048_v5  ;;  %5818 = vmatpush3.bf16.msra.mxu1 (!%p222_p10), %v6397_v4  ;;  %v6466_v19 = vld [vmem:[%s8415_s1 + $0x170] sm:$0xff] (!%p222_p10)   ;;  %v6482_v22 = vld [vmem:[%s8415_s1 + $0x178] sm:$0xff] (!%p222_p10)   ;;  %v6068_v49 = vld [vmem:[%s8415_s1 + $0x40] sm:$0xff] (!%p222_p10)  }
  0x16   : > { %5261 = vmatprep.subr.bf16.mxu0 %v6049_v6  ;;  %5811 = vmatprep.subr.bf16.mxu1 %v6409_v7  ;;  %s6439_s27 = scalar_select %p258_p11, %s6280_s21, 1  ;;  %v6063_v20 = vld [vmem:[%s8415_s1 + $0xf0] sm:$0xff]   ;;  %v6066_v28 = vld [vmem:[%s8415_s1 + $0xf8] sm:$0xff]   ;;  %vm6529_vm5 = vmor %vm327_vm2, %vm328_vm3 }
  0x17   : > { %v6069_v63 = vld [vmem:[%s8415_s1] sm:$0xff]  }
  0x18   : > { %s5985_s12 = smul.u32 216, %s6439_s27 }
  0x19   : > { %5262 = vmatpush3.bf16.msra.mxu0 %v6051_v8  ;;  %5819 = vmatpush3.bf16.msra.mxu1 %v6409_v7 }
  0x1a   : > { %5263 = vmatprep.subr.bf16.mxu0 %v6052_v9  ;;  %5812 = vmatprep.subr.bf16.mxu1 %v6423_v10  ;;  %s6471_s7 = scalar_lea.vmem %s8414_s0, %s5985_s12  ;;  %v6070_v9 = vld [vmem:[%s8415_s1 + $0x48] sm:$0xff]   ;;  %s255_s12 = sand.u32 1, %s6272_s19  }
  0x1b   : > { %v6486_v23 = vld [vmem:[%s6471_s7 + $0xc] sm:$0xf]  ;;  %v6490_v24 = vld [vmem:[%s6471_s7 + $0x10] sm:$0xf]  ;;  %v6493_v25 = vld [vmem:[%s6471_s7 + $0x14] sm:$0x1] }
  0x1c   : > { %v1202_v26 = vshrl.u32 %v6486_v23, 16  ;;  %v1205_v27 = vshll.u32 %v6486_v23, 16  ;;  %v1211_v29 = vshll.u32 %v6490_v24, 16  ;;  %v1215_v30 = vshrl.u32 %v6490_v24, 16  ;;  %v6505_v33 = vld [vmem:[%s6471_s7 + $0x70] sm:$0xf] }
  0x1d   : > { %5264 = vmatpush3.bf16.msra.mxu0 %v6054_v11  ;;  %5820 = vmatpush3.bf16.msra.mxu1 %v6423_v10  ;;  %v1221_v31 = vshll.u32 %v6493_v25, 16  ;;  %v1654_v32 = vrot.slane %v6493_v25, 5  ;;  %v4785_v36 = vld [vmem:[%s6471_s7 + $0x74] sm:$0x1]  ;;  %v4801_v37 = vld [vmem:[%s6471_s7 + $0x6c] sm:$0xe]  ;;  %v4825_v61 = vcombine.low %v6486_v23, %v6490_v24 }
  0x1e   : > { %5265 = vmatprep.subr.bf16.mxu0 %v6055_v12  ;;  %5813 = vmatprep.subr.bf16.mxu1 %v6436_v13  ;;  %v1204_v34 = vrot.slane %v1202_v26, 4  ;;  %v1207_v35 = vrot.slane %v1205_v27, 5  ;;  %v1213_v38 = vrot.slane %v1211_v29, 5  ;;  %v1217_v39 = vrot.slane %v1215_v30, 4  ;;  %v6517_v43 = vld [vmem:[%s6471_s7 + $0x7c] sm:$0xf] }
  0x1f   : > { %v1223_v40 = vrot.slane %v1221_v31, 5  ;;  %v1413_v42 = vshll.u32 %v4785_v36, 16  ;;  %v4817_v45 = vrot.slane %v4801_v37, 9  ;;  %v1707_v46 = vrot.slane %v6505_v33, 5  ;;  %v6522_v48 = vld [vmem:[%s6471_s7 + $0x80] sm:$0x1] }
  0x20   : > { %v1208_v44 = vor.u32 %v1207_v35, %v1204_v34  ;;  %v1710_v47 = vrot.slane %v4785_v36, 5  ;;  %v1218_v51 = vor.u32 %v1217_v39, %v1213_v38  ;;  %v4802_v53 = vld [vmem:[%s6471_s7 + $0x78] sm:$0xe]  ;;  %v1714_v54 = vrot.slane %v6517_v43, 5  ;;  %v6578_v27 = vld [vmem:[%s6471_s7 + $0x88] sm:$0xf] }
  0x21   : > { %5266 = vmatpush3.bf16.msra.mxu0 %v6057_v14  ;;  %5821 = vmatpush3.bf16.msra.mxu1 %v6436_v13  ;;  %v6533_v52 = vrot.slane %v1413_v42, 5  ;;  %v1717_v55 = vrot.slane %v6522_v48, 5  ;;  %v1708_v57 = vsel %vm6512_vm4, %v4817_v45, %v1707_v46  ;;  %v1709_v58 = vrot.slane %v1707_v46, 4  ;;  %v6583_v30 = vld [vmem:[%s6471_s7 + $0x8c] sm:$0x1]  ;;  %s4677_s17 = sshll.u32 %s255_s12, 8 }
  0x22   : > { %5267 = vmatprep.subr.bf16.mxu0 %v6058_v15  ;;  %5814 = vmatprep.subr.bf16.mxu1 %v6452_v16  ;;  %v1209_v56 = vrot.slane %v1208_v44, 4  ;;  %v4818_v59 = vrot.slane %v4802_v53, 9  ;;  %v1219_v60 = vrot.slane %v1218_v51, 4  ;;  %v1716_v62 = vrot.slane %v1714_v54, 4  ;;  %v6562_v15 = vld [vmem:[%s6471_s7 + $0x18] sm:$0xf] }
  0x23   : > { %v1711_v2 = vsel %vm6512_vm4, %v1709_v58, %v1710_v47  ;;  %v1403_v11 = vshll.u32 %v6505_v33, 16  ;;  %v1229_v23 = vshll.u32 %v6562_v15, 16  ;;  %v4803_v31 = vld [vmem:[%s6471_s7 + $0x84] sm:$0xe]  ;;  %v1721_v42 = vrot.slane %v6578_v27, 5  ;;  %s8208_s24 = scalar_lea.vmem [#allocation2], %s4677_s17 }
  0x24   : > { %v1214_v0 = vsel %vm6529_vm5, %v1209_v56, %v1213_v38  ;;  %v1715_v3 = vsel %vm6512_vm4, %v4818_v59, %v1714_v54  ;;  %v1224_v5 = vsel %vm6529_vm5, %v1219_v60, %v1223_v40  ;;  %v4865_v6 = vcombine.low %v1708_v57, %v1711_v2  ;;  %v4768_v38 = vld [vmem:[%s6471_s7 + $0x94] sm:$0xf]  ;;  %v4788_v45 = vld [vmem:[%s6471_s7 + $0x98] sm:$0x1]  ;;  %s4571_s29 = sshll.u32 %s8208_s24, 4  ;;  %s8368_s10 = scalar_lea.sflag [#allocation3], %s255_s12  ;;  %s8362_s29 = int_to_ptr.vmem [resolvable:$true] %s4571_s29 }
  0x25   : > { %5268 = vmatpush3.bf16.msra.mxu0 %v6060_v17  ;;  %5822 = vmatpush3.bf16.msra.mxu1 %v6452_v16  ;;  %v1718_v8 = vsel %vm6512_vm4, %v1716_v62, %v1717_v55  ;;  %v4841_v12 = vcombine.low %v1214_v0, %v1224_v5  ;;  %v6565_v17 = vld [vmem:[%s6471_s7 + $0x1c] sm:$0xf]  ;;  %v1231_v35 = vrot.slane %v1229_v23, 5  ;;  %v4819_v40 = vrot.slane %v4803_v31, 9  ;;  %v6073_v56 = vld [vmem:[%s8415_s1 + $0x50] sm:$0xff]   ;;  %s6210_s21 = scalar_lea.vmem %s8362_s29, 4096 }
  0x26   : > { %5269 = vmatprep.subr.bf16.mxu0 %v6061_v18  ;;  %5815 = vmatprep.subr.bf16.mxu1 %v6466_v19  ;;  %v4866_v14 = vcombine.low %v1715_v3, %v1718_v8  ;;  %v6568_v18 = vld [vmem:[%s6471_s7 + $0x20] sm:$0x1]  ;;  %v1235_v24 = vshll.u32 %v6565_v17, 16  ;;  %v1239_v26 = vshrl.u32 %v6565_v17, 16  ;;  %v1724_v44 = vrot.slane %v6583_v30, 5  ;;  %v6074_v57 = vld [vmem:[%s8415_s1 + $0x10] sm:$0xff]   ;;  %p6211_p12 = scmp.ne.s32.totalorder %s8362_s29, %s6210_s21 }
  0x27   : > { %5697 = vmatprep.mubr.bf16.mxu1 %v4865_v6  ;;  %2194 = vmatprep.mubr.bf16.mxu0 %v4841_v12  ;;  %v1661_v29 = vrot.slane %v6568_v18, 5  ;;  %v1728_v51 = vrot.slane %v4768_v38, 5  ;;  %v1731_v53 = vrot.slane %v4788_v45, 5  ;;  %v1722_v54 = vsel %vm6512_vm4, %v4819_v40, %v1721_v42  ;;  %v6076_v8 = vld [vmem:[%s8415_s1 + $0x18] sm:$0xff]   ;;  %v6622_v12 = vld [vmem:[%s6471_s7 + $0x24] sm:$0xf] }
  0x28   : > { %v1237_v36 = vrot.slane %v1235_v24, 5  ;;  %v1241_v37 = vrot.slane %v1239_v26, 4  ;;  %v1723_v55 = vrot.slane %v1721_v42, 4  ;;  %v4770_v24 = vld [vmem:[%s6471_s7 + $0xa0] sm:$0xf]  ;;  %p6212_p13 = pnand %p6211_p12, %p6363_p4 }
  0x29   : > { %5270 = vmatpush3.bf16.msra.mxu0 %v6063_v20  ;;  %5823 = vmatpush3.bf16.msra.mxu1 %v6466_v19  ;;  %v6071_v20 = vld [vmem:[%s8415_s1 + $0x8] sm:$0xff]   ;;  %v1730_v60 = vrot.slane %v1728_v51, 4  ;;  %v4805_v31 = vld [vmem:[%s6471_s7 + $0x9c] sm:$0xe] }
  0x2a   : > { %5271 = vmatprep.subr.bf16.mxu0 %v6064_v21  ;;  %5816 = vmatprep.subr.bf16.mxu1 %v6482_v22  ;;  %v1226_v21 = vshrl.u32 %v6562_v15, 16  ;;  %v1242_v47 = vor.u32 %v1241_v37, %v1237_v36  ;;  %v1725_v62 = vsel %vm6512_vm4, %v1723_v55, %v1724_v44  ;;  %v4821_v42 = vrot.slane %v4805_v31, 9  ;;  %p6213_p0 = pneg %p6212_p13 }
  0x2b   : > { %v4867_v5 = vcombine.low %v1722_v54, %v1725_v62  ;;  %v1732_v6 = vsel %vm6512_vm4, %v1730_v60, %v1731_v53 }
  0x2c   : > { %v1228_v34 = vrot.slane %v1226_v21, 4  ;;  %v1243_v59 = vrot.slane %v1242_v47, 4 }
  0x2d   : > { %5272 = vmatpush3.bf16.msra.mxu0 %v6066_v28  ;;  %5824 = vmatpush3.bf16.msra.mxu1 %v6482_v22  ;;  %v1245_v28 = vshll.u32 %v6568_v18, 16  ;;  %v6121_v18 = vld [vmem:[%s8415_s1 + $0x1c8] sm:$0xff]  }
  0x2e   : > { %5665 = vmatprep.subr.bf16.mxu0 %v6384_v1  ;;  %5393 = vmatprep.subr.bf16.mxu1 %v6068_v49  ;;  %v1232_v46 = vor.u32 %v1231_v35, %v1228_v34  ;;  %v4804_v49 = vld [vmem:[%s6471_s7 + $0x90] sm:$0xe]  ;;  %v1735_v34 = vrot.slane %v4770_v24, 5 }
  0x2f   : > { %v1247_v39 = vrot.slane %v1245_v28, 5  ;;  %v4789_v28 = vld [vmem:[%s6471_s7 + $0xa4] sm:$0x1] }
  0x30   : > { %5698 = vmatmul.mubr.bf16.vlgmr.msra.gmra.mrb[0].mxu1 %v4866_v14  ;;  %2195 = vmatmul.mubr.bf16.vlgmr.msra.gmra.mrb[0].mxu0 %v4825_v61  ;;  %v1233_v58 = vrot.slane %v1232_v46, 4  ;;  %v6075_v61 = vld [vmem:[%s8415_s1 + $0x58] sm:$0xff]   ;;  %v6625_v14 = vld [vmem:[%s6471_s7 + $0x28] sm:$0xf]  ;;  %v1737_v44 = vrot.slane %v1735_v34, 4  ;;  %v1738_v45 = vrot.slane %v4789_v28, 5  ;;  %v1736_v55 = vsel %vm6512_vm4, %v4821_v42, %v1735_v34 }
  0x31   : > { %5394 = vmatpush3.bf16.msra.mxu1 %v6069_v63  ;;  %5666 = vmatpush3.bf16.msra.mxu0 %v6384_v1  ;;  %v4820_v1 = vrot.slane %v4804_v49, 9  ;;  %v4826_v63 = vcombine.low %v6562_v15, %v6565_v17  ;;  %v1248_v3 = vsel %vm6529_vm5, %v1243_v59, %v1247_v39  ;;  %v4779_v15 = vld [vmem:[%s6471_s7 + $0x2c] sm:$0x1]  ;;  %v1250_v17 = vshrl.u32 %v6622_v12, 16  ;;  %v4790_v46 = vld [vmem:[%s6471_s7 + $0xb0] sm:$0x1] }
  0x32   : > { %5395 = vmatprep.subr.bf16.mxu1 %v6070_v9  ;;  %5667 = vmatprep.subr.bf16.mxu0 %v6397_v4  ;;  %v1238_v2 = vsel %vm6529_vm5, %v1233_v58, %v1237_v36  ;;  %v1259_v21 = vshll.u32 %v6625_v14, 16  ;;  %v1263_v23 = vshrl.u32 %v6625_v14, 16  ;;  %v1269_v26 = vshll.u32 %v4779_v15, 16  ;;  %v4772_v39 = vld [vmem:[%s6471_s7 + $0xac] sm:$0xf] }
  0x33   : > { %v1729_v0 = vsel %vm6512_vm4, %v4820_v1, %v1728_v51  ;;  %v4842_v9 = vcombine.low %v1238_v2, %v1248_v3  ;;  %5701 = vmatprep.mubr.bf16.mxu1 %v4867_v5  ;;  %v1252_v35 = vrot.slane %v1250_v17, 4  ;;  %v4806_v51 = vld [vmem:[%s6471_s7 + $0xa8] sm:$0xe]  ;;  %v1742_v53 = vrot.slane %v4772_v39, 5  ;;  %v4807_v28 = vld [vmem:[%s6471_s7 + $0xb4] sm:$0xe] }
  0x34   : > { %v1261_v37 = vrot.slane %v1259_v21, 5  ;;  %v1265_v38 = vrot.slane %v1263_v23, 4  ;;  %v1271_v40 = vrot.slane %v1269_v26, 5  ;;  %v1745_v54 = vrot.slane %v4790_v46, 5  ;;  %v4774_v23 = vld [vmem:[%s6471_s7 + $0xb8] sm:$0xf] }
  0x35   : > { %5396 = vmatpush3.bf16.msra.mxu1 %v6071_v20  ;;  %5668 = vmatpush3.bf16.msra.mxu0 %v6397_v4  ;;  %v4868_v4 = vcombine.low %v1729_v0, %v1732_v6  ;;  %v1253_v20 = vshll.u32 %v6622_v12, 16  ;;  %v1739_v1 = vsel %vm6512_vm4, %v1737_v44, %v1738_v45  ;;  %v1744_v60 = vrot.slane %v1742_v53, 4  ;;  %v6080_v0 = vld [vmem:[%s8415_s1 + $0x68] sm:$0xff]   ;;  %v4791_v26 = vld [vmem:[%s6471_s7 + $0xbc] sm:$0x1] }
  0x36   : > { %5397 = vmatprep.subr.bf16.mxu1 %v6073_v56  ;;  %5669 = vmatprep.subr.bf16.mxu0 %v6409_v7  ;;  %v1266_v49 = vor.u32 %v1265_v38, %v1261_v37  ;;  %v4822_v56 = vrot.slane %v4806_v51, 9  ;;  %v4869_v59 = vcombine.low %v1736_v55, %v1739_v1  ;;  %v4827_v62 = vcombine.low %v6622_v12, %v6625_v14  ;;  %v6676_v12 = vld [vmem:[%s6471_s7 + $0x34] sm:$0xf]  ;;  %v4780_v14 = vld [vmem:[%s6471_s7 + $0x38] sm:$0x1] }
  0x37   : > { %2202 = vmatprep.mubr.bf16.mxu0 %v4842_v9  ;;  %v1255_v36 = vrot.slane %v1253_v20, 5  ;;  %v6660_v2 = vrot.slane %v1403_v11, 5  ;;  %v1746_v6 = vsel %vm6512_vm4, %v1744_v60, %v1745_v54  ;;  %v1283_v20 = vshll.u32 %v6676_v12, 16  ;;  %v4776_v38 = vld [vmem:[%s6471_s7 + $0xc4] sm:$0xf] }
  0x38   : > { %5702 = vmatmul.mubr.bf16.gmra.mrb[4].mxu1 %v4868_v4  ;;  %2203 = vmatmul.mubr.bf16.gmra.mrb[4].mxu0 %v4826_v63  ;;  %v1267_v58 = vrot.slane %v1266_v49, 4  ;;  %v1743_v63 = vsel %vm6512_vm4, %v4822_v56, %v1742_v53  ;;  %v6673_v4 = vld [vmem:[%s6471_s7 + $0x30] sm:$0xf]  ;;  %v1287_v21 = vshrl.u32 %v6676_v12, 16  ;;  %v1293_v24 = vshll.u32 %v4780_v14, 16 }
  0x39   : > { %5398 = vmatpush3.bf16.msra.mxu1 %v6074_v57  ;;  %5670 = vmatpush3.bf16.msra.mxu0 %v6409_v7  ;;  %v1256_v47 = vor.u32 %v1255_v36, %v1252_v35  ;;  %v6078_v57 = vld [vmem:[%s8415_s1 + $0x60] sm:$0xff]   ;;  %v4870_v9 = vcombine.low %v1743_v63, %v1746_v6  ;;  %v1274_v15 = vshrl.u32 %v6673_v4, 16  ;;  %v1277_v17 = vshll.u32 %v6673_v4, 16  ;;  %v4792_v45 = vld [vmem:[%s6471_s7 + $0xc8] sm:$0x1]  ;;  %v6083_v56 = vld [vmem:[%s8415_s1 + $0x70] sm:$0xff]  }
  0x3a   : > { %5399 = vmatprep.subr.bf16.mxu1 %v6075_v61  ;;  %5671 = vmatprep.subr.bf16.mxu0 %v6423_v10  ;;  %v6079_v61 = vld [vmem:[%s8415_s1 + $0x20] sm:$0xff]   ;;  %v1272_v5 = vsel %vm6529_vm5, %v1267_v58, %v1271_v40  ;;  %v1749_v31 = vrot.slane %v4774_v23, 5  ;;  %v1285_v36 = vrot.slane %v1283_v20, 5  ;;  %v1295_v39 = vrot.slane %v1293_v24, 5  ;;  %v6086_v6 = vld [vmem:[%s8415_s1 + $0x38] sm:$0xff]  }
  0x3b   : > { %v1257_v7 = vrot.slane %v1256_v47, 4  ;;  %5705 = vmatprep.mubr.bf16.mxu1 %v4869_v59  ;;  %v1276_v34 = vrot.slane %v1274_v15, 4  ;;  %v1279_v35 = vrot.slane %v1277_v17, 5  ;;  %v4823_v40 = vrot.slane %v4807_v28, 9  ;;  %v4808_v49 = vld [vmem:[%s6471_s7 + $0xc0] sm:$0xe] }
  0x3c   : > { %v1751_v42 = vrot.slane %v1749_v31, 4  ;;  %v1752_v44 = vrot.slane %v4791_v26, 5  ;;  %v1756_v51 = vrot.slane %v4776_v38, 5  ;;  %v1759_v53 = vrot.slane %v4792_v45, 5  ;;  %v6084_v59 = vld [vmem:[%s8415_s1 + $0x30] sm:$0xff]  }
  0x3d   : > { %5400 = vmatpush3.bf16.msra.mxu1 %v6076_v8  ;;  %5672 = vmatpush3.bf16.msra.mxu0 %v6423_v10  ;;  %v1262_v3 = vsel %vm6529_vm5, %v1257_v7, %v1261_v37  ;;  %v6081_v10 = vld [vmem:[%s8415_s1 + $0x28] sm:$0xff]   ;;  %v1407_v8 = vshrl.u32 %v6505_v33, 16  ;;  %v1289_v37 = vrot.slane %v1287_v21, 4  ;;  %v1280_v46 = vor.u32 %v1279_v35, %v1276_v34  ;;  %v6735_v20 = vld [vmem:[%s6471_s7] sm:$0xf] }
  0x3e   : > { %5401 = vmatprep.subr.bf16.mxu1 %v6078_v57  ;;  %v4843_v11 = vcombine.low %v1262_v3, %v1272_v5  ;;  %5673 = vmatprep.subr.bf16.mxu0 %v6436_v13  ;;  %v1750_v54 = vsel %vm6512_vm4, %v4823_v40, %v1749_v31  ;;  %v1753_v55 = vsel %vm6512_vm4, %v1751_v42, %v1752_v44  ;;  %v4824_v1 = vrot.slane %v4808_v49, 9  ;;  %v6738_v23 = vld [vmem:[%s6471_s7 + $0x4] sm:$0xf]  ;;  %v311_v24 = vld [vmem:[%s6471_s7 + $0x8] sm:$0x1] }
  0x3f   : > { %v1290_v47 = vor.u32 %v1289_v37, %v1285_v36  ;;  %v1281_v57 = vrot.slane %v1280_v46, 4  ;;  %v4871_v7 = vcombine.low %v1750_v54, %v1753_v55  ;;  %v1758_v58 = vrot.slane %v1756_v51, 4  ;;  %v6754_v49 = vld [vmem:[%s6471_s7 + $0x48] sm:$0xf]  ;;  %v6762_v55 = vld [vmem:[%s6471_s7 + $0x4c] sm:$0xf] }
  0x40   : > { %2210 = vmatprep.mubr.bf16.mxu0 %v4843_v11  ;;  %5706 = vmatmul.mubr.bf16.gmra.mrb[8].mxu1 %v4870_v9  ;;  %v4828_v60 = vcombine.low %v6673_v4, %v6676_v12  ;;  %v6709_v63 = vrot.slane %v1407_v8, 4  ;;  %v6723_v11 = vld [vmem:[%s6471_s7 + $0x3c] sm:$0xf]  ;;  %v6726_v9 = vld [vmem:[%s6471_s7 + $0x40] sm:$0xf]  ;;  %v331_v26 = vshrl.u32 %v6735_v20, 16  ;;  %v4697_v54 = vcombine.low %v6735_v20, %v6738_v23 }
  0x41   : > { %5402 = vmatpush3.bf16.msra.mxu1 %v6079_v61  ;;  %2211 = vmatmul.mubr.bf16.gmra.mrb[8].mxu0 %v4827_v62  ;;  %v1757_v61 = vsel %vm6512_vm4, %v4824_v1, %v1756_v51  ;;  %v6085_v62 = vld [vmem:[%s8415_s1 + $0x78] sm:$0xff]   ;;  %v1760_v5 = vsel %vm6512_vm4, %v1758_v58, %v1759_v53  ;;  %v4781_v4 = vld [vmem:[%s6471_s7 + $0x44] sm:$0x1]  ;;  %v1298_v12 = vshrl.u32 %v6723_v11, 16  ;;  %v1301_v14 = vshll.u32 %v6723_v11, 16 }
  0x42   : > { %5403 = vmatprep.subr.bf16.mxu1 %v6080_v0  ;;  %5674 = vmatpush3.bf16.msra.mxu0 %v6436_v13  ;;  %v1291_v13 = vrot.slane %v1290_v47, 4  ;;  %v1286_v0 = vsel %vm6529_vm5, %v1281_v57, %v1285_v36  ;;  %v4872_v8 = vcombine.low %v1757_v61, %v1760_v5  ;;  %v1307_v15 = vshll.u32 %v6726_v9, 16  ;;  %v6751_v47 = vld [vmem:[%s8415_s1 + $0x80] sm:$0xff]   ;;  %v4782_v58 = vld [vmem:[%s6471_s7 + $0x50] sm:$0x1] }
  0x43   : > { %5675 = vmatprep.subr.bf16.mxu0 %v6452_v16  ;;  %5709 = vmatprep.mubr.bf16.mxu1 %v4871_v7  ;;  %v1311_v17 = vshrl.u32 %v6726_v9, 16  ;;  %v1317_v21 = vshll.u32 %v4781_v4, 16  ;;  %v1410_v28 = vor.u32 %v6709_v63, %v6660_v2  ;;  %v1300_v31 = vrot.slane %v1298_v12, 4  ;;  %v6779_v4 = vld [vmem:[%s6471_s7 + $0x10] sm:$0xf] }
  0x44   : > { %v1296_v3 = vsel %vm6529_vm5, %v1291_v13, %v1295_v39  ;;  %v1303_v34 = vrot.slane %v1301_v14, 5  ;;  %v1309_v35 = vrot.slane %v1307_v15, 5  ;;  %v333_v38 = vrot.slane %v331_v26, 4 }
  0x45   : > { %5404 = vmatpush3.bf16.msra.mxu1 %v6081_v10  ;;  %v1427_v10 = vshll.u32 %v6517_v43, 16  ;;  %v1313_v36 = vrot.slane %v1311_v17, 4  ;;  %v1319_v37 = vrot.slane %v1317_v21, 5  ;;  %v334_v39 = vshll.u32 %v6735_v20, 16  ;;  %v6784_v21 = vld [vmem:[%s6471_s7 + $0x14] sm:$0x1] }
  0x46   : > { %5405 = vmatprep.subr.bf16.mxu1 %v6083_v56  ;;  %5676 = vmatpush3.bf16.msra.mxu0 %v6452_v16  ;;  %v4844_v16 = vcombine.low %v1286_v0, %v1296_v3  ;;  %v340_v40 = vshll.u32 %v6738_v23, 16  ;;  %v1304_v42 = vor.u32 %v1303_v34, %v1300_v31  ;;  %v344_v45 = vshrl.u32 %v6738_v23, 16 }
  0x47   : > { %5677 = vmatprep.subr.bf16.mxu0 %v6466_v19  ;;  %v1314_v44 = vor.u32 %v1313_v36, %v1309_v35  ;;  %v350_v46 = vshll.u32 %v311_v24, 16  ;;  %v336_v51 = vrot.slane %v334_v39, 5  ;;  %v1331_v61 = vshll.u32 %v6762_v55, 16 }
  0x48   : > { %2218 = vmatprep.mubr.bf16.mxu0 %v4844_v16  ;;  %5710 = vmatmul.mubr.bf16.gmra.mrb[12].mxu1 %v4872_v8  ;;  %v342_v53 = vrot.slane %v340_v40, 5  ;;  %v1305_v1 = vrot.slane %v1304_v42, 4  ;;  %v346_v57 = vrot.slane %v344_v45, 4  ;;  %v1335_v5 = vshrl.u32 %v6762_v55, 16  ;;  %v6094_v40 = vld [vmem:[%s8415_s1 + $0x88] sm:$0xff]  }
  0x49   : > { %5406 = vmatpush3.bf16.msra.mxu1 %v6084_v59  ;;  %2219 = vmatmul.mubr.bf16.gmra.mrb[12].mxu0 %v4828_v60  ;;  %v1315_v56 = vrot.slane %v1314_v44, 4  ;;  %v352_v13 = vrot.slane %v350_v46, 5  ;;  %v337_v7 = vor.u32 %v336_v51, %v333_v38  ;;  %v1322_v59 = vshrl.u32 %v6754_v49, 16  ;;  %v6797_v51 = vld [vmem:[%s6471_s7 + $0x54] sm:$0xf] }
  0x4a   : > { %5407 = vmatprep.subr.bf16.mxu1 %v6085_v62  ;;  %5678 = vmatpush3.bf16.msra.mxu0 %v6466_v19  ;;  %v4829_v19 = vcombine.low %v6723_v11, %v6726_v9  ;;  %v1325_v60 = vshll.u32 %v6754_v49, 16  ;;  %v1310_v62 = vsel %vm6529_vm5, %v1305_v1, %v1309_v35  ;;  %v347_v3 = vor.u32 %v346_v57, %v342_v53  ;;  %v6805_v57 = vld [vmem:[%s6471_s7 + $0x58] sm:$0xf] }
  0x4b   : > { %5679 = vmatprep.subr.bf16.mxu0 %v6482_v22  ;;  %v1320_v0 = vsel %vm6529_vm5, %v1315_v56, %v1319_v37  ;;  %v338_v8 = vrot.slane %v337_v7, 4  ;;  %v1324_v11 = vrot.slane %v1322_v59, 4  ;;  %v1337_v14 = vrot.slane %v1335_v5, 4  ;;  %v6118_v7 = vld [vmem:[%s8415_s1 + $0x1c0] sm:$0xff]  }
  0x4c   : > { %v4845_v16 = vcombine.low %v1310_v62, %v1320_v0  ;;  %v1327_v9 = vrot.slane %v1325_v60, 5  ;;  %v348_v12 = vrot.slane %v347_v3, 4  ;;  %v1341_v15 = vshll.u32 %v4782_v58, 16  ;;  %v6816_v62 = vld [vmem:[%s6471_s7 + $0x18] sm:$0xf] }
  0x4d   : > { %5408 = vmatpush3.bf16.msra.mxu1 %v6086_v6  ;;  %v6776_v6 = vld [vmem:[%s6471_s7 + $0xc] sm:$0xf]  ;;  %v343_v17 = vsel %vm6529_vm5, %v338_v8, %v342_v53  ;;  %v364_v35 = vshll.u32 %v6779_v4, 16  ;;  %v368_v45 = vshrl.u32 %v6779_v4, 16  ;;  %v374_v46 = vshll.u32 %v6784_v21, 16 }
  0x4e   : > { %5713 = vmatprep.subr.bf16.mxu1 %v6751_v47  ;;  %5680 = vmatpush3.bf16.msra.mxu0 %v6482_v22  ;;  %v1333_v22 = vrot.slane %v1331_v61, 5  ;;  %v1328_v20 = vor.u32 %v1327_v9, %v1324_v11  ;;  %v355_v23 = vshrl.u32 %v6776_v6, 16  ;;  %v358_v24 = vshll.u32 %v6776_v6, 16  ;;  %v6824_v11 = vld [vmem:[%s6471_s7 + $0x1c] sm:$0xf] }
  0x4f   : > { %2226 = vmatprep.mubr.bf16.mxu0 %v4845_v16  ;;  %v353_v26 = vsel %vm6529_vm5, %v348_v12, %v352_v13  ;;  %v1343_v34 = vrot.slane %v1341_v15, 5  ;;  %v366_v44 = vrot.slane %v364_v35, 5  ;;  %v793_v1 = vrot.slane %v6784_v21, 5  ;;  %v4783_v13 = vld [vmem:[%s6471_s7 + $0x5c] sm:$0x1]  ;;  %5529 = vmatprep.subr.bf16.mxu0 %v6118_v7 }
  0x50   : > { %v1338_v31 = vor.u32 %v1337_v14, %v1333_v22  ;;  %v4713_v36 = vcombine.low %v343_v17, %v353_v26  ;;  %v1329_v37 = vrot.slane %v1328_v20, 4  ;;  %v357_v38 = vrot.slane %v355_v23, 4  ;;  %v313_v12 = vld [vmem:[%s6471_s7 + $0x20] sm:$0x1]  ;;  %v6104_v35 = vld [vmem:[%s8415_s1 + $0x98] sm:$0xff]  }
  0x51   : > { %2227 = vmatmul.mubr.bf16.gmra.mrb[16].mxu0 %v4829_v19  ;;  %v360_v39 = vrot.slane %v358_v24, 5  ;;  %v4830_v56 = vcombine.low %v6754_v49, %v6762_v55  ;;  %v370_v59 = vrot.slane %v368_v45, 4  ;;  %v376_v60 = vrot.slane %v374_v46, 5 }
  0x52   : > { %v1339_v42 = vrot.slane %v1338_v31, 4  ;;  %2660 = vmatprep.mubr.bf16.mxu1 %v4713_v36  ;;  %v1334_v53 = vsel %vm6529_vm5, %v1329_v37, %v1333_v22  ;;  %v4698_v61 = vcombine.low %v6776_v6, %v6779_v4  ;;  %v1346_v0 = vshrl.u32 %v6797_v51, 16 }
  0x53   : > { %v361_v19 = vor.u32 %v360_v39, %v357_v38  ;;  %2661 = vmatmul.mubr.bf16.vlgmr.msra.gmra.mrb[16].mxu1 %v4697_v54  ;;  %v1349_v54 = vshll.u32 %v6797_v51, 16  ;;  %v371_v3 = vor.u32 %v370_v59, %v366_v44  ;;  %v1355_v5 = vshll.u32 %v6805_v57, 16 }
  0x54   : > { %v1344_v58 = vsel %vm6529_vm5, %v1339_v42, %v1343_v34  ;;  %5714 = vmatpush3.bf16.msra.mxu1 %v6751_v47  ;;  %v1359_v16 = vshrl.u32 %v6805_v57, 16  ;;  %v1365_v8 = vshll.u32 %v4783_v13, 16  ;;  %v6099_v47 = vld [vmem:[%s8415_s1 + $0x90] sm:$0xff]   ;;  %v1348_v9 = vrot.slane %v1346_v0, 4  ;;  %v6836_v34 = vld [vmem:[%s6471_s7 + $0x60] sm:$0xf] }
  0x55   : > { %v4846_v49 = vcombine.low %v1334_v53, %v1344_v58  ;;  %v362_v55 = vrot.slane %v361_v19, 4  ;;  %5715 = vmatprep.subr.bf16.mxu1 %v6094_v40  ;;  %v1351_v4 = vrot.slane %v1349_v54, 5  ;;  %v379_v22 = vshrl.u32 %v6816_v62, 16  ;;  %v6860_v54 = vld [vmem:[%s6471_s7 + $0x24] sm:$0xf] }
  0x56   : > { %v372_v14 = vrot.slane %v371_v3, 4  ;;  %v1357_v15 = vrot.slane %v1355_v5, 5  ;;  %v1361_v17 = vrot.slane %v1359_v16, 4  ;;  %v1367_v20 = vrot.slane %v1365_v8, 5  ;;  %v6867_v8 = vld [vmem:[%s6471_s7 + $0x28] sm:$0xf] }
  0x57   : > { %2234 = vmatprep.mubr.bf16.mxu0 %v4846_v49  ;;  %v367_v6 = vsel %vm6529_vm5, %v362_v55, %v366_v44  ;;  %v1352_v23 = vor.u32 %v1351_v4, %v1348_v9  ;;  %v381_v24 = vrot.slane %v379_v22, 4  ;;  %v382_v26 = vshll.u32 %v6816_v62, 16  ;;  %v314_v4 = vld [vmem:[%s6471_s7 + $0x2c] sm:$0x1] }
  0x58   : > { %v388_v31 = vshll.u32 %v6824_v11, 16  ;;  %5716 = vmatpush3.bf16.msra.mxu1 %v6094_v40  ;;  %v377_v36 = vsel %vm6529_vm5, %v372_v14, %v376_v60  ;;  %v1362_v37 = vor.u32 %v1361_v17, %v1357_v15  ;;  %v392_v38 = vshrl.u32 %v6824_v11, 16  ;;  %v6845_v40 = vld [vmem:[%s6471_s7 + $0x64] sm:$0xf]  ;;  %v4784_v60 = vld [vmem:[%s6471_s7 + $0x68] sm:$0x1] }
  0x59   : > { %2235 = vmatmul.mubr.bf16.gmra.mrb[20].mxu0 %v4830_v56  ;;  %v398_v39 = vshll.u32 %v313_v12, 16  ;;  %5717 = vmatprep.subr.bf16.mxu1 %v6099_v47  ;;  %v4714_v42 = vcombine.low %v367_v6, %v377_v36  ;;  %v1353_v44 = vrot.slane %v1352_v23, 4  ;;  %v384_v45 = vrot.slane %v382_v26, 5  ;;  %v6114_v26 = vld [vmem:[%s8415_s1 + $0xa8] sm:$0xff]  }
  0x5a   : > { %v390_v46 = vrot.slane %v388_v31, 5  ;;  %v1363_v53 = vrot.slane %v1362_v37, 4  ;;  %v394_v19 = vrot.slane %v392_v38, 4  ;;  %v4831_v13 = vcombine.low %v6797_v51, %v6805_v57 }
  0x5b   : > { %v400_v56 = vrot.slane %v398_v39, 5  ;;  %2668 = vmatprep.mubr.bf16.mxu1 %v4714_v42  ;;  %v1358_v7 = vsel %vm6529_vm5, %v1353_v44, %v1357_v15  ;;  %v385_v58 = vor.u32 %v384_v45, %v381_v24  ;;  %v4699_v59 = vcombine.low %v6816_v62, %v6824_v11  ;;  %v6109_v62 = vld [vmem:[%s8415_s1 + $0xa0] sm:$0xff]   ;;  %v6881_v39 = vld [vmem:[%s6471_s7 + $0x6c] sm:$0xf] }
  0x5c   : > { %v1370_v49 = vshrl.u32 %v6836_v34, 16  ;;  %5718 = vmatpush3.bf16.msra.mxu1 %v6099_v47  ;;  %v1368_v55 = vsel %vm6529_vm5, %v1363_v53, %v1367_v20  ;;  %v395_v0 = vor.u32 %v394_v19, %v390_v46  ;;  %v1373_v51 = vshll.u32 %v6836_v34, 16 }
  0x5d   : > { %2669 = vmatmul.mubr.bf16.gmra.mrb[20].mxu1 %v4698_v61  ;;  %v1379_v57 = vshll.u32 %v6845_v40, 16  ;;  %5719 = vmatprep.subr.bf16.mxu1 %v6104_v35  ;;  %v4847_v3 = vcombine.low %v1358_v7, %v1368_v55  ;;  %v386_v5 = vrot.slane %v385_v58, 4  ;;  %v1383_v61 = vshrl.u32 %v6845_v40, 16  ;;  %v6895_v55 = vld [vmem:[%s6471_s7 + $0x34] sm:$0xf] }
  0x5e   : > { %v1372_v16 = vrot.slane %v1370_v49, 4  ;;  %v396_v11 = vrot.slane %v395_v0, 4  ;;  %v1375_v47 = vrot.slane %v1373_v51, 5  ;;  %v1389_v9 = vshll.u32 %v4784_v60, 16 }
  0x5f   : > { %v1381_v6 = vrot.slane %v1379_v57, 5  ;;  %2242 = vmatprep.mubr.bf16.mxu0 %v4847_v3  ;;  %v391_v12 = vsel %vm6529_vm5, %v386_v5, %v390_v46  ;;  %v1385_v22 = vrot.slane %v1383_v61, 4  ;;  %v403_v14 = vshrl.u32 %v6860_v54, 16  ;;  %v315_v57 = vld [vmem:[%s6471_s7 + $0x38] sm:$0x1] }
  0x60   : > { %v406_v15 = vshll.u32 %v6860_v54, 16  ;;  %5720 = vmatpush3.bf16.msra.mxu1 %v6104_v35  ;;  %v401_v17 = vsel %vm6529_vm5, %v396_v11, %v400_v56  ;;  %v1376_v20 = vor.u32 %v1375_v47, %v1372_v16  ;;  %v1391_v23 = vrot.slane %v1389_v9, 5  ;;  %v6131_v9 = vld [vmem:[%s8415_s1 + $0xb8] sm:$0xff]  }
  0x61   : > { %2243 = vmatmul.mubr.bf16.gmra.mrb[24].mxu0 %v4831_v13  ;;  %v412_v24 = vshll.u32 %v6867_v8, 16  ;;  %5721 = vmatprep.subr.bf16.mxu1 %v6109_v62  ;;  %v4715_v31 = vcombine.low %v391_v12, %v401_v17  ;;  %v1386_v36 = vor.u32 %v1385_v22, %v1381_v6  ;;  %v405_v37 = vrot.slane %v403_v14, 4  ;;  %v6889_v13 = vld [vmem:[%s6471_s7 + $0x30] sm:$0xf]  ;;  %v6922_v14 = vld [vmem:[%s6471_s7 + $0x78] sm:$0xf] }
  0x62   : > { %v408_v38 = vrot.slane %v406_v15, 5  ;;  %v1377_v35 = vrot.slane %v1376_v20, 4  ;;  %v416_v44 = vshrl.u32 %v6867_v8, 16  ;;  %v422_v45 = vshll.u32 %v314_v4, 16 }
  0x63   : > { %v414_v42 = vrot.slane %v412_v24, 5  ;;  %2676 = vmatprep.mubr.bf16.mxu1 %v4715_v31  ;;  %v1387_v46 = vrot.slane %v1386_v36, 4  ;;  %v4832_v19 = vcombine.low %v6836_v34, %v6845_v40  ;;  %v4700_v56 = vcombine.low %v6860_v54, %v6867_v8  ;;  %v6120_v34 = vld [vmem:[%s8415_s1 + $0xb0] sm:$0xff]  }
  0x64   : > { %v409_v53 = vor.u32 %v408_v38, %v405_v37  ;;  %5722 = vmatpush3.bf16.msra.mxu1 %v6109_v62  ;;  %v1382_v7 = vsel %vm6529_vm5, %v1377_v35, %v1381_v6  ;;  %v418_v58 = vrot.slane %v416_v44, 4  ;;  %v424_v60 = vrot.slane %v422_v45, 5  ;;  %v6929_v37 = vld [vmem:[%s6471_s7 + $0x3c] sm:$0xf] }
  0x65   : > { %2677 = vmatmul.mubr.bf16.gmra.mrb[24].mxu1 %v4699_v59  ;;  %v1394_v49 = vshrl.u32 %v6881_v39, 16  ;;  %5723 = vmatprep.subr.bf16.mxu1 %v6114_v26  ;;  %v1392_v40 = vsel %vm6529_vm5, %v1387_v46, %v1391_v23  ;;  %v1397_v59 = vshll.u32 %v6881_v39, 16  ;;  %v1411_v51 = vrot.slane %v1410_v28, 4 }
  0x66   : > { %v410_v0 = vrot.slane %v409_v53, 4  ;;  %v4848_v54 = vcombine.low %v1382_v7, %v1392_v40  ;;  %v419_v62 = vor.u32 %v418_v58, %v414_v42  ;;  %v427_v5 = vshrl.u32 %v6889_v13, 16  ;;  %v6941_v53 = vld [vmem:[%s6471_s7 + $0x40] sm:$0xf] }
  0x67   : > { %v1396_v3 = vrot.slane %v1394_v49, 4  ;;  %v1399_v61 = vrot.slane %v1397_v59, 5  ;;  %v1416_v8 = vsel %vm6529_vm5, %v1411_v51, %v6533_v52  ;;  %v430_v11 = vshll.u32 %v6889_v13, 16 }
  0x68   : > { %v415_v16 = vsel %vm6529_vm5, %v410_v0, %v414_v42  ;;  %5724 = vmatpush3.bf16.msra.mxu1 %v6114_v26  ;;  %2250 = vmatprep.mubr.bf16.mxu0 %v4848_v54  ;;  %v420_v63 = vrot.slane %v419_v62, 4  ;;  %v429_v28 = vrot.slane %v427_v5, 4  ;;  %v436_v47 = vshll.u32 %v6895_v55, 16 }
  0x69   : > { %v440_v6 = vshrl.u32 %v6895_v55, 16  ;;  %5725 = vmatprep.subr.bf16.mxu1 %v6120_v34  ;;  %2251 = vmatmul.mubr.bf16.gmra.mrb[28].mxu0 %v4832_v19  ;;  %v1400_v4 = vor.u32 %v1399_v61, %v1396_v3  ;;  %v432_v12 = vrot.slane %v430_v11, 5  ;;  %v446_v52 = vshll.u32 %v315_v57, 16  ;;  %v6953_v57 = vld [vmem:[%s6471_s7 + $0x84] sm:$0xf] }
  0x6a   : > { %v4833_v22 = vcombine.low %v6881_v39, %v6505_v33  ;;  %v425_v15 = vsel %vm6529_vm5, %v420_v63, %v424_v60  ;;  %v438_v17 = vrot.slane %v436_v47, 5  ;;  %v4701_v23 = vcombine.low %v6889_v13, %v6895_v55  ;;  %v316_v55 = vld [vmem:[%s6471_s7 + $0x44] sm:$0x1] }
  0x6b   : > { %v442_v20 = vrot.slane %v440_v6, 4  ;;  %v4716_v24 = vcombine.low %v415_v16, %v425_v15  ;;  %v1401_v26 = vrot.slane %v1400_v4, 4  ;;  %v433_v31 = vor.u32 %v432_v12, %v429_v28  ;;  %v6960_v28 = vld [vmem:[%s6471_s7 + $0x48] sm:$0xf]  ;;  %v6966_v12 = vld [vmem:[%s6471_s7 + $0x4c] sm:$0xf] }
  0x6c   : > { %v448_v36 = vrot.slane %v446_v52, 5  ;;  %5726 = vmatpush3.bf16.msra.mxu1 %v6120_v34  ;;  %v1418_v33 = vshrl.u32 %v6922_v14, 16  ;;  %v1421_v39 = vshll.u32 %v6922_v14, 16  ;;  %v1429_v35 = vrot.slane %v1427_v10, 5 }
  0x6d   : > { %v443_v38 = vor.u32 %v442_v20, %v438_v17  ;;  %5727 = vmatprep.subr.bf16.mxu1 %v6131_v9  ;;  %2684 = vmatprep.mubr.bf16.mxu1 %v4716_v24  ;;  %v1406_v42 = vsel %vm6529_vm5, %v1401_v26, %v6660_v2  ;;  %v434_v44 = vrot.slane %v433_v31, 4  ;;  %v1431_v45 = vshrl.u32 %v6517_v43, 16  ;;  %v317_v31 = vld [vmem:[%s6471_s7 + $0x50] sm:$0x1] }
  0x6e   : > { %v1437_v46 = vshll.u32 %v6522_v48, 16  ;;  %2685 = vmatmul.mubr.bf16.gmra.mrb[28].mxu1 %v4700_v56  ;;  %v4849_v19 = vcombine.low %v1406_v42, %v1416_v8  ;;  %v1420_v7 = vrot.slane %v1418_v33, 4  ;;  %v1423_v58 = vrot.slane %v1421_v39, 5  ;;  %v6163_v8 = vld [vmem:[%s6471_s7 + $0x7c] sm:$0xf] }
  0x6f   : > { %v444_v13 = vrot.slane %v443_v38, 4  ;;  %v439_v10 = vsel %vm6529_vm5, %v434_v44, %v438_v17  ;;  %v1433_v60 = vrot.slane %v1431_v45, 4  ;;  %v451_v2 = vshrl.u32 %v6929_v37, 16 }
  0x70   : > { %v1439_v49 = vrot.slane %v1437_v46, 5  ;;  %5728 = vmatpush3.bf16.msra.mxu1 %v6131_v9  ;;  %2258 = vmatprep.mubr.bf16.mxu0 %v4849_v19  ;;  %v1424_v48 = vor.u32 %v1423_v58, %v1420_v7  ;;  %v454_v56 = vshll.u32 %v6929_v37, 16  ;;  %v460_v34 = vshll.u32 %v6941_v53, 16  ;;  %v6986_v58 = vld [vmem:[%s6471_s7 + $0x90] sm:$0xf] }
  0x71   : > { %v449_v43 = vsel %vm6529_vm5, %v444_v13, %v448_v36  ;;  %2259 = vmatmul.mubr.bf16.gmra.mrb[32].mxu0 %v4833_v22  ;;  %v1434_v0 = vor.u32 %v1433_v60, %v1429_v35  ;;  %v453_v59 = vrot.slane %v451_v2, 4  ;;  %v464_v51 = vshrl.u32 %v6941_v53, 16 }
  0x72   : > { %v4717_v40 = vcombine.low %v439_v10, %v449_v43  ;;  %v1425_v54 = vrot.slane %v1424_v48, 4  ;;  %v456_v62 = vrot.slane %v454_v56, 5  ;;  %v462_v3 = vrot.slane %v460_v34, 5  ;;  %v6164_v48 = vld [vmem:[%s6471_s7 + $0x88] sm:$0xf] }
  0x73   : > { %v470_v5 = vshll.u32 %v316_v55, 16  ;;  %v1435_v16 = vrot.slane %v1434_v0, 4  ;;  %v466_v61 = vrot.slane %v464_v51, 4  ;;  %v4834_v11 = vcombine.low %v6922_v14, %v6163_v8 }
  0x74   : > { %2692 = vmatprep.mubr.bf16.mxu1 %v4717_v40  ;;  %v4702_v63 = vcombine.low %v6929_v37, %v6941_v53  ;;  %v1430_v47 = vsel %vm6529_vm5, %v1425_v54, %v1429_v35  ;;  %v457_v6 = vor.u32 %v456_v62, %v453_v59  ;;  %v1442_v4 = vshrl.u32 %v6953_v57, 16  ;;  %v6994_v40 = vld [vmem:[%s6471_s7 + $0x54] sm:$0xf]  ;;  %v7000_v62 = vld [vmem:[%s6471_s7 + $0x58] sm:$0xf] }
  0x75   : > { %v472_v9 = vrot.slane %v470_v5, 5  ;;  %v1440_v52 = vsel %vm6529_vm5, %v1435_v16, %v1439_v49  ;;  %v467_v22 = vor.u32 %v466_v61, %v462_v3  ;;  %v1445_v14 = vshll.u32 %v6953_v57, 16  ;;  %v7006_v16 = vld [vmem:[%s6471_s7 + $0x94] sm:$0xf] }
  0x76   : > { %v1451_v15 = vshll.u32 %v6578_v27, 16  ;;  %2693 = vmatmul.mubr.bf16.gmra.mrb[32].mxu1 %v4701_v23  ;;  %v4850_v17 = vcombine.low %v1430_v47, %v1440_v52  ;;  %v458_v20 = vrot.slane %v457_v6, 4  ;;  %v1444_v24 = vrot.slane %v1442_v4, 4  ;;  %v6166_v4 = vld [vmem:[%s6471_s7 + $0x98] sm:$0x1] }
  0x77   : > { %v1455_v26 = vshrl.u32 %v6578_v27, 16  ;;  %v468_v36 = vrot.slane %v467_v22, 4  ;;  %v1447_v37 = vrot.slane %v1445_v14, 5  ;;  %v1461_v33 = vshll.u32 %v6583_v30, 16  ;;  %v6140_v27 = vld [vmem:[%s8415_s1 + $0x200] sm:$0xff]  }
  0x78   : > { %v1453_v38 = vrot.slane %v1451_v15, 5  ;;  %2266 = vmatprep.mubr.bf16.mxu0 %v4850_v17  ;;  %v463_v39 = vsel %vm6529_vm5, %v458_v20, %v462_v3  ;;  %v475_v42 = vshrl.u32 %v6960_v28, 16  ;;  %v478_v23 = vshll.u32 %v6960_v28, 16  ;;  %5761 = vmatprep.subr.bf16.mxu1 %v6140_v27  ;;  %v318_v52 = vld [vmem:[%s6471_s7 + $0x5c] sm:$0x1] }
  0x79   : > { %v1457_v35 = vrot.slane %v1455_v26, 4  ;;  %v473_v44 = vsel %vm6529_vm5, %v468_v36, %v472_v9  ;;  %2267 = vmatmul.mubr.bf16.gmra.mrb[36].mxu0 %v4834_v11  ;;  %v1448_v45 = vor.u32 %v1447_v37, %v1444_v24  ;;  %v1463_v30 = vrot.slane %v1461_v33, 5 }
  0x7a   : > { %v484_v46 = vshll.u32 %v6966_v12, 16  ;;  %v4718_v53 = vcombine.low %v463_v39, %v473_v44  ;;  %v477_v13 = vrot.slane %v475_v42, 4  ;;  %v480_v7 = vrot.slane %v478_v23, 5  ;;  %v7021_v39 = vld [vmem:[%s6471_s7 + $0x9c] sm:$0xf] }
  0x7b   : > { %v1458_v19 = vor.u32 %v1457_v35, %v1453_v38  ;;  %v1449_v10 = vrot.slane %v1448_v45, 4  ;;  %v488_v49 = vshrl.u32 %v6966_v12, 16  ;;  %v494_v55 = vshll.u32 %v317_v31, 16 }
  0x7c   : > { %v486_v60 = vrot.slane %v484_v46, 5  ;;  %2700 = vmatprep.mubr.bf16.mxu1 %v4718_v53  ;;  %v481_v43 = vor.u32 %v480_v7, %v477_v13  ;;  %v4835_v56 = vcombine.low %v6953_v57, %v6164_v48  ;;  %v4703_v34 = vcombine.low %v6960_v28, %v6966_v12 }
  0x7d   : > { %v1459_v2 = vrot.slane %v1458_v19, 4  ;;  %v1454_v0 = vsel %vm6529_vm5, %v1449_v10, %v1453_v38  ;;  %v490_v59 = vrot.slane %v488_v49, 4  ;;  %v496_v51 = vrot.slane %v494_v55, 5  ;;  %v7031_v10 = vld [vmem:[%s6471_s7 + $0x60] sm:$0xf] }
  0x7e   : > { %v1466_v54 = vshrl.u32 %v6986_v58, 16  ;;  %2701 = vmatmul.mubr.bf16.gmra.mrb[36].mxu1 %v4702_v63  ;;  %v482_v3 = vrot.slane %v481_v43, 4  ;;  %v1469_v5 = vshll.u32 %v6986_v58, 16  ;;  %v1475_v61 = vshll.u32 %v7006_v16, 16 }
  0x7f   : > { %v1464_v57 = vsel %vm6529_vm5, %v1459_v2, %v1463_v30  ;;  %v491_v11 = vor.u32 %v490_v59, %v486_v60  ;;  %v1479_v47 = vshrl.u32 %v7006_v16, 16  ;;  %v1485_v12 = vshll.u32 %v6166_v4, 16  ;;  %v7037_v2 = vld [vmem:[%s6471_s7 + $0x64] sm:$0xf]  ;;  %v319_v59 = vld [vmem:[%s6471_s7 + $0x68] sm:$0x1] }
  0x80   : > { %v4851_v8 = vcombine.low %v1454_v0, %v1464_v57  ;;  %v1468_v28 = vrot.slane %v1466_v54, 4  ;;  %v487_v6 = vsel %vm6529_vm5, %v482_v3, %v486_v60  ;;  %v1471_v9 = vrot.slane %v1469_v5, 5 }
  0x81   : > { %v1477_v63 = vrot.slane %v1475_v61, 5  ;;  %v492_v22 = vrot.slane %v491_v11, 4  ;;  %v1481_v14 = vrot.slane %v1479_v47, 4  ;;  %v499_v15 = vshrl.u32 %v6994_v40, 16 }
  0x82   : > { %2274 = vmatprep.mubr.bf16.mxu0 %v4851_v8  ;;  %v502_v17 = vshll.u32 %v6994_v40, 16  ;;  %v1472_v20 = vor.u32 %v1471_v9, %v1468_v28  ;;  %v1487_v24 = vrot.slane %v1485_v12, 5  ;;  %v508_v26 = vshll.u32 %v7000_v62, 16  ;;  %v7053_v8 = vld [vmem:[%s6471_s7 + $0xa8] sm:$0xf] }
  0x83   : > { %2275 = vmatmul.mubr.bf16.gmra.mrb[40].mxu0 %v4835_v56  ;;  %v512_v31 = vshrl.u32 %v7000_v62, 16  ;;  %v497_v36 = vsel %vm6529_vm5, %v492_v22, %v496_v51  ;;  %v1482_v37 = vor.u32 %v1481_v14, %v1477_v63  ;;  %v501_v38 = vrot.slane %v499_v15, 4 }
  0x84   : > { %v504_v33 = vrot.slane %v502_v17, 5  ;;  %v4719_v35 = vcombine.low %v487_v6, %v497_v36  ;;  %v1473_v42 = vrot.slane %v1472_v20, 4  ;;  %v510_v23 = vrot.slane %v508_v26, 5 }
  0x85   : > { %v514_v27 = vrot.slane %v512_v31, 4  ;;  %v1483_v44 = vrot.slane %v1482_v37, 4  ;;  %v518_v30 = vshll.u32 %v318_v52, 16  ;;  %v4836_v46 = vcombine.low %v6986_v58, %v7006_v16 }
  0x86   : > { %v505_v45 = vor.u32 %v504_v33, %v501_v38  ;;  %2708 = vmatprep.mubr.bf16.mxu1 %v4719_v35  ;;  %v1478_v53 = vsel %vm6529_vm5, %v1473_v42, %v1477_v63  ;;  %v4704_v13 = vcombine.low %v6994_v40, %v7000_v62  ;;  %v1490_v7 = vshrl.u32 %v7021_v39, 16  ;;  %v7040_v40 = vld [vmem:[%s6471_s7 + $0xa0] sm:$0xf]  ;;  %v6168_v62 = vld [vmem:[%s6471_s7 + $0xa4] sm:$0x1] }
  0x87   : > { %v515_v19 = vor.u32 %v514_v27, %v510_v23  ;;  %2709 = vmatmul.mubr.bf16.gmra.mrb[40].mxu1 %v4703_v34  ;;  %v1488_v60 = vsel %vm6529_vm5, %v1483_v44, %v1487_v24  ;;  %v520_v49 = vrot.slane %v518_v30, 5  ;;  %v1493_v55 = vshll.u32 %v7021_v39, 16  ;;  %v7065_v33 = vld [vmem:[%s6471_s7 + $0x6c] sm:$0xf]  ;;  %v7073_v44 = vld [vmem:[%s6471_s7 + $0x70] sm:$0xf] }
  0x88   : > { %v506_v58 = vrot.slane %v505_v45, 4  ;;  %v4852_v43 = vcombine.low %v1478_v53, %v1488_v60  ;;  %v1492_v56 = vrot.slane %v1490_v7, 4  ;;  %v1499_v0 = vshll.u32 %v7040_v40, 16  ;;  %v6170_v53 = vld [vmem:[%s6471_s7 + $0xb0] sm:$0x1] }
  0x89   : > { %v516_v48 = vrot.slane %v515_v19, 4  ;;  %v1495_v51 = vrot.slane %v1493_v55, 5  ;;  %v1503_v54 = vshrl.u32 %v7040_v40, 16  ;;  %v1509_v57 = vshll.u32 %v6168_v62, 16 }
  0x8a   : > { %v511_v34 = vsel %vm6529_vm5, %v506_v58, %v510_v23  ;;  %2282 = vmatprep.mubr.bf16.mxu0 %v4852_v43  ;;  %v1501_v5 = vrot.slane %v1499_v0, 5  ;;  %v523_v16 = vshrl.u32 %v7031_v10, 16  ;;  %v526_v61 = vshll.u32 %v7031_v10, 16  ;;  %v7069_v23 = vld [vmem:[%s6471_s7 + $0xac] sm:$0xf] }
  0x8b   : > { %v521_v3 = vsel %vm6529_vm5, %v516_v48, %v520_v49  ;;  %2283 = vmatmul.mubr.bf16.gmra.mrb[44].mxu0 %v4836_v46  ;;  %v1496_v28 = vor.u32 %v1495_v51, %v1492_v56  ;;  %v1505_v47 = vrot.slane %v1503_v54, 4  ;;  %v1511_v6 = vrot.slane %v1509_v57, 5  ;;  %v7084_v48 = vld [vmem:[%s6471_s7 + $0xb4] sm:$0xf] }
  0x8c   : > { %v4720_v11 = vcombine.low %v511_v34, %v521_v3  ;;  %v525_v9 = vrot.slane %v523_v16, 4  ;;  %v528_v63 = vrot.slane %v526_v61, 5  ;;  %v532_v4 = vshll.u32 %v7037_v2, 16 }
  0x8d   : > { %v536_v12 = vshrl.u32 %v7037_v2, 16  ;;  %v1497_v52 = vrot.slane %v1496_v28, 4  ;;  %v1506_v22 = vor.u32 %v1505_v47, %v1501_v5  ;;  %v542_v14 = vshll.u32 %v319_v59, 16 }
  0x8e   : > { %2716 = vmatprep.mubr.bf16.mxu1 %v4720_v11  ;;  %v4837_v15 = vcombine.low %v7021_v39, %v7040_v40  ;;  %v529_v17 = vor.u32 %v528_v63, %v525_v9  ;;  %v534_v20 = vrot.slane %v532_v4, 5  ;;  %v4705_v26 = vcombine.low %v7031_v10, %v7037_v2 }
  0x8f   : > { %v538_v24 = vrot.slane %v536_v12, 4  ;;  %2717 = vmatmul.mubr.bf16.gmra.mrb[44].mxu1 %v4704_v13  ;;  %v1502_v31 = vsel %vm6529_vm5, %v1497_v52, %v1501_v5  ;;  %v1507_v36 = vrot.slane %v1506_v22, 4  ;;  %v544_v37 = vrot.slane %v542_v14, 5  ;;  %v320_v13 = vld [vmem:[%s6471_s7 + $0x74] sm:$0x1] }
  0x90   : > { %v1514_v38 = vshrl.u32 %v7053_v8, 16  ;;  %v530_v39 = vrot.slane %v529_v17, 4  ;;  %v1517_v42 = vshll.u32 %v7053_v8, 16  ;;  %v1523_v27 = vshll.u32 %v7069_v23, 16  ;;  %v7099_v12 = vld [vmem:[%s6471_s7 + $0x78] sm:$0xf] }
  0x91   : > { %v539_v35 = vor.u32 %v538_v24, %v534_v20  ;;  %v1512_v45 = vsel %vm6529_vm5, %v1507_v36, %v1511_v6  ;;  %v1527_v46 = vshrl.u32 %v7069_v23, 16  ;;  %v1533_v19 = vshll.u32 %v6170_v53, 16  ;;  %v7105_v14 = vld [vmem:[%s6471_s7 + $0xb8] sm:$0xf]  ;;  %v7109_v17 = vld [vmem:[%s6471_s7 + $0x7c] sm:$0xf] }
  0x92   : > { %v1516_v30 = vrot.slane %v1514_v38, 4  ;;  %v4853_v7 = vcombine.low %v1502_v31, %v1512_v45  ;;  %v535_v10 = vsel %vm6529_vm5, %v530_v39, %v534_v20  ;;  %v1519_v58 = vrot.slane %v1517_v42, 5 }
  0x93   : > { %v540_v60 = vrot.slane %v539_v35, 4  ;;  %v1525_v49 = vrot.slane %v1523_v27, 5  ;;  %v1529_v55 = vrot.slane %v1527_v46, 4  ;;  %v1535_v2 = vrot.slane %v1533_v19, 5 }
  0x94   : > { %v547_v43 = vshrl.u32 %v7065_v33, 16  ;;  %2290 = vmatprep.mubr.bf16.mxu0 %v4853_v7  ;;  %v1520_v40 = vor.u32 %v1519_v58, %v1516_v30  ;;  %v550_v0 = vshll.u32 %v7065_v33, 16  ;;  %v556_v59 = vshll.u32 %v7073_v44, 16 }
  0x95   : > { %v545_v56 = vsel %vm6529_vm5, %v540_v60, %v544_v37  ;;  %2291 = vmatmul.mubr.bf16.gmra.mrb[48].mxu0 %v4837_v15  ;;  %v1530_v51 = vor.u32 %v1529_v55, %v1525_v49  ;;  %v560_v62 = vshrl.u32 %v7073_v44, 16  ;;  %v566_v16 = vshll.u32 %v320_v13, 16  ;;  %v7124_v60 = vld [vmem:[%s6471_s7 + $0xc0] sm:$0xf] }
  0x96   : > { %v4721_v34 = vcombine.low %v535_v10, %v545_v56  ;;  %v549_v54 = vrot.slane %v547_v43, 4  ;;  %v1521_v57 = vrot.slane %v1520_v40, 4  ;;  %v552_v3 = vrot.slane %v550_v0, 5 }
  0x97   : > { %v558_v5 = vrot.slane %v556_v59, 5  ;;  %v1531_v61 = vrot.slane %v1530_v51, 4  ;;  %v562_v11 = vrot.slane %v560_v62, 4  ;;  %v4838_v28 = vcombine.low %v7053_v8, %v7069_v23  ;;  %v7116_v23 = vld [vmem:[%s6471_s7 + $0x80] sm:$0x1] }
  0x98   : > { %2724 = vmatprep.mubr.bf16.mxu1 %v4721_v34  ;;  %v4706_v47 = vcombine.low %v7065_v33, %v7073_v44  ;;  %v1526_v6 = vsel %vm6529_vm5, %v1521_v57, %v1525_v49  ;;  %v553_v9 = vor.u32 %v552_v3, %v549_v54  ;;  %v568_v63 = vrot.slane %v566_v16, 5  ;;  %v6172_v33 = vld [vmem:[%s6471_s7 + $0xbc] sm:$0x1]  ;;  %v7143_v16 = vld [vmem:[%s6471_s7 + $0x84] sm:$0xf] }
  0x99   : > { %2725 = vmatmul.mubr.bf16.gmra.mrb[48].mxu1 %v4705_v26  ;;  %v1538_v4 = vshrl.u32 %v7084_v48, 16  ;;  %v1536_v52 = vsel %vm6529_vm5, %v1531_v61, %v1535_v2  ;;  %v563_v22 = vor.u32 %v562_v11, %v558_v5  ;;  %v1541_v8 = vshll.u32 %v7084_v48, 16 }
  0x9a   : > { %v1547_v15 = vshll.u32 %v7105_v14, 16  ;;  %v4854_v20 = vcombine.low %v1526_v6, %v1536_v52  ;;  %v554_v24 = vrot.slane %v553_v9, 4  ;;  %v1551_v31 = vshrl.u32 %v7105_v14, 16  ;;  %v7147_v6 = vld [vmem:[%s6471_s7 + $0x88] sm:$0xf] }
  0x9b   : > { %v1540_v26 = vrot.slane %v1538_v4, 4  ;;  %v564_v36 = vrot.slane %v563_v22, 4  ;;  %v1543_v37 = vrot.slane %v1541_v8, 5  ;;  %v1557_v39 = vshll.u32 %v6172_v33, 16 }
  0x9c   : > { %v1549_v38 = vrot.slane %v1547_v15, 5  ;;  %2298 = vmatprep.mubr.bf16.mxu0 %v4854_v20  ;;  %v559_v35 = vsel %vm6529_vm5, %v554_v24, %v558_v5  ;;  %v1553_v42 = vrot.slane %v1551_v31, 4  ;;  %v571_v27 = vshrl.u32 %v7099_v12, 16  ;;  %v7155_v24 = vld [vmem:[%s6471_s7 + $0x8c] sm:$0x1] }
  0x9d   : > { %v574_v44 = vshll.u32 %v7099_v12, 16  ;;  %v569_v45 = vsel %vm6529_vm5, %v564_v36, %v568_v63  ;;  %2299 = vmatmul.mubr.bf16.gmra.mrb[52].mxu0 %v4838_v28  ;;  %v1544_v30 = vor.u32 %v1543_v37, %v1540_v26  ;;  %v1559_v46 = vrot.slane %v1557_v39, 5  ;;  %v4793_v39 = vld [vmem:[%s6471_s7 + $0xc] sm:$0xe] }
  0x9e   : > { %v580_v53 = vshll.u32 %v7109_v17, 16  ;;  %v4722_v19 = vcombine.low %v559_v35, %v569_v45  ;;  %v1554_v13 = vor.u32 %v1553_v42, %v1549_v38  ;;  %v573_v7 = vrot.slane %v571_v27, 4  ;;  %v7163_v45 = vld [vmem:[%s6471_s7 + $0x90] sm:$0xf] }
  0x9f   : > { %v576_v10 = vrot.slane %v574_v44, 5  ;;  %v1545_v58 = vrot.slane %v1544_v30, 4  ;;  %v584_v55 = vshrl.u32 %v7109_v17, 16  ;;  %v590_v2 = vshll.u32 %v7116_v23, 16 }
  0xa0   : > { %v582_v49 = vrot.slane %v580_v53, 5  ;;  %2732 = vmatprep.mubr.bf16.mxu1 %v4722_v19  ;;  %v1555_v43 = vrot.slane %v1554_v13, 4  ;;  %v4839_v40 = vcombine.low %v7084_v48, %v7105_v14  ;;  %v4707_v0 = vcombine.low %v7099_v12, %v7109_v17  ;;  %v7139_v48 = vld [vmem:[%s6471_s7 + $0xc4] sm:$0xf]  ;;  %v6174_v12 = vld [vmem:[%s6471_s7 + $0xc8] sm:$0x1] }
  0xa1   : > { %v577_v56 = vor.u32 %v576_v10, %v573_v7  ;;  %2733 = vmatmul.mubr.bf16.gmra.mrb[52].mxu1 %v4706_v47  ;;  %v1550_v59 = vsel %vm6529_vm5, %v1545_v58, %v1549_v38  ;;  %v586_v34 = vrot.slane %v584_v55, 4  ;;  %v592_v51 = vrot.slane %v590_v2, 5 }
  0xa2   : > { %v1562_v54 = vshrl.u32 %v7124_v60, 16  ;;  %v1560_v62 = vsel %vm6529_vm5, %v1555_v43, %v1559_v46  ;;  %v1565_v3 = vshll.u32 %v7124_v60, 16  ;;  %v1571_v5 = vshll.u32 %v7139_v48, 16 }
  0xa3   : > { %v578_v57 = vrot.slane %v577_v56, 4  ;;  %v4855_v61 = vcombine.low %v1550_v59, %v1560_v62  ;;  %v587_v11 = vor.u32 %v586_v34, %v582_v49  ;;  %v1575_v47 = vshrl.u32 %v7139_v48, 16  ;;  %v4794_v62 = vld [vmem:[%s6471_s7 + $0x18] sm:$0xe] }
  0xa4   : > { %v1564_v28 = vrot.slane %v1562_v54, 4  ;;  %v1567_v63 = vrot.slane %v1565_v3, 5  ;;  %v1573_v4 = vrot.slane %v1571_v5, 5  ;;  %v1581_v52 = vshll.u32 %v6174_v12, 16  ;;  %v4795_v5 = vld [vmem:[%s6471_s7 + $0x24] sm:$0xe] }
  0xa5   : > { %v583_v9 = vsel %vm6529_vm5, %v578_v57, %v582_v49  ;;  %2306 = vmatprep.mubr.bf16.mxu0 %v4855_v61  ;;  %v588_v22 = vrot.slane %v587_v11, 4  ;;  %v1577_v8 = vrot.slane %v1575_v47, 4  ;;  %v595_v14 = vshrl.u32 %v7143_v16, 16  ;;  %v7173_v49 = vld [vmem:[%s6471_s7 + $0x94] sm:$0xf] }
  0xa6   : > { %v598_v15 = vshll.u32 %v7143_v16, 16  ;;  %2307 = vmatmul.mubr.bf16.gmra.mrb[56].mxu0 %v4839_v40  ;;  %v1568_v17 = vor.u32 %v1567_v63, %v1564_v28  ;;  %v1583_v20 = vrot.slane %v1581_v52, 5  ;;  %v604_v26 = vshll.u32 %v7147_v6, 16  ;;  %v7179_v40 = vld [vmem:[%s6471_s7 + $0x98] sm:$0x1] }
  0xa7   : > { %v608_v31 = vshrl.u32 %v7147_v6, 16  ;;  %v593_v36 = vsel %vm6529_vm5, %v588_v22, %v592_v51  ;;  %v1578_v37 = vor.u32 %v1577_v8, %v1573_v4  ;;  %v597_v38 = vrot.slane %v595_v14, 4  ;;  %v7199_v14 = vld [vmem:[%s6471_s7 + $0x9c] sm:$0xf] }
  0xa8   : > { %v600_v33 = vrot.slane %v598_v15, 5  ;;  %v4723_v35 = vcombine.low %v583_v9, %v593_v36  ;;  %v1569_v42 = vrot.slane %v1568_v17, 4  ;;  %v606_v27 = vrot.slane %v604_v26, 5  ;;  %v6176_v17 = vld [vmem:[%s6471_s7 + $0x1c] sm:$0xf] }
  0xa9   : > { %v610_v44 = vrot.slane %v608_v31, 4  ;;  %v1579_v30 = vrot.slane %v1578_v37, 4  ;;  %v614_v53 = vshll.u32 %v7155_v24, 16  ;;  %v4840_v19 = vcombine.low %v7124_v60, %v7139_v48  ;;  %v6175_v60 = vld [vmem:[%s6471_s7 + $0x10] sm:$0xf] }
  0xaa   : > { %v601_v46 = vor.u32 %v600_v33, %v597_v38  ;;  %2740 = vmatprep.mubr.bf16.mxu1 %v4723_v35  ;;  %v1574_v13 = vsel %vm6529_vm5, %v1569_v42, %v1573_v4  ;;  %v4708_v10 = vcombine.low %v7143_v16, %v7147_v6  ;;  %v4809_v58 = vrot.slane %v4793_v39, 9  ;;  %v6177_v37 = vld [vmem:[%s6471_s7 + $0x28] sm:$0xf]  ;;  %v6178_v33 = vld [vmem:[%s6471_s7 + $0x2c] sm:$0x1] }
  0xab   : > { %v611_v7 = vor.u32 %v610_v44, %v606_v27  ;;  %2741 = vmatmul.mubr.bf16.gmra.mrb[56].mxu1 %v4707_v0  ;;  %v1584_v55 = vsel %vm6529_vm5, %v1579_v30, %v1583_v20  ;;  %v616_v43 = vrot.slane %v614_v53, 5  ;;  %v1651_v56 = vrot.slane %v6175_v60, 5 }
  0xac   : > { %v602_v2 = vrot.slane %v601_v46, 4  ;;  %v4856_v59 = vcombine.low %v1574_v13, %v1584_v55  ;;  %v619_v51 = vshrl.u32 %v7163_v45, 16  ;;  %v622_v54 = vshll.u32 %v7163_v45, 16 }
  0xad   : > { %v612_v34 = vrot.slane %v611_v7, 4  ;;  %v1652_v57 = vsel %vm6512_vm4, %v4809_v58, %v1651_v56  ;;  %v1653_v3 = vrot.slane %v1651_v56, 4  ;;  %v628_v48 = vshll.u32 %v7173_v49, 16  ;;  %v6119_v7 = vld [vmem:[%s8415_s1 + $0x180] sm:$0xff]  }
  0xae   : > { %v607_v0 = vsel %vm6529_vm5, %v602_v2, %v606_v27  ;;  %2314 = vmatprep.mubr.bf16.mxu0 %v4856_v59  ;;  %v621_v61 = vrot.slane %v619_v51, 4  ;;  %v624_v11 = vrot.slane %v622_v54, 5  ;;  %v632_v28 = vshrl.u32 %v7173_v49, 16  ;;  %v4796_v2 = vld [vmem:[%s6471_s7 + $0x30] sm:$0xe] }
  0xaf   : > { %v617_v16 = vsel %vm6529_vm5, %v612_v34, %v616_v43  ;;  %2315 = vmatmul.mubr.bf16.gmra.mrb[60].mxu0 %v4840_v19  ;;  %v1655_v9 = vsel %vm6512_vm4, %v1653_v3, %v1654_v32  ;;  %v630_v63 = vrot.slane %v628_v48, 5  ;;  %v638_v4 = vshll.u32 %v7179_v40, 16  ;;  %v7205_v32 = vld [vmem:[%s6471_s7 + $0xa0] sm:$0xf]  ;;  %v7218_v19 = vld [vmem:[%s6471_s7 + $0xa4] sm:$0x1] }
  0xb0   : > { %v4724_v47 = vcombine.low %v607_v0, %v617_v16  ;;  %v4857_v12 = vcombine.low %v1652_v57, %v1655_v9  ;;  %v625_v52 = vor.u32 %v624_v11, %v621_v61  ;;  %v634_v22 = vrot.slane %v632_v28, 4  ;;  %v4797_v59 = vld [vmem:[%s6471_s7 + $0x3c] sm:$0xe]  ;;  %v6179_v48 = vld [vmem:[%s6471_s7 + $0x34] sm:$0xf]  ;;  %v6122_v61 = vld [vmem:[%s8415_s1 + $0x188] sm:$0xff]  }
  0xb1   : > { %v4810_v8 = vrot.slane %v4794_v62, 9  ;;  %v640_v15 = vrot.slane %v638_v4, 5  ;;  %v1658_v20 = vrot.slane %v6176_v17, 5  ;;  %v4709_v25 = vcombine.low %v7163_v45, %v7173_v49  ;;  %v7241_v16 = vld [vmem:[%s6471_s7 + $0xa8] sm:$0xf] }
  0xb2   : > { %2748 = vmatprep.mubr.bf16.mxu1 %v4724_v47  ;;  %v4811_v26 = vrot.slane %v4795_v5, 9  ;;  %5681 = vmatprep.mubr.bf16.mxu0 %v4857_v12  ;;  %v626_v31 = vrot.slane %v625_v52, 4  ;;  %v635_v36 = vor.u32 %v634_v22, %v630_v63  ;;  %v1665_v38 = vrot.slane %v6177_v37, 5  ;;  %v6180_v28 = vld [vmem:[%s6471_s7 + $0x38] sm:$0x1] }
  0xb3   : > { %v1668_v39 = vrot.slane %v6178_v33, 5  ;;  %2749 = vmatmul.mubr.bf16.gmra.mrb[60].mxu1 %v4708_v10  ;;  %v1659_v35 = vsel %vm6512_vm4, %v4810_v8, %v1658_v20  ;;  %v1660_v42 = vrot.slane %v1658_v20, 4  ;;  %v643_v27 = vshrl.u32 %v7199_v14, 16  ;;  %v7250_v4 = vld [vmem:[%s6471_s7 + $0xac] sm:$0xf] }
  0xb4   : > { %v646_v44 = vshll.u32 %v7199_v14, 16  ;;  %v631_v45 = vsel %vm6529_vm5, %v626_v31, %v630_v63  ;;  %v636_v30 = vrot.slane %v635_v36, 4  ;;  %v1666_v46 = vsel %vm6512_vm4, %v4811_v26, %v1665_v38  ;;  %v7258_v17 = vld [vmem:[%s6471_s7 + $0xb0] sm:$0x1]  ;;  %v6181_v20 = vld [vmem:[%s6471_s7 + $0x40] sm:$0xf] }
  0xb5   : > { %v1667_v53 = vrot.slane %v1665_v38, 4  ;;  %v1662_v13 = vsel %vm6512_vm4, %v1660_v42, %v1661_v29  ;;  %v645_v10 = vrot.slane %v643_v27, 4  ;;  %v652_v55 = vshll.u32 %v7205_v32, 16  ;;  %v6182_v31 = vld [vmem:[%s6471_s7 + $0x44] sm:$0x1]  ;;  %v6125_v27 = vld [vmem:[%s8415_s1 + $0x190] sm:$0xff]  }
  0xb6   : > { %v648_v58 = vrot.slane %v646_v44, 5  ;;  %v641_v43 = vsel %vm6529_vm5, %v636_v30, %v640_v15  ;;  %v4858_v60 = vcombine.low %v1659_v35, %v1662_v13  ;;  %v656_v56 = vshrl.u32 %v7205_v32, 16  ;;  %v6124_v15 = vld [vmem:[%s8415_s1 + $0x1d0] sm:$0xff]   ;;  %v4798_v38 = vld [vmem:[%s6471_s7 + $0x48] sm:$0xe] }
  0xb7   : > { %v1669_v29 = vsel %vm6512_vm4, %v1667_v53, %v1668_v39  ;;  %v4725_v34 = vcombine.low %v631_v45, %v641_v43  ;;  %v654_v62 = vrot.slane %v652_v55, 5  ;;  %v662_v57 = vshll.u32 %v7218_v19, 16  ;;  %v6126_v53 = vld [vmem:[%s8415_s1 + $0x1d8] sm:$0xff]  }
  0xb8   : > { %v4859_v51 = vcombine.low %v1666_v46, %v1669_v29  ;;  %v649_v54 = vor.u32 %v648_v58, %v645_v10  ;;  %5682 = vmatmul.mubr.bf16.vlgmr.msra.gmra.mrb[64].mxu0 %v4858_v60  ;;  %v658_v0 = vrot.slane %v656_v56, 4  ;;  %v4812_v3 = vrot.slane %v4796_v2, 9  ;;  %v4799_v58 = vld [vmem:[%s6471_s7 + $0x54] sm:$0xe] }
  0xb9   : > { %v1672_v5 = vrot.slane %v6179_v48, 5  ;;  %2756 = vmatprep.mubr.bf16.mxu1 %v4725_v34  ;;  %5530 = vmatpush3.bf16.msra.mxu0 %v6119_v7  ;;  %v1675_v47 = vrot.slane %v6180_v28, 5  ;;  %v4710_v9 = vcombine.low %v7199_v14, %v7205_v32  ;;  %v4813_v63 = vrot.slane %v4797_v59, 9  ;;  %v6183_v59 = vld [vmem:[%s6471_s7 + $0x4c] sm:$0xf] }
  0xba   : > { %v650_v11 = vrot.slane %v649_v54, 4  ;;  %5531 = vmatprep.subr.bf16.mxu0 %v6121_v18  ;;  %5685 = vmatprep.mubr.bf16.mxu0 %v4859_v51  ;;  %v659_v12 = vor.u32 %v658_v0, %v654_v62  ;;  %v664_v52 = vrot.slane %v662_v57, 5  ;;  %v1679_v26 = vrot.slane %v6181_v20, 5  ;;  %v7287_v51 = vld [vmem:[%s6471_s7 + $0xb4] sm:$0xf]  ;;  %v6127_v54 = vld [vmem:[%s8415_s1 + $0x198] sm:$0xff]  }
  0xbb   : > { %v1673_v22 = vsel %vm6512_vm4, %v4812_v3, %v1672_v5  ;;  %v1674_v8 = vrot.slane %v1672_v5, 4  ;;  %2757 = vmatmul.mubr.bf16.gmra.mrb[64].mxu1 %v4709_v25  ;;  %v1682_v36 = vrot.slane %v6182_v31, 5  ;;  %v667_v37 = vshrl.u32 %v7241_v16, 16  ;;  %v6184_v0 = vld [vmem:[%s6471_s7 + $0x50] sm:$0x1] }
  0xbc   : > { %v655_v14 = vsel %vm6529_vm5, %v650_v11, %v654_v62  ;;  %v660_v33 = vrot.slane %v659_v12, 4  ;;  %v670_v35 = vshll.u32 %v7241_v16, 16  ;;  %v676_v42 = vshll.u32 %v7250_v4, 16  ;;  %v7296_v5 = vld [vmem:[%s6471_s7 + $0xb8] sm:$0xf] }
  0xbd   : > { %v1676_v39 = vsel %vm6512_vm4, %v1674_v8, %v1675_v47  ;;  %5532 = vmatpush3.bf16.msra.mxu0 %v6122_v61  ;;  %v1680_v44 = vsel %vm6512_vm4, %v4813_v63, %v1679_v26  ;;  %v1681_v45 = vrot.slane %v1679_v26, 4  ;;  %v669_v30 = vrot.slane %v667_v37, 4  ;;  %v6129_v63 = vld [vmem:[%s8415_s1 + $0x1e0] sm:$0xff]   ;;  %v6185_v12 = vld [vmem:[%s6471_s7 + $0x58] sm:$0xf] }
  0xbe   : > { %v4860_v25 = vcombine.low %v1673_v22, %v1676_v39  ;;  %v665_v46 = vsel %vm6529_vm5, %v660_v33, %v664_v52  ;;  %5533 = vmatprep.subr.bf16.mxu0 %v6124_v15  ;;  %v672_v13 = vrot.slane %v670_v35, 5  ;;  %v678_v7 = vrot.slane %v676_v42, 5  ;;  %v6186_v52 = vld [vmem:[%s6471_s7 + $0x5c] sm:$0x1] }
  0xbf   : > { %v680_v10 = vshrl.u32 %v7250_v4, 16  ;;  %v4726_v55 = vcombine.low %v655_v14, %v665_v46  ;;  %v1683_v2 = vsel %vm6512_vm4, %v1681_v45, %v1682_v36  ;;  %v686_v43 = vshll.u32 %v7258_v17, 16  ;;  %v7312_v31 = vld [vmem:[%s6471_s7 + $0xbc] sm:$0x1]  ;;  %v4800_v36 = vld [vmem:[%s6471_s7 + $0x60] sm:$0xe] }
  0xc0   : > { %v4814_v60 = vrot.slane %v4798_v38, 9  ;;  %5686 = vmatmul.mubr.bf16.gmra.mrb[68].mxu0 %v4860_v25  ;;  %v4861_v18 = vcombine.low %v1680_v44, %v1683_v2  ;;  %v673_v29 = vor.u32 %v672_v13, %v669_v30  ;;  %v1686_v34 = vrot.slane %v6183_v59, 5  ;;  %v6130_v38 = vld [vmem:[%s8415_s1 + $0x1a0] sm:$0xff]   ;;  %v6132_v25 = vld [vmem:[%s8415_s1 + $0x1e8] sm:$0xff]  }
  0xc1   : > { %v682_v56 = vrot.slane %v680_v10, 4  ;;  %2764 = vmatprep.mubr.bf16.mxu1 %v4726_v55  ;;  %5534 = vmatpush3.bf16.msra.mxu0 %v6125_v27  ;;  %v688_v62 = vrot.slane %v686_v43, 5  ;;  %v1689_v57 = vrot.slane %v6184_v0, 5  ;;  %v4711_v3 = vcombine.low %v7241_v16, %v7250_v4  ;;  %v714_v30 = vld [vmem:[%s6471_s7] sm:$0xe] }
  0xc2   : > { %v4815_v48 = vrot.slane %v4799_v58, 9  ;;  %5535 = vmatprep.subr.bf16.mxu0 %v6126_v53  ;;  %5689 = vmatprep.mubr.bf16.mxu0 %v4861_v18  ;;  %v674_v61 = vrot.slane %v673_v29, 4  ;;  %v1687_v28 = vsel %vm6512_vm4, %v4814_v60, %v1686_v34  ;;  %v1688_v47 = vrot.slane %v1686_v34, 4  ;;  %v6187_v2 = vld [vmem:[%s6471_s7 + $0x64] sm:$0xf]  ;;  %v6133_v18 = vld [vmem:[%s8415_s1 + $0x1a8] sm:$0xff]  }
  0xc3   : > { %v683_v11 = vor.u32 %v682_v56, %v678_v7  ;;  %2765 = vmatmul.mubr.bf16.gmra.mrb[68].mxu1 %v4710_v9  ;;  %v1693_v16 = vrot.slane %v6185_v12, 5  ;;  %v1696_v22 = vrot.slane %v6186_v52, 5  ;;  %v691_v8 = vshrl.u32 %v7287_v51, 16  ;;  %v7333_v60 = vld [vmem:[%s6471_s7 + $0x18] sm:$0xf] }
  0xc4   : > { %v694_v15 = vshll.u32 %v7287_v51, 16  ;;  %v679_v14 = vsel %vm6529_vm5, %v674_v61, %v678_v7  ;;  %v1690_v26 = vsel %vm6512_vm4, %v1688_v47, %v1689_v57  ;;  %v700_v9 = vshll.u32 %v7296_v5, 16  ;;  %v6188_v56 = vld [vmem:[%s6471_s7 + $0x68] sm:$0x1] }
  0xc5   : > { %v684_v20 = vrot.slane %v683_v11, 4  ;;  %5536 = vmatpush3.bf16.msra.mxu0 %v6127_v54  ;;  %v4862_v37 = vcombine.low %v1687_v28, %v1690_v26  ;;  %v1694_v33 = vsel %vm6512_vm4, %v4815_v48, %v1693_v16  ;;  %v1695_v39 = vrot.slane %v1693_v16, 4  ;;  %v6135_v11 = vld [vmem:[%s8415_s1 + $0x1f0] sm:$0xff]   ;;  %v6189_v28 = vld [vmem:[%s6471_s7 + $0x4] sm:$0xf] }
  0xc6   : > { %v693_v35 = vrot.slane %v691_v8, 4  ;;  %5537 = vmatprep.subr.bf16.mxu0 %v6129_v63  ;;  %v696_v27 = vrot.slane %v694_v15, 5  ;;  %v702_v44 = vrot.slane %v700_v9, 5  ;;  %v704_v45 = vshrl.u32 %v7296_v5, 16  ;;  %v6190_v47 = vld [vmem:[%s6471_s7 + $0x8] sm:$0x1] }
  0xc7   : > { %v689_v42 = vsel %vm6529_vm5, %v684_v20, %v688_v62  ;;  %v1697_v53 = vsel %vm6512_vm4, %v1695_v39, %v1696_v22  ;;  %v710_v13 = vshll.u32 %v7312_v31, 16  ;;  %v4816_v7 = vrot.slane %v4800_v36, 9  ;;  %v7342_v62 = vld [vmem:[%s6471_s7 + $0x1c] sm:$0xf]  ;;  %v7358_v15 = vld [vmem:[%s6471_s7 + $0x20] sm:$0x1] }
  0xc8   : > { %v4727_v46 = vcombine.low %v679_v14, %v689_v42  ;;  %5690 = vmatmul.mubr.bf16.gmra.mrb[72].mxu0 %v4862_v37  ;;  %v4863_v10 = vcombine.low %v1694_v33, %v1697_v53  ;;  %v697_v58 = vor.u32 %v696_v27, %v693_v35  ;;  %v706_v55 = vrot.slane %v704_v45, 4  ;;  %v715_v14 = vld [vmem:[%s6471_s7 + $0xc] sm:$0xe]  ;;  %v6136_v26 = vld [vmem:[%s8415_s1 + $0x1b0] sm:$0xff]   ;;  %v6137_v33 = vld [vmem:[%s8415_s1 + $0x1f8] sm:$0xff]  }
  0xc9   : > { %v1700_v43 = vrot.slane %v6187_v2, 5  ;;  %5538 = vmatpush3.bf16.msra.mxu0 %v6130_v38  ;;  %v712_v29 = vrot.slane %v710_v13, 5  ;;  %v1703_v59 = vrot.slane %v6188_v56, 5  ;;  %v4712_v34 = vcombine.low %v7287_v51, %v7296_v5 }
  0xca   : > { %2772 = vmatprep.mubr.bf16.mxu1 %v4727_v46  ;;  %v4681_v54 = vrot.slane %v714_v30, 9  ;;  %5539 = vmatprep.subr.bf16.mxu0 %v6132_v25  ;;  %v698_v0 = vrot.slane %v697_v58, 4  ;;  %v707_v57 = vor.u32 %v706_v55, %v702_v44  ;;  %v783_v51 = vrot.slane %v6189_v28, 5  ;;  %v716_v25 = vld [vmem:[%s6471_s7 + $0x18] sm:$0xe] }
  0xcb   : > { %5693 = vmatprep.mubr.bf16.mxu0 %v4863_v10  ;;  %v1701_v48 = vsel %vm6512_vm4, %v4816_v7, %v1700_v43  ;;  %v1702_v61 = vrot.slane %v1700_v43, 4  ;;  %2773 = vmatmul.mubr.bf16.gmra.mrb[72].mxu1 %v4711_v3  ;;  %v786_v63 = vrot.slane %v6190_v47, 5  ;;  %v3003_v12 = vshrl.u32 %v7333_v60, 16  ;;  %v6191_v7 = vld [vmem:[%s6471_s7 + $0x10] sm:$0xf]  ;;  %v6138_v55 = vld [vmem:[%s8415_s1 + $0x1b8] sm:$0xff]  }
  0xcc   : > { %v3006_v16 = vshll.u32 %v7333_v60, 16  ;;  %v703_v52 = vsel %vm6529_vm5, %v698_v0, %v702_v44  ;;  %v708_v22 = vrot.slane %v707_v57, 4  ;;  %v3012_v3 = vshll.u32 %v7342_v62, 16  ;;  %v7379_v58 = vld [vmem:[%s6471_s7 + $0x24] sm:$0xf] }
  0xcd   : > { %v1704_v8 = vsel %vm6512_vm4, %v1702_v61, %v1703_v59  ;;  %5540 = vmatpush3.bf16.msra.mxu0 %v6133_v18  ;;  %v784_v9 = vsel %vm6512_vm4, %v4681_v54, %v783_v51  ;;  %v785_v36 = vrot.slane %v783_v51, 4  ;;  %v3005_v37 = vrot.slane %v3003_v12, 4  ;;  %v7403_v12 = vld [vmem:[%s6471_s7 + $0x2c] sm:$0x1] }
  0xce   : > { %v4864_v20 = vcombine.low %v1701_v48, %v1704_v8  ;;  %v713_v38 = vsel %vm6529_vm5, %v708_v22, %v712_v29  ;;  %5541 = vmatprep.subr.bf16.mxu0 %v6135_v11  ;;  %v3008_v39 = vrot.slane %v3006_v16, 5  ;;  %v3014_v35 = vrot.slane %v3012_v3, 5  ;;  %v6192_v29 = vld [vmem:[%s6471_s7 + $0x1c] sm:$0xf]  ;;  %v7390_v48 = vld [vmem:[%s6471_s7 + $0x28] sm:$0xf] }
  0xcf   : > { %v3016_v42 = vshrl.u32 %v7342_v62, 16  ;;  %v4728_v27 = vcombine.low %v703_v52, %v713_v38  ;;  %v787_v44 = vsel %vm6512_vm4, %v785_v36, %v786_v63  ;;  %v3022_v45 = vshll.u32 %v7358_v15, 16 }
  0xd0   : > { %v4682_v30 = vrot.slane %v715_v14, 9  ;;  %5694 = vmatmul.mubr.bf16.gmra.mrb[76].mxu0 %v4864_v20  ;;  %v4729_v46 = vcombine.low %v784_v9, %v787_v44  ;;  %v3009_v53 = vor.u32 %v3008_v39, %v3005_v37  ;;  %v790_v10 = vrot.slane %v6191_v7, 5  ;;  %v717_v14 = vld [vmem:[%s6471_s7 + $0x24] sm:$0xe]  ;;  %v718_v9 = vld [vmem:[%s6471_s7 + $0x30] sm:$0xe] }
  0xd1   : > { %v3018_v13 = vrot.slane %v3016_v42, 4  ;;  %2780 = vmatprep.mubr.bf16.mxu1 %v4728_v27  ;;  %5542 = vmatpush3.bf16.msra.mxu0 %v6136_v26  ;;  %v3024_v2 = vrot.slane %v3022_v45, 5  ;;  %v5049_v43 = vcombine.low %v7333_v60, %v7342_v62  ;;  %v4683_v18 = vrot.slane %v716_v25, 9  ;;  %v6193_v60 = vld [vmem:[%s6471_s7 + $0x20] sm:$0x1] }
  0xd2   : > { %v797_v56 = vrot.slane %v6192_v29, 5  ;;  %5543 = vmatprep.subr.bf16.mxu0 %v6137_v33  ;;  %v3010_v59 = vrot.slane %v3009_v53, 4  ;;  %v791_v0 = vsel %vm6512_vm4, %v4682_v30, %v790_v10  ;;  %v792_v57 = vrot.slane %v790_v10, 4  ;;  %v6194_v25 = vld [vmem:[%s6471_s7 + $0x28] sm:$0xf] }
  0xd3   : > { %v3019_v54 = vor.u32 %v3018_v13, %v3014_v35  ;;  %2781 = vmatmul.mubr.bf16.gmra.mrb[76].mxu1 %v4712_v34  ;;  %v800_v28 = vrot.slane %v6193_v60, 5  ;;  %v3027_v51 = vshrl.u32 %v7379_v58, 16  ;;  %v3030_v16 = vshll.u32 %v7379_v58, 16  ;;  %v7418_v44 = vld [vmem:[%s6471_s7 + $0x30] sm:$0xf]  ;;  %v6142_v13 = vld [vmem:[%s8415_s1 + $0x208] sm:$0xff]  }
  0xd4   : > { %v798_v61 = vsel %vm6512_vm4, %v4683_v18, %v797_v56  ;;  %v799_v11 = vrot.slane %v797_v56, 4  ;;  %5729 = vmatprep.mubr.bf16.mxu1 %v4729_v46  ;;  %v3015_v47 = vsel %vm6529_vm5, %v3010_v59, %v3014_v35  ;;  %v794_v34 = vsel %vm6512_vm4, %v792_v57, %v793_v1  ;;  %v6195_v30 = vld [vmem:[%s6471_s7 + $0x2c] sm:$0x1]  ;;  %v7427_v10 = vld [vmem:[%s6471_s7 + $0x34] sm:$0xf] }
  0xd5   : > { %v3020_v63 = vrot.slane %v3019_v54, 4  ;;  %5544 = vmatpush3.bf16.msra.mxu0 %v6138_v55  ;;  %v4730_v52 = vcombine.low %v791_v0, %v794_v34  ;;  %v3029_v8 = vrot.slane %v3027_v51, 4  ;;  %v3036_v3 = vshll.u32 %v7390_v48, 16  ;;  %v6196_v56 = vld [vmem:[%s6471_s7 + $0x34] sm:$0xf] }
  0xd6   : > { %v801_v22 = vsel %vm6512_vm4, %v799_v11, %v800_v28  ;;  %v3032_v1 = vrot.slane %v3030_v16, 5  ;;  %v3040_v26 = vshrl.u32 %v7390_v48, 16  ;;  %v3046_v38 = vshll.u32 %v7403_v12, 16  ;;  %v7443_v28 = vld [vmem:[%s6471_s7 + $0x38] sm:$0x1] }
  0xd7   : > { %v3025_v21 = vsel %vm6529_vm5, %v3020_v63, %v3024_v2  ;;  %v4731_v20 = vcombine.low %v798_v61, %v801_v22  ;;  %v3038_v37 = vrot.slane %v3036_v3, 5  ;;  %v3462_v33 = vrot.slane %v7403_v12, 5  ;;  %v6144_v22 = vld [vmem:[%s8415_s1 + $0x210] sm:$0xff]  }
  0xd8   : > { %v5065_v36 = vcombine.low %v3015_v47, %v3025_v21  ;;  %v3033_v39 = vor.u32 %v3032_v1, %v3029_v8  ;;  %v3042_v35 = vrot.slane %v3040_v26, 4  ;;  %v4684_v42 = vrot.slane %v717_v14, 9  ;;  %v719_v47 = vld [vmem:[%s6471_s7 + $0x3c] sm:$0xe] }
  0xd9   : > { %v804_v27 = vrot.slane %v6194_v25, 5  ;;  %v3048_v45 = vrot.slane %v3046_v38, 5  ;;  %v807_v46 = vrot.slane %v6195_v30, 5  ;;  %v5050_v53 = vcombine.low %v7379_v58, %v7390_v48  ;;  %v6197_v58 = vld [vmem:[%s6471_s7 + $0x38] sm:$0x1] }
  0xda   : > { %3995 = vmatprep.mubr.bf16.mxu0 %v5065_v36  ;;  %v4685_v7 = vrot.slane %v718_v9, 9  ;;  %v3034_v55 = vrot.slane %v3033_v39, 4  ;;  %v3043_v2 = vor.u32 %v3042_v35, %v3038_v37  ;;  %v811_v59 = vrot.slane %v6196_v56, 5  ;;  %v6199_v35 = vld [vmem:[%s6471_s7 + $0x40] sm:$0xf] }
  0xdb   : > { %3996 = vmatmul.mubr.bf16.vlgmr.msra.gmra.mrb[80].mxu0 %v5049_v43  ;;  %v805_v18 = vsel %vm6512_vm4, %v4684_v42, %v804_v27  ;;  %v806_v29 = vrot.slane %v804_v27, 4  ;;  %5730 = vmatmul.mubr.bf16.vlgmr.msra.gmra.mrb[80].mxu1 %v4730_v52  ;;  %v814_v54 = vrot.slane %v6197_v58, 5  ;;  %v3051_v0 = vshrl.u32 %v7418_v44, 16  ;;  %v6198_v43 = vld [vmem:[%s8415_s1 + $0x200] sm:$0xff]   ;;  %v7461_v25 = vld [vmem:[%s6471_s7 + $0x3c] sm:$0xf] }
  0xdc   : > { %v3054_v57 = vshll.u32 %v7418_v44, 16  ;;  %5762 = vmatpush3.bf16.msra.mxu1 %v6198_v43  ;;  %5733 = vmatprep.mubr.bf16.mxu1 %v4731_v20  ;;  %v3039_v61 = vsel %vm6529_vm5, %v3034_v55, %v3038_v37  ;;  %v3044_v11 = vrot.slane %v3043_v2, 4  ;;  %v3060_v51 = vshll.u32 %v7427_v10, 16  ;;  %v720_v20 = vld [vmem:[%s6471_s7 + $0x48] sm:$0xe] }
  0xdd   : > { %v808_v60 = vsel %vm6512_vm4, %v806_v29, %v807_v46  ;;  %5763 = vmatprep.subr.bf16.mxu1 %v6142_v13  ;;  %v812_v34 = vsel %vm6512_vm4, %v4685_v7, %v811_v59  ;;  %v813_v16 = vrot.slane %v811_v59, 4  ;;  %v3053_v52 = vrot.slane %v3051_v0, 4  ;;  %v7467_v55 = vld [vmem:[%s6471_s7 + $0x40] sm:$0xf]  ;;  %v6201_v59 = vld [vmem:[%s6471_s7 + $0x4c] sm:$0xf] }
  0xde   : > { %v4732_v63 = vcombine.low %v805_v18, %v808_v60  ;;  %v3049_v8 = vsel %vm6529_vm5, %v3044_v11, %v3048_v45  ;;  %v3056_v3 = vrot.slane %v3054_v57, 5  ;;  %v3062_v14 = vrot.slane %v3060_v51, 5  ;;  %v6200_v45 = vld [vmem:[%s6471_s7 + $0x44] sm:$0x1]  ;;  %v6202_v58 = vld [vmem:[%s6471_s7 + $0x50] sm:$0x1] }
  0xdf   : > { %v3064_v21 = vshrl.u32 %v7427_v10, 16  ;;  %v5066_v1 = vcombine.low %v3039_v61, %v3049_v8  ;;  %v815_v26 = vsel %vm6512_vm4, %v813_v16, %v814_v54  ;;  %v3070_v9 = vshll.u32 %v7443_v28, 16  ;;  %v7483_v11 = vld [vmem:[%s6471_s7 + $0x44] sm:$0x1]  ;;  %v721_v51 = vld [vmem:[%s6471_s7 + $0x54] sm:$0xe] }
  0xe0   : > { %v4686_v36 = vrot.slane %v719_v47, 9  ;;  %5764 = vmatpush3.bf16.msra.mxu1 %v6142_v13  ;;  %v4733_v37 = vcombine.low %v812_v34, %v815_v26  ;;  %v3057_v38 = vor.u32 %v3056_v3, %v3053_v52  ;;  %v818_v42 = vrot.slane %v6199_v35, 5  ;;  %v6146_v13 = vld [vmem:[%s8415_s1 + $0x218] sm:$0xff]   ;;  %v6148_v52 = vld [vmem:[%s8415_s1 + $0x220] sm:$0xff]  }
  0xe1   : > { %v3066_v39 = vrot.slane %v3064_v21, 4  ;;  %4003 = vmatprep.mubr.bf16.mxu0 %v5066_v1  ;;  %v3072_v27 = vrot.slane %v3070_v9, 5  ;;  %v821_v30 = vrot.slane %v6200_v45, 5  ;;  %v5051_v46 = vcombine.low %v7418_v44, %v7427_v10  ;;  %5765 = vmatprep.subr.bf16.mxu1 %v6144_v22  ;;  %v722_v21 = vld [vmem:[%s6471_s7 + $0x60] sm:$0xe] }
  0xe2   : > { %v4687_v7 = vrot.slane %v720_v20, 9  ;;  %v3058_v2 = vrot.slane %v3057_v38, 4  ;;  %v819_v29 = vsel %vm6512_vm4, %v4686_v36, %v818_v42  ;;  %v820_v56 = vrot.slane %v818_v42, 4  ;;  %v7501_v42 = vld [vmem:[%s6471_s7 + $0x48] sm:$0xf] }
  0xe3   : > { %4004 = vmatmul.mubr.bf16.gmra.mrb[84].mxu0 %v5050_v53  ;;  %v3067_v18 = vor.u32 %v3066_v39, %v3062_v14  ;;  %5734 = vmatmul.mubr.bf16.gmra.mrb[84].mxu1 %v4732_v63  ;;  %v825_v44 = vrot.slane %v6201_v59, 5  ;;  %v828_v54 = vrot.slane %v6202_v58, 5  ;;  %v3075_v0 = vshrl.u32 %v7461_v25, 16  ;;  %v6203_v39 = vld [vmem:[%s6471_s7 + $0x58] sm:$0xf] }
  0xe4   : > { %v3078_v57 = vshll.u32 %v7461_v25, 16  ;;  %5737 = vmatprep.mubr.bf16.mxu1 %v4733_v37  ;;  %v3063_v53 = vsel %vm6529_vm5, %v3058_v2, %v3062_v14  ;;  %v822_v61 = vsel %vm6512_vm4, %v820_v56, %v821_v30  ;;  %5766 = vmatpush3.bf16.msra.mxu1 %v6144_v22  ;;  %v3084_v60 = vshll.u32 %v7467_v55, 16  ;;  %v6204_v45 = vld [vmem:[%s6471_s7 + $0x5c] sm:$0x1]  ;;  %v6205_v58 = vld [vmem:[%s6471_s7 + $0x64] sm:$0xf] }
  0xe5   : > { %v3068_v43 = vrot.slane %v3067_v18, 4  ;;  %v4734_v47 = vcombine.low %v819_v29, %v822_v61  ;;  %v826_v63 = vsel %vm6512_vm4, %v4687_v7, %v825_v44  ;;  %v827_v34 = vrot.slane %v825_v44, 4  ;;  %5767 = vmatprep.subr.bf16.mxu1 %v6146_v13  ;;  %v7507_v18 = vld [vmem:[%s6471_s7 + $0x4c] sm:$0xf] }
  0xe6   : > { %v3077_v16 = vrot.slane %v3075_v0, 4  ;;  %v3080_v8 = vrot.slane %v3078_v57, 5  ;;  %v3086_v3 = vrot.slane %v3084_v60, 5  ;;  %v3088_v14 = vshrl.u32 %v7467_v55, 16  ;;  %v6150_v29 = vld [vmem:[%s8415_s1 + $0x228] sm:$0xff]  }
  0xe7   : > { %v3073_v22 = vsel %vm6529_vm5, %v3068_v43, %v3072_v27  ;;  %v829_v1 = vsel %vm6512_vm4, %v827_v34, %v828_v54  ;;  %v3094_v26 = vshll.u32 %v7483_v11, 16  ;;  %v4688_v9 = vrot.slane %v721_v51, 9  ;;  %v6206_v54 = vld [vmem:[%s6471_s7 + $0x68] sm:$0x1]  ;;  %v7523_v60 = vld [vmem:[%s6471_s7 + $0x50] sm:$0x1] }
  0xe8   : > { %v5067_v20 = vcombine.low %v3063_v53, %v3073_v22  ;;  %v4735_v36 = vcombine.low %v826_v63, %v829_v1  ;;  %v3081_v37 = vor.u32 %v3080_v8, %v3077_v16  ;;  %v3090_v38 = vrot.slane %v3088_v14, 4  ;;  %5768 = vmatpush3.bf16.msra.mxu1 %v6146_v13  ;;  %v6152_v8 = vld [vmem:[%s8415_s1 + $0x230] sm:$0xff]  }
  0xe9   : > { %v832_v35 = vrot.slane %v6203_v39, 5  ;;  %v3096_v27 = vrot.slane %v3094_v26, 5  ;;  %v835_v30 = vrot.slane %v6204_v45, 5  ;;  %v5052_v7 = vcombine.low %v7461_v25, %v7467_v55  ;;  %5769 = vmatprep.subr.bf16.mxu1 %v6148_v52 }
  0xea   : > { %4011 = vmatprep.mubr.bf16.mxu0 %v5067_v20  ;;  %v4689_v2 = vrot.slane %v722_v21, 9  ;;  %v3082_v13 = vrot.slane %v3081_v37, 4  ;;  %v3091_v56 = vor.u32 %v3090_v38, %v3086_v3  ;;  %v839_v25 = vrot.slane %v6205_v58, 5  ;;  %v724_v20 = vld [vmem:[%s6471_s7 + $0x78] sm:$0xe] }
  0xeb   : > { %4012 = vmatmul.mubr.bf16.gmra.mrb[88].mxu0 %v5051_v46  ;;  %v833_v59 = vsel %vm6512_vm4, %v4688_v9, %v832_v35  ;;  %v834_v44 = vrot.slane %v832_v35, 4  ;;  %5738 = vmatmul.mubr.bf16.gmra.mrb[88].mxu1 %v4734_v47  ;;  %v842_v0 = vrot.slane %v6206_v54, 5  ;;  %v3099_v57 = vshrl.u32 %v7501_v42, 16  ;;  %v723_v47 = vld [vmem:[%s6471_s7 + $0x6c] sm:$0xe]  ;;  %v6154_v58 = vld [vmem:[%s8415_s1 + $0x238] sm:$0xff]  }
  0xec   : > { %v3102_v53 = vshll.u32 %v7501_v42, 16  ;;  %5741 = vmatprep.mubr.bf16.mxu1 %v4735_v36  ;;  %v3087_v46 = vsel %vm6529_vm5, %v3082_v13, %v3086_v3  ;;  %v3092_v43 = vrot.slane %v3091_v56, 4  ;;  %v3108_v51 = vshll.u32 %v7507_v18, 16  ;;  %5770 = vmatpush3.bf16.msra.mxu1 %v6148_v52  ;;  %v6207_v35 = vld [vmem:[%s6471_s7 + $0x70] sm:$0xf] }
  0xed   : > { %v836_v61 = vsel %vm6512_vm4, %v834_v44, %v835_v30  ;;  %v840_v34 = vsel %vm6512_vm4, %v4689_v2, %v839_v25  ;;  %v841_v16 = vrot.slane %v839_v25, 4  ;;  %v3101_v22 = vrot.slane %v3099_v57, 4  ;;  %5771 = vmatprep.subr.bf16.mxu1 %v6150_v29  ;;  %v6208_v2 = vld [vmem:[%s6471_s7 + $0x74] sm:$0x1]  ;;  %v7547_v44 = vld [vmem:[%s6471_s7 + $0x58] sm:$0xf] }
  0xee   : > { %v4736_v63 = vcombine.low %v833_v59, %v836_v61  ;;  %v3097_v3 = vsel %vm6529_vm5, %v3092_v43, %v3096_v27  ;;  %v3104_v14 = vrot.slane %v3102_v53, 5  ;;  %v3110_v21 = vrot.slane %v3108_v51, 5  ;;  %v7541_v27 = vld [vmem:[%s6471_s7 + $0x54] sm:$0xf]  ;;  %v6209_v57 = vld [vmem:[%s6471_s7 + $0x7c] sm:$0xf] }
  0xef   : > { %v3112_v52 = vshrl.u32 %v7507_v18, 16  ;;  %v5068_v1 = vcombine.low %v3087_v46, %v3097_v3  ;;  %v843_v26 = vsel %vm6512_vm4, %v841_v16, %v842_v0  ;;  %v3118_v9 = vshll.u32 %v7523_v60, 16 }
  0xf0   : > { %v4690_v36 = vrot.slane %v723_v47, 9  ;;  %v4737_v37 = vcombine.low %v840_v34, %v843_v26  ;;  %v3105_v38 = vor.u32 %v3104_v14, %v3101_v22  ;;  %v846_v45 = vrot.slane %v6207_v35, 5  ;;  %5772 = vmatpush3.bf16.msra.mxu1 %v6150_v29  ;;  %v7563_v47 = vld [vmem:[%s6471_s7 + $0x5c] sm:$0x1]  ;;  %v725_v34 = vld [vmem:[%s6471_s7 + $0x84] sm:$0xe] }
  0xf1   : > { %v3114_v39 = vrot.slane %v3112_v52, 4  ;;  %4019 = vmatprep.mubr.bf16.mxu0 %v5068_v1  ;;  %v3120_v30 = vrot.slane %v3118_v9, 5  ;;  %v849_v13 = vrot.slane %v6208_v2, 5  ;;  %v5053_v56 = vcombine.low %v7501_v42, %v7507_v18  ;;  %5773 = vmatprep.subr.bf16.mxu1 %v6152_v8  ;;  %v726_v1 = vld [vmem:[%s6471_s7 + $0x90] sm:$0xe] }
  0xf2   : > { %v4691_v59 = vrot.slane %v724_v20, 9  ;;  %v3106_v25 = vrot.slane %v3105_v38, 4  ;;  %v847_v54 = vsel %vm6512_vm4, %v4690_v36, %v846_v45  ;;  %v848_v0 = vrot.slane %v846_v45, 4  ;;  %v7578_v45 = vld [vmem:[%s6471_s7 + $0x60] sm:$0xf] }
  0xf3   : > { %4020 = vmatmul.mubr.bf16.gmra.mrb[92].mxu0 %v5052_v7  ;;  %v3115_v29 = vor.u32 %v3114_v39, %v3110_v21  ;;  %5742 = vmatmul.mubr.bf16.gmra.mrb[92].mxu1 %v4736_v63  ;;  %v853_v42 = vrot.slane %v6209_v57, 5  ;;  %v856_v53 = vrot.slane %v7116_v23, 5  ;;  %v3123_v46 = vshrl.u32 %v7541_v27, 16 }
  0xf4   : > { %v3126_v43 = vshll.u32 %v7541_v27, 16  ;;  %5745 = vmatprep.mubr.bf16.mxu1 %v4737_v37  ;;  %v3111_v7 = vsel %vm6529_vm5, %v3106_v25, %v3110_v21  ;;  %v850_v51 = vsel %vm6512_vm4, %v848_v0, %v849_v13  ;;  %v3132_v63 = vshll.u32 %v7547_v44, 16  ;;  %5774 = vmatpush3.bf16.msra.mxu1 %v6152_v8  ;;  %v7584_v25 = vld [vmem:[%s6471_s7 + $0x64] sm:$0xf] }
  0xf5   : > { %v3116_v61 = vrot.slane %v3115_v29, 4  ;;  %v4738_v23 = vcombine.low %v847_v54, %v850_v51  ;;  %v854_v16 = vsel %vm6512_vm4, %v4691_v59, %v853_v42  ;;  %v855_v22 = vrot.slane %v853_v42, 4  ;;  %5775 = vmatprep.subr.bf16.mxu1 %v6154_v58 }
  0xf6   : > { %v3125_v3 = vrot.slane %v3123_v46, 4  ;;  %v3128_v21 = vrot.slane %v3126_v43, 5  ;;  %v3134_v52 = vrot.slane %v3132_v63, 5  ;;  %v3136_v20 = vshrl.u32 %v7547_v44, 16  ;;  %v727_v63 = vld [vmem:[%s6471_s7 + $0x9c] sm:$0xe] }
  0xf7   : > { %v3121_v14 = vsel %vm6529_vm5, %v3116_v61, %v3120_v30  ;;  %v857_v8 = vsel %vm6512_vm4, %v855_v22, %v856_v53  ;;  %v3142_v9 = vshll.u32 %v7563_v47, 16  ;;  %v4692_v36 = vrot.slane %v725_v34, 9 }
  0xf8   : > { %v5069_v26 = vcombine.low %v3111_v7, %v3121_v14  ;;  %v4739_v37 = vcombine.low %v854_v16, %v857_v8  ;;  %v3129_v38 = vor.u32 %v3128_v21, %v3125_v3  ;;  %v3138_v39 = vrot.slane %v3136_v20, 4  ;;  %5776 = vmatpush3.bf16.msra.mxu1 %v6154_v58  ;;  %v7589_v58 = vld [vmem:[%s6471_s7 + $0x68] sm:$0x1] }
  0xf9   : > { %v860_v35 = vrot.slane %v7147_v6, 5  ;;  %v3144_v30 = vrot.slane %v3142_v9, 5  ;;  %v863_v2 = vrot.slane %v7155_v24, 5  ;;  %v5054_v13 = vcombine.low %v7541_v27, %v7547_v44 }
  0xfa   : > { %4027 = vmatprep.mubr.bf16.mxu0 %v5069_v26  ;;  %v4693_v59 = vrot.slane %v726_v1, 9  ;;  %v3130_v54 = vrot.slane %v3129_v38, 4  ;;  %v3139_v0 = vor.u32 %v3138_v39, %v3134_v52  ;;  %v867_v24 = vrot.slane %v7173_v49, 5  ;;  %v728_v38 = vld [vmem:[%s6471_s7 + $0xa8] sm:$0xe] }
  0xfb   : > { %4028 = vmatmul.mubr.bf16.gmra.mrb[96].mxu0 %v5053_v56  ;;  %v861_v6 = vsel %vm6512_vm4, %v4692_v36, %v860_v35  ;;  %v862_v57 = vrot.slane %v860_v35, 4  ;;  %5746 = vmatmul.mubr.bf16.gmra.mrb[0].mxu1 %v4738_v23  ;;  %v870_v27 = vrot.slane %v7179_v40, 5  ;;  %v3147_v53 = vshrl.u32 %v7578_v45, 16 }
  0xfc   : > { %v3150_v46 = vshll.u32 %v7578_v45, 16  ;;  %5749 = vmatprep.mubr.bf16.mxu1 %v4739_v37  ;;  %v3135_v43 = vsel %vm6529_vm5, %v3130_v54, %v3134_v52  ;;  %v3140_v7 = vrot.slane %v3139_v0, 4  ;;  %v3156_v51 = vshll.u32 %v7584_v25, 16 }
  0xfd   : > { %v864_v61 = vsel %vm6512_vm4, %v862_v57, %v863_v2  ;;  %v868_v40 = vsel %vm6512_vm4, %v4693_v59, %v867_v24  ;;  %v869_v23 = vrot.slane %v867_v24, 4  ;;  %v3149_v16 = vrot.slane %v3147_v53, 4  ;;  %v7617_v59 = vld [vmem:[%s6471_s7 + $0x6c] sm:$0xf] }
  0xfe   : > { %v4740_v49 = vcombine.low %v861_v6, %v864_v61  ;;  %v3145_v22 = vsel %vm6529_vm5, %v3140_v7, %v3144_v30  ;;  %v3152_v3 = vrot.slane %v3150_v46, 5  ;;  %v3158_v14 = vrot.slane %v3156_v51, 5  ;;  %v7633_v46 = vld [vmem:[%s6471_s7 + $0x74] sm:$0x1]  ;;  %v729_v51 = vld [vmem:[%s6471_s7 + $0xb4] sm:$0xe] }
  0xff   : > { %v3160_v21 = vshrl.u32 %v7584_v25, 16  ;;  %v5070_v52 = vcombine.low %v3135_v43, %v3145_v22  ;;  %v871_v20 = vsel %vm6512_vm4, %v869_v23, %v870_v27  ;;  %v3166_v1 = vshll.u32 %v7589_v58, 16 }
 0x100   : > { %v4694_v26 = vrot.slane %v727_v63, 9  ;;  %v4741_v8 = vcombine.low %v868_v40, %v871_v20  ;;  %v3153_v9 = vor.u32 %v3152_v3, %v3149_v16  ;;  %v874_v37 = vrot.slane %v7205_v32, 5 }
 0x101   : > { %v3162_v36 = vrot.slane %v3160_v21, 4  ;;  %4035 = vmatprep.mubr.bf16.mxu0 %v5070_v52  ;;  %v3168_v39 = vrot.slane %v3166_v1, 5  ;;  %v877_v35 = vrot.slane %v7218_v19, 5  ;;  %v5055_v30 = vcombine.low %v7578_v45, %v7584_v25 }
 0x102   : > { %v3154_v54 = vrot.slane %v3153_v9, 4  ;;  %v875_v32 = vsel %vm6512_vm4, %v4694_v26, %v874_v37  ;;  %v876_v6 = vrot.slane %v874_v37, 4  ;;  %v4695_v24 = vrot.slane %v728_v38, 9 }
 0x103   : > { %v5273_v29 = vpop.f32.mrb[0].mxu0  ;;  %4036 = vmatmul.mubr.bf16.gmra.mrb[100].mxu0 %v5054_v13  ;;  %v3163_v0 = vor.u32 %v3162_v36, %v3158_v14  ;;  %5750 = vmatmul.mubr.bf16.gmra.mrb[4].mxu1 %v4740_v49  ;;  %v881_v19 = vrot.slane %v7250_v4, 5  ;;  %v884_v45 = vrot.slane %v7258_v17, 5  ;;  %v3174_v61 = vshll.u32 %v7617_v59, 16 }
 0x104   : > { %v5274_v42 = vpop.f32.mrb[1].mxu0  ;;  %5753 = vmatprep.mubr.bf16.mxu1 %v4741_v8  ;;  %v3159_v13 = vsel %vm6529_vm5, %v3154_v54, %v3158_v14  ;;  %v878_v53 = vsel %vm6512_vm4, %v876_v6, %v877_v35  ;;  %v3190_v21 = vshll.u32 %v7633_v46, 16  ;;  %v4696_v26 = vrot.slane %v729_v51, 9  ;;  %v7648_v8 = vld [vmem:[%s6471_s7 + $0x78] sm:$0xf] }
 0x105   : > { %v5276_v56 = vpop.f32.mrb[2].mxu0  ;;  %v7614_v2 = vadd.f32 %v5274_v42, %v5273_v29  ;;  %v7626_v29 = vld [vmem:[%s6471_s7 + $0x70] sm:$0xf]  ;;  %v3164_v27 = vrot.slane %v3163_v0, 4  ;;  %v4742_v7 = vcombine.low %v875_v32, %v878_v53  ;;  %v882_v4 = vsel %vm6512_vm4, %v4695_v24, %v881_v19  ;;  %v7662_v6 = vld [vmem:[%s6471_s7 + $0x80] sm:$0x1] }
 0x106   : > { %v5277_v34 = vpop.f32.mrb[3].mxu0  ;;  %v883_v17 = vrot.slane %v881_v19, 4  ;;  %v3180_v40 = vshll.u32 %v7626_v29, 16  ;;  %v3184_v23 = vshrl.u32 %v7626_v29, 16  ;;  %v3176_v14 = vrot.slane %v3174_v61, 5 }
 0x107   : > { %v7621_v57 = vadd.f32 %v5277_v34, %v5276_v56  ;;  %v3171_v56 = vshrl.u32 %v7617_v59, 16  ;;  %v3169_v34 = vsel %vm6529_vm5, %v3164_v27, %v3168_v39  ;;  %v3192_v36 = vrot.slane %v3190_v21, 5  ;;  %v7653_v39 = vld [vmem:[%s6471_s7 + $0x7c] sm:$0xf] }
 0x108   : > { %v5071_v22 = vcombine.low %v3159_v13, %v3169_v34  ;;  %v885_v3 = vsel %vm6512_vm4, %v883_v17, %v884_v45  ;;  %v3182_v20 = vrot.slane %v3180_v40, 5  ;;  %v3186_v1 = vrot.slane %v3184_v23, 4  ;;  %v5017_v13 = vld [vmem:[%s6471_s7 + $0x18] sm:$0xe] }
 0x109   : > { %v3173_v49 = vrot.slane %v3171_v56, 4  ;;  %v4743_v52 = vcombine.low %v882_v4, %v885_v3  ;;  %v888_v37 = vrot.slane %v7296_v5, 5  ;;  %v891_v38 = vrot.slane %v7312_v31, 5 }
 0x10a   : > { %4043 = vmatprep.mubr.bf16.mxu0 %v5071_v22  ;;  %v3187_v35 = vor.u32 %v3186_v1, %v3182_v20  ;;  %v5056_v54 = vcombine.low %v7617_v59, %v7626_v29  ;;  %v3195_v19 = vshrl.u32 %v7648_v8, 16  ;;  %v3198_v45 = vshll.u32 %v7648_v8, 16  ;;  %v7684_v1 = vld [vmem:[%s6471_s7 + $0x84] sm:$0xf] }
 0x10b   : > { %v5279_v42 = vpop.f32.mrb[4].mxu0  ;;  %v3177_v9 = vor.u32 %v3176_v14, %v3173_v49  ;;  %4044 = vmatmul.mubr.bf16.gmra.mrb[104].mxu0 %v5055_v30  ;;  %5754 = vmatmul.mubr.bf16.gmra.mrb[8].mxu1 %v4742_v7  ;;  %v889_v5 = vsel %vm6512_vm4, %v4696_v26, %v888_v37  ;;  %v890_v31 = vrot.slane %v888_v37, 4  ;;  %v3204_v59 = vshll.u32 %v7653_v39, 16 }
 0x10c   : > { %v5280_v43 = vpop.f32.mrb[5].mxu0  ;;  %5757 = vmatprep.mubr.bf16.mxu1 %v4743_v52  ;;  %v3188_v30 = vrot.slane %v3187_v35, 4  ;;  %v3197_v56 = vrot.slane %v3195_v19, 4  ;;  %v3200_v61 = vrot.slane %v3198_v45, 5  ;;  %v3452_v14 = vrot.slane %v7342_v62, 5 }
 0x10d   : > { %v5282_v63 = vpop.f32.mrb[6].mxu0  ;;  %v7657_v0 = vadd.f32 %v5280_v43, %v5279_v42  ;;  %v3178_v24 = vrot.slane %v3177_v9, 4  ;;  %v3208_v42 = vshrl.u32 %v7653_v39, 16  ;;  %v892_v53 = vsel %vm6512_vm4, %v890_v31, %v891_v38  ;;  %v7690_v38 = vld [vmem:[%s6471_s7 + $0x88] sm:$0xf] }
 0x10e   : > { %v5283_v16 = vpop.f32.mrb[7].mxu0  ;;  %v3214_v43 = vshll.u32 %v7662_v6, 16  ;;  %v3193_v4 = vsel %vm6529_vm5, %v3188_v30, %v3192_v36  ;;  %v4744_v17 = vcombine.low %v889_v5, %v892_v53  ;;  %v3206_v51 = vrot.slane %v3204_v59, 5  ;;  %v7704_v30 = vld [vmem:[%s6471_s7 + $0x8c] sm:$0x1] }
 0x10f   : > { %v7659_v32 = vadd.f32 %v5283_v16, %v5282_v63  ;;  %v3183_v27 = vsel %vm6529_vm5, %v3178_v24, %v3182_v20  ;;  %v5018_v63 = vld [vmem:[%s6471_s7 + $0x24] sm:$0xe]  ;;  %v3210_v40 = vrot.slane %v3208_v42, 4  ;;  %v5033_v16 = vrot.slane %v5017_v13, 9  ;;  %v5019_v42 = vld [vmem:[%s6471_s7 + $0x30] sm:$0xe] }
 0x110   : > { %v5072_v49 = vcombine.low %v3183_v27, %v3193_v4  ;;  %v3216_v23 = vrot.slane %v3214_v43, 5  ;;  %v3201_v3 = vor.u32 %v3200_v61, %v3197_v56  ;;  %v3455_v21 = vrot.slane %v7358_v15, 5  ;;  %v5020_v43 = vld [vmem:[%s6471_s7 + $0x3c] sm:$0xe] }
 0x111   : > { %v5057_v52 = vcombine.low %v7648_v8, %v7653_v39  ;;  %v3211_v26 = vor.u32 %v3210_v40, %v3206_v51  ;;  %v5034_v9 = vrot.slane %v5018_v63, 9  ;;  %v3459_v36 = vrot.slane %v7390_v48, 5 }
 0x112   : > { %4051 = vmatprep.mubr.bf16.mxu0 %v5072_v49  ;;  %v3202_v62 = vrot.slane %v3201_v3, 4  ;;  %v3453_v15 = vsel %vm6512_vm4, %v5033_v16, %v3452_v14  ;;  %v3454_v8 = vrot.slane %v3452_v14, 4  ;;  %v3219_v31 = vshrl.u32 %v7684_v1, 16  ;;  %v7723_v3 = vld [vmem:[%s6471_s7 + $0x90] sm:$0xf] }
 0x113   : > { %4052 = vmatmul.mubr.bf16.gmra.mrb[108].mxu0 %v5056_v54  ;;  %5758 = vmatmul.mubr.bf16.gmra.mrb[12].mxu1 %v4744_v17  ;;  %v3212_v24 = vrot.slane %v3211_v26, 4  ;;  %v3460_v5 = vsel %vm6512_vm4, %v5034_v9, %v3459_v36  ;;  %v3461_v48 = vrot.slane %v3459_v36, 4  ;;  %v3222_v45 = vshll.u32 %v7684_v1, 16 }
 0x114   : > { %v5285_v7 = vpop.f32.mrb[8].mxu0  ;;  %v3207_v19 = vsel %vm6529_vm5, %v3202_v62, %v3206_v51  ;;  %v3456_v54 = vsel %vm6512_vm4, %v3454_v8, %v3455_v21  ;;  %v3228_v59 = vshll.u32 %v7690_v38, 16  ;;  %v3221_v56 = vrot.slane %v3219_v31, 4 }
 0x115   : > { %v5286_v34 = vpop.f32.mrb[9].mxu0  ;;  %v3217_v13 = vsel %vm6529_vm5, %v3212_v24, %v3216_v23  ;;  %v5081_v27 = vcombine.low %v3453_v15, %v3456_v54  ;;  %v3463_v53 = vsel %vm6512_vm4, %v3461_v48, %v3462_v33  ;;  %v3224_v17 = vrot.slane %v3222_v45, 5  ;;  %v7732_v15 = vld [vmem:[%s6471_s7 + $0x94] sm:$0xf]  ;;  %v7739_v48 = vld [vmem:[%s6471_s7 + $0x98] sm:$0x1] }
 0x116   : > { %v5288_v22 = vpop.f32.mrb[10].mxu0  ;;  %v7687_v37 = vadd.f32 %v5286_v34, %v5285_v7  ;;  %v5073_v7 = vcombine.low %v3207_v19, %v3217_v13  ;;  %v5082_v4 = vcombine.low %v3460_v5, %v3463_v53  ;;  %v3230_v61 = vrot.slane %v3228_v59, 5 }
 0x117   : > { %v5289_v20 = vpop.f32.mrb[11].mxu0  ;;  %5777 = vmatprep.mubr.bf16.mxu1 %v5081_v27  ;;  %v3232_v51 = vshrl.u32 %v7690_v38, 16  ;;  %v3238_v63 = vshll.u32 %v7704_v30, 16  ;;  %v5035_v34 = vrot.slane %v5019_v42, 9  ;;  %v3466_v49 = vrot.slane %v7427_v10, 5 }
 0x118   : > { %v7694_v35 = vadd.f32 %v5289_v20, %v5288_v22  ;;  %4059 = vmatprep.mubr.bf16.mxu0 %v5073_v7  ;;  %v3225_v12 = vor.u32 %v3224_v17, %v3221_v56  ;;  %v3469_v33 = vrot.slane %v7443_v28, 5  ;;  %v5058_v23 = vcombine.low %v7684_v1, %v7690_v38  ;;  %v5022_v7 = vld [vmem:[%s6471_s7 + $0x54] sm:$0xe] }
 0x119   : > { %v5036_v16 = vrot.slane %v5020_v43, 9  ;;  %v3234_v14 = vrot.slane %v3232_v51, 4  ;;  %v3240_v21 = vrot.slane %v3238_v63, 5  ;;  %v3467_v20 = vsel %vm6512_vm4, %v5035_v34, %v3466_v49 }
 0x11a   : > { %v3468_v10 = vrot.slane %v3466_v49, 4  ;;  %v3226_v9 = vrot.slane %v3225_v12, 4  ;;  %v3473_v28 = vrot.slane %v7467_v55, 5  ;;  %v3476_v36 = vrot.slane %v7483_v11, 5  ;;  %v5021_v55 = vld [vmem:[%s6471_s7 + $0x48] sm:$0xe] }
 0x11b   : > { %4060 = vmatmul.mubr.bf16.gmra.mrb[112].mxu0 %v5057_v52  ;;  %5778 = vmatmul.mubr.bf16.vlgmr.msra.gmra.mrb[80].mxu1 %v5082_v4  ;;  %v3235_v8 = vor.u32 %v3234_v14, %v3230_v61  ;;  %v3243_v52 = vshrl.u32 %v7723_v3, 16  ;;  %v3246_v42 = vshll.u32 %v7723_v3, 16  ;;  %v3252_v13 = vshll.u32 %v7732_v15, 16  ;;  %v7758_v12 = vld [vmem:[%s6471_s7 + $0x9c] sm:$0xf] }
 0x11c   : > { %v5291_v40 = vpop.f32.mrb[12].mxu0  ;;  %v3470_v24 = vsel %vm6512_vm4, %v3468_v10, %v3469_v33  ;;  %v3231_v11 = vsel %vm6529_vm5, %v3226_v9, %v3230_v61  ;;  %v3474_v19 = vsel %vm6512_vm4, %v5036_v16, %v3473_v28  ;;  %v3475_v54 = vrot.slane %v3473_v28, 4 }
 0x11d   : > { %v5292_v22 = vpop.f32.mrb[13].mxu0  ;;  %v5083_v31 = vcombine.low %v3467_v20, %v3470_v24  ;;  %v3236_v45 = vrot.slane %v3235_v8, 4  ;;  %v3245_v59 = vrot.slane %v3243_v52, 4  ;;  %v3256_v53 = vshrl.u32 %v7732_v15, 16 }
 0x11e   : > { %v5294_v26 = vpop.f32.mrb[14].mxu0  ;;  %v7729_v1 = vadd.f32 %v5292_v22, %v5291_v40  ;;  %v3477_v27 = vsel %vm6512_vm4, %v3475_v54, %v3476_v36  ;;  %v3262_v56 = vshll.u32 %v7739_v48, 16  ;;  %v5037_v43 = vrot.slane %v5021_v55, 9  ;;  %v7782_v54 = vld [vmem:[%s6471_s7 + $0xa4] sm:$0x1] }
 0x11f   : > { %v5295_v62 = vpop.f32.mrb[15].mxu0  ;;  %5781 = vmatprep.mubr.bf16.mxu1 %v5083_v31  ;;  %v3241_v4 = vsel %vm6529_vm5, %v3236_v45, %v3240_v21  ;;  %v5084_v17 = vcombine.low %v3474_v19, %v3477_v27  ;;  %v3248_v61 = vrot.slane %v3246_v42, 5  ;;  %v3254_v51 = vrot.slane %v3252_v13, 5 }
 0x120   : > { %v7736_v5 = vadd.f32 %v5295_v62, %v5294_v26  ;;  %v5074_v63 = vcombine.low %v3231_v11, %v3241_v4  ;;  %v3258_v34 = vrot.slane %v3256_v53, 4  ;;  %v3264_v49 = vrot.slane %v3262_v56, 5  ;;  %v7770_v62 = vld [vmem:[%s6471_s7 + $0xa0] sm:$0xf] }
 0x121   : > { %v3480_v40 = vrot.slane %v7507_v18, 5  ;;  %v3249_v33 = vor.u32 %v3248_v61, %v3245_v59  ;;  %v3483_v16 = vrot.slane %v7523_v60, 5  ;;  %v5059_v22 = vcombine.low %v7723_v3, %v7732_v15  ;;  %v5023_v59 = vld [vmem:[%s6471_s7 + $0x60] sm:$0xe] }
 0x122   : > { %v5038_v14 = vrot.slane %v5022_v7, 9  ;;  %4067 = vmatprep.mubr.bf16.mxu0 %v5074_v63  ;;  %v3259_v21 = vor.u32 %v3258_v34, %v3254_v51  ;;  %v3487_v9 = vrot.slane %v7547_v44, 5  ;;  %v3490_v60 = vrot.slane %v7563_v47, 5 }
 0x123   : > { %v3481_v10 = vsel %vm6512_vm4, %v5037_v43, %v3480_v40  ;;  %v3482_v26 = vrot.slane %v3480_v40, 4  ;;  %4068 = vmatmul.mubr.bf16.gmra.mrb[116].mxu0 %v5058_v23  ;;  %5782 = vmatmul.mubr.bf16.gmra.mrb[84].mxu1 %v5084_v17  ;;  %v3250_v28 = vrot.slane %v3249_v33, 4  ;;  %v3267_v8 = vshrl.u32 %v7758_v12, 16 }
 0x124   : > { %v5297_v20 = vpop.f32.mrb[16].mxu0  ;;  %v3260_v24 = vrot.slane %v3259_v21, 4  ;;  %v3488_v44 = vsel %vm6512_vm4, %v5038_v14, %v3487_v9  ;;  %v3489_v23 = vrot.slane %v3487_v9, 4  ;;  %v3270_v53 = vshll.u32 %v7758_v12, 16 }
 0x125   : > { %v5298_v18 = vpop.f32.mrb[17].mxu0  ;;  %v3484_v52 = vsel %vm6512_vm4, %v3482_v26, %v3483_v16  ;;  %v3255_v47 = vsel %vm6529_vm5, %v3250_v28, %v3254_v51  ;;  %v3269_v45 = vrot.slane %v3267_v8, 4  ;;  %v3276_v56 = vshll.u32 %v7770_v62, 16  ;;  %v5024_v51 = vld [vmem:[%s6471_s7 + $0x6c] sm:$0xe] }
 0x126   : > { %v7767_v36 = vadd.f32 %v5298_v18, %v5297_v20  ;;  %v5300_v3 = vpop.f32.mrb[18].mxu0  ;;  %v5085_v11 = vcombine.low %v3481_v10, %v3484_v52  ;;  %v5409_v31 = vpop.f32.mrb[16].mxu1  ;;  %v3265_v42 = vsel %vm6529_vm5, %v3260_v24, %v3264_v49  ;;  %v3491_v13 = vsel %vm6512_vm4, %v3489_v23, %v3490_v60  ;;  %v7801_v26 = vld [vmem:[%s6471_s7 + $0xa8] sm:$0xf] }
 0x127   : > { %v5301_v55 = vpop.f32.mrb[19].mxu0  ;;  %v5410_v27 = vpop.f32.mrb[17].mxu1  ;;  %v5075_v43 = vcombine.low %v3255_v47, %v3265_v42  ;;  %v5086_v7 = vcombine.low %v3488_v44, %v3491_v13  ;;  %v3280_v61 = vshrl.u32 %v7770_v62, 16  ;;  %v3272_v63 = vrot.slane %v3270_v53, 5  ;;  %v7812_v47 = vld [vmem:[%s6471_s7 + $0xac] sm:$0xf] }
 0x128   : > { %v7779_v19 = vadd.f32 %v5301_v55, %v5300_v3  ;;  %5785 = vmatprep.mubr.bf16.mxu1 %v5085_v11  ;;  %v7791_v4 = vadd.f32 %v5410_v27, %v5409_v31  ;;  %v5412_v17 = vpop.f32.mrb[18].mxu1  ;;  %v3278_v34 = vrot.slane %v3276_v56, 5  ;;  %v3286_v49 = vshll.u32 %v7782_v54, 16  ;;  %v5025_v53 = vld [vmem:[%s6471_s7 + $0x78] sm:$0xe] }
 0x129   : > { %v5039_v40 = vrot.slane %v5023_v59, 9  ;;  %v5413_v33 = vpop.f32.mrb[19].mxu1  ;;  %4075 = vmatprep.mubr.bf16.mxu0 %v5075_v43  ;;  %v3282_v16 = vrot.slane %v3280_v61, 4  ;;  %v3494_v14 = vrot.slane %v7584_v25, 5  ;;  %v3497_v20 = vrot.slane %v7589_v58, 5 }
 0x12a   : > { %v7798_v21 = vadd.f32 %v5413_v33, %v5412_v17  ;;  %v3273_v9 = vor.u32 %v3272_v63, %v3269_v45  ;;  %v3288_v18 = vrot.slane %v3286_v49, 5  ;;  %v5060_v28 = vcombine.low %v7758_v12, %v7770_v62  ;;  %v7820_v59 = vld [vmem:[%s6471_s7 + $0xb0] sm:$0x1]  ;;  %v5026_v33 = vld [vmem:[%s6471_s7 + $0x84] sm:$0xe] }
 0x12b   : > { %v5040_v60 = vrot.slane %v5024_v51, 9  ;;  %4076 = vmatmul.mubr.bf16.gmra.mrb[120].mxu0 %v5059_v22  ;;  %5786 = vmatmul.mubr.bf16.gmra.mrb[88].mxu1 %v5086_v7  ;;  %v3283_v8 = vor.u32 %v3282_v16, %v3278_v34  ;;  %v3495_v25 = vsel %vm6512_vm4, %v5039_v40, %v3494_v14  ;;  %v3496_v58 = vrot.slane %v3494_v14, 4 }
 0x12c   : > { %v5303_v10 = vpop.f32.mrb[20].mxu0  ;;  %v3501_v24 = vrot.slane %v7626_v29, 5  ;;  %v3274_v44 = vrot.slane %v3273_v9, 4  ;;  %v3504_v23 = vrot.slane %v7633_v46, 5  ;;  %v3291_v22 = vshrl.u32 %v7801_v26, 16 }
 0x12d   : > { %v5304_v3 = vpop.f32.mrb[21].mxu0  ;;  %v3284_v11 = vrot.slane %v3283_v8, 4  ;;  %v3498_v31 = vsel %vm6512_vm4, %v3496_v58, %v3497_v20  ;;  %v3294_v17 = vshll.u32 %v7801_v26, 16  ;;  %v3300_v61 = vshll.u32 %v7812_v47, 16 }
 0x12e   : > { %v5306_v52 = vpop.f32.mrb[22].mxu0  ;;  %v7809_v55 = vadd.f32 %v5304_v3, %v5303_v10  ;;  %v3502_v45 = vsel %vm6512_vm4, %v5040_v60, %v3501_v24  ;;  %v3503_v29 = vrot.slane %v3501_v24, 4  ;;  %v3279_v46 = vsel %vm6529_vm5, %v3274_v44, %v3278_v34 }
 0x12f   : > { %v5307_v12 = vpop.f32.mrb[23].mxu0  ;;  %v5087_v42 = vcombine.low %v3495_v25, %v3498_v31  ;;  %v3293_v27 = vrot.slane %v3291_v22, 4  ;;  %v3289_v56 = vsel %vm6529_vm5, %v3284_v11, %v3288_v18  ;;  %v3304_v49 = vshrl.u32 %v7812_v47, 16  ;;  %v7839_v18 = vld [vmem:[%s6471_s7 + $0xb4] sm:$0xf] }
 0x130   : > { %v7824_v13 = vadd.f32 %v5307_v12, %v5306_v52  ;;  %v3505_v43 = vsel %vm6512_vm4, %v3503_v29, %v3504_v23  ;;  %v5415_v7 = vpop.f32.mrb[20].mxu1  ;;  %v5076_v51 = vcombine.low %v3279_v46, %v3289_v56  ;;  %v3310_v40 = vshll.u32 %v7820_v59, 16 }
 0x131   : > { %5789 = vmatprep.mubr.bf16.mxu1 %v5087_v42  ;;  %v5088_v63 = vcombine.low %v3502_v45, %v3505_v43  ;;  %v5416_v34 = vpop.f32.mrb[21].mxu1  ;;  %v3296_v20 = vrot.slane %v3294_v17, 5  ;;  %v3302_v10 = vrot.slane %v3300_v61, 5  ;;  %v5041_v9 = vrot.slane %v5025_v53, 9  ;;  %v7854_v42 = vld [vmem:[%s6471_s7 + $0xb8] sm:$0xf] }
 0x132   : > { %v7836_v16 = vadd.f32 %v5416_v34, %v5415_v7  ;;  %v5418_v14 = vpop.f32.mrb[22].mxu1  ;;  %4083 = vmatprep.mubr.bf16.mxu0 %v5076_v51  ;;  %v3306_v60 = vrot.slane %v3304_v49, 4  ;;  %v3312_v3 = vrot.slane %v3310_v40, 5  ;;  %v3508_v8 = vrot.slane %v7653_v39, 5  ;;  %v7866_v51 = vld [vmem:[%s6471_s7 + $0xbc] sm:$0x1] }
 0x133   : > { %v3511_v25 = vrot.slane %v7662_v6, 5  ;;  %v5419_v58 = vpop.f32.mrb[23].mxu1  ;;  %4084 = vmatmul.mubr.bf16.gmra.mrb[124].mxu0 %v5060_v28  ;;  %5790 = vmatmul.mubr.bf16.gmra.mrb[92].mxu1 %v5088_v63  ;;  %v3297_v24 = vor.u32 %v3296_v20, %v3293_v27  ;;  %v5061_v44 = vcombine.low %v7801_v26, %v7812_v47  ;;  %v5042_v23 = vrot.slane %v5026_v33, 9  ;;  %v5027_v34 = vld [vmem:[%s6471_s7 + $0x90] sm:$0xe] }
 0x134   : > { %v7843_v52 = vadd.f32 %v5419_v58, %v5418_v14  ;;  %v5309_v12 = vpop.f32.mrb[24].mxu0  ;;  %v3307_v22 = vor.u32 %v3306_v60, %v3302_v10  ;;  %v3509_v11 = vsel %vm6512_vm4, %v5041_v9, %v3508_v8  ;;  %v3510_v31 = vrot.slane %v3508_v8, 4  ;;  %v5028_v58 = vld [vmem:[%s6471_s7 + $0x9c] sm:$0xe] }
 0x135   : > { %v3515_v39 = vrot.slane %v7690_v38, 5  ;;  %v5310_v6 = vpop.f32.mrb[25].mxu0  ;;  %v3298_v28 = vrot.slane %v3297_v24, 4  ;;  %v3518_v45 = vrot.slane %v7704_v30, 5  ;;  %v3315_v26 = vshrl.u32 %v7839_v18, 16 }
 0x136   : > { %v7851_v29 = vadd.f32 %v5310_v6, %v5309_v12  ;;  %v5312_v46 = vpop.f32.mrb[26].mxu0  ;;  %v3308_v27 = vrot.slane %v3307_v22, 4  ;;  %v3512_v53 = vsel %vm6512_vm4, %v3510_v31, %v3511_v25  ;;  %v3318_v14 = vshll.u32 %v7839_v18, 16 }
 0x137   : > { %v3516_v38 = vsel %vm6512_vm4, %v5042_v23, %v3515_v39  ;;  %v3517_v56 = vrot.slane %v3515_v39, 4  ;;  %v5313_v43 = vpop.f32.mrb[27].mxu0  ;;  %v3303_v30 = vsel %vm6529_vm5, %v3298_v28, %v3302_v10  ;;  %v5089_v7 = vcombine.low %v3509_v11, %v3512_v53  ;;  %v7885_v28 = vld [vmem:[%s6471_s7 + $0xc0] sm:$0xf] }
 0x138   : > { %v5421_v17 = vpop.f32.mrb[24].mxu1  ;;  %v7863_v61 = vadd.f32 %v5313_v43, %v5312_v46  ;;  %v3317_v63 = vrot.slane %v3315_v26, 4  ;;  %v3313_v49 = vsel %vm6529_vm5, %v3308_v27, %v3312_v3  ;;  %v3324_v20 = vshll.u32 %v7854_v42, 16 }
 0x139   : > { %v3519_v40 = vsel %vm6512_vm4, %v3517_v56, %v3518_v45  ;;  %v5422_v33 = vpop.f32.mrb[25].mxu1  ;;  %v5077_v10 = vcombine.low %v3303_v30, %v3313_v49  ;;  %5793 = vmatprep.mubr.bf16.mxu1 %v5089_v7  ;;  %v3328_v25 = vshrl.u32 %v7854_v42, 16  ;;  %v3320_v24 = vrot.slane %v3318_v14, 5  ;;  %v7904_v14 = vld [vmem:[%s6471_s7 + $0xc8] sm:$0x1] }
 0x13a   : > { %v5090_v9 = vcombine.low %v3516_v38, %v3519_v40  ;;  %v7875_v60 = vadd.f32 %v5422_v33, %v5421_v17  ;;  %v5424_v8 = vpop.f32.mrb[26].mxu1  ;;  %v3326_v3 = vrot.slane %v3324_v20, 5  ;;  %v3334_v23 = vshll.u32 %v7866_v51, 16 }
 0x13b   : > { %v5043_v12 = vrot.slane %v5027_v34, 9  ;;  %v5425_v22 = vpop.f32.mrb[27].mxu1  ;;  %4091 = vmatprep.mubr.bf16.mxu0 %v5077_v10  ;;  %v3330_v11 = vrot.slane %v3328_v25, 4  ;;  %v3522_v31 = vrot.slane %v7732_v15, 5  ;;  %v3525_v39 = vrot.slane %v7739_v48, 5 }
 0x13c   : > { %5794 = vmatmul.mubr.bf16.gmra.mrb[0].mxu1 %v5090_v9  ;;  %v7882_v6 = vadd.f32 %v5425_v22, %v5424_v8  ;;  %4092 = vmatmul.mubr.bf16.gmra.mrb[128].mxu0 %v5061_v44  ;;  %v3321_v45 = vor.u32 %v3320_v24, %v3317_v63  ;;  %v3336_v46 = vrot.slane %v3334_v23, 5  ;;  %v5062_v26 = vcombine.low %v7839_v18, %v7854_v42  ;;  %v5315_v53 = vpop.f32.mrb[28].mxu0  ;;  %v7896_v63 = vld [vmem:[%s6471_s7 + $0xc4] sm:$0xf]  ;;  %v5029_v8 = vld [vmem:[%s6471_s7 + $0xa8] sm:$0xe] }
 0x13d   : > { %v5044_v27 = vrot.slane %v5028_v58, 9  ;;  %v3331_v38 = vor.u32 %v3330_v11, %v3326_v3  ;;  %v3523_v15 = vsel %vm6512_vm4, %v5043_v12, %v3522_v31  ;;  %v3524_v56 = vrot.slane %v3522_v31, 4  ;;  %v5316_v43 = vpop.f32.mrb[29].mxu0 }
 0x13e   : > { %v3529_v48 = vrot.slane %v7770_v62, 5  ;;  %v3322_v30 = vrot.slane %v3321_v45, 4  ;;  %v3532_v44 = vrot.slane %v7782_v54, 5  ;;  %v7893_v7 = vadd.f32 %v5316_v43, %v5315_v53  ;;  %v5318_v17 = vpop.f32.mrb[30].mxu0  ;;  %v5030_v45 = vld [vmem:[%s6471_s7 + $0xb4] sm:$0xe] }
 0x13f   : > { %v3339_v18 = vshrl.u32 %v7885_v28, 16  ;;  %v3332_v34 = vrot.slane %v3331_v38, 4  ;;  %v3526_v49 = vsel %vm6512_vm4, %v3524_v56, %v3525_v39  ;;  %v5319_v33 = vpop.f32.mrb[31].mxu0  ;;  %v3342_v23 = vshll.u32 %v7885_v28, 16  ;;  %v7923_v56 = vld [vmem:[%s6471_s7 + $0xcc] sm:$0xf] }
 0x140   : > { %v3530_v40 = vsel %vm6512_vm4, %v5044_v27, %v3529_v48  ;;  %v3531_v62 = vrot.slane %v3529_v48, 4  ;;  %v3327_v54 = vsel %vm6529_vm5, %v3322_v30, %v3326_v3  ;;  %v5091_v20 = vcombine.low %v3523_v15, %v3526_v49 }
 0x141   : > { %v7908_v10 = vadd.f32 %v5319_v33, %v5318_v17  ;;  %v3341_v9 = vrot.slane %v3339_v18, 4  ;;  %v3337_v25 = vsel %vm6529_vm5, %v3332_v34, %v3336_v46  ;;  %v5427_v24 = vpop.f32.mrb[28].mxu1  ;;  %v3348_v12 = vshll.u32 %v7896_v63, 16 }
 0x142   : > { %v3533_v58 = vsel %vm6512_vm4, %v3531_v62, %v3532_v44  ;;  %v5078_v22 = vcombine.low %v3327_v54, %v3337_v25  ;;  %5797 = vmatprep.mubr.bf16.mxu1 %v5091_v20  ;;  %v5428_v11 = vpop.f32.mrb[29].mxu1  ;;  %v3352_v31 = vshrl.u32 %v7896_v63, 16  ;;  %v3358_v39 = vshll.u32 %v7904_v14, 16 }
 0x143   : > { %v5092_v3 = vcombine.low %v3530_v40, %v3533_v58  ;;  %v7920_v27 = vadd.f32 %v5428_v11, %v5427_v24  ;;  %v5430_v46 = vpop.f32.mrb[30].mxu1  ;;  %v3344_v53 = vrot.slane %v3342_v23, 5  ;;  %v3350_v38 = vrot.slane %v3348_v12, 5  ;;  %v7938_v24 = vld [vmem:[%s6471_s7 + $0xd0] sm:$0xf] }
 0x144   : > { %v5045_v15 = vrot.slane %v5029_v8, 9  ;;  %4099 = vmatprep.mubr.bf16.mxu0 %v5078_v22  ;;  %v3354_v48 = vrot.slane %v3352_v31, 4  ;;  %v3360_v43 = vrot.slane %v3358_v39, 5  ;;  %v3536_v30 = vrot.slane %v7812_v47, 5  ;;  %v5431_v17 = vpop.f32.mrb[31].mxu1  ;;  %v5321_v18 = vpop.f32.mrb[32].mxu0 }
 0x145   : > { %5798 = vmatmul.mubr.bf16.gmra.mrb[4].mxu1 %v5092_v3  ;;  %v3539_v44 = vrot.slane %v7820_v59, 5  ;;  %4100 = vmatmul.mubr.bf16.gmra.mrb[132].mxu0 %v5062_v26  ;;  %v3345_v34 = vor.u32 %v3344_v53, %v3341_v9  ;;  %v7927_v49 = vadd.f32 %v5431_v17, %v5430_v46  ;;  %v5063_v40 = vcombine.low %v7885_v28, %v7896_v63  ;;  %v5322_v33 = vpop.f32.mrb[33].mxu0  ;;  %v5016_v39 = vld [vmem:[%s6471_s7 + $0xd4] sm:$0x1]  ;;  %v5031_v46 = vld [vmem:[%s6471_s7 + $0xc0] sm:$0xe] }
 0x146   : > { %v5046_v62 = vrot.slane %v5030_v45, 9  ;;  %v3355_v54 = vor.u32 %v3354_v48, %v3350_v38  ;;  %v3537_v20 = vsel %vm6512_vm4, %v5045_v15, %v3536_v30  ;;  %v3538_v8 = vrot.slane %v3536_v30, 4  ;;  %v5324_v59 = vpop.f32.mrb[34].mxu0 }
 0x147   : > { %v3543_v47 = vrot.slane %v7854_v42, 5  ;;  %v3346_v25 = vrot.slane %v3345_v34, 4  ;;  %v3546_v26 = vrot.slane %v7866_v51, 5  ;;  %v7935_v9 = vadd.f32 %v5322_v33, %v5321_v18  ;;  %v5325_v58 = vpop.f32.mrb[35].mxu0  ;;  %v5032_v33 = vld [vmem:[%s6471_s7 + $0xcc] sm:$0xe] }
 0x148   : > { %v3363_v28 = vshrl.u32 %v7923_v56, 16  ;;  %v3356_v23 = vrot.slane %v3355_v54, 4  ;;  %v3540_v12 = vsel %vm6512_vm4, %v3538_v8, %v3539_v44  ;;  %v7947_v31 = vadd.f32 %v5325_v58, %v5324_v59  ;;  %s5176_s7 = sshll.u32 %s6439_s27, 7 }
 0x149   : > { %v3544_v42 = vsel %vm6512_vm4, %v5046_v62, %v3543_v47  ;;  %v3545_v22 = vrot.slane %v3543_v47, 4  ;;  %v3351_v3 = vsel %vm6529_vm5, %v3346_v25, %v3350_v38  ;;  %v5093_v11 = vcombine.low %v3537_v20, %v3540_v12  ;;  %v5433_v51 = vpop.f32.mrb[32].mxu1  ;;  %s8167_s13 = scalar_lea.vmem %s8418_s4, %s5176_s7  ;;  %s8360_s7 = scalar_lea.hbm %s8419_s5, %s5177_s25 }
 0x14a   : > { %v3365_v45 = vrot.slane %v3363_v28, 4  ;;  %v3361_v53 = vsel %vm6529_vm5, %v3356_v23, %v3360_v43  ;;  %v5434_v48 = vpop.f32.mrb[33].mxu1  ;;  %v3366_v30 = vshll.u32 %v7923_v56, 16  ;;  %v3372_v44 = vshll.u32 %v7938_v24, 16 }
 0x14b   : > { %v3547_v15 = vsel %vm6512_vm4, %v3545_v22, %v3546_v26  ;;  %v5079_v38 = vcombine.low %v3351_v3, %v3361_v53  ;;  %5801 = vmatprep.mubr.bf16.mxu1 %v5093_v11  ;;  %v7957_v18 = vadd.f32 %v5434_v48, %v5433_v51  ;;  %v5436_v34 = vpop.f32.mrb[34].mxu1  ;;  %v3376_v62 = vshrl.u32 %v7938_v24, 16 }
 0x14c   : > { %v5094_v17 = vcombine.low %v3544_v42, %v3547_v15  ;;  %v3368_v54 = vrot.slane %v3366_v30, 5  ;;  %v3374_v20 = vrot.slane %v3372_v44, 5  ;;  %v3382_v43 = vshll.u32 %v5016_v39, 16  ;;  %v5437_v47 = vpop.f32.mrb[35].mxu1  ;;  %v5327_v59 = vpop.f32.mrb[36].mxu0 }
 0x14d   : > { %v5047_v8 = vrot.slane %v5031_v46, 9  ;;  %4107 = vmatprep.mubr.bf16.mxu0 %v5079_v38  ;;  %v3378_v25 = vrot.slane %v3376_v62, 4  ;;  %v3550_v26 = vrot.slane %v7896_v63, 5  ;;  %v3553_v58 = vrot.slane %v7904_v14, 5  ;;  %v5328_v23 = vpop.f32.mrb[37].mxu0 }
 0x14e   : > { %5802 = vmatmul.mubr.bf16.gmra.mrb[8].mxu1 %v5094_v17  ;;  %v7963_v28 = vadd.f32 %v5437_v47, %v5436_v34  ;;  %4108 = vmatmul.mubr.bf16.gmra.mrb[136].mxu0 %v5063_v40  ;;  %v3369_v12 = vor.u32 %v3368_v54, %v3365_v45  ;;  %v3384_v42 = vrot.slane %v3382_v43, 5  ;;  %v5048_v22 = vrot.slane %v5032_v33, 9  ;;  %v5330_v3 = vpop.f32.mrb[38].mxu0 }
 0x14f   : > { %v3379_v11 = vor.u32 %v3378_v25, %v3374_v20  ;;  %v3551_v51 = vsel %vm6512_vm4, %v5047_v8, %v3550_v26  ;;  %v3552_v46 = vrot.slane %v3550_v26, 4  ;;  %v3557_v53 = vrot.slane %v7938_v24, 5  ;;  %v5331_v15 = vpop.f32.mrb[39].mxu0 }
 0x150   : > { %v3370_v48 = vrot.slane %v3369_v12, 4  ;;  %v3560_v63 = vrot.slane %v5016_v39, 5  ;;  %v7968_v30 = vadd.f32 %v5328_v23, %v5327_v59  ;;  %v7970_v14 = vadd.f32 %v5331_v15, %v5330_v3 }
 0x151   : > { %v3380_v44 = vrot.slane %v3379_v11, 4  ;;  %v3554_v40 = vsel %vm6512_vm4, %v3552_v46, %v3553_v58  ;;  %v3558_v45 = vsel %vm6512_vm4, %v5048_v22, %v3557_v53  ;;  %v3559_v38 = vrot.slane %v3557_v53, 4  ;;  %v5439_v17 = vpop.f32.mrb[36].mxu1 }
 0x152   : > { %v3375_v34 = vsel %vm6529_vm5, %v3370_v48, %v3374_v20  ;;  %v5095_v62 = vcombine.low %v3551_v51, %v3554_v40  ;;  %v5440_v33 = vpop.f32.mrb[37].mxu1  ;;  %v5064_v54 = vcombine.low %v7923_v56, %v7938_v24 }
 0x153   : > { %v3385_v39 = vsel %vm6529_vm5, %v3380_v44, %v3384_v42  ;;  %v3561_v43 = vsel %vm6512_vm4, %v3559_v38, %v3560_v63  ;;  %v7984_v8 = vadd.f32 %v5440_v33, %v5439_v17  ;;  %v5442_v47 = vpop.f32.mrb[38].mxu1 }
 0x154   : > { %v5080_v59 = vcombine.low %v3375_v34, %v3385_v39  ;;  %5805 = vmatprep.mubr.bf16.mxu1 %v5095_v62  ;;  %v5096_v25 = vcombine.low %v3558_v45, %v3561_v43  ;;  %v5443_v26 = vpop.f32.mrb[39].mxu1 }
 0x155   : > { %v7986_v58 = vadd.f32 %v5443_v26, %v5442_v47 }
 0x156   : > { %v5333_v20 = vpop.f32.mrb[40].mxu0  ;;  %4115 = vmatprep.mubr.bf16.mxu0 %v5080_v59  ;;  %5806 = vmatmul.mubr.bf16.gmra.mrb[12].mxu1 %v5096_v25 }
 0x157   : > { %v5334_v50 = vpop.f32.mrb[41].mxu0  ;;  %4116 = vmatmul.mubr.bf16.gmra.mrb[140].mxu0 %v5064_v54 }
 0x158   : > { %v5335_v23 = vadd.f32 %v5334_v50, %v5333_v20  ;;  %v5336_v12 = vpop.f32.mrb[42].mxu0 }
 0x159   : > { %v5337_v56 = vpop.f32.mrb[43].mxu0 }
 0x15a   : > { %v5338_v24 = vadd.f32 %v5337_v56, %v5336_v12  ;;  %v5445_v41 = vpop.f32.mrb[40].mxu1 }
 0x15b   : > { %v5446_v42 = vpop.f32.mrb[41].mxu1 }
 0x15c   : > { %v7988_v22 = vadd.f32 %v5446_v42, %v5445_v41  ;;  %v5448_v3 = vpop.f32.mrb[42].mxu1 }
 0x15d   : > { %v5449_v11 = vpop.f32.mrb[43].mxu1 }
 0x15e   : > { %v7990_v51 = vadd.f32 %v5449_v11, %v5448_v3  ;;  %v5339_v46 = vpop.f32.mrb[44].mxu0 }
 0x15f   : > { %v5340_v53 = vpop.f32.mrb[45].mxu0 }
 0x160   : > { %v7992_v15 = vadd.f32 %v5340_v53, %v5339_v46  ;;  %v5342_v48 = vpop.f32.mrb[46].mxu0 }
 0x161   : > { %v5343_v63 = vpop.f32.mrb[47].mxu0 }
 0x162   : > { %v5451_v44 = vpop.f32.mrb[44].mxu1  ;;  %v5344_v40 = vadd.f32 %v5343_v63, %v5342_v48 }
 0x163   : > { %v5452_v45 = vpop.f32.mrb[45].mxu1 }
 0x164   : > { %v7994_v38 = vadd.f32 %v5452_v45, %v5451_v44  ;;  %v5454_v17 = vpop.f32.mrb[46].mxu1 }
 0x165   : > { %v5455_v34 = vpop.f32.mrb[47].mxu1 }
 0x166   : > { %v7996_v62 = vadd.f32 %v5455_v34, %v5454_v17 }
 0x168   : > { %v5345_v33 = vpop.f32.mrb[48].mxu0 }
 0x169   : > { %v5346_v39 = vpop.f32.mrb[49].mxu0 }
 0x16a   : > { %v7998_v54 = vadd.f32 %v5346_v39, %v5345_v33  ;;  %v5348_v43 = vpop.f32.mrb[50].mxu0 }
 0x16b   : > { %v5349_v59 = vpop.f32.mrb[51].mxu0 }
 0x16c   : > { %v5457_v47 = vpop.f32.mrb[48].mxu1  ;;  %v8000_v26 = vadd.f32 %v5349_v59, %v5348_v43 }
 0x16d   : > { %v5458_v25 = vpop.f32.mrb[49].mxu1 }
 0x16e   : > { %v5459_v20 = vadd.f32 %v5458_v25, %v5457_v47  ;;  %v5460_v50 = vpop.f32.mrb[50].mxu1 }
 0x16f   : > { %v5461_v12 = vpop.f32.mrb[51].mxu1 }
 0x170   : > { %v8003_v56 = vadd.f32 %v5459_v20, %v7935_v9  ;;  %v5462_v41 = vadd.f32 %v5461_v12, %v5460_v50  ;;  %v5351_v42 = vpop.f32.mrb[52].mxu0 }
 0x171   : > { %v5352_v11 = vpop.f32.mrb[53].mxu0 }
 0x172   : > { %v8006_v3 = vadd.f32 %v5462_v41, %v7947_v31  ;;  %v8008_v46 = vadd.f32 %v5352_v11, %v5351_v42  ;;  %v5354_v53 = vpop.f32.mrb[54].mxu0 }
 0x173   : > { %v5355_v48 = vpop.f32.mrb[55].mxu0 }
 0x174   : > { %v5463_v63 = vpop.f32.mrb[52].mxu1  ;;  %v8010_v44 = vadd.f32 %v5355_v48, %v5354_v53 }
 0x175   : > { %v5464_v45 = vpop.f32.mrb[53].mxu1 }
 0x176   : > { %v5465_v17 = vadd.f32 %v5464_v45, %v5463_v63  ;;  %v5466_v34 = vpop.f32.mrb[54].mxu1 }
 0x177   : > { %v5467_v33 = vpop.f32.mrb[55].mxu1 }
 0x178   : > { %v8013_v9 = vadd.f32 %v5465_v17, %v7968_v30  ;;  %v5468_v39 = vadd.f32 %v5467_v33, %v5466_v34 }
 0x179   : > { %v5357_v43 = vpop.f32.mrb[56].mxu0 }
 0x17a   : > { %v8016_v31 = vadd.f32 %v5468_v39, %v7970_v14  ;;  %v5358_v47 = vpop.f32.mrb[57].mxu0 }
 0x17b   : > { %v8018_v59 = vadd.f32 %v5358_v47, %v5357_v43  ;;  %v5360_v25 = vpop.f32.mrb[58].mxu0 }
 0x17c   : > { %v5361_v20 = vpop.f32.mrb[59].mxu0 }
 0x17d   : > { %v8020_v50 = vadd.f32 %v5361_v20, %v5360_v25 }
 0x17e   : > { %v5469_v12 = vpop.f32.mrb[56].mxu1 }
 0x17f   : > { %v5470_v41 = vpop.f32.mrb[57].mxu1 }
 0x180   : > { %v5471_v42 = vadd.f32 %v5470_v41, %v5469_v12  ;;  %v5472_v11 = vpop.f32.mrb[58].mxu1 }
 0x181   : > { %v5473_v53 = vpop.f32.mrb[59].mxu1 }
 0x182   : > { %v8022_v48 = vadd.f32 %v5471_v42, %v5335_v23  ;;  %v5474_v30 = vadd.f32 %v5473_v53, %v5472_v11  ;;  %v5363_v63 = vpop.f32.mrb[60].mxu0 }
 0x183   : > { %v5364_v45 = vpop.f32.mrb[61].mxu0 }
 0x184   : > { %v8024_v17 = vadd.f32 %v5474_v30, %v5338_v24  ;;  %v8026_v14 = vadd.f32 %v5364_v45, %v5363_v63  ;;  %v5366_v34 = vpop.f32.mrb[62].mxu0 }
 0x185   : > { %v5367_v33 = vpop.f32.mrb[63].mxu0 }
 0x186   : > { %v5475_v39 = vpop.f32.mrb[60].mxu1  ;;  %v8028_v43 = vadd.f32 %v5367_v33, %v5366_v34 }
 0x187   : > { %v5476_v47 = vpop.f32.mrb[61].mxu1 }
 0x188   : > { %v5477_v25 = vadd.f32 %v5476_v47, %v5475_v39  ;;  %v5478_v20 = vpop.f32.mrb[62].mxu1 }
 0x189   : > { %v5479_v12 = vpop.f32.mrb[63].mxu1 }
 0x18a   : > { %v8031_v41 = vadd.f32 %v5477_v25, %v7992_v15  ;;  %v5480_v23 = vadd.f32 %v5479_v12, %v5478_v20 }
 0x18b   : > { %v5683_v42 = vpop.f32.mrb[64].mxu0 }
 0x18c   : > { %v8033_v11 = vadd.f32 %v5480_v23, %v5344_v40  ;;  %v2366_v24 = vadd.f32 %v5683_v42, %v7657_v0  ;;  %v2357_v53 = vpop.f32.mrb[65].mxu0 }
 0x18d   : > { %v2358_v30 = vadd.f32 %v7614_v2, %v2357_v53  ;;  %v5684_v63 = vpop.f32.mrb[66].mxu0 }
 0x18e   : > { %v8038_v45 = vadd.f32 %v7836_v16, %v2366_v24  ;;  %v5481_v34 = vpop.f32.mrb[64].mxu1  ;;  %v2369_v33 = vadd.f32 %v5684_v63, %v7659_v32  ;;  %v2360_v39 = vpop.f32.mrb[67].mxu0 }
 0x18f   : > { %v8042_v15 = vadd.f32 %v7791_v4, %v2358_v30  ;;  %v5482_v47 = vpop.f32.mrb[65].mxu1  ;;  %v2361_v40 = vadd.f32 %v7621_v57, %v2360_v39 }
 0x190   : > { %v5483_v25 = vadd.f32 %v5482_v47, %v5481_v34  ;;  %v8046_v0 = vadd.f32 %v7843_v52, %v2369_v33  ;;  %v5484_v20 = vpop.f32.mrb[66].mxu1 }
 0x191   : > { %v8049_v2 = vadd.f32 %v7798_v21, %v2361_v40  ;;  %v5485_v16 = vpop.f32.mrb[67].mxu1 }
 0x192   : > { %v8052_v12 = vadd.f32 %v5483_v25, %v7998_v54  ;;  %v5486_v32 = vadd.f32 %v5485_v16, %v5484_v20 }
 0x193   : > { %v5687_v23 = vpop.f32.mrb[68].mxu0 }
 0x194   : > { %v8055_v4 = vadd.f32 %v5486_v32, %v8000_v26  ;;  %v2382_v42 = vadd.f32 %v5687_v23, %v7729_v1  ;;  %v2373_v57 = vpop.f32.mrb[69].mxu0 }
 0x195   : > { %v2374_v24 = vadd.f32 %v7687_v37, %v2373_v57  ;;  %v5688_v52 = vpop.f32.mrb[70].mxu0 }
 0x196   : > { %v8060_v53 = vadd.f32 %v7920_v27, %v2382_v42  ;;  %v5487_v21 = vpop.f32.mrb[68].mxu1  ;;  %v2385_v30 = vadd.f32 %v5688_v52, %v7736_v5  ;;  %v2376_v63 = vpop.f32.mrb[71].mxu0 }
 0x197   : > { %v8064_v54 = vadd.f32 %v7875_v60, %v2374_v24  ;;  %v5488_v34 = vpop.f32.mrb[69].mxu1  ;;  %v2377_v26 = vadd.f32 %v7694_v35, %v2376_v63 }
 0x198   : > { %v5489_v33 = vadd.f32 %v5488_v34, %v5487_v21  ;;  %v8068_v1 = vadd.f32 %v7927_v49, %v2385_v30  ;;  %v5490_v39 = vpop.f32.mrb[70].mxu1 }
 0x199   : > { %v8071_v37 = vadd.f32 %v7882_v6, %v2377_v26  ;;  %v5491_v27 = vpop.f32.mrb[71].mxu1 }
 0x19a   : > { %v8074_v47 = vadd.f32 %v5489_v33, %v8008_v46  ;;  %v5492_v5 = vadd.f32 %v5491_v27, %v5490_v39 }
 0x19b   : > { %v5691_v40 = vpop.f32.mrb[72].mxu0 }
 0x19c   : > { %v8077_v60 = vadd.f32 %v5492_v5, %v8010_v44  ;;  %v2398_v25 = vadd.f32 %v5691_v40, %v7809_v55  ;;  %v2389_v35 = vpop.f32.mrb[73].mxu0 }
 0x19d   : > { %v2390_v20 = vadd.f32 %v7767_v36, %v2389_v35  ;;  %v5692_v49 = vpop.f32.mrb[74].mxu0 }
 0x19e   : > { %v8082_v16 = vadd.f32 %v7984_v8, %v2398_v25  ;;  %v5493_v6 = vpop.f32.mrb[72].mxu1  ;;  %v2401_v32 = vadd.f32 %v5692_v49, %v7824_v13  ;;  %v2392_v23 = vpop.f32.mrb[75].mxu0 }
 0x19f   : > { %v8086_v46 = vadd.f32 %v7957_v18, %v2390_v20  ;;  %v5494_v42 = vpop.f32.mrb[73].mxu1  ;;  %v2393_v44 = vadd.f32 %v7779_v19, %v2392_v23 }
 0x1a0   : > { %v5495_v57 = vadd.f32 %v5494_v42, %v5493_v6  ;;  %v8090_v55 = vadd.f32 %v7986_v58, %v2401_v32  ;;  %v5496_v24 = vpop.f32.mrb[74].mxu1 }
 0x1a1   : > { %v8093_v36 = vadd.f32 %v7963_v28, %v2393_v44  ;;  %v5497_v8 = vpop.f32.mrb[75].mxu1 }
 0x1a2   : > { %v8096_v52 = vadd.f32 %v5495_v57, %v8018_v59  ;;  %v5498_v13 = vadd.f32 %v5497_v8, %v5496_v24 }
 0x1a3   : > { %v5695_v21 = vpop.f32.mrb[76].mxu0 }
 0x1a4   : > { %v8099_v18 = vadd.f32 %v5498_v13, %v8020_v50  ;;  %v2414_v30 = vadd.f32 %v5695_v21, %v7893_v7  ;;  %v2405_v19 = vpop.f32.mrb[77].mxu0 }
 0x1a5   : > { %v2406_v63 = vadd.f32 %v7851_v29, %v2405_v19  ;;  %v5696_v58 = vpop.f32.mrb[78].mxu0 }
 0x1a6   : > { %v8104_v34 = vadd.f32 %v7994_v38, %v2414_v30  ;;  %v5499_v28 = vpop.f32.mrb[76].mxu1  ;;  %v2417_v26 = vadd.f32 %v5696_v58, %v7908_v10  ;;  %v2408_v33 = vpop.f32.mrb[79].mxu0 }
 0x1a7   : > { %v8108_v59 = vadd.f32 %v7988_v22, %v2406_v63  ;;  %v5500_v39 = vpop.f32.mrb[77].mxu1  ;;  %v2409_v50 = vadd.f32 %v7863_v61, %v2408_v33 }
 0x1a8   : > { %v5501_v27 = vadd.f32 %v5500_v39, %v5499_v28  ;;  %v8112_v7 = vadd.f32 %v7996_v62, %v2417_v26  ;;  %v5502_v5 = vpop.f32.mrb[78].mxu1 }
 0x1a9   : > { %v2714_v29 = vadd.f32 %v7990_v51, %v2409_v50  ;;  %v5503_v40 = vpop.f32.mrb[79].mxu1 }
 0x1aa   : > { %v8116_v38 = vadd.f32 %v5501_v27, %v8026_v14  ;;  %v5504_v25 = vadd.f32 %v5503_v40, %v5502_v5 }
 0x1ac   : > { %v8119_v10 = vadd.f32 %v5504_v25, %v8028_v43 }
 0x1ae   : > { %v5545_v22 = vpop.f32.mrb[80].mxu0 }
 0x1af   : > { %v5546_v35 = vpop.f32.mrb[81].mxu0 }
 0x1b0   : > { %v5547_v20 = vadd.f32 %v5546_v35, %v5545_v22  ;;  %v5548_v49 = vpop.f32.mrb[82].mxu0 }
 0x1b1   : > { %v5549_v61 = vpop.f32.mrb[83].mxu0 }
 0x1b2   : > { %v5550_v6 = vadd.f32 %v5549_v61, %v5548_v49  ;;  %v8122_v62 = vadd.f32 %v5547_v20, %v8042_v15 }
 0x1b4   : > { %v8125_v32 = vadd.f32 %v5550_v6, %v8049_v2 }
 0x1b6   : > { %v5551_v51 = vpop.f32.mrb[84].mxu0 }
 0x1b7   : > { %v5552_v23 = vpop.f32.mrb[85].mxu0 }
 0x1b8   : > { %v5553_v14 = vadd.f32 %v5552_v23, %v5551_v51  ;;  %v5554_v42 = vpop.f32.mrb[86].mxu0 }
 0x1b9   : > { %v5555_v44 = vpop.f32.mrb[87].mxu0 }
 0x1ba   : > { %v5556_v57 = vadd.f32 %v5555_v44, %v5554_v42  ;;  %v5827_v43 = vadd.f32 %v5553_v14, %v8038_v45 }
 0x1bc   : > { %v8129_v24 = vadd.f32 %v5556_v57, %v8046_v0 }
 0x1be   : > { %v5557_v8 = vpop.f32.mrb[88].mxu0 }
 0x1bf   : > { %v5558_v13 = vpop.f32.mrb[89].mxu0 }
 0x1c0   : > { %v5559_v21 = vadd.f32 %v5558_v13, %v5557_v8  ;;  %v5560_v30 = vpop.f32.mrb[90].mxu0 }
 0x1c1   : > { %v5561_v15 = vpop.f32.mrb[91].mxu0 }
 0x1c2   : > { %v5562_v19 = vadd.f32 %v5561_v15, %v5560_v30  ;;  %v8132_v2 = vadd.f32 %v5559_v21, %v8064_v54 }
 0x1c4   : > { %v8135_v63 = vadd.f32 %v5562_v19, %v8071_v37 }
 0x1c6   : > { %v5563_v58 = vpop.f32.mrb[92].mxu0 }
 0x1c7   : > { %v5564_v28 = vpop.f32.mrb[93].mxu0 }
 0x1c8   : > { %v5565_v26 = vadd.f32 %v5564_v28, %v5563_v58  ;;  %v5566_v33 = vpop.f32.mrb[94].mxu0  ;;  %v5242_v28 = vld [vmem:[%s8167_s13 + $0x8] sm:$0xff]  }
 0x1c9   : > { %v5567_v45 = vpop.f32.mrb[95].mxu0 }
 0x1ca   : > { %v5568_v39 = vadd.f32 %v5567_v45, %v5566_v33  ;;  %v8138_v0 = vadd.f32 %v5565_v26, %v8060_v53  ;;  %v8176_v33 = vld [vmem:[%s8416_s2] ss:$0 sm:$0xff] }
 0x1cc   : > { %v8141_v50 = vadd.f32 %v5568_v39, %v8068_v1 }
 0x1ce   : > { %v5569_v27 = vpop.f32.mrb[96].mxu0 }
 0x1cf   : > { %v5570_v5 = vpop.f32.mrb[97].mxu0 }
 0x1d0   : > { %v5571_v40 = vadd.f32 %v5570_v5, %v5569_v27  ;;  %v5572_v54 = vpop.f32.mrb[98].mxu0  ;;  %v5179_v5 = vld [vmem:[%s8167_s13] sm:$0xff]  }
 0x1d1   : > { %v5573_v25 = vpop.f32.mrb[99].mxu0 }
 0x1d2   : > { %v5574_v22 = vadd.f32 %v5573_v25, %v5572_v54  ;;  %v8144_v37 = vadd.f32 %v5571_v40, %v8086_v46  ;;  %v5184_v54 = vunpack.c.l.bf16 %v5242_v28 }
 0x1d4   : > { %v8147_v35 = vadd.f32 %v5574_v22, %v8093_v36 }
 0x1d6   : > { %v5575_v20 = vpop.f32.mrb[100].mxu0 }
 0x1d7   : > { %v5576_v49 = vpop.f32.mrb[101].mxu0 }
 0x1d8   : > { %v5577_v61 = vadd.f32 %v5576_v49, %v5575_v20  ;;  %v5578_v53 = vpop.f32.mrb[102].mxu0 }
 0x1d9   : > { %v5579_v6 = vpop.f32.mrb[103].mxu0 }
 0x1da   : > { %v5580_v1 = vadd.f32 %v5579_v6, %v5578_v53  ;;  %v8150_v51 = vadd.f32 %v5577_v61, %v8082_v16 }
 0x1dc   : > { %v8153_v23 = vadd.f32 %v5580_v1, %v8090_v55 }
 0x1de   : > { %v5581_v14 = vpop.f32.mrb[104].mxu0 }
 0x1df   : > { %v5582_v42 = vpop.f32.mrb[105].mxu0 }
 0x1e0   : > { %v5583_v46 = vadd.f32 %v5582_v42, %v5581_v14  ;;  %v5584_v44 = vpop.f32.mrb[106].mxu0  ;;  %v5180_v14 = vunpack.c.l.bf16 %v5179_v5 }
 0x1e1   : > { %v5585_v57 = vpop.f32.mrb[107].mxu0 }
 0x1e2   : > { %v5586_v36 = vadd.f32 %v5585_v57, %v5584_v44  ;;  %v8156_v8 = vadd.f32 %v5583_v46, %v8108_v59  ;;  %v5185_v44 = vunpack.c.h.bf16 %v5242_v28 }
 0x1e4   : > { %v8158_v13 = vadd.f32 %v5586_v36, %v2714_v29  ;;  %v5181_v36 = vunpack.c.h.bf16 %v5179_v5 }
 0x1e6   : > { %v5587_v21 = vpop.f32.mrb[108].mxu0 }
 0x1e7   : > { %v5588_v30 = vpop.f32.mrb[109].mxu0 }
 0x1e8   : > { %v5589_v15 = vadd.f32 %v5588_v30, %v5587_v21  ;;  %v5590_v19 = vpop.f32.mrb[110].mxu0  ;;  %v5244_v21 = vld [vmem:[%s8167_s13 + $0x18] sm:$0xff]  }
 0x1e9   : > { %v5591_v16 = vpop.f32.mrb[111].mxu0 }
 0x1ea   : > { %v5592_v55 = vadd.f32 %v5591_v16, %v5590_v19  ;;  %v8162_v58 = vadd.f32 %v5589_v15, %v8104_v34 }
 0x1ec   : > { %v8170_v59 = vadd.f32 %v5592_v55, %v8112_v7  ;;  %v8183_v7 = vld [vmem:[%s8417_s3] ss:$0 sm:$0xff] }
 0x1ee   : > { %v5593_v29 = vpop.f32.mrb[112].mxu0  ;;  %v5779_v26 = vpop.f32.mrb[80].mxu1 }
 0x1ef   : > { %v5594_v34 = vpop.f32.mrb[113].mxu0  ;;  %v5828_v45 = vadd.f32 %v5827_v43, %v5779_v26  ;;  %v4158_v27 = vpop.f32.mrb[81].mxu1 }
 0x1f0   : > { %v5595_v39 = vadd.f32 %v5594_v34, %v5593_v29  ;;  %v5596_v40 = vpop.f32.mrb[114].mxu0  ;;  %v5832_v25 = vadd.f32 %v8122_v62, %v4158_v27  ;;  %v5780_v22 = vpop.f32.mrb[82].mxu1  ;;  %v5243_v29 = vld [vmem:[%s8167_s13 + $0x10] sm:$0xff]   ;;  %v5192_v34 = vunpack.c.l.bf16 %v5244_v21 }
 0x1f1   : > { %v5597_v20 = vpop.f32.mrb[115].mxu0  ;;  %v4326_v49 = vmul.f32 %v5828_v45, %v8176_v33  ;;  %v5836_v43 = vadd.f32 %v8129_v24, %v5780_v22  ;;  %v4161_v53 = vpop.f32.mrb[83].mxu1 }
 0x1f2   : > { %v5598_v61 = vadd.f32 %v5597_v20, %v5596_v40  ;;  %v8189_v6 = vadd.f32 %v8003_v56, %v5595_v39  ;;  %v4324_v1 = vmul.f32 %v5832_v25, %v8176_v33  ;;  %v5840_v42 = vadd.f32 %v8125_v32, %v4161_v53 }
 0x1f3   : > { %v4365_v62 = vadd.f32 %v8183_v7, %v4326_v49  ;;  %v4327_v46 = vmul.f32 %v5836_v43, %v8176_v33  ;;  %v5188_v49 = vunpack.c.l.bf16 %v5243_v29 }
 0x1f4   : > { %v8198_v24 = vadd.f32 %v8006_v3, %v5598_v61  ;;  %v4363_v57 = vadd.f32 %v8183_v7, %v4324_v1  ;;  %v4325_v56 = vmul.f32 %v5840_v42, %v8176_v33 }
 0x1f5   : > { %v4461_v30 = vadd.f32 %v5184_v54, %v4365_v62  ;;  %v4366_v32 = vadd.f32 %v8183_v7, %v4327_v46 }
 0x1f6   : > { %v4459_v15 = vadd.f32 %v5180_v14, %v4363_v57  ;;  %v4364_v19 = vadd.f32 %v8183_v7, %v4325_v56  ;;  %v5599_v16 = vpop.f32.mrb[116].mxu0  ;;  %v5783_v55 = vpop.f32.mrb[84].mxu1 }
 0x1f7   : > { %v4493_v26 = vmax.f32 %v4461_v30, 0.0  ;;  %v4462_v28 = vadd.f32 %v5185_v44, %v4366_v32  ;;  %v5844_v3 = vadd.f32 %v8138_v0, %v5783_v55  ;;  %v5600_v45 = vpop.f32.mrb[117].mxu0  ;;  %v4174_v39 = vpop.f32.mrb[85].mxu1  ;;  %v5193_v44 = vunpack.c.h.bf16 %v5244_v21  ;;  %v5246_v30 = vld [vmem:[%s8167_s13 + $0x28] sm:$0xff]   ;;  %v5245_v55 = vld [vmem:[%s8167_s13 + $0x20] sm:$0xff]  }
 0x1f8   : > { %v4491_v27 = vmax.f32 %v4459_v15, 0.0  ;;  %v4460_v40 = vadd.f32 %v5181_v36, %v4364_v19  ;;  %v5601_v5 = vadd.f32 %v5600_v45, %v5599_v16  ;;  %v5848_v54 = vadd.f32 %v8132_v2, %v4174_v39  ;;  %v5602_v25 = vpop.f32.mrb[118].mxu0  ;;  %v5784_v22 = vpop.f32.mrb[86].mxu1 }
 0x1f9   : > { %4525 = vst [vmem:[%s8208_s24 + $0x10] sm:$0xff] %v4493_v26  ;;  %v4494_v20 = vmax.f32 %v4462_v28, 0.0  ;;  %v4330_v0 = vmul.f32 %v5844_v3, %v8176_v33  ;;  %v5852_v43 = vadd.f32 %v8141_v50, %v5784_v22  ;;  %v5603_v61 = vpop.f32.mrb[119].mxu0  ;;  %v4177_v53 = vpop.f32.mrb[87].mxu1  ;;  %v5189_v36 = vunpack.c.h.bf16 %v5243_v29 }
 0x1fa   : > { %4523 = vst [vmem:[%s8208_s24] sm:$0xff] %v4491_v27  ;;  %v4492_v2 = vmax.f32 %v4460_v40, 0.0  ;;  %v4328_v1 = vmul.f32 %v5848_v54, %v8176_v33  ;;  %v5604_v14 = vadd.f32 %v5603_v61, %v5602_v25  ;;  %v5856_v42 = vadd.f32 %v8135_v63, %v4177_v53 }
 0x1fb   : > { %4526 = vst [vmem:[%s8208_s24 + $0x18] sm:$0xff] %v4494_v20  ;;  %v4369_v62 = vadd.f32 %v8183_v7, %v4330_v0  ;;  %v4331_v46 = vmul.f32 %v5852_v43, %v8176_v33  ;;  %v8220_v57 = vadd.f32 %v8013_v9, %v5601_v5  ;;  %v5200_v45 = vunpack.c.l.bf16 %v5246_v30 }
 0x1fc   : > { %4524 = vst [vmem:[%s8208_s24 + $0x8] sm:$0xff] %v4492_v2  ;;  %v4367_v50 = vadd.f32 %v8183_v7, %v4328_v1  ;;  %v4329_v56 = vmul.f32 %v5856_v42, %v8176_v33  ;;  %v8227_v32 = vadd.f32 %v8016_v31, %v5604_v14  ;;  %v5196_v20 = vunpack.c.l.bf16 %v5245_v55 }
 0x1fd   : > { %v4465_v63 = vadd.f32 %v5192_v34, %v4369_v62  ;;  %v4370_v15 = vadd.f32 %v8183_v7, %v4331_v46  ;;  %v5201_v14 = vunpack.c.h.bf16 %v5246_v30  ;;  %v5197_v46 = vunpack.c.h.bf16 %v5245_v55 }
 0x1fe   : > { %v4463_v19 = vadd.f32 %v5188_v49, %v4367_v50  ;;  %v4368_v16 = vadd.f32 %v8183_v7, %v4329_v56  ;;  %v5605_v21 = vpop.f32.mrb[120].mxu0  ;;  %v5787_v9 = vpop.f32.mrb[88].mxu1 }
 0x1ff   : > { %v4497_v26 = vmax.f32 %v4465_v63, 0.0  ;;  %v4466_v28 = vadd.f32 %v5193_v44, %v4370_v15  ;;  %v5860_v3 = vadd.f32 %v8150_v51, %v5787_v9  ;;  %v5606_v29 = vpop.f32.mrb[121].mxu0  ;;  %v4190_v39 = vpop.f32.mrb[89].mxu1  ;;  %v5248_v44 = vld [vmem:[%s8167_s13 + $0x38] sm:$0xff]   ;;  %v5247_v15 = vld [vmem:[%s8167_s13 + $0x30] sm:$0xff]  }
 0x200   : > { %v4495_v31 = vmax.f32 %v4463_v19, 0.0  ;;  %v4464_v27 = vadd.f32 %v5189_v36, %v4368_v16  ;;  %v5607_v34 = vadd.f32 %v5606_v29, %v5605_v21  ;;  %v5864_v40 = vadd.f32 %v8144_v37, %v4190_v39  ;;  %v5608_v5 = vpop.f32.mrb[122].mxu0  ;;  %v5788_v54 = vpop.f32.mrb[90].mxu1 }
 0x201   : > { %4529 = vst [vmem:[%s8208_s24 + $0x30] sm:$0xff] %v4497_v26  ;;  %v4498_v25 = vmax.f32 %v4466_v28, 0.0  ;;  %v4334_v22 = vmul.f32 %v5860_v3, %v8176_v33  ;;  %v5868_v51 = vadd.f32 %v8153_v23, %v5788_v54  ;;  %v5609_v0 = vpop.f32.mrb[123].mxu0  ;;  %v4193_v49 = vpop.f32.mrb[91].mxu1  ;;  %v5208_v9 = vunpack.c.l.bf16 %v5248_v44 }
 0x202   : > { %4527 = vst [vmem:[%s8208_s24 + $0x20] sm:$0xff] %v4495_v31  ;;  %v4496_v43 = vmax.f32 %v4464_v27, 0.0  ;;  %v4332_v61 = vmul.f32 %v5864_v40, %v8176_v33  ;;  %v5610_v53 = vadd.f32 %v5609_v0, %v5608_v5  ;;  %v5872_v37 = vadd.f32 %v8147_v35, %v4193_v49 }
 0x203   : > { %4530 = vst [vmem:[%s8208_s24 + $0x38] sm:$0xff] %v4498_v25  ;;  %v4373_v2 = vadd.f32 %v8183_v7, %v4334_v22  ;;  %v4335_v1 = vmul.f32 %v5868_v51, %v8176_v33  ;;  %v8244_v42 = vadd.f32 %v8022_v48, %v5607_v34  ;;  %v5204_v34 = vunpack.c.l.bf16 %v5247_v15 }
 0x204   : > { %4528 = vst [vmem:[%s8208_s24 + $0x28] sm:$0xff] %v4496_v43  ;;  %v4371_v23 = vadd.f32 %v8183_v7, %v4332_v61  ;;  %v4333_v62 = vmul.f32 %v5872_v37, %v8176_v33  ;;  %v8251_v50 = vadd.f32 %v8024_v17, %v5610_v53  ;;  %v5209_v0 = vunpack.c.h.bf16 %v5248_v44  ;;  %v5250_v53 = vld [vmem:[%s8167_s13 + $0x48] sm:$0xff]  }
 0x205   : > { %v4469_v35 = vadd.f32 %v5200_v45, %v4373_v2  ;;  %v4374_v56 = vadd.f32 %v8183_v7, %v4335_v1  ;;  %v5205_v61 = vunpack.c.h.bf16 %v5247_v15  ;;  %v5249_v1 = vld [vmem:[%s8167_s13 + $0x40] sm:$0xff]  }
 0x206   : > { %v4467_v36 = vadd.f32 %v5196_v20, %v4371_v23  ;;  %v4372_v63 = vadd.f32 %v8183_v7, %v4333_v62  ;;  %v5611_v30 = vpop.f32.mrb[124].mxu0  ;;  %v5791_v48 = vpop.f32.mrb[92].mxu1  ;;  %v5212_v15 = vunpack.c.l.bf16 %v5249_v1 }
 0x207   : > { %v4501_v19 = vmax.f32 %v4469_v35, 0.0  ;;  %v4470_v16 = vadd.f32 %v5201_v14, %v4374_v56  ;;  %v5876_v21 = vadd.f32 %v8162_v58, %v5791_v48  ;;  %v5612_v55 = vpop.f32.mrb[125].mxu0  ;;  %v4206_v26 = vpop.f32.mrb[93].mxu1  ;;  %v5216_v56 = vunpack.c.l.bf16 %v5250_v53 }
 0x208   : > { %v4499_v17 = vmax.f32 %v4467_v36, 0.0  ;;  %v4468_v28 = vadd.f32 %v5197_v46, %v4372_v63  ;;  %v5613_v3 = vadd.f32 %v5612_v55, %v5611_v30  ;;  %v5880_v45 = vadd.f32 %v8156_v8, %v4206_v26  ;;  %v5614_v29 = vpop.f32.mrb[126].mxu0  ;;  %v5792_v39 = vpop.f32.mrb[94].mxu1 }
 0x209   : > { %4533 = vst [vmem:[%s8208_s24 + $0x50] sm:$0xff] %v4501_v19  ;;  %v4502_v31 = vmax.f32 %v4470_v16, 0.0  ;;  %v4338_v27 = vmul.f32 %v5876_v21, %v8176_v33  ;;  %v5884_v58 = vadd.f32 %v8170_v59, %v5792_v39  ;;  %v5615_v40 = vpop.f32.mrb[127].mxu0  ;;  %v4209_v5 = vpop.f32.mrb[95].mxu1 }
 0x20a   : > { %4531 = vst [vmem:[%s8208_s24 + $0x40] sm:$0xff] %v4499_v17  ;;  %v4500_v54 = vmax.f32 %v4468_v28, 0.0  ;;  %v4336_v25 = vmul.f32 %v5880_v45, %v8176_v33  ;;  %v5616_v22 = vadd.f32 %v5615_v40, %v5614_v29  ;;  %v5888_v8 = vadd.f32 %v8158_v13, %v4209_v5 }
 0x20b   : > { %4534 = vst [vmem:[%s8208_s24 + $0x58] sm:$0xff] %v4502_v31  ;;  %v4377_v20 = vadd.f32 %v8183_v7, %v4338_v27  ;;  %v4339_v51 = vmul.f32 %v5884_v58, %v8176_v33  ;;  %v5902_v49 = vadd.f32 %v8031_v41, %v5613_v3  ;;  %v5217_v3 = vunpack.c.h.bf16 %v5250_v53  ;;  %v5251_v53 = vld [vmem:[%s8167_s13 + $0x50] sm:$0xff]  }
 0x20c   : > { %4532 = vst [vmem:[%s8208_s24 + $0x48] sm:$0xff] %v4500_v54  ;;  %v4375_v59 = vadd.f32 %v8183_v7, %v4336_v25  ;;  %v4337_v43 = vmul.f32 %v5888_v8, %v8176_v33  ;;  %v8273_v37 = vadd.f32 %v8033_v11, %v5616_v22  ;;  %v5213_v58 = vunpack.c.h.bf16 %v5249_v1  ;;  %v5252_v22 = vld [vmem:[%s8167_s13 + $0x58] sm:$0xff]  }
 0x20d   : > { %v4473_v2 = vadd.f32 %v5208_v9, %v4377_v20  ;;  %v4378_v13 = vadd.f32 %v8183_v7, %v4339_v51 }
 0x20e   : > { %v4471_v14 = vadd.f32 %v5204_v34, %v4375_v59  ;;  %v4376_v23 = vadd.f32 %v8183_v7, %v4337_v43 }
 0x20f   : > { %v5795_v62 = vpop.f32.mrb[0].mxu1  ;;  %v4505_v41 = vmax.f32 %v4473_v2, 0.0  ;;  %v4474_v46 = vadd.f32 %v5209_v0, %v4378_v13  ;;  %v5617_v44 = vpop.f32.mrb[128].mxu0  ;;  %v5224_v13 = vunpack.c.l.bf16 %v5252_v22 }
 0x210   : > { %v5891_v35 = vadd.f32 %v8220_v57, %v5795_v62  ;;  %v4222_v36 = vpop.f32.mrb[1].mxu1  ;;  %v4503_v63 = vmax.f32 %v4471_v14, 0.0  ;;  %v4472_v11 = vadd.f32 %v5205_v61, %v4376_v23  ;;  %v5618_v30 = vpop.f32.mrb[129].mxu0 }
 0x211   : > { %v5894_v48 = vadd.f32 %v8189_v6, %v4222_v36  ;;  %v5796_v19 = vpop.f32.mrb[2].mxu1  ;;  %4537 = vst [vmem:[%s8208_s24 + $0x70] sm:$0xff] %v4505_v41  ;;  %v4506_v16 = vmax.f32 %v4474_v46, 0.0  ;;  %v5619_v9 = vadd.f32 %v5618_v30, %v5617_v44  ;;  %v5620_v55 = vpop.f32.mrb[130].mxu0  ;;  %v5225_v36 = vunpack.c.h.bf16 %v5252_v22 }
 0x212   : > { %v4342_v21 = vmul.f32 %v5891_v35, %v8176_v33  ;;  %v5897_v57 = vadd.f32 %v8227_v32, %v5796_v19  ;;  %v4225_v26 = vpop.f32.mrb[3].mxu1  ;;  %4535 = vst [vmem:[%s8208_s24 + $0x60] sm:$0xff] %v4503_v63  ;;  %v4504_v17 = vmax.f32 %v4472_v11, 0.0  ;;  %v5621_v45 = vpop.f32.mrb[131].mxu0 }
 0x213   : > { %v4340_v28 = vmul.f32 %v5894_v48, %v8176_v33  ;;  %v5900_v6 = vadd.f32 %v8198_v24, %v4225_v26  ;;  %4538 = vst [vmem:[%s8208_s24 + $0x78] sm:$0xff] %v4506_v16  ;;  %v5622_v31 = vadd.f32 %v5621_v45, %v5620_v55  ;;  %v8290_v27 = vadd.f32 %v8052_v12, %v5619_v9  ;;  %v5254_v26 = vld [vmem:[%s8167_s13 + $0x68] sm:$0xff]  }
 0x214   : > { %v4381_v29 = vadd.f32 %v8183_v7, %v4342_v21  ;;  %v4343_v39 = vmul.f32 %v5897_v57, %v8176_v33  ;;  %4536 = vst [vmem:[%s8208_s24 + $0x68] sm:$0xff] %v4504_v17  ;;  %v5221_v16 = vunpack.c.h.bf16 %v5251_v53 }
 0x215   : > { %v4379_v32 = vadd.f32 %v8183_v7, %v4340_v28  ;;  %v4341_v34 = vmul.f32 %v5900_v6, %v8176_v33  ;;  %v8297_v5 = vadd.f32 %v8055_v4, %v5622_v31  ;;  %v5253_v31 = vld [vmem:[%s8167_s13 + $0x60] sm:$0xff]  }
 0x216   : > { %v4477_v40 = vadd.f32 %v5216_v56, %v4381_v29  ;;  %v4382_v24 = vadd.f32 %v8183_v7, %v4343_v39  ;;  %v5220_v56 = vunpack.c.l.bf16 %v5251_v53 }
 0x217   : > { %v4475_v54 = vadd.f32 %v5212_v15, %v4379_v32  ;;  %v4380_v25 = vadd.f32 %v8183_v7, %v4341_v34  ;;  %v5232_v34 = vunpack.c.l.bf16 %v5254_v26 }
 0x218   : > { %v4509_v12 = vmax.f32 %v4477_v40, 0.0  ;;  %v4478_v8 = vadd.f32 %v5217_v3, %v4382_v24  ;;  %v5799_v20 = vpop.f32.mrb[4].mxu1  ;;  %v5623_v59 = vpop.f32.mrb[132].mxu0 }
 0x219   : > { %v4507_v51 = vmax.f32 %v4475_v54, 0.0  ;;  %v4476_v0 = vadd.f32 %v5213_v58, %v4380_v25  ;;  %v5903_v43 = vadd.f32 %v5902_v49, %v5799_v20  ;;  %v4238_v61 = vpop.f32.mrb[5].mxu1  ;;  %v5624_v4 = vpop.f32.mrb[133].mxu0 }
 0x21a   : > { %4541 = vst [vmem:[%s8208_s24 + $0x90] sm:$0xff] %v4509_v12  ;;  %v4510_v2 = vmax.f32 %v4478_v8, 0.0  ;;  %v5906_v1 = vadd.f32 %v8244_v42, %v4238_v61  ;;  %v5800_v14 = vpop.f32.mrb[6].mxu1  ;;  %v5625_v41 = vadd.f32 %v5624_v4, %v5623_v59  ;;  %v5626_v46 = vpop.f32.mrb[134].mxu0 }
 0x21b   : > { %4539 = vst [vmem:[%s8208_s24 + $0x80] sm:$0xff] %v4507_v51  ;;  %v4508_v23 = vmax.f32 %v4476_v0, 0.0  ;;  %v4346_v62 = vmul.f32 %v5903_v43, %v8176_v33  ;;  %v5909_v44 = vadd.f32 %v8273_v37, %v5800_v14  ;;  %v4241_v49 = vpop.f32.mrb[7].mxu1  ;;  %v5627_v63 = vpop.f32.mrb[135].mxu0  ;;  %v5228_v51 = vunpack.c.l.bf16 %v5253_v31 }
 0x21c   : > { %4542 = vst [vmem:[%s8208_s24 + $0x98] sm:$0xff] %v4510_v2  ;;  %v4344_v35 = vmul.f32 %v5906_v1, %v8176_v33  ;;  %v5912_v11 = vadd.f32 %v8251_v50, %v4241_v49  ;;  %v5628_v48 = vadd.f32 %v5627_v63, %v5626_v46  ;;  %v5914_v15 = vadd.f32 %v8074_v47, %v5625_v41  ;;  %v5255_v63 = vld [vmem:[%s8167_s13 + $0x70] sm:$0xff]  }
 0x21d   : > { %4540 = vst [vmem:[%s8208_s24 + $0x88] sm:$0xff] %v4508_v23  ;;  %v4385_v42 = vadd.f32 %v8183_v7, %v4346_v62  ;;  %v4347_v30 = vmul.f32 %v5909_v44, %v8176_v33  ;;  %v5233_v0 = vunpack.c.h.bf16 %v5254_v26  ;;  %v5229_v1 = vunpack.c.h.bf16 %v5253_v31  ;;  %v5256_v26 = vld [vmem:[%s8167_s13 + $0x78] sm:$0xff]   ;;  %s6214_s13 = sshll.u32 %s6290_s11, 4  ;;  %s6215_s13 = int_to_ptr.vmem [resolvable:$false] %s6214_s13 }
 0x21e   : > { %v4383_v37 = vadd.f32 %v8183_v7, %v4344_v35  ;;  %v4345_v19 = vmul.f32 %v5912_v11, %v8176_v33  ;;  %v5920_v50 = vadd.f32 %v8077_v60, %v5628_v48  ;;  %s6216_s27 = scalar_lea.vmem %s6215_s13, 8192  ;;  %p6217_p1 = scmp.lt.s32.totalorder %s8362_s29, %s6215_s13 }
 0x21f   : > { %v4481_v21 = vadd.f32 %v5224_v13, %v4385_v42  ;;  %v4386_v9 = vadd.f32 %v8183_v7, %v4347_v30  ;;  %p6218_p2 = scmp.lt.s32.totalorder %s6216_s27, %s6210_s21 }
 0x220   : > { %v4479_v55 = vadd.f32 %v5220_v56, %v4383_v37  ;;  %v4384_v57 = vadd.f32 %v8183_v7, %v4345_v19 }
 0x221   : > { %v4513_v17 = vmax.f32 %v4481_v21, 0.0  ;;  %v4482_v28 = vadd.f32 %v5225_v36, %v4386_v9  ;;  %v5803_v47 = vpop.f32.mrb[8].mxu1  ;;  %v5629_v6 = vpop.f32.mrb[136].mxu0  ;;  %v5236_v21 = vunpack.c.l.bf16 %v5255_v63  ;;  %p6219_p3 = por %p6218_p2, %p6217_p1 }
 0x222   : > { %v4511_v3 = vmax.f32 %v4479_v55, 0.0  ;;  %v4480_v45 = vadd.f32 %v5221_v16, %v4384_v57  ;;  %v5915_v29 = vadd.f32 %v5914_v15, %v5803_v47  ;;  %v4254_v39 = vpop.f32.mrb[9].mxu1  ;;  %v5630_v58 = vpop.f32.mrb[137].mxu0  ;;  %v5237_v47 = vunpack.c.h.bf16 %v5255_v63 }
 0x223   : > { %4545 = vst [vmem:[%s8208_s24 + $0xb0] sm:$0xff] %v4513_v17  ;;  %v4514_v32 = vmax.f32 %v4482_v28, 0.0  ;;  %v5918_v60 = vadd.f32 %v8290_v27, %v4254_v39  ;;  %v5804_v40 = vpop.f32.mrb[10].mxu1  ;;  %v5631_v25 = vadd.f32 %v5630_v58, %v5629_v6  ;;  %v5632_v22 = vpop.f32.mrb[138].mxu0  ;;  %p6220_p5 = pnand %p6219_p3, %p6213_p0 }
 0x224   : > { %4543 = vst [vmem:[%s8208_s24 + $0xa0] sm:$0xff] %v4511_v3  ;;  %v4512_v24 = vmax.f32 %v4480_v45, 0.0  ;;  %v4350_v54 = vmul.f32 %v5915_v29, %v8176_v33  ;;  %v5921_v12 = vadd.f32 %v5920_v50, %v5804_v40  ;;  %v4257_v8 = vpop.f32.mrb[11].mxu1  ;;  %v5633_v59 = vpop.f32.mrb[139].mxu0  ;;  %v5241_v40 = vunpack.c.h.bf16 %v5256_v26 }
 0x225   : > { %4546 = vst [vmem:[%s8208_s24 + $0xb8] sm:$0xff] %v4514_v32  ;;  %v4348_v20 = vmul.f32 %v5918_v60, %v8176_v33  ;;  %v5924_v43 = vadd.f32 %v8297_v5, %v4257_v8  ;;  %v5634_v53 = vadd.f32 %v5633_v59, %v5632_v22  ;;  %v5929_v2 = vadd.f32 %v8096_v52, %v5631_v25 }
 0x226   : > { %4544 = vst [vmem:[%s8208_s24 + $0xa8] sm:$0xff] %v4512_v24  ;;  %v4389_v27 = vadd.f32 %v8183_v7, %v4350_v54  ;;  %v4351_v61 = vmul.f32 %v5921_v12, %v8176_v33 }
 0x227   : > { %v4387_v13 = vadd.f32 %v8183_v7, %v4348_v20  ;;  %v4349_v4 = vmul.f32 %v5924_v43, %v8176_v33  ;;  %v5935_v5 = vadd.f32 %v8099_v18, %v5634_v53 }
 0x228   : > { %v4485_v14 = vadd.f32 %v5232_v34, %v4389_v27  ;;  %v4390_v23 = vadd.f32 %v8183_v7, %v4351_v61 }
 0x229   : > { %v4483_v62 = vadd.f32 %v5228_v51, %v4387_v13  ;;  %v4388_v41 = vadd.f32 %v8183_v7, %v4349_v4  ;;  %v5807_v49 = vpop.f32.mrb[12].mxu1 }
 0x22a   : > { %v4517_v46 = vmax.f32 %v4485_v14, 0.0  ;;  %v4486_v44 = vadd.f32 %v5233_v0, %v4390_v23  ;;  %v5635_v56 = vpop.f32.mrb[140].mxu0  ;;  %v4270_v36 = vpop.f32.mrb[13].mxu1 }
 0x22b   : > { %v4515_v52 = vmax.f32 %v4483_v62, 0.0  ;;  %v4484_v35 = vadd.f32 %v5229_v1, %v4388_v41  ;;  %v5636_v42 = vpop.f32.mrb[141].mxu0  ;;  %v5930_v30 = vadd.f32 %v5929_v2, %v4270_v36  ;;  %v5808_v18 = vpop.f32.mrb[14].mxu1 }
 0x22c   : > { %4549 = vst [vmem:[%s8208_s24 + $0xd0] sm:$0xff] %v4517_v46  ;;  %v4518_v11 = vmax.f32 %v4486_v44, 0.0  ;;  %v5637_v15 = vadd.f32 %v5636_v42, %v5635_v56  ;;  %v5638_v37 = vpop.f32.mrb[142].mxu0  ;;  %v4273_v19 = vpop.f32.mrb[15].mxu1 }
 0x22d   : > { %4547 = vst [vmem:[%s8208_s24 + $0xc0] sm:$0xff] %v4515_v52  ;;  %v4516_v48 = vmax.f32 %v4484_v35, 0.0  ;;  %v4352_v16 = vmul.f32 %v5930_v30, %v8176_v33  ;;  %v5639_v9 = vpop.f32.mrb[143].mxu0  ;;  %v5936_v50 = vadd.f32 %v5935_v5, %v4273_v19 }
 0x22e   : > { %4550 = vst [vmem:[%s8208_s24 + $0xd8] sm:$0xff] %v4518_v11  ;;  %v5926_v55 = vadd.f32 %v8116_v38, %v5637_v15  ;;  %v5640_v57 = vadd.f32 %v5639_v9, %v5638_v37  ;;  %v5240_v38 = vunpack.c.l.bf16 %v5256_v26 }
 0x22f   : > { %4548 = vst [vmem:[%s8208_s24 + $0xc8] sm:$0xff] %v4516_v48  ;;  %v4391_v17 = vadd.f32 %v8183_v7, %v4352_v16  ;;  %v4353_v28 = vmul.f32 %v5936_v50, %v8176_v33 }
 0x230   : > { %v5927_v3 = vadd.f32 %v5926_v55, %v5807_v49  ;;  %v5932_v45 = vadd.f32 %v8119_v10, %v5640_v57 }
 0x231   : > { %v4487_v6 = vadd.f32 %v5236_v21, %v4391_v17  ;;  %v4392_v29 = vadd.f32 %v8183_v7, %v4353_v28 }
 0x232   : > { %v4354_v39 = vmul.f32 %v5927_v3, %v8176_v33  ;;  %v5933_v31 = vadd.f32 %v5932_v45, %v5808_v18 }
 0x233   : > { %v4519_v32 = vmax.f32 %v4487_v6, 0.0  ;;  %v4488_v34 = vadd.f32 %v5237_v47, %v4392_v29 }
 0x234   : > { %v4393_v58 = vadd.f32 %v8183_v7, %v4354_v39  ;;  %v4355_v60 = vmul.f32 %v5933_v31, %v8176_v33 }
 0x235   : > { %4551 = vst [vmem:[%s8208_s24 + $0xe0] sm:$0xff] %v4519_v32  ;;  %v4520_v10 = vmax.f32 %v4488_v34, 0.0 }
 0x236   : > { %v4489_v24 = vadd.f32 %v5240_v38, %v4393_v58  ;;  %v4394_v54 = vadd.f32 %v8183_v7, %v4355_v60 }
 0x237   : > { %4552 = vst [vmem:[%s8208_s24 + $0xe8] sm:$0xff] %v4520_v10 }
 0x238   : > { %v4521_v25 = vmax.f32 %v4489_v24, 0.0  ;;  %v4490_v22 = vadd.f32 %v5241_v40, %v4394_v54 }
 0x23a   : > { %4553 = vst [vmem:[%s8208_s24 + $0xf0] sm:$0xff] %v4521_v25  ;;  %v4522_v33 = vmax.f32 %v4490_v22, 0.0 }
 0x23c   : > { %4554 = vst [vmem:[%s8208_s24 + $0xf8] sm:$0xff] %v4522_v33 }
 0x23d   : > { %6223 = shalt.err (!%p6220_p5)
}
 0x23e   : > { %s6224_s14 = scalar_lea.hbm %s8360_s7, 4096  ;;  %s6228_s16 = scalar_lea.hbm %s8419_s5, 8192 }
 0x23f   : > { %p6225_p6 = scmp.ne.s32.totalorder %s8360_s7, %s6224_s14  ;;  %p6229_p10 = scmp.lt.u32.totalorder %s8360_s7, %s8419_s5 }
 0x240   : > { %p6230_p11 = scmp.lt.u32.totalorder %s6228_s16, %s6224_s14  ;;  %p6232_p13 = scmp.lt.u32.totalorder %s6224_s14, %s8360_s7 }
 0x241   : > { %p6226_p7 = pnand %p6225_p6, %p6363_p4 }
 0x242   : > { %p6231_p12 = por %p6230_p11, %p6229_p10 }
 0x243   : > { %p6227_p9 = pneg %p6226_p7 }
 0x244   : > { %p6233_p0 = por %p6232_p13, %p6231_p12 }
 0x246   : > { %p6234_p1 = pnand %p6233_p0, %p6227_p9 }
 0x248   : > { %6237 = shalt.err (!%p6234_p1)
}
 0x249   : > { %s6291_s25 = smov 128   ;;  %s6292_s8 = smov 8  }
 0x24a   : > { %5986 = dma.vmem_to_hbm [thread:$0]  (%p6363_p4), %s8362_s29, 4096, %s8360_s7, %s8368_s10, %s6291_s25, %s6291_s25, %s6292_s8  }
 0x24b PF: > { %p5992_p2 = scmp.ge.s32.totalorder %s6288_s23, 2  ;;  %s4586_s9 = sand.u32 1, %s6268_s18  }
 0x24c   : > { %s4587_s21 = scalar_lea.sflag [#allocation3], %s4586_s9 }
 0x24d   : > { %p5989_p3 = pnand %p5992_p2, %p6370_p8 }
 0x24f   : > { %6263 = dma.done.wait (!%p5989_p3), %s4587_s21, 4096  }
 0x250   : > { %6265 = vsyncadd (!%p5989_p3), %s4587_s21, 4294963200  ;;  %s18_s23 = sadd.s32 1, %s6288_s23   ;;  %s8426_s18 = smov %s6272_s19 }
 0x251   : > { %p15_p5 = scmp.ge.s32.totalorder %s18_s23, 4   ;;  %s8427_s19 = smov %s6276_s20 }
 0x252   : > { %s8428_s20 = smov %s6376_s6  ;;  %s8429_s21 = smov %s6284_s22 }
 0x253   : > { %s8430_s22 = smov %s8432_s26  ;;  %17 = sbr.rel (!%p15_p5) target bundleno = 4 (0x4), region = 83 }
 0x25a   :  { %4592 = vsyncpa [#allocation3], 1 }
 0x25b   :  { %4594 = vsyncpa [#allocation3 + $0x1], 1 }

</bundles_post_ra>
